<compile_context>
chip_gen: v7x
topology: tpu7x:2x2x1
jax: 0.10.0
libtpu: 0.0.40
codegen_flags: <defaults>
</compile_context>

<pallas_src>
import jax
import jax.numpy as jnp
from jax import lax
from jax.experimental import pallas as pl
from jax.experimental.pallas import tpu as pltpu


def _const_spec(shape):
    nd = len(shape)
    return pl.BlockSpec(shape, lambda i, tf, _nd=nd: (0,) * _nd)


# -----------------------------------------------------------------------------
# Fused encoder + attention decoder kernel (single invocation, loops unrolled)
# -----------------------------------------------------------------------------
def seq2seq_kernel(tf_ref,                       # SMEM (T,) int32  (scalar prefetch)
                   src_ref, trg_ref,             # VMEM (B,S), (B,T) int32
                   eemb_ref,                     # (Vin, E)
                   wxf_ref, whf_ref, bf_ref,     # fwd enc LSTM (E,4H),(H,4H),(1,4H)
                   wxb_ref, whb_ref, bb_ref,     # bwd enc LSTM
                   fhw_ref, fhb_ref, fcw_ref, fcb_ref,   # fc_hidden / fc_cell
                   demb_ref,                     # (Vout, Ed)
                   weh_ref, wee_ref, be_ref,     # energy Linear(3H->1) split
                   wc_ref, we_ref, wh_ref, bl_ref,       # dec LSTM split weights
                   wfc_ref, bfc_ref,             # output projection
                   out_ref,                      # (T, B, Vout)
                   enc_sc):                      # VMEM scratch (B, S, 2H)
    f32 = jnp.float32
    B, S = src_ref.shape
    T = trg_ref.shape[1]
    H = whf_ref.shape[0]
    Vout = demb_ref.shape[0]

    def embed(tok_col, table_ref):
        v = table_ref.shape[0]
        onehot = (lax.broadcasted_iota(jnp.int32, (tok_col.shape[0], v), 1)
                  == tok_col).astype(f32)
        return jnp.dot(onehot, table_ref[...], preferred_element_type=f32)

    def lstm(gates, c_prev):
        i_g = jax.nn.sigmoid(gates[:, 0 * H:1 * H])
        f_g = jax.nn.sigmoid(gates[:, 1 * H:2 * H])
        g_g = jnp.tanh(gates[:, 2 * H:3 * H])
        o_g = jax.nn.sigmoid(gates[:, 3 * H:4 * H])
        c_new = f_g * c_prev + i_g * g_g
        return o_g * jnp.tanh(c_new), c_new

    # ---------------- bidirectional encoder (fully unrolled) -----------------
    h_f = jnp.zeros((B, H), f32)
    c_f = jnp.zeros((B, H), f32)
    h_b = jnp.zeros((B, H), f32)
    c_b = jnp.zeros((B, H), f32)
    for t in range(S):
        rb = S - 1 - t
        x_f = embed(src_ref[:, t:t + 1], eemb_ref)                     # (B, E)
        gates_f = (jnp.dot(x_f, wxf_ref[...], preferred_element_type=f32)
                   + jnp.dot(h_f, whf_ref[...], preferred_element_type=f32)
                   + bf_ref[...])
        h_f, c_f = lstm(gates_f, c_f)

        x_b = embed(src_ref[:, rb:rb + 1], eemb_ref)
        gates_b = (jnp.dot(x_b, wxb_ref[...], preferred_element_type=f32)
                   + jnp.dot(h_b, whb_ref[...], preferred_element_type=f32)
                   + bb_ref[...])
        h_b, c_b = lstm(gates_b, c_b)

        # Write encoder states directly in the (B, S, 2H) attention layout.
        for b in range(B):
            enc_sc[b, pl.ds(t, 1), 0:H] = h_f[b:b + 1, :]
            enc_sc[b, pl.ds(rb, 1), H:2 * H] = h_b[b:b + 1, :]

    # fc_hidden / fc_cell on concat(final fwd, final bwd) via split matmuls
    hidden = (jnp.dot(h_f, fhw_ref[0:H, :], preferred_element_type=f32)
              + jnp.dot(h_b, fhw_ref[H:2 * H, :], preferred_element_type=f32)
              + fhb_ref[...])
    cell = (jnp.dot(c_f, fcw_ref[0:H, :], preferred_element_type=f32)
            + jnp.dot(c_b, fcw_ref[H:2 * H, :], preferred_element_type=f32)
            + fcb_ref[...])

    # ---------------- attention decoder (fully unrolled) ---------------------
    enc_all = enc_sc[...]                                  # (B, S, 2H) resident
    enc_slabs = [enc_sc[b] for b in range(B)]              # per-batch (S, 2H)
    # Encoder-side energy term + bias is constant across decode steps.
    e_base = jnp.sum(enc_all * wee_ref[...], axis=-1) + be_ref[...]    # (B, S)

    out_ref[pl.ds(0, 1)] = jnp.zeros((1, B, Vout), out_ref.dtype)      # outputs[0]=0
    iota_v = lax.broadcasted_iota(jnp.int32, (B, Vout), 1)

    h = hidden
    c = cell
    emb = embed(trg_ref[:, 0:1], demb_ref)                 # first input = trg[0]

    for t in range(1, T):
        # attention energies: relu(Linear([h ; enc_state])), softmax over S
        e_h = jnp.sum(h * weh_ref[...], axis=-1, keepdims=True)        # (B, 1)
        energy = jnp.maximum(e_h + e_base, 0.0)                        # (B, S)
        energy = energy - jnp.max(energy, axis=-1, keepdims=True)
        p_exp = jnp.exp(energy)
        attn = p_exp * pl.reciprocal(
            jnp.sum(p_exp, axis=-1, keepdims=True), approx=True)       # (B, S)

        # context vector via per-batch MXU matmuls (B is tiny and static)
        context = jnp.concatenate(
            [jnp.dot(attn[b:b + 1, :], enc_slabs[b],
                     preferred_element_type=f32) for b in range(B)],
            axis=0)                                                    # (B, 2H)

        # decoder LSTM cell with split weights (no per-step lane concat)
        gates = (jnp.dot(context, wc_ref[...], preferred_element_type=f32)
                 + jnp.dot(emb, we_ref[...], preferred_element_type=f32)
                 + jnp.dot(h, wh_ref[...], preferred_element_type=f32)
                 + bl_ref[...])
        h, c = lstm(gates, c)

        # output projection -> outputs[t]
        logits = (jnp.dot(h, wfc_ref[...], preferred_element_type=f32)
                  + bfc_ref[...])                                      # (B, V)
        out_ref[pl.ds(t, 1)] = logits.reshape(1, B, Vout).astype(out_ref.dtype)

        # next input token: teacher forcing vs in-kernel argmax
        max_l = jnp.max(logits, axis=-1, keepdims=True)
        top1 = jnp.min(jnp.where(logits == max_l, iota_v, Vout),
                       axis=-1, keepdims=True)                         # (B, 1)
        nxt = jnp.where(tf_ref[t] > 0, trg_ref[:, t:t + 1], top1)      # (B, 1)
        emb = embed(nxt, demb_ref)


# -----------------------------------------------------------------------------
# Wrapper: full Seq2Seq forward (mirrors the PyTorch module's forward)
# -----------------------------------------------------------------------------
def seq2seq_forward(src, trg, params, teacher_forcing_ratio=0.5, *, rng_key):
    S, B = src.shape
    T = trg.shape[0]
    H = params['fc_hid_w'].shape[1]
    Vout = params['dec_embed'].shape[0]

    # Teacher-forcing decisions as a precomputed int32 mask (one Bernoulli draw
    # per output step) instead of host random.random() per step.
    tf_mask = (jax.random.uniform(rng_key, (T,)) < teacher_forcing_ratio
               ).astype(jnp.int32)
    # Batch-major token layouts so the kernel reads a (B,1) column per step.
    src_bt = jnp.transpose(src).astype(jnp.int32)          # (B, S)
    trg_bt = jnp.transpose(trg).astype(jnp.int32)          # (B, T)

    order = ['enc_embed', 'enc_wx_f', 'enc_wh_f', 'enc_b_f',
             'enc_wx_b', 'enc_wh_b', 'enc_b_b',
             'fc_hid_w', 'fc_hid_b', 'fc_cell_w', 'fc_cell_b',
             'dec_embed', 'dec_weh', 'dec_wee', 'dec_be',
             'dec_wc', 'dec_we', 'dec_wh', 'dec_b', 'dec_wfc', 'dec_bfc']
    param_args = [params[k] for k in order]

    in_specs = ([_const_spec(src_bt.shape), _const_spec(trg_bt.shape)]
                + [_const_spec(p.shape) for p in param_args])

    return pl.pallas_call(
        seq2seq_kernel,
        out_shape=jax.ShapeDtypeStruct((T, B, Vout), jnp.float32),
        grid_spec=pltpu.PrefetchScalarGridSpec(
            num_scalar_prefetch=1,
            grid=(1,),
            in_specs=in_specs,
            out_specs=_const_spec((T, B, Vout)),
            scratch_shapes=[pltpu.VMEM((B, S, 2 * H), jnp.float32)]),
        compiler_params=pltpu.CompilerParams(
            dimension_semantics=("arbitrary",)),
    )(tf_mask, src_bt, trg_bt, *param_args)


# -----------------------------------------------------------------------------
# Deterministic parameter init (split per-operand weight layout)
# -----------------------------------------------------------------------------
def init_params(key, in_vocab, out_vocab, emb, emb_dec, hid):
    ks = iter(jax.random.split(key, 32))
    n = lambda shape: jax.random.normal(next(ks), shape, jnp.float32) * 0.1
    return {
        'enc_embed': n((in_vocab, emb)),
        # encoder LSTMs: gates = x @ Wx + h @ Wh + b   (combined bias)
        'enc_wx_f': n((emb, 4 * hid)), 'enc_wh_f': n((hid, 4 * hid)),
        'enc_b_f': n((1, 4 * hid)),
        'enc_wx_b': n((emb, 4 * hid)), 'enc_wh_b': n((hid, 4 * hid)),
        'enc_b_b': n((1, 4 * hid)),
        'fc_hid_w': n((2 * hid, hid)), 'fc_hid_b': n((1, hid)),
        'fc_cell_w': n((2 * hid, hid)), 'fc_cell_b': n((1, hid)),
        'dec_embed': n((out_vocab, emb_dec)),
        # energy Linear(3H -> 1) split: weh acts on h, wee on encoder state
        'dec_weh': n((1, hid)), 'dec_wee': n((1, 2 * hid)), 'dec_be': n((1, 1)),
        # decoder LSTM: gates = ctx @ Wc + emb @ We + h @ Wh + b
        'dec_wc': n((2 * hid, 4 * hid)), 'dec_we': n((emb_dec, 4 * hid)),
        'dec_wh': n((hid, 4 * hid)), 'dec_b': n((1, 4 * hid)),
        'dec_wfc': n((hid, out_vocab)), 'dec_bfc': n((1, out_vocab)),
    }


if __name__ == "__main__":
    SRC_LEN, TRG_LEN, BATCH = 10, 8, 2
    IN_VOCAB, OUT_VOCAB = 24, 24
    EMB, EMB_DEC, HID = 16, 16, 32

    key = jax.random.PRNGKey(0)
    kp, ks, kt, kf = jax.random.split(key, 4)

    params = init_params(kp, IN_VOCAB, OUT_VOCAB, EMB, EMB_DEC, HID)
    src = jax.random.randint(ks, (SRC_LEN, BATCH), 0, IN_VOCAB, jnp.int32)
    trg = jax.random.randint(kt, (TRG_LEN, BATCH), 0, OUT_VOCAB, jnp.int32)

    forward = jax.jit(seq2seq_forward)
    outputs = forward(src, trg, params, 0.5, rng_key=kf)
    outputs = jax.block_until_ready(outputs)

    assert outputs.shape == (TRG_LEN, BATCH, OUT_VOCAB)
    assert bool(jnp.all(jnp.isfinite(outputs)))
    assert bool(jnp.all(outputs[0] == 0.0))   # outputs[0] stays zero, as in PyTorch
    print("KERNEL_OK")
</pallas_src>

<mosaic_0001>
module attributes {stable_mosaic.version = 11 : i64} {
  func.func @seq2seq_kernel(%arg0: i32, %arg1: memref<8xi32, #tpu.memory_space<smem>>, %arg2: memref<2x10xi32, #tpu.memory_space<vmem>>, %arg3: memref<2x8xi32, #tpu.memory_space<vmem>>, %arg4: memref<24x16xf32, #tpu.memory_space<vmem>>, %arg5: memref<16x128xf32, #tpu.memory_space<vmem>>, %arg6: memref<32x128xf32, #tpu.memory_space<vmem>>, %arg7: memref<1x128xf32, #tpu.memory_space<vmem>>, %arg8: memref<16x128xf32, #tpu.memory_space<vmem>>, %arg9: memref<32x128xf32, #tpu.memory_space<vmem>>, %arg10: memref<1x128xf32, #tpu.memory_space<vmem>>, %arg11: memref<64x32xf32, #tpu.memory_space<vmem>>, %arg12: memref<1x32xf32, #tpu.memory_space<vmem>>, %arg13: memref<64x32xf32, #tpu.memory_space<vmem>>, %arg14: memref<1x32xf32, #tpu.memory_space<vmem>>, %arg15: memref<24x16xf32, #tpu.memory_space<vmem>>, %arg16: memref<1x32xf32, #tpu.memory_space<vmem>>, %arg17: memref<1x64xf32, #tpu.memory_space<vmem>>, %arg18: memref<1x1xf32, #tpu.memory_space<vmem>>, %arg19: memref<64x128xf32, #tpu.memory_space<vmem>>, %arg20: memref<16x128xf32, #tpu.memory_space<vmem>>, %arg21: memref<32x128xf32, #tpu.memory_space<vmem>>, %arg22: memref<1x128xf32, #tpu.memory_space<vmem>>, %arg23: memref<32x24xf32, #tpu.memory_space<vmem>>, %arg24: memref<1x24xf32, #tpu.memory_space<vmem>>, %arg25: memref<8x2x24xf32, #tpu.memory_space<vmem>>, %arg26: memref<2x10x64xf32, #tpu.memory_space<vmem>>) attributes {dimension_semantics = [#tpu.dimension_semantics<arbitrary>], iteration_bounds = array<i64: 1>, scalar_prefetch = 1 : i64, scratch_operands = 1 : i64, tpu.core_type = #tpu.core_type<tc>, window_params = [{pipeline_mode = #tpu.pipeline_mode<synchronous>, transform_indices = @transform_0, window_bounds = array<i64: 2, 10>}, {pipeline_mode = #tpu.pipeline_mode<synchronous>, transform_indices = @transform_1, window_bounds = array<i64: 2, 8>}, {pipeline_mode = #tpu.pipeline_mode<synchronous>, transform_indices = @transform_2, window_bounds = array<i64: 24, 16>}, {pipeline_mode = #tpu.pipeline_mode<synchronous>, transform_indices = @transform_3, window_bounds = array<i64: 16, 128>}, {pipeline_mode = #tpu.pipeline_mode<synchronous>, transform_indices = @transform_4, window_bounds = array<i64: 32, 128>}, {pipeline_mode = #tpu.pipeline_mode<synchronous>, transform_indices = @transform_5, window_bounds = array<i64: 1, 128>}, {pipeline_mode = #tpu.pipeline_mode<synchronous>, transform_indices = @transform_6, window_bounds = array<i64: 16, 128>}, {pipeline_mode = #tpu.pipeline_mode<synchronous>, transform_indices = @transform_7, window_bounds = array<i64: 32, 128>}, {pipeline_mode = #tpu.pipeline_mode<synchronous>, transform_indices = @transform_8, window_bounds = array<i64: 1, 128>}, {pipeline_mode = #tpu.pipeline_mode<synchronous>, transform_indices = @transform_9, window_bounds = array<i64: 64, 32>}, {pipeline_mode = #tpu.pipeline_mode<synchronous>, transform_indices = @transform_10, window_bounds = array<i64: 1, 32>}, {pipeline_mode = #tpu.pipeline_mode<synchronous>, transform_indices = @transform_11, window_bounds = array<i64: 64, 32>}, {pipeline_mode = #tpu.pipeline_mode<synchronous>, transform_indices = @transform_12, window_bounds = array<i64: 1, 32>}, {pipeline_mode = #tpu.pipeline_mode<synchronous>, transform_indices = @transform_13, window_bounds = array<i64: 24, 16>}, {pipeline_mode = #tpu.pipeline_mode<synchronous>, transform_indices = @transform_14, window_bounds = array<i64: 1, 32>}, {pipeline_mode = #tpu.pipeline_mode<synchronous>, transform_indices = @transform_15, window_bounds = array<i64: 1, 64>}, {pipeline_mode = #tpu.pipeline_mode<synchronous>, transform_indices = @transform_16, window_bounds = array<i64: 1, 1>}, {pipeline_mode = #tpu.pipeline_mode<synchronous>, transform_indices = @transform_17, window_bounds = array<i64: 64, 128>}, {pipeline_mode = #tpu.pipeline_mode<synchronous>, transform_indices = @transform_18, window_bounds = array<i64: 16, 128>}, {pipeline_mode = #tpu.pipeline_mode<synchronous>, transform_indices = @transform_19, window_bounds = array<i64: 32, 128>}, {pipeline_mode = #tpu.pipeline_mode<synchronous>, transform_indices = @transform_20, window_bounds = array<i64: 1, 128>}, {pipeline_mode = #tpu.pipeline_mode<synchronous>, transform_indices = @transform_21, window_bounds = array<i64: 32, 24>}, {pipeline_mode = #tpu.pipeline_mode<synchronous>, transform_indices = @transform_22, window_bounds = array<i64: 1, 24>}, {pipeline_mode = #tpu.pipeline_mode<synchronous>, transform_indices = @transform_23, window_bounds = array<i64: 8, 2, 24>}]} {
    %cst = arith.constant 0.000000e+00 : f32
    %0 = vector.broadcast %cst : f32 to vector<2x32xf32>
    %cst_0 = arith.constant 0.000000e+00 : f32
    %1 = vector.broadcast %cst_0 : f32 to vector<2x32xf32>
    %cst_1 = arith.constant 0.000000e+00 : f32
    %2 = vector.broadcast %cst_1 : f32 to vector<2x32xf32>
    %cst_2 = arith.constant 0.000000e+00 : f32
    %3 = vector.broadcast %cst_2 : f32 to vector<2x32xf32>
    %c0 = arith.constant 0 : index
    %c0_3 = arith.constant 0 : index
    %4 = vector.load %arg2[%c0, %c0_3] : memref<2x10xi32, #tpu.memory_space<vmem>>, vector<2x1xi32>
    %5 = tpu.iota {dimensions = array<i32: 1>} : vector<2x24xi32>
    %6 = vector.broadcast %4 : vector<2x1xi32> to vector<2x24xi32>
    %7 = arith.cmpi eq, %5, %6 : vector<2x24xi32>
    %8 = arith.extui %7 : vector<2x24xi1> to vector<2x24xi32>
    %9 = arith.sitofp %8 : vector<2x24xi32> to vector<2x24xf32>
    %c0_4 = arith.constant 0 : index
    %c0_5 = arith.constant 0 : index
    %10 = vector.load %arg4[%c0_4, %c0_5] : memref<24x16xf32, #tpu.memory_space<vmem>>, vector<24x16xf32>
    %cst_6 = arith.constant dense<0.000000e+00> : vector<2x16xf32>
    %11 = tpu.matmul %9, %10, %cst_6 {dimension_numbers = #tpu.dot_dimension_numbers<[1], [0], [0], [1], [0, 0, 1, 1], [], []>} : vector<2x24xf32>, vector<24x16xf32>, vector<2x16xf32> -> vector<2x16xf32>
    %c0_7 = arith.constant 0 : index
    %c0_8 = arith.constant 0 : index
    %12 = vector.load %arg5[%c0_7, %c0_8] : memref<16x128xf32, #tpu.memory_space<vmem>>, vector<16x128xf32>
    %cst_9 = arith.constant dense<0.000000e+00> : vector<2x128xf32>
    %13 = tpu.matmul %11, %12, %cst_9 {dimension_numbers = #tpu.dot_dimension_numbers<[1], [0], [0], [1], [0, 0, 1, 1], [], []>} : vector<2x16xf32>, vector<16x128xf32>, vector<2x128xf32> -> vector<2x128xf32>
    %c0_10 = arith.constant 0 : index
    %c0_11 = arith.constant 0 : index
    %14 = vector.load %arg6[%c0_10, %c0_11] : memref<32x128xf32, #tpu.memory_space<vmem>>, vector<32x128xf32>
    %cst_12 = arith.constant dense<0.000000e+00> : vector<2x128xf32>
    %15 = tpu.matmul %0, %14, %cst_12 {dimension_numbers = #tpu.dot_dimension_numbers<[1], [0], [0], [1], [0, 0, 1, 1], [], []>} : vector<2x32xf32>, vector<32x128xf32>, vector<2x128xf32> -> vector<2x128xf32>
    %16 = arith.addf %13, %15 : vector<2x128xf32>
    %c0_13 = arith.constant 0 : index
    %c0_14 = arith.constant 0 : index
    %17 = vector.load %arg7[%c0_13, %c0_14] : memref<1x128xf32, #tpu.memory_space<vmem>>, vector<1x128xf32>
    %18 = vector.broadcast %17 : vector<1x128xf32> to vector<2x128xf32>
    %19 = arith.addf %16, %18 : vector<2x128xf32>
    %20 = vector.extract_strided_slice %19 {offsets = [0, 0], sizes = [2, 32], strides = [1, 1]} : vector<2x128xf32> to vector<2x32xf32>
    %21 = arith.negf %20 : vector<2x32xf32>
    %22 = math.exp %21 : vector<2x32xf32>
    %cst_15 = arith.constant 1.000000e+00 : f32
    %23 = vector.broadcast %cst_15 : f32 to vector<2x32xf32>
    %24 = arith.addf %23, %22 : vector<2x32xf32>
    %25 = arith.divf %23, %24 : vector<2x32xf32>
    %26 = vector.extract_strided_slice %19 {offsets = [0, 32], sizes = [2, 32], strides = [1, 1]} : vector<2x128xf32> to vector<2x32xf32>
    %27 = arith.negf %26 : vector<2x32xf32>
    %28 = math.exp %27 : vector<2x32xf32>
    %cst_16 = arith.constant 1.000000e+00 : f32
    %29 = vector.broadcast %cst_16 : f32 to vector<2x32xf32>
    %30 = arith.addf %29, %28 : vector<2x32xf32>
    %31 = arith.divf %29, %30 : vector<2x32xf32>
    %32 = vector.extract_strided_slice %19 {offsets = [0, 64], sizes = [2, 32], strides = [1, 1]} : vector<2x128xf32> to vector<2x32xf32>
    %33 = math.tanh %32 : vector<2x32xf32>
    %34 = vector.extract_strided_slice %19 {offsets = [0, 96], sizes = [2, 32], strides = [1, 1]} : vector<2x128xf32> to vector<2x32xf32>
    %35 = arith.negf %34 : vector<2x32xf32>
    %36 = math.exp %35 : vector<2x32xf32>
    %cst_17 = arith.constant 1.000000e+00 : f32
    %37 = vector.broadcast %cst_17 : f32 to vector<2x32xf32>
    %38 = arith.addf %37, %36 : vector<2x32xf32>
    %39 = arith.divf %37, %38 : vector<2x32xf32>
    %40 = arith.mulf %31, %1 : vector<2x32xf32>
    %41 = arith.mulf %25, %33 : vector<2x32xf32>
    %42 = arith.addf %40, %41 : vector<2x32xf32>
    %43 = math.tanh %42 : vector<2x32xf32>
    %44 = arith.mulf %39, %43 : vector<2x32xf32>
    %c0_18 = arith.constant 0 : index
    %c9 = arith.constant 9 : index
    %45 = vector.load %arg2[%c0_18, %c9] : memref<2x10xi32, #tpu.memory_space<vmem>>, vector<2x1xi32>
    %46 = tpu.iota {dimensions = array<i32: 1>} : vector<2x24xi32>
    %47 = vector.broadcast %45 : vector<2x1xi32> to vector<2x24xi32>
    %48 = arith.cmpi eq, %46, %47 : vector<2x24xi32>
    %49 = arith.extui %48 : vector<2x24xi1> to vector<2x24xi32>
    %50 = arith.sitofp %49 : vector<2x24xi32> to vector<2x24xf32>
    %c0_19 = arith.constant 0 : index
    %c0_20 = arith.constant 0 : index
    %51 = vector.load %arg4[%c0_19, %c0_20] : memref<24x16xf32, #tpu.memory_space<vmem>>, vector<24x16xf32>
    %cst_21 = arith.constant dense<0.000000e+00> : vector<2x16xf32>
    %52 = tpu.matmul %50, %51, %cst_21 {dimension_numbers = #tpu.dot_dimension_numbers<[1], [0], [0], [1], [0, 0, 1, 1], [], []>} : vector<2x24xf32>, vector<24x16xf32>, vector<2x16xf32> -> vector<2x16xf32>
    %c0_22 = arith.constant 0 : index
    %c0_23 = arith.constant 0 : index
    %53 = vector.load %arg8[%c0_22, %c0_23] : memref<16x128xf32, #tpu.memory_space<vmem>>, vector<16x128xf32>
    %cst_24 = arith.constant dense<0.000000e+00> : vector<2x128xf32>
    %54 = tpu.matmul %52, %53, %cst_24 {dimension_numbers = #tpu.dot_dimension_numbers<[1], [0], [0], [1], [0, 0, 1, 1], [], []>} : vector<2x16xf32>, vector<16x128xf32>, vector<2x128xf32> -> vector<2x128xf32>
    %c0_25 = arith.constant 0 : index
    %c0_26 = arith.constant 0 : index
    %55 = vector.load %arg9[%c0_25, %c0_26] : memref<32x128xf32, #tpu.memory_space<vmem>>, vector<32x128xf32>
    %cst_27 = arith.constant dense<0.000000e+00> : vector<2x128xf32>
    %56 = tpu.matmul %2, %55, %cst_27 {dimension_numbers = #tpu.dot_dimension_numbers<[1], [0], [0], [1], [0, 0, 1, 1], [], []>} : vector<2x32xf32>, vector<32x128xf32>, vector<2x128xf32> -> vector<2x128xf32>
    %57 = arith.addf %54, %56 : vector<2x128xf32>
    %c0_28 = arith.constant 0 : index
    %c0_29 = arith.constant 0 : index
    %58 = vector.load %arg10[%c0_28, %c0_29] : memref<1x128xf32, #tpu.memory_space<vmem>>, vector<1x128xf32>
    %59 = vector.broadcast %58 : vector<1x128xf32> to vector<2x128xf32>
    %60 = arith.addf %57, %59 : vector<2x128xf32>
    %61 = vector.extract_strided_slice %60 {offsets = [0, 0], sizes = [2, 32], strides = [1, 1]} : vector<2x128xf32> to vector<2x32xf32>
    %62 = arith.negf %61 : vector<2x32xf32>
    %63 = math.exp %62 : vector<2x32xf32>
    %cst_30 = arith.constant 1.000000e+00 : f32
    %64 = vector.broadcast %cst_30 : f32 to vector<2x32xf32>
    %65 = arith.addf %64, %63 : vector<2x32xf32>
    %66 = arith.divf %64, %65 : vector<2x32xf32>
    %67 = vector.extract_strided_slice %60 {offsets = [0, 32], sizes = [2, 32], strides = [1, 1]} : vector<2x128xf32> to vector<2x32xf32>
    %68 = arith.negf %67 : vector<2x32xf32>
    %69 = math.exp %68 : vector<2x32xf32>
    %cst_31 = arith.constant 1.000000e+00 : f32
    %70 = vector.broadcast %cst_31 : f32 to vector<2x32xf32>
    %71 = arith.addf %70, %69 : vector<2x32xf32>
    %72 = arith.divf %70, %71 : vector<2x32xf32>
    %73 = vector.extract_strided_slice %60 {offsets = [0, 64], sizes = [2, 32], strides = [1, 1]} : vector<2x128xf32> to vector<2x32xf32>
    %74 = math.tanh %73 : vector<2x32xf32>
    %75 = vector.extract_strided_slice %60 {offsets = [0, 96], sizes = [2, 32], strides = [1, 1]} : vector<2x128xf32> to vector<2x32xf32>
    %76 = arith.negf %75 : vector<2x32xf32>
    %77 = math.exp %76 : vector<2x32xf32>
    %cst_32 = arith.constant 1.000000e+00 : f32
    %78 = vector.broadcast %cst_32 : f32 to vector<2x32xf32>
    %79 = arith.addf %78, %77 : vector<2x32xf32>
    %80 = arith.divf %78, %79 : vector<2x32xf32>
    %81 = arith.mulf %72, %3 : vector<2x32xf32>
    %82 = arith.mulf %66, %74 : vector<2x32xf32>
    %83 = arith.addf %81, %82 : vector<2x32xf32>
    %84 = math.tanh %83 : vector<2x32xf32>
    %85 = arith.mulf %80, %84 : vector<2x32xf32>
    %86 = vector.extract_strided_slice %44 {offsets = [0, 0], sizes = [1, 32], strides = [1, 1]} : vector<2x32xf32> to vector<1x32xf32>
    %c0_33 = arith.constant 0 : index
    %c0_34 = arith.constant 0 : index
    %c0_35 = arith.constant 0 : index
    %87 = vector.load %arg26[%c0_33, %c0_34, %c0_35] : memref<2x10x64xf32, #tpu.memory_space<vmem>>, vector<1x1x32xf32>
    %88 = vector.shape_cast %87 : vector<1x1x32xf32> to vector<1x32xf32>
    %89 = vector.shape_cast %86 : vector<1x32xf32> to vector<1x1x32xf32>
    tpu.vector_store %arg26[%c0_33, %c0_34, %c0_35], %89 {strides = array<i32>} : memref<2x10x64xf32, #tpu.memory_space<vmem>>, vector<1x1x32xf32>,
    %90 = vector.extract_strided_slice %85 {offsets = [0, 0], sizes = [1, 32], strides = [1, 1]} : vector<2x32xf32> to vector<1x32xf32>
    %c0_36 = arith.constant 0 : index
    %c9_37 = arith.constant 9 : index
    %c32 = arith.constant 32 : index
    %91 = vector.load %arg26[%c0_36, %c9_37, %c32] : memref<2x10x64xf32, #tpu.memory_space<vmem>>, vector<1x1x32xf32>
    %92 = vector.shape_cast %91 : vector<1x1x32xf32> to vector<1x32xf32>
    %93 = vector.shape_cast %90 : vector<1x32xf32> to vector<1x1x32xf32>
    tpu.vector_store %arg26[%c0_36, %c9_37, %c32], %93 {strides = array<i32>} : memref<2x10x64xf32, #tpu.memory_space<vmem>>, vector<1x1x32xf32>,
    %94 = vector.extract_strided_slice %44 {offsets = [1, 0], sizes = [1, 32], strides = [1, 1]} : vector<2x32xf32> to vector<1x32xf32>
    %c1 = arith.constant 1 : index
    %c0_38 = arith.constant 0 : index
    %c0_39 = arith.constant 0 : index
    %95 = vector.load %arg26[%c1, %c0_38, %c0_39] : memref<2x10x64xf32, #tpu.memory_space<vmem>>, vector<1x1x32xf32>
    %96 = vector.shape_cast %95 : vector<1x1x32xf32> to vector<1x32xf32>
    %97 = vector.shape_cast %94 : vector<1x32xf32> to vector<1x1x32xf32>
    tpu.vector_store %arg26[%c1, %c0_38, %c0_39], %97 {strides = array<i32>} : memref<2x10x64xf32, #tpu.memory_space<vmem>>, vector<1x1x32xf32>,
    %98 = vector.extract_strided_slice %85 {offsets = [1, 0], sizes = [1, 32], strides = [1, 1]} : vector<2x32xf32> to vector<1x32xf32>
    %c1_40 = arith.constant 1 : index
    %c9_41 = arith.constant 9 : index
    %c32_42 = arith.constant 32 : index
    %99 = vector.load %arg26[%c1_40, %c9_41, %c32_42] : memref<2x10x64xf32, #tpu.memory_space<vmem>>, vector<1x1x32xf32>
    %100 = vector.shape_cast %99 : vector<1x1x32xf32> to vector<1x32xf32>
    %101 = vector.shape_cast %98 : vector<1x32xf32> to vector<1x1x32xf32>
    tpu.vector_store %arg26[%c1_40, %c9_41, %c32_42], %101 {strides = array<i32>} : memref<2x10x64xf32, #tpu.memory_space<vmem>>, vector<1x1x32xf32>,
    %c0_43 = arith.constant 0 : index
    %c1_44 = arith.constant 1 : index
    %102 = vector.load %arg2[%c0_43, %c1_44] : memref<2x10xi32, #tpu.memory_space<vmem>>, vector<2x1xi32>
    %103 = tpu.iota {dimensions = array<i32: 1>} : vector<2x24xi32>
    %104 = vector.broadcast %102 : vector<2x1xi32> to vector<2x24xi32>
    %105 = arith.cmpi eq, %103, %104 : vector<2x24xi32>
    %106 = arith.extui %105 : vector<2x24xi1> to vector<2x24xi32>
    %107 = arith.sitofp %106 : vector<2x24xi32> to vector<2x24xf32>
    %c0_45 = arith.constant 0 : index
    %c0_46 = arith.constant 0 : index
    %108 = vector.load %arg4[%c0_45, %c0_46] : memref<24x16xf32, #tpu.memory_space<vmem>>, vector<24x16xf32>
    %cst_47 = arith.constant dense<0.000000e+00> : vector<2x16xf32>
    %109 = tpu.matmul %107, %108, %cst_47 {dimension_numbers = #tpu.dot_dimension_numbers<[1], [0], [0], [1], [0, 0, 1, 1], [], []>} : vector<2x24xf32>, vector<24x16xf32>, vector<2x16xf32> -> vector<2x16xf32>
    %c0_48 = arith.constant 0 : index
    %c0_49 = arith.constant 0 : index
    %110 = vector.load %arg5[%c0_48, %c0_49] : memref<16x128xf32, #tpu.memory_space<vmem>>, vector<16x128xf32>
    %cst_50 = arith.constant dense<0.000000e+00> : vector<2x128xf32>
    %111 = tpu.matmul %109, %110, %cst_50 {dimension_numbers = #tpu.dot_dimension_numbers<[1], [0], [0], [1], [0, 0, 1, 1], [], []>} : vector<2x16xf32>, vector<16x128xf32>, vector<2x128xf32> -> vector<2x128xf32>
    %c0_51 = arith.constant 0 : index
    %c0_52 = arith.constant 0 : index
    %112 = vector.load %arg6[%c0_51, %c0_52] : memref<32x128xf32, #tpu.memory_space<vmem>>, vector<32x128xf32>
    %cst_53 = arith.constant dense<0.000000e+00> : vector<2x128xf32>
    %113 = tpu.matmul %44, %112, %cst_53 {dimension_numbers = #tpu.dot_dimension_numbers<[1], [0], [0], [1], [0, 0, 1, 1], [], []>} : vector<2x32xf32>, vector<32x128xf32>, vector<2x128xf32> -> vector<2x128xf32>
    %114 = arith.addf %111, %113 : vector<2x128xf32>
    %c0_54 = arith.constant 0 : index
    %c0_55 = arith.constant 0 : index
    %115 = vector.load %arg7[%c0_54, %c0_55] : memref<1x128xf32, #tpu.memory_space<vmem>>, vector<1x128xf32>
    %116 = vector.broadcast %115 : vector<1x128xf32> to vector<2x128xf32>
    %117 = arith.addf %114, %116 : vector<2x128xf32>
    %118 = vector.extract_strided_slice %117 {offsets = [0, 0], sizes = [2, 32], strides = [1, 1]} : vector<2x128xf32> to vector<2x32xf32>
    %119 = arith.negf %118 : vector<2x32xf32>
    %120 = math.exp %119 : vector<2x32xf32>
    %cst_56 = arith.constant 1.000000e+00 : f32
    %121 = vector.broadcast %cst_56 : f32 to vector<2x32xf32>
    %122 = arith.addf %121, %120 : vector<2x32xf32>
    %123 = arith.divf %121, %122 : vector<2x32xf32>
    %124 = vector.extract_strided_slice %117 {offsets = [0, 32], sizes = [2, 32], strides = [1, 1]} : vector<2x128xf32> to vector<2x32xf32>
    %125 = arith.negf %124 : vector<2x32xf32>
    %126 = math.exp %125 : vector<2x32xf32>
    %cst_57 = arith.constant 1.000000e+00 : f32
    %127 = vector.broadcast %cst_57 : f32 to vector<2x32xf32>
    %128 = arith.addf %127, %126 : vector<2x32xf32>
    %129 = arith.divf %127, %128 : vector<2x32xf32>
    %130 = vector.extract_strided_slice %117 {offsets = [0, 64], sizes = [2, 32], strides = [1, 1]} : vector<2x128xf32> to vector<2x32xf32>
    %131 = math.tanh %130 : vector<2x32xf32>
    %132 = vector.extract_strided_slice %117 {offsets = [0, 96], sizes = [2, 32], strides = [1, 1]} : vector<2x128xf32> to vector<2x32xf32>
    %133 = arith.negf %132 : vector<2x32xf32>
    %134 = math.exp %133 : vector<2x32xf32>
    %cst_58 = arith.constant 1.000000e+00 : f32
    %135 = vector.broadcast %cst_58 : f32 to vector<2x32xf32>
    %136 = arith.addf %135, %134 : vector<2x32xf32>
    %137 = arith.divf %135, %136 : vector<2x32xf32>
    %138 = arith.mulf %129, %42 : vector<2x32xf32>
    %139 = arith.mulf %123, %131 : vector<2x32xf32>
    %140 = arith.addf %138, %139 : vector<2x32xf32>
    %141 = math.tanh %140 : vector<2x32xf32>
    %142 = arith.mulf %137, %141 : vector<2x32xf32>
    %c0_59 = arith.constant 0 : index
    %c8 = arith.constant 8 : index
    %143 = vector.load %arg2[%c0_59, %c8] : memref<2x10xi32, #tpu.memory_space<vmem>>, vector<2x1xi32>
    %144 = tpu.iota {dimensions = array<i32: 1>} : vector<2x24xi32>
    %145 = vector.broadcast %143 : vector<2x1xi32> to vector<2x24xi32>
    %146 = arith.cmpi eq, %144, %145 : vector<2x24xi32>
    %147 = arith.extui %146 : vector<2x24xi1> to vector<2x24xi32>
    %148 = arith.sitofp %147 : vector<2x24xi32> to vector<2x24xf32>
    %c0_60 = arith.constant 0 : index
    %c0_61 = arith.constant 0 : index
    %149 = vector.load %arg4[%c0_60, %c0_61] : memref<24x16xf32, #tpu.memory_space<vmem>>, vector<24x16xf32>
    %cst_62 = arith.constant dense<0.000000e+00> : vector<2x16xf32>
    %150 = tpu.matmul %148, %149, %cst_62 {dimension_numbers = #tpu.dot_dimension_numbers<[1], [0], [0], [1], [0, 0, 1, 1], [], []>} : vector<2x24xf32>, vector<24x16xf32>, vector<2x16xf32> -> vector<2x16xf32>
    %c0_63 = arith.constant 0 : index
    %c0_64 = arith.constant 0 : index
    %151 = vector.load %arg8[%c0_63, %c0_64] : memref<16x128xf32, #tpu.memory_space<vmem>>, vector<16x128xf32>
    %cst_65 = arith.constant dense<0.000000e+00> : vector<2x128xf32>
    %152 = tpu.matmul %150, %151, %cst_65 {dimension_numbers = #tpu.dot_dimension_numbers<[1], [0], [0], [1], [0, 0, 1, 1], [], []>} : vector<2x16xf32>, vector<16x128xf32>, vector<2x128xf32> -> vector<2x128xf32>
    %c0_66 = arith.constant 0 : index
    %c0_67 = arith.constant 0 : index
    %153 = vector.load %arg9[%c0_66, %c0_67] : memref<32x128xf32, #tpu.memory_space<vmem>>, vector<32x128xf32>
    %cst_68 = arith.constant dense<0.000000e+00> : vector<2x128xf32>
    %154 = tpu.matmul %85, %153, %cst_68 {dimension_numbers = #tpu.dot_dimension_numbers<[1], [0], [0], [1], [0, 0, 1, 1], [], []>} : vector<2x32xf32>, vector<32x128xf32>, vector<2x128xf32> -> vector<2x128xf32>
    %155 = arith.addf %152, %154 : vector<2x128xf32>
    %c0_69 = arith.constant 0 : index
    %c0_70 = arith.constant 0 : index
    %156 = vector.load %arg10[%c0_69, %c0_70] : memref<1x128xf32, #tpu.memory_space<vmem>>, vector<1x128xf32>
    %157 = vector.broadcast %156 : vector<1x128xf32> to vector<2x128xf32>
    %158 = arith.addf %155, %157 : vector<2x128xf32>
    %159 = vector.extract_strided_slice %158 {offsets = [0, 0], sizes = [2, 32], strides = [1, 1]} : vector<2x128xf32> to vector<2x32xf32>
    %160 = arith.negf %159 : vector<2x32xf32>
    %161 = math.exp %160 : vector<2x32xf32>
    %cst_71 = arith.constant 1.000000e+00 : f32
    %162 = vector.broadcast %cst_71 : f32 to vector<2x32xf32>
    %163 = arith.addf %162, %161 : vector<2x32xf32>
    %164 = arith.divf %162, %163 : vector<2x32xf32>
    %165 = vector.extract_strided_slice %158 {offsets = [0, 32], sizes = [2, 32], strides = [1, 1]} : vector<2x128xf32> to vector<2x32xf32>
    %166 = arith.negf %165 : vector<2x32xf32>
    %167 = math.exp %166 : vector<2x32xf32>
    %cst_72 = arith.constant 1.000000e+00 : f32
    %168 = vector.broadcast %cst_72 : f32 to vector<2x32xf32>
    %169 = arith.addf %168, %167 : vector<2x32xf32>
    %170 = arith.divf %168, %169 : vector<2x32xf32>
    %171 = vector.extract_strided_slice %158 {offsets = [0, 64], sizes = [2, 32], strides = [1, 1]} : vector<2x128xf32> to vector<2x32xf32>
    %172 = math.tanh %171 : vector<2x32xf32>
    %173 = vector.extract_strided_slice %158 {offsets = [0, 96], sizes = [2, 32], strides = [1, 1]} : vector<2x128xf32> to vector<2x32xf32>
    %174 = arith.negf %173 : vector<2x32xf32>
    %175 = math.exp %174 : vector<2x32xf32>
    %cst_73 = arith.constant 1.000000e+00 : f32
    %176 = vector.broadcast %cst_73 : f32 to vector<2x32xf32>
    %177 = arith.addf %176, %175 : vector<2x32xf32>
    %178 = arith.divf %176, %177 : vector<2x32xf32>
    %179 = arith.mulf %170, %83 : vector<2x32xf32>
    %180 = arith.mulf %164, %172 : vector<2x32xf32>
    %181 = arith.addf %179, %180 : vector<2x32xf32>
    %182 = math.tanh %181 : vector<2x32xf32>
    %183 = arith.mulf %178, %182 : vector<2x32xf32>
    %184 = vector.extract_strided_slice %142 {offsets = [0, 0], sizes = [1, 32], strides = [1, 1]} : vector<2x32xf32> to vector<1x32xf32>
    %c0_74 = arith.constant 0 : index
    %c1_75 = arith.constant 1 : index
    %c0_76 = arith.constant 0 : index
    %185 = vector.load %arg26[%c0_74, %c1_75, %c0_76] : memref<2x10x64xf32, #tpu.memory_space<vmem>>, vector<1x1x32xf32>
    %186 = vector.shape_cast %185 : vector<1x1x32xf32> to vector<1x32xf32>
    %187 = vector.shape_cast %184 : vector<1x32xf32> to vector<1x1x32xf32>
    tpu.vector_store %arg26[%c0_74, %c1_75, %c0_76], %187 {strides = array<i32>} : memref<2x10x64xf32, #tpu.memory_space<vmem>>, vector<1x1x32xf32>,
    %188 = vector.extract_strided_slice %183 {offsets = [0, 0], sizes = [1, 32], strides = [1, 1]} : vector<2x32xf32> to vector<1x32xf32>
    %c0_77 = arith.constant 0 : index
    %c8_78 = arith.constant 8 : index
    %c32_79 = arith.constant 32 : index
    %189 = vector.load %arg26[%c0_77, %c8_78, %c32_79] : memref<2x10x64xf32, #tpu.memory_space<vmem>>, vector<1x1x32xf32>
    %190 = vector.shape_cast %189 : vector<1x1x32xf32> to vector<1x32xf32>
    %191 = vector.shape_cast %188 : vector<1x32xf32> to vector<1x1x32xf32>
    tpu.vector_store %arg26[%c0_77, %c8_78, %c32_79], %191 {strides = array<i32>} : memref<2x10x64xf32, #tpu.memory_space<vmem>>, vector<1x1x32xf32>,
    %192 = vector.extract_strided_slice %142 {offsets = [1, 0], sizes = [1, 32], strides = [1, 1]} : vector<2x32xf32> to vector<1x32xf32>
    %c1_80 = arith.constant 1 : index
    %c1_81 = arith.constant 1 : index
    %c0_82 = arith.constant 0 : index
    %193 = vector.load %arg26[%c1_80, %c1_81, %c0_82] : memref<2x10x64xf32, #tpu.memory_space<vmem>>, vector<1x1x32xf32>
    %194 = vector.shape_cast %193 : vector<1x1x32xf32> to vector<1x32xf32>
    %195 = vector.shape_cast %192 : vector<1x32xf32> to vector<1x1x32xf32>
    tpu.vector_store %arg26[%c1_80, %c1_81, %c0_82], %195 {strides = array<i32>} : memref<2x10x64xf32, #tpu.memory_space<vmem>>, vector<1x1x32xf32>,
    %196 = vector.extract_strided_slice %183 {offsets = [1, 0], sizes = [1, 32], strides = [1, 1]} : vector<2x32xf32> to vector<1x32xf32>
    %c1_83 = arith.constant 1 : index
    %c8_84 = arith.constant 8 : index
    %c32_85 = arith.constant 32 : index
    %197 = vector.load %arg26[%c1_83, %c8_84, %c32_85] : memref<2x10x64xf32, #tpu.memory_space<vmem>>, vector<1x1x32xf32>
    %198 = vector.shape_cast %197 : vector<1x1x32xf32> to vector<1x32xf32>
    %199 = vector.shape_cast %196 : vector<1x32xf32> to vector<1x1x32xf32>
    tpu.vector_store %arg26[%c1_83, %c8_84, %c32_85], %199 {strides = array<i32>} : memref<2x10x64xf32, #tpu.memory_space<vmem>>, vector<1x1x32xf32>,
    %c0_86 = arith.constant 0 : index
    %c2 = arith.constant 2 : index
    %200 = vector.load %arg2[%c0_86, %c2] : memref<2x10xi32, #tpu.memory_space<vmem>>, vector<2x1xi32>
    %201 = tpu.iota {dimensions = array<i32: 1>} : vector<2x24xi32>
    %202 = vector.broadcast %200 : vector<2x1xi32> to vector<2x24xi32>
    %203 = arith.cmpi eq, %201, %202 : vector<2x24xi32>
    %204 = arith.extui %203 : vector<2x24xi1> to vector<2x24xi32>
    %205 = arith.sitofp %204 : vector<2x24xi32> to vector<2x24xf32>
    %c0_87 = arith.constant 0 : index
    %c0_88 = arith.constant 0 : index
    %206 = vector.load %arg4[%c0_87, %c0_88] : memref<24x16xf32, #tpu.memory_space<vmem>>, vector<24x16xf32>
    %cst_89 = arith.constant dense<0.000000e+00> : vector<2x16xf32>
    %207 = tpu.matmul %205, %206, %cst_89 {dimension_numbers = #tpu.dot_dimension_numbers<[1], [0], [0], [1], [0, 0, 1, 1], [], []>} : vector<2x24xf32>, vector<24x16xf32>, vector<2x16xf32> -> vector<2x16xf32>
    %c0_90 = arith.constant 0 : index
    %c0_91 = arith.constant 0 : index
    %208 = vector.load %arg5[%c0_90, %c0_91] : memref<16x128xf32, #tpu.memory_space<vmem>>, vector<16x128xf32>
    %cst_92 = arith.constant dense<0.000000e+00> : vector<2x128xf32>
    %209 = tpu.matmul %207, %208, %cst_92 {dimension_numbers = #tpu.dot_dimension_numbers<[1], [0], [0], [1], [0, 0, 1, 1], [], []>} : vector<2x16xf32>, vector<16x128xf32>, vector<2x128xf32> -> vector<2x128xf32>
    %c0_93 = arith.constant 0 : index
    %c0_94 = arith.constant 0 : index
    %210 = vector.load %arg6[%c0_93, %c0_94] : memref<32x128xf32, #tpu.memory_space<vmem>>, vector<32x128xf32>
    %cst_95 = arith.constant dense<0.000000e+00> : vector<2x128xf32>
    %211 = tpu.matmul %142, %210, %cst_95 {dimension_numbers = #tpu.dot_dimension_numbers<[1], [0], [0], [1], [0, 0, 1, 1], [], []>} : vector<2x32xf32>, vector<32x128xf32>, vector<2x128xf32> -> vector<2x128xf32>
    %212 = arith.addf %209, %211 : vector<2x128xf32>
    %c0_96 = arith.constant 0 : index
    %c0_97 = arith.constant 0 : index
    %213 = vector.load %arg7[%c0_96, %c0_97] : memref<1x128xf32, #tpu.memory_space<vmem>>, vector<1x128xf32>
    %214 = vector.broadcast %213 : vector<1x128xf32> to vector<2x128xf32>
    %215 = arith.addf %212, %214 : vector<2x128xf32>
    %216 = vector.extract_strided_slice %215 {offsets = [0, 0], sizes = [2, 32], strides = [1, 1]} : vector<2x128xf32> to vector<2x32xf32>
    %217 = arith.negf %216 : vector<2x32xf32>
    %218 = math.exp %217 : vector<2x32xf32>
    %cst_98 = arith.constant 1.000000e+00 : f32
    %219 = vector.broadcast %cst_98 : f32 to vector<2x32xf32>
    %220 = arith.addf %219, %218 : vector<2x32xf32>
    %221 = arith.divf %219, %220 : vector<2x32xf32>
    %222 = vector.extract_strided_slice %215 {offsets = [0, 32], sizes = [2, 32], strides = [1, 1]} : vector<2x128xf32> to vector<2x32xf32>
    %223 = arith.negf %222 : vector<2x32xf32>
    %224 = math.exp %223 : vector<2x32xf32>
    %cst_99 = arith.constant 1.000000e+00 : f32
    %225 = vector.broadcast %cst_99 : f32 to vector<2x32xf32>
    %226 = arith.addf %225, %224 : vector<2x32xf32>
    %227 = arith.divf %225, %226 : vector<2x32xf32>
    %228 = vector.extract_strided_slice %215 {offsets = [0, 64], sizes = [2, 32], strides = [1, 1]} : vector<2x128xf32> to vector<2x32xf32>
    %229 = math.tanh %228 : vector<2x32xf32>
    %230 = vector.extract_strided_slice %215 {offsets = [0, 96], sizes = [2, 32], strides = [1, 1]} : vector<2x128xf32> to vector<2x32xf32>
    %231 = arith.negf %230 : vector<2x32xf32>
    %232 = math.exp %231 : vector<2x32xf32>
    %cst_100 = arith.constant 1.000000e+00 : f32
    %233 = vector.broadcast %cst_100 : f32 to vector<2x32xf32>
    %234 = arith.addf %233, %232 : vector<2x32xf32>
    %235 = arith.divf %233, %234 : vector<2x32xf32>
    %236 = arith.mulf %227, %140 : vector<2x32xf32>
    %237 = arith.mulf %221, %229 : vector<2x32xf32>
    %238 = arith.addf %236, %237 : vector<2x32xf32>
    %239 = math.tanh %238 : vector<2x32xf32>
    %240 = arith.mulf %235, %239 : vector<2x32xf32>
    %c0_101 = arith.constant 0 : index
    %c7 = arith.constant 7 : index
    %241 = vector.load %arg2[%c0_101, %c7] : memref<2x10xi32, #tpu.memory_space<vmem>>, vector<2x1xi32>
    %242 = tpu.iota {dimensions = array<i32: 1>} : vector<2x24xi32>
    %243 = vector.broadcast %241 : vector<2x1xi32> to vector<2x24xi32>
    %244 = arith.cmpi eq, %242, %243 : vector<2x24xi32>
    %245 = arith.extui %244 : vector<2x24xi1> to vector<2x24xi32>
    %246 = arith.sitofp %245 : vector<2x24xi32> to vector<2x24xf32>
    %c0_102 = arith.constant 0 : index
    %c0_103 = arith.constant 0 : index
    %247 = vector.load %arg4[%c0_102, %c0_103] : memref<24x16xf32, #tpu.memory_space<vmem>>, vector<24x16xf32>
    %cst_104 = arith.constant dense<0.000000e+00> : vector<2x16xf32>
    %248 = tpu.matmul %246, %247, %cst_104 {dimension_numbers = #tpu.dot_dimension_numbers<[1], [0], [0], [1], [0, 0, 1, 1], [], []>} : vector<2x24xf32>, vector<24x16xf32>, vector<2x16xf32> -> vector<2x16xf32>
    %c0_105 = arith.constant 0 : index
    %c0_106 = arith.constant 0 : index
    %249 = vector.load %arg8[%c0_105, %c0_106] : memref<16x128xf32, #tpu.memory_space<vmem>>, vector<16x128xf32>
    %cst_107 = arith.constant dense<0.000000e+00> : vector<2x128xf32>
    %250 = tpu.matmul %248, %249, %cst_107 {dimension_numbers = #tpu.dot_dimension_numbers<[1], [0], [0], [1], [0, 0, 1, 1], [], []>} : vector<2x16xf32>, vector<16x128xf32>, vector<2x128xf32> -> vector<2x128xf32>
    %c0_108 = arith.constant 0 : index
    %c0_109 = arith.constant 0 : index
    %251 = vector.load %arg9[%c0_108, %c0_109] : memref<32x128xf32, #tpu.memory_space<vmem>>, vector<32x128xf32>
    %cst_110 = arith.constant dense<0.000000e+00> : vector<2x128xf32>
    %252 = tpu.matmul %183, %251, %cst_110 {dimension_numbers = #tpu.dot_dimension_numbers<[1], [0], [0], [1], [0, 0, 1, 1], [], []>} : vector<2x32xf32>, vector<32x128xf32>, vector<2x128xf32> -> vector<2x128xf32>
    %253 = arith.addf %250, %252 : vector<2x128xf32>
    %c0_111 = arith.constant 0 : index
    %c0_112 = arith.constant 0 : index
    %254 = vector.load %arg10[%c0_111, %c0_112] : memref<1x128xf32, #tpu.memory_space<vmem>>, vector<1x128xf32>
    %255 = vector.broadcast %254 : vector<1x128xf32> to vector<2x128xf32>
    %256 = arith.addf %253, %255 : vector<2x128xf32>
    %257 = vector.extract_strided_slice %256 {offsets = [0, 0], sizes = [2, 32], strides = [1, 1]} : vector<2x128xf32> to vector<2x32xf32>
    %258 = arith.negf %257 : vector<2x32xf32>
    %259 = math.exp %258 : vector<2x32xf32>
    %cst_113 = arith.constant 1.000000e+00 : f32
    %260 = vector.broadcast %cst_113 : f32 to vector<2x32xf32>
    %261 = arith.addf %260, %259 : vector<2x32xf32>
    %262 = arith.divf %260, %261 : vector<2x32xf32>
    %263 = vector.extract_strided_slice %256 {offsets = [0, 32], sizes = [2, 32], strides = [1, 1]} : vector<2x128xf32> to vector<2x32xf32>
    %264 = arith.negf %263 : vector<2x32xf32>
    %265 = math.exp %264 : vector<2x32xf32>
    %cst_114 = arith.constant 1.000000e+00 : f32
    %266 = vector.broadcast %cst_114 : f32 to vector<2x32xf32>
    %267 = arith.addf %266, %265 : vector<2x32xf32>
    %268 = arith.divf %266, %267 : vector<2x32xf32>
    %269 = vector.extract_strided_slice %256 {offsets = [0, 64], sizes = [2, 32], strides = [1, 1]} : vector<2x128xf32> to vector<2x32xf32>
    %270 = math.tanh %269 : vector<2x32xf32>
    %271 = vector.extract_strided_slice %256 {offsets = [0, 96], sizes = [2, 32], strides = [1, 1]} : vector<2x128xf32> to vector<2x32xf32>
    %272 = arith.negf %271 : vector<2x32xf32>
    %273 = math.exp %272 : vector<2x32xf32>
    %cst_115 = arith.constant 1.000000e+00 : f32
    %274 = vector.broadcast %cst_115 : f32 to vector<2x32xf32>
    %275 = arith.addf %274, %273 : vector<2x32xf32>
    %276 = arith.divf %274, %275 : vector<2x32xf32>
    %277 = arith.mulf %268, %181 : vector<2x32xf32>
    %278 = arith.mulf %262, %270 : vector<2x32xf32>
    %279 = arith.addf %277, %278 : vector<2x32xf32>
    %280 = math.tanh %279 : vector<2x32xf32>
    %281 = arith.mulf %276, %280 : vector<2x32xf32>
    %282 = vector.extract_strided_slice %240 {offsets = [0, 0], sizes = [1, 32], strides = [1, 1]} : vector<2x32xf32> to vector<1x32xf32>
    %c0_116 = arith.constant 0 : index
    %c2_117 = arith.constant 2 : index
    %c0_118 = arith.constant 0 : index
    %283 = vector.load %arg26[%c0_116, %c2_117, %c0_118] : memref<2x10x64xf32, #tpu.memory_space<vmem>>, vector<1x1x32xf32>
    %284 = vector.shape_cast %283 : vector<1x1x32xf32> to vector<1x32xf32>
    %285 = vector.shape_cast %282 : vector<1x32xf32> to vector<1x1x32xf32>
    tpu.vector_store %arg26[%c0_116, %c2_117, %c0_118], %285 {strides = array<i32>} : memref<2x10x64xf32, #tpu.memory_space<vmem>>, vector<1x1x32xf32>,
    %286 = vector.extract_strided_slice %281 {offsets = [0, 0], sizes = [1, 32], strides = [1, 1]} : vector<2x32xf32> to vector<1x32xf32>
    %c0_119 = arith.constant 0 : index
    %c7_120 = arith.constant 7 : index
    %c32_121 = arith.constant 32 : index
    %287 = vector.load %arg26[%c0_119, %c7_120, %c32_121] : memref<2x10x64xf32, #tpu.memory_space<vmem>>, vector<1x1x32xf32>
    %288 = vector.shape_cast %287 : vector<1x1x32xf32> to vector<1x32xf32>
    %289 = vector.shape_cast %286 : vector<1x32xf32> to vector<1x1x32xf32>
    tpu.vector_store %arg26[%c0_119, %c7_120, %c32_121], %289 {strides = array<i32>} : memref<2x10x64xf32, #tpu.memory_space<vmem>>, vector<1x1x32xf32>,
    %290 = vector.extract_strided_slice %240 {offsets = [1, 0], sizes = [1, 32], strides = [1, 1]} : vector<2x32xf32> to vector<1x32xf32>
    %c1_122 = arith.constant 1 : index
    %c2_123 = arith.constant 2 : index
    %c0_124 = arith.constant 0 : index
    %291 = vector.load %arg26[%c1_122, %c2_123, %c0_124] : memref<2x10x64xf32, #tpu.memory_space<vmem>>, vector<1x1x32xf32>
    %292 = vector.shape_cast %291 : vector<1x1x32xf32> to vector<1x32xf32>
    %293 = vector.shape_cast %290 : vector<1x32xf32> to vector<1x1x32xf32>
    tpu.vector_store %arg26[%c1_122, %c2_123, %c0_124], %293 {strides = array<i32>} : memref<2x10x64xf32, #tpu.memory_space<vmem>>, vector<1x1x32xf32>,
    %294 = vector.extract_strided_slice %281 {offsets = [1, 0], sizes = [1, 32], strides = [1, 1]} : vector<2x32xf32> to vector<1x32xf32>
    %c1_125 = arith.constant 1 : index
    %c7_126 = arith.constant 7 : index
    %c32_127 = arith.constant 32 : index
    %295 = vector.load %arg26[%c1_125, %c7_126, %c32_127] : memref<2x10x64xf32, #tpu.memory_space<vmem>>, vector<1x1x32xf32>
    %296 = vector.shape_cast %295 : vector<1x1x32xf32> to vector<1x32xf32>
    %297 = vector.shape_cast %294 : vector<1x32xf32> to vector<1x1x32xf32>
    tpu.vector_store %arg26[%c1_125, %c7_126, %c32_127], %297 {strides = array<i32>} : memref<2x10x64xf32, #tpu.memory_space<vmem>>, vector<1x1x32xf32>,
    %c0_128 = arith.constant 0 : index
    %c3 = arith.constant 3 : index
    %298 = vector.load %arg2[%c0_128, %c3] : memref<2x10xi32, #tpu.memory_space<vmem>>, vector<2x1xi32>
    %299 = tpu.iota {dimensions = array<i32: 1>} : vector<2x24xi32>
    %300 = vector.broadcast %298 : vector<2x1xi32> to vector<2x24xi32>
    %301 = arith.cmpi eq, %299, %300 : vector<2x24xi32>
    %302 = arith.extui %301 : vector<2x24xi1> to vector<2x24xi32>
    %303 = arith.sitofp %302 : vector<2x24xi32> to vector<2x24xf32>
    %c0_129 = arith.constant 0 : index
    %c0_130 = arith.constant 0 : index
    %304 = vector.load %arg4[%c0_129, %c0_130] : memref<24x16xf32, #tpu.memory_space<vmem>>, vector<24x16xf32>
    %cst_131 = arith.constant dense<0.000000e+00> : vector<2x16xf32>
    %305 = tpu.matmul %303, %304, %cst_131 {dimension_numbers = #tpu.dot_dimension_numbers<[1], [0], [0], [1], [0, 0, 1, 1], [], []>} : vector<2x24xf32>, vector<24x16xf32>, vector<2x16xf32> -> vector<2x16xf32>
    %c0_132 = arith.constant 0 : index
    %c0_133 = arith.constant 0 : index
    %306 = vector.load %arg5[%c0_132, %c0_133] : memref<16x128xf32, #tpu.memory_space<vmem>>, vector<16x128xf32>
    %cst_134 = arith.constant dense<0.000000e+00> : vector<2x128xf32>
    %307 = tpu.matmul %305, %306, %cst_134 {dimension_numbers = #tpu.dot_dimension_numbers<[1], [0], [0], [1], [0, 0, 1, 1], [], []>} : vector<2x16xf32>, vector<16x128xf32>, vector<2x128xf32> -> vector<2x128xf32>
    %c0_135 = arith.constant 0 : index
    %c0_136 = arith.constant 0 : index
    %308 = vector.load %arg6[%c0_135, %c0_136] : memref<32x128xf32, #tpu.memory_space<vmem>>, vector<32x128xf32>
    %cst_137 = arith.constant dense<0.000000e+00> : vector<2x128xf32>
    %309 = tpu.matmul %240, %308, %cst_137 {dimension_numbers = #tpu.dot_dimension_numbers<[1], [0], [0], [1], [0, 0, 1, 1], [], []>} : vector<2x32xf32>, vector<32x128xf32>, vector<2x128xf32> -> vector<2x128xf32>
    %310 = arith.addf %307, %309 : vector<2x128xf32>
    %c0_138 = arith.constant 0 : index
    %c0_139 = arith.constant 0 : index
    %311 = vector.load %arg7[%c0_138, %c0_139] : memref<1x128xf32, #tpu.memory_space<vmem>>, vector<1x128xf32>
    %312 = vector.broadcast %311 : vector<1x128xf32> to vector<2x128xf32>
    %313 = arith.addf %310, %312 : vector<2x128xf32>
    %314 = vector.extract_strided_slice %313 {offsets = [0, 0], sizes = [2, 32], strides = [1, 1]} : vector<2x128xf32> to vector<2x32xf32>
    %315 = arith.negf %314 : vector<2x32xf32>
    %316 = math.exp %315 : vector<2x32xf32>
    %cst_140 = arith.constant 1.000000e+00 : f32
    %317 = vector.broadcast %cst_140 : f32 to vector<2x32xf32>
    %318 = arith.addf %317, %316 : vector<2x32xf32>
    %319 = arith.divf %317, %318 : vector<2x32xf32>
    %320 = vector.extract_strided_slice %313 {offsets = [0, 32], sizes = [2, 32], strides = [1, 1]} : vector<2x128xf32> to vector<2x32xf32>
    %321 = arith.negf %320 : vector<2x32xf32>
    %322 = math.exp %321 : vector<2x32xf32>
    %cst_141 = arith.constant 1.000000e+00 : f32
    %323 = vector.broadcast %cst_141 : f32 to vector<2x32xf32>
    %324 = arith.addf %323, %322 : vector<2x32xf32>
    %325 = arith.divf %323, %324 : vector<2x32xf32>
    %326 = vector.extract_strided_slice %313 {offsets = [0, 64], sizes = [2, 32], strides = [1, 1]} : vector<2x128xf32> to vector<2x32xf32>
    %327 = math.tanh %326 : vector<2x32xf32>
    %328 = vector.extract_strided_slice %313 {offsets = [0, 96], sizes = [2, 32], strides = [1, 1]} : vector<2x128xf32> to vector<2x32xf32>
    %329 = arith.negf %328 : vector<2x32xf32>
    %330 = math.exp %329 : vector<2x32xf32>
    %cst_142 = arith.constant 1.000000e+00 : f32
    %331 = vector.broadcast %cst_142 : f32 to vector<2x32xf32>
    %332 = arith.addf %331, %330 : vector<2x32xf32>
    %333 = arith.divf %331, %332 : vector<2x32xf32>
    %334 = arith.mulf %325, %238 : vector<2x32xf32>
    %335 = arith.mulf %319, %327 : vector<2x32xf32>
    %336 = arith.addf %334, %335 : vector<2x32xf32>
    %337 = math.tanh %336 : vector<2x32xf32>
    %338 = arith.mulf %333, %337 : vector<2x32xf32>
    %c0_143 = arith.constant 0 : index
    %c6 = arith.constant 6 : index
    %339 = vector.load %arg2[%c0_143, %c6] : memref<2x10xi32, #tpu.memory_space<vmem>>, vector<2x1xi32>
    %340 = tpu.iota {dimensions = array<i32: 1>} : vector<2x24xi32>
    %341 = vector.broadcast %339 : vector<2x1xi32> to vector<2x24xi32>
    %342 = arith.cmpi eq, %340, %341 : vector<2x24xi32>
    %343 = arith.extui %342 : vector<2x24xi1> to vector<2x24xi32>
    %344 = arith.sitofp %343 : vector<2x24xi32> to vector<2x24xf32>
    %c0_144 = arith.constant 0 : index
    %c0_145 = arith.constant 0 : index
    %345 = vector.load %arg4[%c0_144, %c0_145] : memref<24x16xf32, #tpu.memory_space<vmem>>, vector<24x16xf32>
    %cst_146 = arith.constant dense<0.000000e+00> : vector<2x16xf32>
    %346 = tpu.matmul %344, %345, %cst_146 {dimension_numbers = #tpu.dot_dimension_numbers<[1], [0], [0], [1], [0, 0, 1, 1], [], []>} : vector<2x24xf32>, vector<24x16xf32>, vector<2x16xf32> -> vector<2x16xf32>
    %c0_147 = arith.constant 0 : index
    %c0_148 = arith.constant 0 : index
    %347 = vector.load %arg8[%c0_147, %c0_148] : memref<16x128xf32, #tpu.memory_space<vmem>>, vector<16x128xf32>
    %cst_149 = arith.constant dense<0.000000e+00> : vector<2x128xf32>
    %348 = tpu.matmul %346, %347, %cst_149 {dimension_numbers = #tpu.dot_dimension_numbers<[1], [0], [0], [1], [0, 0, 1, 1], [], []>} : vector<2x16xf32>, vector<16x128xf32>, vector<2x128xf32> -> vector<2x128xf32>
    %c0_150 = arith.constant 0 : index
    %c0_151 = arith.constant 0 : index
    %349 = vector.load %arg9[%c0_150, %c0_151] : memref<32x128xf32, #tpu.memory_space<vmem>>, vector<32x128xf32>
    %cst_152 = arith.constant dense<0.000000e+00> : vector<2x128xf32>
    %350 = tpu.matmul %281, %349, %cst_152 {dimension_numbers = #tpu.dot_dimension_numbers<[1], [0], [0], [1], [0, 0, 1, 1], [], []>} : vector<2x32xf32>, vector<32x128xf32>, vector<2x128xf32> -> vector<2x128xf32>
    %351 = arith.addf %348, %350 : vector<2x128xf32>
    %c0_153 = arith.constant 0 : index
    %c0_154 = arith.constant 0 : index
    %352 = vector.load %arg10[%c0_153, %c0_154] : memref<1x128xf32, #tpu.memory_space<vmem>>, vector<1x128xf32>
    %353 = vector.broadcast %352 : vector<1x128xf32> to vector<2x128xf32>
    %354 = arith.addf %351, %353 : vector<2x128xf32>
    %355 = vector.extract_strided_slice %354 {offsets = [0, 0], sizes = [2, 32], strides = [1, 1]} : vector<2x128xf32> to vector<2x32xf32>
    %356 = arith.negf %355 : vector<2x32xf32>
    %357 = math.exp %356 : vector<2x32xf32>
    %cst_155 = arith.constant 1.000000e+00 : f32
    %358 = vector.broadcast %cst_155 : f32 to vector<2x32xf32>
    %359 = arith.addf %358, %357 : vector<2x32xf32>
    %360 = arith.divf %358, %359 : vector<2x32xf32>
    %361 = vector.extract_strided_slice %354 {offsets = [0, 32], sizes = [2, 32], strides = [1, 1]} : vector<2x128xf32> to vector<2x32xf32>
    %362 = arith.negf %361 : vector<2x32xf32>
    %363 = math.exp %362 : vector<2x32xf32>
    %cst_156 = arith.constant 1.000000e+00 : f32
    %364 = vector.broadcast %cst_156 : f32 to vector<2x32xf32>
    %365 = arith.addf %364, %363 : vector<2x32xf32>
    %366 = arith.divf %364, %365 : vector<2x32xf32>
    %367 = vector.extract_strided_slice %354 {offsets = [0, 64], sizes = [2, 32], strides = [1, 1]} : vector<2x128xf32> to vector<2x32xf32>
    %368 = math.tanh %367 : vector<2x32xf32>
    %369 = vector.extract_strided_slice %354 {offsets = [0, 96], sizes = [2, 32], strides = [1, 1]} : vector<2x128xf32> to vector<2x32xf32>
    %370 = arith.negf %369 : vector<2x32xf32>
    %371 = math.exp %370 : vector<2x32xf32>
    %cst_157 = arith.constant 1.000000e+00 : f32
    %372 = vector.broadcast %cst_157 : f32 to vector<2x32xf32>
    %373 = arith.addf %372, %371 : vector<2x32xf32>
    %374 = arith.divf %372, %373 : vector<2x32xf32>
    %375 = arith.mulf %366, %279 : vector<2x32xf32>
    %376 = arith.mulf %360, %368 : vector<2x32xf32>
    %377 = arith.addf %375, %376 : vector<2x32xf32>
    %378 = math.tanh %377 : vector<2x32xf32>
    %379 = arith.mulf %374, %378 : vector<2x32xf32>
    %380 = vector.extract_strided_slice %338 {offsets = [0, 0], sizes = [1, 32], strides = [1, 1]} : vector<2x32xf32> to vector<1x32xf32>
    %c0_158 = arith.constant 0 : index
    %c3_159 = arith.constant 3 : index
    %c0_160 = arith.constant 0 : index
    %381 = vector.load %arg26[%c0_158, %c3_159, %c0_160] : memref<2x10x64xf32, #tpu.memory_space<vmem>>, vector<1x1x32xf32>
    %382 = vector.shape_cast %381 : vector<1x1x32xf32> to vector<1x32xf32>
    %383 = vector.shape_cast %380 : vector<1x32xf32> to vector<1x1x32xf32>
    tpu.vector_store %arg26[%c0_158, %c3_159, %c0_160], %383 {strides = array<i32>} : memref<2x10x64xf32, #tpu.memory_space<vmem>>, vector<1x1x32xf32>,
    %384 = vector.extract_strided_slice %379 {offsets = [0, 0], sizes = [1, 32], strides = [1, 1]} : vector<2x32xf32> to vector<1x32xf32>
    %c0_161 = arith.constant 0 : index
    %c6_162 = arith.constant 6 : index
    %c32_163 = arith.constant 32 : index
    %385 = vector.load %arg26[%c0_161, %c6_162, %c32_163] : memref<2x10x64xf32, #tpu.memory_space<vmem>>, vector<1x1x32xf32>
    %386 = vector.shape_cast %385 : vector<1x1x32xf32> to vector<1x32xf32>
    %387 = vector.shape_cast %384 : vector<1x32xf32> to vector<1x1x32xf32>
    tpu.vector_store %arg26[%c0_161, %c6_162, %c32_163], %387 {strides = array<i32>} : memref<2x10x64xf32, #tpu.memory_space<vmem>>, vector<1x1x32xf32>,
    %388 = vector.extract_strided_slice %338 {offsets = [1, 0], sizes = [1, 32], strides = [1, 1]} : vector<2x32xf32> to vector<1x32xf32>
    %c1_164 = arith.constant 1 : index
    %c3_165 = arith.constant 3 : index
    %c0_166 = arith.constant 0 : index
    %389 = vector.load %arg26[%c1_164, %c3_165, %c0_166] : memref<2x10x64xf32, #tpu.memory_space<vmem>>, vector<1x1x32xf32>
    %390 = vector.shape_cast %389 : vector<1x1x32xf32> to vector<1x32xf32>
    %391 = vector.shape_cast %388 : vector<1x32xf32> to vector<1x1x32xf32>
    tpu.vector_store %arg26[%c1_164, %c3_165, %c0_166], %391 {strides = array<i32>} : memref<2x10x64xf32, #tpu.memory_space<vmem>>, vector<1x1x32xf32>,
    %392 = vector.extract_strided_slice %379 {offsets = [1, 0], sizes = [1, 32], strides = [1, 1]} : vector<2x32xf32> to vector<1x32xf32>
    %c1_167 = arith.constant 1 : index
    %c6_168 = arith.constant 6 : index
    %c32_169 = arith.constant 32 : index
    %393 = vector.load %arg26[%c1_167, %c6_168, %c32_169] : memref<2x10x64xf32, #tpu.memory_space<vmem>>, vector<1x1x32xf32>
    %394 = vector.shape_cast %393 : vector<1x1x32xf32> to vector<1x32xf32>
    %395 = vector.shape_cast %392 : vector<1x32xf32> to vector<1x1x32xf32>
    tpu.vector_store %arg26[%c1_167, %c6_168, %c32_169], %395 {strides = array<i32>} : memref<2x10x64xf32, #tpu.memory_space<vmem>>, vector<1x1x32xf32>,
    %c0_170 = arith.constant 0 : index
    %c4 = arith.constant 4 : index
    %396 = vector.load %arg2[%c0_170, %c4] : memref<2x10xi32, #tpu.memory_space<vmem>>, vector<2x1xi32>
    %397 = tpu.iota {dimensions = array<i32: 1>} : vector<2x24xi32>
    %398 = vector.broadcast %396 : vector<2x1xi32> to vector<2x24xi32>
    %399 = arith.cmpi eq, %397, %398 : vector<2x24xi32>
    %400 = arith.extui %399 : vector<2x24xi1> to vector<2x24xi32>
    %401 = arith.sitofp %400 : vector<2x24xi32> to vector<2x24xf32>
    %c0_171 = arith.constant 0 : index
    %c0_172 = arith.constant 0 : index
    %402 = vector.load %arg4[%c0_171, %c0_172] : memref<24x16xf32, #tpu.memory_space<vmem>>, vector<24x16xf32>
    %cst_173 = arith.constant dense<0.000000e+00> : vector<2x16xf32>
    %403 = tpu.matmul %401, %402, %cst_173 {dimension_numbers = #tpu.dot_dimension_numbers<[1], [0], [0], [1], [0, 0, 1, 1], [], []>} : vector<2x24xf32>, vector<24x16xf32>, vector<2x16xf32> -> vector<2x16xf32>
    %c0_174 = arith.constant 0 : index
    %c0_175 = arith.constant 0 : index
    %404 = vector.load %arg5[%c0_174, %c0_175] : memref<16x128xf32, #tpu.memory_space<vmem>>, vector<16x128xf32>
    %cst_176 = arith.constant dense<0.000000e+00> : vector<2x128xf32>
    %405 = tpu.matmul %403, %404, %cst_176 {dimension_numbers = #tpu.dot_dimension_numbers<[1], [0], [0], [1], [0, 0, 1, 1], [], []>} : vector<2x16xf32>, vector<16x128xf32>, vector<2x128xf32> -> vector<2x128xf32>
    %c0_177 = arith.constant 0 : index
    %c0_178 = arith.constant 0 : index
    %406 = vector.load %arg6[%c0_177, %c0_178] : memref<32x128xf32, #tpu.memory_space<vmem>>, vector<32x128xf32>
    %cst_179 = arith.constant dense<0.000000e+00> : vector<2x128xf32>
    %407 = tpu.matmul %338, %406, %cst_179 {dimension_numbers = #tpu.dot_dimension_numbers<[1], [0], [0], [1], [0, 0, 1, 1], [], []>} : vector<2x32xf32>, vector<32x128xf32>, vector<2x128xf32> -> vector<2x128xf32>
    %408 = arith.addf %405, %407 : vector<2x128xf32>
    %c0_180 = arith.constant 0 : index
    %c0_181 = arith.constant 0 : index
    %409 = vector.load %arg7[%c0_180, %c0_181] : memref<1x128xf32, #tpu.memory_space<vmem>>, vector<1x128xf32>
    %410 = vector.broadcast %409 : vector<1x128xf32> to vector<2x128xf32>
    %411 = arith.addf %408, %410 : vector<2x128xf32>
    %412 = vector.extract_strided_slice %411 {offsets = [0, 0], sizes = [2, 32], strides = [1, 1]} : vector<2x128xf32> to vector<2x32xf32>
    %413 = arith.negf %412 : vector<2x32xf32>
    %414 = math.exp %413 : vector<2x32xf32>
    %cst_182 = arith.constant 1.000000e+00 : f32
    %415 = vector.broadcast %cst_182 : f32 to vector<2x32xf32>
    %416 = arith.addf %415, %414 : vector<2x32xf32>
    %417 = arith.divf %415, %416 : vector<2x32xf32>
    %418 = vector.extract_strided_slice %411 {offsets = [0, 32], sizes = [2, 32], strides = [1, 1]} : vector<2x128xf32> to vector<2x32xf32>
    %419 = arith.negf %418 : vector<2x32xf32>
    %420 = math.exp %419 : vector<2x32xf32>
    %cst_183 = arith.constant 1.000000e+00 : f32
    %421 = vector.broadcast %cst_183 : f32 to vector<2x32xf32>
    %422 = arith.addf %421, %420 : vector<2x32xf32>
    %423 = arith.divf %421, %422 : vector<2x32xf32>
    %424 = vector.extract_strided_slice %411 {offsets = [0, 64], sizes = [2, 32], strides = [1, 1]} : vector<2x128xf32> to vector<2x32xf32>
    %425 = math.tanh %424 : vector<2x32xf32>
    %426 = vector.extract_strided_slice %411 {offsets = [0, 96], sizes = [2, 32], strides = [1, 1]} : vector<2x128xf32> to vector<2x32xf32>
    %427 = arith.negf %426 : vector<2x32xf32>
    %428 = math.exp %427 : vector<2x32xf32>
    %cst_184 = arith.constant 1.000000e+00 : f32
    %429 = vector.broadcast %cst_184 : f32 to vector<2x32xf32>
    %430 = arith.addf %429, %428 : vector<2x32xf32>
    %431 = arith.divf %429, %430 : vector<2x32xf32>
    %432 = arith.mulf %423, %336 : vector<2x32xf32>
    %433 = arith.mulf %417, %425 : vector<2x32xf32>
    %434 = arith.addf %432, %433 : vector<2x32xf32>
    %435 = math.tanh %434 : vector<2x32xf32>
    %436 = arith.mulf %431, %435 : vector<2x32xf32>
    %c0_185 = arith.constant 0 : index
    %c5 = arith.constant 5 : index
    %437 = vector.load %arg2[%c0_185, %c5] : memref<2x10xi32, #tpu.memory_space<vmem>>, vector<2x1xi32>
    %438 = tpu.iota {dimensions = array<i32: 1>} : vector<2x24xi32>
    %439 = vector.broadcast %437 : vector<2x1xi32> to vector<2x24xi32>
    %440 = arith.cmpi eq, %438, %439 : vector<2x24xi32>
    %441 = arith.extui %440 : vector<2x24xi1> to vector<2x24xi32>
    %442 = arith.sitofp %441 : vector<2x24xi32> to vector<2x24xf32>
    %c0_186 = arith.constant 0 : index
    %c0_187 = arith.constant 0 : index
    %443 = vector.load %arg4[%c0_186, %c0_187] : memref<24x16xf32, #tpu.memory_space<vmem>>, vector<24x16xf32>
    %cst_188 = arith.constant dense<0.000000e+00> : vector<2x16xf32>
    %444 = tpu.matmul %442, %443, %cst_188 {dimension_numbers = #tpu.dot_dimension_numbers<[1], [0], [0], [1], [0, 0, 1, 1], [], []>} : vector<2x24xf32>, vector<24x16xf32>, vector<2x16xf32> -> vector<2x16xf32>
    %c0_189 = arith.constant 0 : index
    %c0_190 = arith.constant 0 : index
    %445 = vector.load %arg8[%c0_189, %c0_190] : memref<16x128xf32, #tpu.memory_space<vmem>>, vector<16x128xf32>
    %cst_191 = arith.constant dense<0.000000e+00> : vector<2x128xf32>
    %446 = tpu.matmul %444, %445, %cst_191 {dimension_numbers = #tpu.dot_dimension_numbers<[1], [0], [0], [1], [0, 0, 1, 1], [], []>} : vector<2x16xf32>, vector<16x128xf32>, vector<2x128xf32> -> vector<2x128xf32>
    %c0_192 = arith.constant 0 : index
    %c0_193 = arith.constant 0 : index
    %447 = vector.load %arg9[%c0_192, %c0_193] : memref<32x128xf32, #tpu.memory_space<vmem>>, vector<32x128xf32>
    %cst_194 = arith.constant dense<0.000000e+00> : vector<2x128xf32>
    %448 = tpu.matmul %379, %447, %cst_194 {dimension_numbers = #tpu.dot_dimension_numbers<[1], [0], [0], [1], [0, 0, 1, 1], [], []>} : vector<2x32xf32>, vector<32x128xf32>, vector<2x128xf32> -> vector<2x128xf32>
    %449 = arith.addf %446, %448 : vector<2x128xf32>
    %c0_195 = arith.constant 0 : index
    %c0_196 = arith.constant 0 : index
    %450 = vector.load %arg10[%c0_195, %c0_196] : memref<1x128xf32, #tpu.memory_space<vmem>>, vector<1x128xf32>
    %451 = vector.broadcast %450 : vector<1x128xf32> to vector<2x128xf32>
    %452 = arith.addf %449, %451 : vector<2x128xf32>
    %453 = vector.extract_strided_slice %452 {offsets = [0, 0], sizes = [2, 32], strides = [1, 1]} : vector<2x128xf32> to vector<2x32xf32>
    %454 = arith.negf %453 : vector<2x32xf32>
    %455 = math.exp %454 : vector<2x32xf32>
    %cst_197 = arith.constant 1.000000e+00 : f32
    %456 = vector.broadcast %cst_197 : f32 to vector<2x32xf32>
    %457 = arith.addf %456, %455 : vector<2x32xf32>
    %458 = arith.divf %456, %457 : vector<2x32xf32>
    %459 = vector.extract_strided_slice %452 {offsets = [0, 32], sizes = [2, 32], strides = [1, 1]} : vector<2x128xf32> to vector<2x32xf32>
    %460 = arith.negf %459 : vector<2x32xf32>
    %461 = math.exp %460 : vector<2x32xf32>
    %cst_198 = arith.constant 1.000000e+00 : f32
    %462 = vector.broadcast %cst_198 : f32 to vector<2x32xf32>
    %463 = arith.addf %462, %461 : vector<2x32xf32>
    %464 = arith.divf %462, %463 : vector<2x32xf32>
    %465 = vector.extract_strided_slice %452 {offsets = [0, 64], sizes = [2, 32], strides = [1, 1]} : vector<2x128xf32> to vector<2x32xf32>
    %466 = math.tanh %465 : vector<2x32xf32>
    %467 = vector.extract_strided_slice %452 {offsets = [0, 96], sizes = [2, 32], strides = [1, 1]} : vector<2x128xf32> to vector<2x32xf32>
    %468 = arith.negf %467 : vector<2x32xf32>
    %469 = math.exp %468 : vector<2x32xf32>
    %cst_199 = arith.constant 1.000000e+00 : f32
    %470 = vector.broadcast %cst_199 : f32 to vector<2x32xf32>
    %471 = arith.addf %470, %469 : vector<2x32xf32>
    %472 = arith.divf %470, %471 : vector<2x32xf32>
    %473 = arith.mulf %464, %377 : vector<2x32xf32>
    %474 = arith.mulf %458, %466 : vector<2x32xf32>
    %475 = arith.addf %473, %474 : vector<2x32xf32>
    %476 = math.tanh %475 : vector<2x32xf32>
    %477 = arith.mulf %472, %476 : vector<2x32xf32>
    %478 = vector.extract_strided_slice %436 {offsets = [0, 0], sizes = [1, 32], strides = [1, 1]} : vector<2x32xf32> to vector<1x32xf32>
    %c0_200 = arith.constant 0 : index
    %c4_201 = arith.constant 4 : index
    %c0_202 = arith.constant 0 : index
    %479 = vector.load %arg26[%c0_200, %c4_201, %c0_202] : memref<2x10x64xf32, #tpu.memory_space<vmem>>, vector<1x1x32xf32>
    %480 = vector.shape_cast %479 : vector<1x1x32xf32> to vector<1x32xf32>
    %481 = vector.shape_cast %478 : vector<1x32xf32> to vector<1x1x32xf32>
    tpu.vector_store %arg26[%c0_200, %c4_201, %c0_202], %481 {strides = array<i32>} : memref<2x10x64xf32, #tpu.memory_space<vmem>>, vector<1x1x32xf32>,
    %482 = vector.extract_strided_slice %477 {offsets = [0, 0], sizes = [1, 32], strides = [1, 1]} : vector<2x32xf32> to vector<1x32xf32>
    %c0_203 = arith.constant 0 : index
    %c5_204 = arith.constant 5 : index
    %c32_205 = arith.constant 32 : index
    %483 = vector.load %arg26[%c0_203, %c5_204, %c32_205] : memref<2x10x64xf32, #tpu.memory_space<vmem>>, vector<1x1x32xf32>
    %484 = vector.shape_cast %483 : vector<1x1x32xf32> to vector<1x32xf32>
    %485 = vector.shape_cast %482 : vector<1x32xf32> to vector<1x1x32xf32>
    tpu.vector_store %arg26[%c0_203, %c5_204, %c32_205], %485 {strides = array<i32>} : memref<2x10x64xf32, #tpu.memory_space<vmem>>, vector<1x1x32xf32>,
    %486 = vector.extract_strided_slice %436 {offsets = [1, 0], sizes = [1, 32], strides = [1, 1]} : vector<2x32xf32> to vector<1x32xf32>
    %c1_206 = arith.constant 1 : index
    %c4_207 = arith.constant 4 : index
    %c0_208 = arith.constant 0 : index
    %487 = vector.load %arg26[%c1_206, %c4_207, %c0_208] : memref<2x10x64xf32, #tpu.memory_space<vmem>>, vector<1x1x32xf32>
    %488 = vector.shape_cast %487 : vector<1x1x32xf32> to vector<1x32xf32>
    %489 = vector.shape_cast %486 : vector<1x32xf32> to vector<1x1x32xf32>
    tpu.vector_store %arg26[%c1_206, %c4_207, %c0_208], %489 {strides = array<i32>} : memref<2x10x64xf32, #tpu.memory_space<vmem>>, vector<1x1x32xf32>,
    %490 = vector.extract_strided_slice %477 {offsets = [1, 0], sizes = [1, 32], strides = [1, 1]} : vector<2x32xf32> to vector<1x32xf32>
    %c1_209 = arith.constant 1 : index
    %c5_210 = arith.constant 5 : index
    %c32_211 = arith.constant 32 : index
    %491 = vector.load %arg26[%c1_209, %c5_210, %c32_211] : memref<2x10x64xf32, #tpu.memory_space<vmem>>, vector<1x1x32xf32>
    %492 = vector.shape_cast %491 : vector<1x1x32xf32> to vector<1x32xf32>
    %493 = vector.shape_cast %490 : vector<1x32xf32> to vector<1x1x32xf32>
    tpu.vector_store %arg26[%c1_209, %c5_210, %c32_211], %493 {strides = array<i32>} : memref<2x10x64xf32, #tpu.memory_space<vmem>>, vector<1x1x32xf32>,
    %c0_212 = arith.constant 0 : index
    %c5_213 = arith.constant 5 : index
    %494 = vector.load %arg2[%c0_212, %c5_213] : memref<2x10xi32, #tpu.memory_space<vmem>>, vector<2x1xi32>
    %495 = tpu.iota {dimensions = array<i32: 1>} : vector<2x24xi32>
    %496 = vector.broadcast %494 : vector<2x1xi32> to vector<2x24xi32>
    %497 = arith.cmpi eq, %495, %496 : vector<2x24xi32>
    %498 = arith.extui %497 : vector<2x24xi1> to vector<2x24xi32>
    %499 = arith.sitofp %498 : vector<2x24xi32> to vector<2x24xf32>
    %c0_214 = arith.constant 0 : index
    %c0_215 = arith.constant 0 : index
    %500 = vector.load %arg4[%c0_214, %c0_215] : memref<24x16xf32, #tpu.memory_space<vmem>>, vector<24x16xf32>
    %cst_216 = arith.constant dense<0.000000e+00> : vector<2x16xf32>
    %501 = tpu.matmul %499, %500, %cst_216 {dimension_numbers = #tpu.dot_dimension_numbers<[1], [0], [0], [1], [0, 0, 1, 1], [], []>} : vector<2x24xf32>, vector<24x16xf32>, vector<2x16xf32> -> vector<2x16xf32>
    %c0_217 = arith.constant 0 : index
    %c0_218 = arith.constant 0 : index
    %502 = vector.load %arg5[%c0_217, %c0_218] : memref<16x128xf32, #tpu.memory_space<vmem>>, vector<16x128xf32>
    %cst_219 = arith.constant dense<0.000000e+00> : vector<2x128xf32>
    %503 = tpu.matmul %501, %502, %cst_219 {dimension_numbers = #tpu.dot_dimension_numbers<[1], [0], [0], [1], [0, 0, 1, 1], [], []>} : vector<2x16xf32>, vector<16x128xf32>, vector<2x128xf32> -> vector<2x128xf32>
    %c0_220 = arith.constant 0 : index
    %c0_221 = arith.constant 0 : index
    %504 = vector.load %arg6[%c0_220, %c0_221] : memref<32x128xf32, #tpu.memory_space<vmem>>, vector<32x128xf32>
    %cst_222 = arith.constant dense<0.000000e+00> : vector<2x128xf32>
    %505 = tpu.matmul %436, %504, %cst_222 {dimension_numbers = #tpu.dot_dimension_numbers<[1], [0], [0], [1], [0, 0, 1, 1], [], []>} : vector<2x32xf32>, vector<32x128xf32>, vector<2x128xf32> -> vector<2x128xf32>
    %506 = arith.addf %503, %505 : vector<2x128xf32>
    %c0_223 = arith.constant 0 : index
    %c0_224 = arith.constant 0 : index
    %507 = vector.load %arg7[%c0_223, %c0_224] : memref<1x128xf32, #tpu.memory_space<vmem>>, vector<1x128xf32>
    %508 = vector.broadcast %507 : vector<1x128xf32> to vector<2x128xf32>
    %509 = arith.addf %506, %508 : vector<2x128xf32>
    %510 = vector.extract_strided_slice %509 {offsets = [0, 0], sizes = [2, 32], strides = [1, 1]} : vector<2x128xf32> to vector<2x32xf32>
    %511 = arith.negf %510 : vector<2x32xf32>
    %512 = math.exp %511 : vector<2x32xf32>
    %cst_225 = arith.constant 1.000000e+00 : f32
    %513 = vector.broadcast %cst_225 : f32 to vector<2x32xf32>
    %514 = arith.addf %513, %512 : vector<2x32xf32>
    %515 = arith.divf %513, %514 : vector<2x32xf32>
    %516 = vector.extract_strided_slice %509 {offsets = [0, 32], sizes = [2, 32], strides = [1, 1]} : vector<2x128xf32> to vector<2x32xf32>
    %517 = arith.negf %516 : vector<2x32xf32>
    %518 = math.exp %517 : vector<2x32xf32>
    %cst_226 = arith.constant 1.000000e+00 : f32
    %519 = vector.broadcast %cst_226 : f32 to vector<2x32xf32>
    %520 = arith.addf %519, %518 : vector<2x32xf32>
    %521 = arith.divf %519, %520 : vector<2x32xf32>
    %522 = vector.extract_strided_slice %509 {offsets = [0, 64], sizes = [2, 32], strides = [1, 1]} : vector<2x128xf32> to vector<2x32xf32>
    %523 = math.tanh %522 : vector<2x32xf32>
    %524 = vector.extract_strided_slice %509 {offsets = [0, 96], sizes = [2, 32], strides = [1, 1]} : vector<2x128xf32> to vector<2x32xf32>
    %525 = arith.negf %524 : vector<2x32xf32>
    %526 = math.exp %525 : vector<2x32xf32>
    %cst_227 = arith.constant 1.000000e+00 : f32
    %527 = vector.broadcast %cst_227 : f32 to vector<2x32xf32>
    %528 = arith.addf %527, %526 : vector<2x32xf32>
    %529 = arith.divf %527, %528 : vector<2x32xf32>
    %530 = arith.mulf %521, %434 : vector<2x32xf32>
    %531 = arith.mulf %515, %523 : vector<2x32xf32>
    %532 = arith.addf %530, %531 : vector<2x32xf32>
    %533 = math.tanh %532 : vector<2x32xf32>
    %534 = arith.mulf %529, %533 : vector<2x32xf32>
    %c0_228 = arith.constant 0 : index
    %c4_229 = arith.constant 4 : index
    %535 = vector.load %arg2[%c0_228, %c4_229] : memref<2x10xi32, #tpu.memory_space<vmem>>, vector<2x1xi32>
    %536 = tpu.iota {dimensions = array<i32: 1>} : vector<2x24xi32>
    %537 = vector.broadcast %535 : vector<2x1xi32> to vector<2x24xi32>
    %538 = arith.cmpi eq, %536, %537 : vector<2x24xi32>
    %539 = arith.extui %538 : vector<2x24xi1> to vector<2x24xi32>
    %540 = arith.sitofp %539 : vector<2x24xi32> to vector<2x24xf32>
    %c0_230 = arith.constant 0 : index
    %c0_231 = arith.constant 0 : index
    %541 = vector.load %arg4[%c0_230, %c0_231] : memref<24x16xf32, #tpu.memory_space<vmem>>, vector<24x16xf32>
    %cst_232 = arith.constant dense<0.000000e+00> : vector<2x16xf32>
    %542 = tpu.matmul %540, %541, %cst_232 {dimension_numbers = #tpu.dot_dimension_numbers<[1], [0], [0], [1], [0, 0, 1, 1], [], []>} : vector<2x24xf32>, vector<24x16xf32>, vector<2x16xf32> -> vector<2x16xf32>
    %c0_233 = arith.constant 0 : index
    %c0_234 = arith.constant 0 : index
    %543 = vector.load %arg8[%c0_233, %c0_234] : memref<16x128xf32, #tpu.memory_space<vmem>>, vector<16x128xf32>
    %cst_235 = arith.constant dense<0.000000e+00> : vector<2x128xf32>
    %544 = tpu.matmul %542, %543, %cst_235 {dimension_numbers = #tpu.dot_dimension_numbers<[1], [0], [0], [1], [0, 0, 1, 1], [], []>} : vector<2x16xf32>, vector<16x128xf32>, vector<2x128xf32> -> vector<2x128xf32>
    %c0_236 = arith.constant 0 : index
    %c0_237 = arith.constant 0 : index
    %545 = vector.load %arg9[%c0_236, %c0_237] : memref<32x128xf32, #tpu.memory_space<vmem>>, vector<32x128xf32>
    %cst_238 = arith.constant dense<0.000000e+00> : vector<2x128xf32>
    %546 = tpu.matmul %477, %545, %cst_238 {dimension_numbers = #tpu.dot_dimension_numbers<[1], [0], [0], [1], [0, 0, 1, 1], [], []>} : vector<2x32xf32>, vector<32x128xf32>, vector<2x128xf32> -> vector<2x128xf32>
    %547 = arith.addf %544, %546 : vector<2x128xf32>
    %c0_239 = arith.constant 0 : index
    %c0_240 = arith.constant 0 : index
    %548 = vector.load %arg10[%c0_239, %c0_240] : memref<1x128xf32, #tpu.memory_space<vmem>>, vector<1x128xf32>
    %549 = vector.broadcast %548 : vector<1x128xf32> to vector<2x128xf32>
    %550 = arith.addf %547, %549 : vector<2x128xf32>
    %551 = vector.extract_strided_slice %550 {offsets = [0, 0], sizes = [2, 32], strides = [1, 1]} : vector<2x128xf32> to vector<2x32xf32>
    %552 = arith.negf %551 : vector<2x32xf32>
    %553 = math.exp %552 : vector<2x32xf32>
    %cst_241 = arith.constant 1.000000e+00 : f32
    %554 = vector.broadcast %cst_241 : f32 to vector<2x32xf32>
    %555 = arith.addf %554, %553 : vector<2x32xf32>
    %556 = arith.divf %554, %555 : vector<2x32xf32>
    %557 = vector.extract_strided_slice %550 {offsets = [0, 32], sizes = [2, 32], strides = [1, 1]} : vector<2x128xf32> to vector<2x32xf32>
    %558 = arith.negf %557 : vector<2x32xf32>
    %559 = math.exp %558 : vector<2x32xf32>
    %cst_242 = arith.constant 1.000000e+00 : f32
    %560 = vector.broadcast %cst_242 : f32 to vector<2x32xf32>
    %561 = arith.addf %560, %559 : vector<2x32xf32>
    %562 = arith.divf %560, %561 : vector<2x32xf32>
    %563 = vector.extract_strided_slice %550 {offsets = [0, 64], sizes = [2, 32], strides = [1, 1]} : vector<2x128xf32> to vector<2x32xf32>
    %564 = math.tanh %563 : vector<2x32xf32>
    %565 = vector.extract_strided_slice %550 {offsets = [0, 96], sizes = [2, 32], strides = [1, 1]} : vector<2x128xf32> to vector<2x32xf32>
    %566 = arith.negf %565 : vector<2x32xf32>
    %567 = math.exp %566 : vector<2x32xf32>
    %cst_243 = arith.constant 1.000000e+00 : f32
    %568 = vector.broadcast %cst_243 : f32 to vector<2x32xf32>
    %569 = arith.addf %568, %567 : vector<2x32xf32>
    %570 = arith.divf %568, %569 : vector<2x32xf32>
    %571 = arith.mulf %562, %475 : vector<2x32xf32>
    %572 = arith.mulf %556, %564 : vector<2x32xf32>
    %573 = arith.addf %571, %572 : vector<2x32xf32>
    %574 = math.tanh %573 : vector<2x32xf32>
    %575 = arith.mulf %570, %574 : vector<2x32xf32>
    %576 = vector.extract_strided_slice %534 {offsets = [0, 0], sizes = [1, 32], strides = [1, 1]} : vector<2x32xf32> to vector<1x32xf32>
    %c0_244 = arith.constant 0 : index
    %c5_245 = arith.constant 5 : index
    %c0_246 = arith.constant 0 : index
    %577 = vector.load %arg26[%c0_244, %c5_245, %c0_246] : memref<2x10x64xf32, #tpu.memory_space<vmem>>, vector<1x1x32xf32>
    %578 = vector.shape_cast %577 : vector<1x1x32xf32> to vector<1x32xf32>
    %579 = vector.shape_cast %576 : vector<1x32xf32> to vector<1x1x32xf32>
    tpu.vector_store %arg26[%c0_244, %c5_245, %c0_246], %579 {strides = array<i32>} : memref<2x10x64xf32, #tpu.memory_space<vmem>>, vector<1x1x32xf32>,
    %580 = vector.extract_strided_slice %575 {offsets = [0, 0], sizes = [1, 32], strides = [1, 1]} : vector<2x32xf32> to vector<1x32xf32>
    %c0_247 = arith.constant 0 : index
    %c4_248 = arith.constant 4 : index
    %c32_249 = arith.constant 32 : index
    %581 = vector.load %arg26[%c0_247, %c4_248, %c32_249] : memref<2x10x64xf32, #tpu.memory_space<vmem>>, vector<1x1x32xf32>
    %582 = vector.shape_cast %581 : vector<1x1x32xf32> to vector<1x32xf32>
    %583 = vector.shape_cast %580 : vector<1x32xf32> to vector<1x1x32xf32>
    tpu.vector_store %arg26[%c0_247, %c4_248, %c32_249], %583 {strides = array<i32>} : memref<2x10x64xf32, #tpu.memory_space<vmem>>, vector<1x1x32xf32>,
    %584 = vector.extract_strided_slice %534 {offsets = [1, 0], sizes = [1, 32], strides = [1, 1]} : vector<2x32xf32> to vector<1x32xf32>
    %c1_250 = arith.constant 1 : index
    %c5_251 = arith.constant 5 : index
    %c0_252 = arith.constant 0 : index
    %585 = vector.load %arg26[%c1_250, %c5_251, %c0_252] : memref<2x10x64xf32, #tpu.memory_space<vmem>>, vector<1x1x32xf32>
    %586 = vector.shape_cast %585 : vector<1x1x32xf32> to vector<1x32xf32>
    %587 = vector.shape_cast %584 : vector<1x32xf32> to vector<1x1x32xf32>
    tpu.vector_store %arg26[%c1_250, %c5_251, %c0_252], %587 {strides = array<i32>} : memref<2x10x64xf32, #tpu.memory_space<vmem>>, vector<1x1x32xf32>,
    %588 = vector.extract_strided_slice %575 {offsets = [1, 0], sizes = [1, 32], strides = [1, 1]} : vector<2x32xf32> to vector<1x32xf32>
    %c1_253 = arith.constant 1 : index
    %c4_254 = arith.constant 4 : index
    %c32_255 = arith.constant 32 : index
    %589 = vector.load %arg26[%c1_253, %c4_254, %c32_255] : memref<2x10x64xf32, #tpu.memory_space<vmem>>, vector<1x1x32xf32>
    %590 = vector.shape_cast %589 : vector<1x1x32xf32> to vector<1x32xf32>
    %591 = vector.shape_cast %588 : vector<1x32xf32> to vector<1x1x32xf32>
    tpu.vector_store %arg26[%c1_253, %c4_254, %c32_255], %591 {strides = array<i32>} : memref<2x10x64xf32, #tpu.memory_space<vmem>>, vector<1x1x32xf32>,
    %c0_256 = arith.constant 0 : index
    %c6_257 = arith.constant 6 : index
    %592 = vector.load %arg2[%c0_256, %c6_257] : memref<2x10xi32, #tpu.memory_space<vmem>>, vector<2x1xi32>
    %593 = tpu.iota {dimensions = array<i32: 1>} : vector<2x24xi32>
    %594 = vector.broadcast %592 : vector<2x1xi32> to vector<2x24xi32>
    %595 = arith.cmpi eq, %593, %594 : vector<2x24xi32>
    %596 = arith.extui %595 : vector<2x24xi1> to vector<2x24xi32>
    %597 = arith.sitofp %596 : vector<2x24xi32> to vector<2x24xf32>
    %c0_258 = arith.constant 0 : index
    %c0_259 = arith.constant 0 : index
    %598 = vector.load %arg4[%c0_258, %c0_259] : memref<24x16xf32, #tpu.memory_space<vmem>>, vector<24x16xf32>
    %cst_260 = arith.constant dense<0.000000e+00> : vector<2x16xf32>
    %599 = tpu.matmul %597, %598, %cst_260 {dimension_numbers = #tpu.dot_dimension_numbers<[1], [0], [0], [1], [0, 0, 1, 1], [], []>} : vector<2x24xf32>, vector<24x16xf32>, vector<2x16xf32> -> vector<2x16xf32>
    %c0_261 = arith.constant 0 : index
    %c0_262 = arith.constant 0 : index
    %600 = vector.load %arg5[%c0_261, %c0_262] : memref<16x128xf32, #tpu.memory_space<vmem>>, vector<16x128xf32>
    %cst_263 = arith.constant dense<0.000000e+00> : vector<2x128xf32>
    %601 = tpu.matmul %599, %600, %cst_263 {dimension_numbers = #tpu.dot_dimension_numbers<[1], [0], [0], [1], [0, 0, 1, 1], [], []>} : vector<2x16xf32>, vector<16x128xf32>, vector<2x128xf32> -> vector<2x128xf32>
    %c0_264 = arith.constant 0 : index
    %c0_265 = arith.constant 0 : index
    %602 = vector.load %arg6[%c0_264, %c0_265] : memref<32x128xf32, #tpu.memory_space<vmem>>, vector<32x128xf32>
    %cst_266 = arith.constant dense<0.000000e+00> : vector<2x128xf32>
    %603 = tpu.matmul %534, %602, %cst_266 {dimension_numbers = #tpu.dot_dimension_numbers<[1], [0], [0], [1], [0, 0, 1, 1], [], []>} : vector<2x32xf32>, vector<32x128xf32>, vector<2x128xf32> -> vector<2x128xf32>
    %604 = arith.addf %601, %603 : vector<2x128xf32>
    %c0_267 = arith.constant 0 : index
    %c0_268 = arith.constant 0 : index
    %605 = vector.load %arg7[%c0_267, %c0_268] : memref<1x128xf32, #tpu.memory_space<vmem>>, vector<1x128xf32>
    %606 = vector.broadcast %605 : vector<1x128xf32> to vector<2x128xf32>
    %607 = arith.addf %604, %606 : vector<2x128xf32>
    %608 = vector.extract_strided_slice %607 {offsets = [0, 0], sizes = [2, 32], strides = [1, 1]} : vector<2x128xf32> to vector<2x32xf32>
    %609 = arith.negf %608 : vector<2x32xf32>
    %610 = math.exp %609 : vector<2x32xf32>
    %cst_269 = arith.constant 1.000000e+00 : f32
    %611 = vector.broadcast %cst_269 : f32 to vector<2x32xf32>
    %612 = arith.addf %611, %610 : vector<2x32xf32>
    %613 = arith.divf %611, %612 : vector<2x32xf32>
    %614 = vector.extract_strided_slice %607 {offsets = [0, 32], sizes = [2, 32], strides = [1, 1]} : vector<2x128xf32> to vector<2x32xf32>
    %615 = arith.negf %614 : vector<2x32xf32>
    %616 = math.exp %615 : vector<2x32xf32>
    %cst_270 = arith.constant 1.000000e+00 : f32
    %617 = vector.broadcast %cst_270 : f32 to vector<2x32xf32>
    %618 = arith.addf %617, %616 : vector<2x32xf32>
    %619 = arith.divf %617, %618 : vector<2x32xf32>
    %620 = vector.extract_strided_slice %607 {offsets = [0, 64], sizes = [2, 32], strides = [1, 1]} : vector<2x128xf32> to vector<2x32xf32>
    %621 = math.tanh %620 : vector<2x32xf32>
    %622 = vector.extract_strided_slice %607 {offsets = [0, 96], sizes = [2, 32], strides = [1, 1]} : vector<2x128xf32> to vector<2x32xf32>
    %623 = arith.negf %622 : vector<2x32xf32>
    %624 = math.exp %623 : vector<2x32xf32>
    %cst_271 = arith.constant 1.000000e+00 : f32
    %625 = vector.broadcast %cst_271 : f32 to vector<2x32xf32>
    %626 = arith.addf %625, %624 : vector<2x32xf32>
    %627 = arith.divf %625, %626 : vector<2x32xf32>
    %628 = arith.mulf %619, %532 : vector<2x32xf32>
    %629 = arith.mulf %613, %621 : vector<2x32xf32>
    %630 = arith.addf %628, %629 : vector<2x32xf32>
    %631 = math.tanh %630 : vector<2x32xf32>
    %632 = arith.mulf %627, %631 : vector<2x32xf32>
    %c0_272 = arith.constant 0 : index
    %c3_273 = arith.constant 3 : index
    %633 = vector.load %arg2[%c0_272, %c3_273] : memref<2x10xi32, #tpu.memory_space<vmem>>, vector<2x1xi32>
    %634 = tpu.iota {dimensions = array<i32: 1>} : vector<2x24xi32>
    %635 = vector.broadcast %633 : vector<2x1xi32> to vector<2x24xi32>
    %636 = arith.cmpi eq, %634, %635 : vector<2x24xi32>
    %637 = arith.extui %636 : vector<2x24xi1> to vector<2x24xi32>
    %638 = arith.sitofp %637 : vector<2x24xi32> to vector<2x24xf32>
    %c0_274 = arith.constant 0 : index
    %c0_275 = arith.constant 0 : index
    %639 = vector.load %arg4[%c0_274, %c0_275] : memref<24x16xf32, #tpu.memory_space<vmem>>, vector<24x16xf32>
    %cst_276 = arith.constant dense<0.000000e+00> : vector<2x16xf32>
    %640 = tpu.matmul %638, %639, %cst_276 {dimension_numbers = #tpu.dot_dimension_numbers<[1], [0], [0], [1], [0, 0, 1, 1], [], []>} : vector<2x24xf32>, vector<24x16xf32>, vector<2x16xf32> -> vector<2x16xf32>
    %c0_277 = arith.constant 0 : index
    %c0_278 = arith.constant 0 : index
    %641 = vector.load %arg8[%c0_277, %c0_278] : memref<16x128xf32, #tpu.memory_space<vmem>>, vector<16x128xf32>
    %cst_279 = arith.constant dense<0.000000e+00> : vector<2x128xf32>
    %642 = tpu.matmul %640, %641, %cst_279 {dimension_numbers = #tpu.dot_dimension_numbers<[1], [0], [0], [1], [0, 0, 1, 1], [], []>} : vector<2x16xf32>, vector<16x128xf32>, vector<2x128xf32> -> vector<2x128xf32>
    %c0_280 = arith.constant 0 : index
    %c0_281 = arith.constant 0 : index
    %643 = vector.load %arg9[%c0_280, %c0_281] : memref<32x128xf32, #tpu.memory_space<vmem>>, vector<32x128xf32>
    %cst_282 = arith.constant dense<0.000000e+00> : vector<2x128xf32>
    %644 = tpu.matmul %575, %643, %cst_282 {dimension_numbers = #tpu.dot_dimension_numbers<[1], [0], [0], [1], [0, 0, 1, 1], [], []>} : vector<2x32xf32>, vector<32x128xf32>, vector<2x128xf32> -> vector<2x128xf32>
    %645 = arith.addf %642, %644 : vector<2x128xf32>
    %c0_283 = arith.constant 0 : index
    %c0_284 = arith.constant 0 : index
    %646 = vector.load %arg10[%c0_283, %c0_284] : memref<1x128xf32, #tpu.memory_space<vmem>>, vector<1x128xf32>
    %647 = vector.broadcast %646 : vector<1x128xf32> to vector<2x128xf32>
    %648 = arith.addf %645, %647 : vector<2x128xf32>
    %649 = vector.extract_strided_slice %648 {offsets = [0, 0], sizes = [2, 32], strides = [1, 1]} : vector<2x128xf32> to vector<2x32xf32>
    %650 = arith.negf %649 : vector<2x32xf32>
    %651 = math.exp %650 : vector<2x32xf32>
    %cst_285 = arith.constant 1.000000e+00 : f32
    %652 = vector.broadcast %cst_285 : f32 to vector<2x32xf32>
    %653 = arith.addf %652, %651 : vector<2x32xf32>
    %654 = arith.divf %652, %653 : vector<2x32xf32>
    %655 = vector.extract_strided_slice %648 {offsets = [0, 32], sizes = [2, 32], strides = [1, 1]} : vector<2x128xf32> to vector<2x32xf32>
    %656 = arith.negf %655 : vector<2x32xf32>
    %657 = math.exp %656 : vector<2x32xf32>
    %cst_286 = arith.constant 1.000000e+00 : f32
    %658 = vector.broadcast %cst_286 : f32 to vector<2x32xf32>
    %659 = arith.addf %658, %657 : vector<2x32xf32>
    %660 = arith.divf %658, %659 : vector<2x32xf32>
    %661 = vector.extract_strided_slice %648 {offsets = [0, 64], sizes = [2, 32], strides = [1, 1]} : vector<2x128xf32> to vector<2x32xf32>
    %662 = math.tanh %661 : vector<2x32xf32>
    %663 = vector.extract_strided_slice %648 {offsets = [0, 96], sizes = [2, 32], strides = [1, 1]} : vector<2x128xf32> to vector<2x32xf32>
    %664 = arith.negf %663 : vector<2x32xf32>
    %665 = math.exp %664 : vector<2x32xf32>
    %cst_287 = arith.constant 1.000000e+00 : f32
    %666 = vector.broadcast %cst_287 : f32 to vector<2x32xf32>
    %667 = arith.addf %666, %665 : vector<2x32xf32>
    %668 = arith.divf %666, %667 : vector<2x32xf32>
    %669 = arith.mulf %660, %573 : vector<2x32xf32>
    %670 = arith.mulf %654, %662 : vector<2x32xf32>
    %671 = arith.addf %669, %670 : vector<2x32xf32>
    %672 = math.tanh %671 : vector<2x32xf32>
    %673 = arith.mulf %668, %672 : vector<2x32xf32>
    %674 = vector.extract_strided_slice %632 {offsets = [0, 0], sizes = [1, 32], strides = [1, 1]} : vector<2x32xf32> to vector<1x32xf32>
    %c0_288 = arith.constant 0 : index
    %c6_289 = arith.constant 6 : index
    %c0_290 = arith.constant 0 : index
    %675 = vector.load %arg26[%c0_288, %c6_289, %c0_290] : memref<2x10x64xf32, #tpu.memory_space<vmem>>, vector<1x1x32xf32>
    %676 = vector.shape_cast %675 : vector<1x1x32xf32> to vector<1x32xf32>
    %677 = vector.shape_cast %674 : vector<1x32xf32> to vector<1x1x32xf32>
    tpu.vector_store %arg26[%c0_288, %c6_289, %c0_290], %677 {strides = array<i32>} : memref<2x10x64xf32, #tpu.memory_space<vmem>>, vector<1x1x32xf32>,
    %678 = vector.extract_strided_slice %673 {offsets = [0, 0], sizes = [1, 32], strides = [1, 1]} : vector<2x32xf32> to vector<1x32xf32>
    %c0_291 = arith.constant 0 : index
    %c3_292 = arith.constant 3 : index
    %c32_293 = arith.constant 32 : index
    %679 = vector.load %arg26[%c0_291, %c3_292, %c32_293] : memref<2x10x64xf32, #tpu.memory_space<vmem>>, vector<1x1x32xf32>
    %680 = vector.shape_cast %679 : vector<1x1x32xf32> to vector<1x32xf32>
    %681 = vector.shape_cast %678 : vector<1x32xf32> to vector<1x1x32xf32>
    tpu.vector_store %arg26[%c0_291, %c3_292, %c32_293], %681 {strides = array<i32>} : memref<2x10x64xf32, #tpu.memory_space<vmem>>, vector<1x1x32xf32>,
    %682 = vector.extract_strided_slice %632 {offsets = [1, 0], sizes = [1, 32], strides = [1, 1]} : vector<2x32xf32> to vector<1x32xf32>
    %c1_294 = arith.constant 1 : index
    %c6_295 = arith.constant 6 : index
    %c0_296 = arith.constant 0 : index
    %683 = vector.load %arg26[%c1_294, %c6_295, %c0_296] : memref<2x10x64xf32, #tpu.memory_space<vmem>>, vector<1x1x32xf32>
    %684 = vector.shape_cast %683 : vector<1x1x32xf32> to vector<1x32xf32>
    %685 = vector.shape_cast %682 : vector<1x32xf32> to vector<1x1x32xf32>
    tpu.vector_store %arg26[%c1_294, %c6_295, %c0_296], %685 {strides = array<i32>} : memref<2x10x64xf32, #tpu.memory_space<vmem>>, vector<1x1x32xf32>,
    %686 = vector.extract_strided_slice %673 {offsets = [1, 0], sizes = [1, 32], strides = [1, 1]} : vector<2x32xf32> to vector<1x32xf32>
    %c1_297 = arith.constant 1 : index
    %c3_298 = arith.constant 3 : index
    %c32_299 = arith.constant 32 : index
    %687 = vector.load %arg26[%c1_297, %c3_298, %c32_299] : memref<2x10x64xf32, #tpu.memory_space<vmem>>, vector<1x1x32xf32>
    %688 = vector.shape_cast %687 : vector<1x1x32xf32> to vector<1x32xf32>
    %689 = vector.shape_cast %686 : vector<1x32xf32> to vector<1x1x32xf32>
    tpu.vector_store %arg26[%c1_297, %c3_298, %c32_299], %689 {strides = array<i32>} : memref<2x10x64xf32, #tpu.memory_space<vmem>>, vector<1x1x32xf32>,
    %c0_300 = arith.constant 0 : index
    %c7_301 = arith.constant 7 : index
    %690 = vector.load %arg2[%c0_300, %c7_301] : memref<2x10xi32, #tpu.memory_space<vmem>>, vector<2x1xi32>
    %691 = tpu.iota {dimensions = array<i32: 1>} : vector<2x24xi32>
    %692 = vector.broadcast %690 : vector<2x1xi32> to vector<2x24xi32>
    %693 = arith.cmpi eq, %691, %692 : vector<2x24xi32>
    %694 = arith.extui %693 : vector<2x24xi1> to vector<2x24xi32>
    %695 = arith.sitofp %694 : vector<2x24xi32> to vector<2x24xf32>
    %c0_302 = arith.constant 0 : index
    %c0_303 = arith.constant 0 : index
    %696 = vector.load %arg4[%c0_302, %c0_303] : memref<24x16xf32, #tpu.memory_space<vmem>>, vector<24x16xf32>
    %cst_304 = arith.constant dense<0.000000e+00> : vector<2x16xf32>
    %697 = tpu.matmul %695, %696, %cst_304 {dimension_numbers = #tpu.dot_dimension_numbers<[1], [0], [0], [1], [0, 0, 1, 1], [], []>} : vector<2x24xf32>, vector<24x16xf32>, vector<2x16xf32> -> vector<2x16xf32>
    %c0_305 = arith.constant 0 : index
    %c0_306 = arith.constant 0 : index
    %698 = vector.load %arg5[%c0_305, %c0_306] : memref<16x128xf32, #tpu.memory_space<vmem>>, vector<16x128xf32>
    %cst_307 = arith.constant dense<0.000000e+00> : vector<2x128xf32>
    %699 = tpu.matmul %697, %698, %cst_307 {dimension_numbers = #tpu.dot_dimension_numbers<[1], [0], [0], [1], [0, 0, 1, 1], [], []>} : vector<2x16xf32>, vector<16x128xf32>, vector<2x128xf32> -> vector<2x128xf32>
    %c0_308 = arith.constant 0 : index
    %c0_309 = arith.constant 0 : index
    %700 = vector.load %arg6[%c0_308, %c0_309] : memref<32x128xf32, #tpu.memory_space<vmem>>, vector<32x128xf32>
    %cst_310 = arith.constant dense<0.000000e+00> : vector<2x128xf32>
    %701 = tpu.matmul %632, %700, %cst_310 {dimension_numbers = #tpu.dot_dimension_numbers<[1], [0], [0], [1], [0, 0, 1, 1], [], []>} : vector<2x32xf32>, vector<32x128xf32>, vector<2x128xf32> -> vector<2x128xf32>
    %702 = arith.addf %699, %701 : vector<2x128xf32>
    %c0_311 = arith.constant 0 : index
    %c0_312 = arith.constant 0 : index
    %703 = vector.load %arg7[%c0_311, %c0_312] : memref<1x128xf32, #tpu.memory_space<vmem>>, vector<1x128xf32>
    %704 = vector.broadcast %703 : vector<1x128xf32> to vector<2x128xf32>
    %705 = arith.addf %702, %704 : vector<2x128xf32>
    %706 = vector.extract_strided_slice %705 {offsets = [0, 0], sizes = [2, 32], strides = [1, 1]} : vector<2x128xf32> to vector<2x32xf32>
    %707 = arith.negf %706 : vector<2x32xf32>
    %708 = math.exp %707 : vector<2x32xf32>
    %cst_313 = arith.constant 1.000000e+00 : f32
    %709 = vector.broadcast %cst_313 : f32 to vector<2x32xf32>
    %710 = arith.addf %709, %708 : vector<2x32xf32>
    %711 = arith.divf %709, %710 : vector<2x32xf32>
    %712 = vector.extract_strided_slice %705 {offsets = [0, 32], sizes = [2, 32], strides = [1, 1]} : vector<2x128xf32> to vector<2x32xf32>
    %713 = arith.negf %712 : vector<2x32xf32>
    %714 = math.exp %713 : vector<2x32xf32>
    %cst_314 = arith.constant 1.000000e+00 : f32
    %715 = vector.broadcast %cst_314 : f32 to vector<2x32xf32>
    %716 = arith.addf %715, %714 : vector<2x32xf32>
    %717 = arith.divf %715, %716 : vector<2x32xf32>
    %718 = vector.extract_strided_slice %705 {offsets = [0, 64], sizes = [2, 32], strides = [1, 1]} : vector<2x128xf32> to vector<2x32xf32>
    %719 = math.tanh %718 : vector<2x32xf32>
    %720 = vector.extract_strided_slice %705 {offsets = [0, 96], sizes = [2, 32], strides = [1, 1]} : vector<2x128xf32> to vector<2x32xf32>
    %721 = arith.negf %720 : vector<2x32xf32>
    %722 = math.exp %721 : vector<2x32xf32>
    %cst_315 = arith.constant 1.000000e+00 : f32
    %723 = vector.broadcast %cst_315 : f32 to vector<2x32xf32>
    %724 = arith.addf %723, %722 : vector<2x32xf32>
    %725 = arith.divf %723, %724 : vector<2x32xf32>
    %726 = arith.mulf %717, %630 : vector<2x32xf32>
    %727 = arith.mulf %711, %719 : vector<2x32xf32>
    %728 = arith.addf %726, %727 : vector<2x32xf32>
    %729 = math.tanh %728 : vector<2x32xf32>
    %730 = arith.mulf %725, %729 : vector<2x32xf32>
    %c0_316 = arith.constant 0 : index
    %c2_317 = arith.constant 2 : index
    %731 = vector.load %arg2[%c0_316, %c2_317] : memref<2x10xi32, #tpu.memory_space<vmem>>, vector<2x1xi32>
    %732 = tpu.iota {dimensions = array<i32: 1>} : vector<2x24xi32>
    %733 = vector.broadcast %731 : vector<2x1xi32> to vector<2x24xi32>
    %734 = arith.cmpi eq, %732, %733 : vector<2x24xi32>
    %735 = arith.extui %734 : vector<2x24xi1> to vector<2x24xi32>
    %736 = arith.sitofp %735 : vector<2x24xi32> to vector<2x24xf32>
    %c0_318 = arith.constant 0 : index
    %c0_319 = arith.constant 0 : index
    %737 = vector.load %arg4[%c0_318, %c0_319] : memref<24x16xf32, #tpu.memory_space<vmem>>, vector<24x16xf32>
    %cst_320 = arith.constant dense<0.000000e+00> : vector<2x16xf32>
    %738 = tpu.matmul %736, %737, %cst_320 {dimension_numbers = #tpu.dot_dimension_numbers<[1], [0], [0], [1], [0, 0, 1, 1], [], []>} : vector<2x24xf32>, vector<24x16xf32>, vector<2x16xf32> -> vector<2x16xf32>
    %c0_321 = arith.constant 0 : index
    %c0_322 = arith.constant 0 : index
    %739 = vector.load %arg8[%c0_321, %c0_322] : memref<16x128xf32, #tpu.memory_space<vmem>>, vector<16x128xf32>
    %cst_323 = arith.constant dense<0.000000e+00> : vector<2x128xf32>
    %740 = tpu.matmul %738, %739, %cst_323 {dimension_numbers = #tpu.dot_dimension_numbers<[1], [0], [0], [1], [0, 0, 1, 1], [], []>} : vector<2x16xf32>, vector<16x128xf32>, vector<2x128xf32> -> vector<2x128xf32>
    %c0_324 = arith.constant 0 : index
    %c0_325 = arith.constant 0 : index
    %741 = vector.load %arg9[%c0_324, %c0_325] : memref<32x128xf32, #tpu.memory_space<vmem>>, vector<32x128xf32>
    %cst_326 = arith.constant dense<0.000000e+00> : vector<2x128xf32>
    %742 = tpu.matmul %673, %741, %cst_326 {dimension_numbers = #tpu.dot_dimension_numbers<[1], [0], [0], [1], [0, 0, 1, 1], [], []>} : vector<2x32xf32>, vector<32x128xf32>, vector<2x128xf32> -> vector<2x128xf32>
    %743 = arith.addf %740, %742 : vector<2x128xf32>
    %c0_327 = arith.constant 0 : index
    %c0_328 = arith.constant 0 : index
    %744 = vector.load %arg10[%c0_327, %c0_328] : memref<1x128xf32, #tpu.memory_space<vmem>>, vector<1x128xf32>
    %745 = vector.broadcast %744 : vector<1x128xf32> to vector<2x128xf32>
    %746 = arith.addf %743, %745 : vector<2x128xf32>
    %747 = vector.extract_strided_slice %746 {offsets = [0, 0], sizes = [2, 32], strides = [1, 1]} : vector<2x128xf32> to vector<2x32xf32>
    %748 = arith.negf %747 : vector<2x32xf32>
    %749 = math.exp %748 : vector<2x32xf32>
    %cst_329 = arith.constant 1.000000e+00 : f32
    %750 = vector.broadcast %cst_329 : f32 to vector<2x32xf32>
    %751 = arith.addf %750, %749 : vector<2x32xf32>
    %752 = arith.divf %750, %751 : vector<2x32xf32>
    %753 = vector.extract_strided_slice %746 {offsets = [0, 32], sizes = [2, 32], strides = [1, 1]} : vector<2x128xf32> to vector<2x32xf32>
    %754 = arith.negf %753 : vector<2x32xf32>
    %755 = math.exp %754 : vector<2x32xf32>
    %cst_330 = arith.constant 1.000000e+00 : f32
    %756 = vector.broadcast %cst_330 : f32 to vector<2x32xf32>
    %757 = arith.addf %756, %755 : vector<2x32xf32>
    %758 = arith.divf %756, %757 : vector<2x32xf32>
    %759 = vector.extract_strided_slice %746 {offsets = [0, 64], sizes = [2, 32], strides = [1, 1]} : vector<2x128xf32> to vector<2x32xf32>
    %760 = math.tanh %759 : vector<2x32xf32>
    %761 = vector.extract_strided_slice %746 {offsets = [0, 96], sizes = [2, 32], strides = [1, 1]} : vector<2x128xf32> to vector<2x32xf32>
    %762 = arith.negf %761 : vector<2x32xf32>
    %763 = math.exp %762 : vector<2x32xf32>
    %cst_331 = arith.constant 1.000000e+00 : f32
    %764 = vector.broadcast %cst_331 : f32 to vector<2x32xf32>
    %765 = arith.addf %764, %763 : vector<2x32xf32>
    %766 = arith.divf %764, %765 : vector<2x32xf32>
    %767 = arith.mulf %758, %671 : vector<2x32xf32>
    %768 = arith.mulf %752, %760 : vector<2x32xf32>
    %769 = arith.addf %767, %768 : vector<2x32xf32>
    %770 = math.tanh %769 : vector<2x32xf32>
    %771 = arith.mulf %766, %770 : vector<2x32xf32>
    %772 = vector.extract_strided_slice %730 {offsets = [0, 0], sizes = [1, 32], strides = [1, 1]} : vector<2x32xf32> to vector<1x32xf32>
    %c0_332 = arith.constant 0 : index
    %c7_333 = arith.constant 7 : index
    %c0_334 = arith.constant 0 : index
    %773 = vector.load %arg26[%c0_332, %c7_333, %c0_334] : memref<2x10x64xf32, #tpu.memory_space<vmem>>, vector<1x1x32xf32>
    %774 = vector.shape_cast %773 : vector<1x1x32xf32> to vector<1x32xf32>
    %775 = vector.shape_cast %772 : vector<1x32xf32> to vector<1x1x32xf32>
    tpu.vector_store %arg26[%c0_332, %c7_333, %c0_334], %775 {strides = array<i32>} : memref<2x10x64xf32, #tpu.memory_space<vmem>>, vector<1x1x32xf32>,
    %776 = vector.extract_strided_slice %771 {offsets = [0, 0], sizes = [1, 32], strides = [1, 1]} : vector<2x32xf32> to vector<1x32xf32>
    %c0_335 = arith.constant 0 : index
    %c2_336 = arith.constant 2 : index
    %c32_337 = arith.constant 32 : index
    %777 = vector.load %arg26[%c0_335, %c2_336, %c32_337] : memref<2x10x64xf32, #tpu.memory_space<vmem>>, vector<1x1x32xf32>
    %778 = vector.shape_cast %777 : vector<1x1x32xf32> to vector<1x32xf32>
    %779 = vector.shape_cast %776 : vector<1x32xf32> to vector<1x1x32xf32>
    tpu.vector_store %arg26[%c0_335, %c2_336, %c32_337], %779 {strides = array<i32>} : memref<2x10x64xf32, #tpu.memory_space<vmem>>, vector<1x1x32xf32>,
    %780 = vector.extract_strided_slice %730 {offsets = [1, 0], sizes = [1, 32], strides = [1, 1]} : vector<2x32xf32> to vector<1x32xf32>
    %c1_338 = arith.constant 1 : index
    %c7_339 = arith.constant 7 : index
    %c0_340 = arith.constant 0 : index
    %781 = vector.load %arg26[%c1_338, %c7_339, %c0_340] : memref<2x10x64xf32, #tpu.memory_space<vmem>>, vector<1x1x32xf32>
    %782 = vector.shape_cast %781 : vector<1x1x32xf32> to vector<1x32xf32>
    %783 = vector.shape_cast %780 : vector<1x32xf32> to vector<1x1x32xf32>
    tpu.vector_store %arg26[%c1_338, %c7_339, %c0_340], %783 {strides = array<i32>} : memref<2x10x64xf32, #tpu.memory_space<vmem>>, vector<1x1x32xf32>,
    %784 = vector.extract_strided_slice %771 {offsets = [1, 0], sizes = [1, 32], strides = [1, 1]} : vector<2x32xf32> to vector<1x32xf32>
    %c1_341 = arith.constant 1 : index
    %c2_342 = arith.constant 2 : index
    %c32_343 = arith.constant 32 : index
    %785 = vector.load %arg26[%c1_341, %c2_342, %c32_343] : memref<2x10x64xf32, #tpu.memory_space<vmem>>, vector<1x1x32xf32>
    %786 = vector.shape_cast %785 : vector<1x1x32xf32> to vector<1x32xf32>
    %787 = vector.shape_cast %784 : vector<1x32xf32> to vector<1x1x32xf32>
    tpu.vector_store %arg26[%c1_341, %c2_342, %c32_343], %787 {strides = array<i32>} : memref<2x10x64xf32, #tpu.memory_space<vmem>>, vector<1x1x32xf32>,
    %c0_344 = arith.constant 0 : index
    %c8_345 = arith.constant 8 : index
    %788 = vector.load %arg2[%c0_344, %c8_345] : memref<2x10xi32, #tpu.memory_space<vmem>>, vector<2x1xi32>
    %789 = tpu.iota {dimensions = array<i32: 1>} : vector<2x24xi32>
    %790 = vector.broadcast %788 : vector<2x1xi32> to vector<2x24xi32>
    %791 = arith.cmpi eq, %789, %790 : vector<2x24xi32>
    %792 = arith.extui %791 : vector<2x24xi1> to vector<2x24xi32>
    %793 = arith.sitofp %792 : vector<2x24xi32> to vector<2x24xf32>
    %c0_346 = arith.constant 0 : index
    %c0_347 = arith.constant 0 : index
    %794 = vector.load %arg4[%c0_346, %c0_347] : memref<24x16xf32, #tpu.memory_space<vmem>>, vector<24x16xf32>
    %cst_348 = arith.constant dense<0.000000e+00> : vector<2x16xf32>
    %795 = tpu.matmul %793, %794, %cst_348 {dimension_numbers = #tpu.dot_dimension_numbers<[1], [0], [0], [1], [0, 0, 1, 1], [], []>} : vector<2x24xf32>, vector<24x16xf32>, vector<2x16xf32> -> vector<2x16xf32>
    %c0_349 = arith.constant 0 : index
    %c0_350 = arith.constant 0 : index
    %796 = vector.load %arg5[%c0_349, %c0_350] : memref<16x128xf32, #tpu.memory_space<vmem>>, vector<16x128xf32>
    %cst_351 = arith.constant dense<0.000000e+00> : vector<2x128xf32>
    %797 = tpu.matmul %795, %796, %cst_351 {dimension_numbers = #tpu.dot_dimension_numbers<[1], [0], [0], [1], [0, 0, 1, 1], [], []>} : vector<2x16xf32>, vector<16x128xf32>, vector<2x128xf32> -> vector<2x128xf32>
    %c0_352 = arith.constant 0 : index
    %c0_353 = arith.constant 0 : index
    %798 = vector.load %arg6[%c0_352, %c0_353] : memref<32x128xf32, #tpu.memory_space<vmem>>, vector<32x128xf32>
    %cst_354 = arith.constant dense<0.000000e+00> : vector<2x128xf32>
    %799 = tpu.matmul %730, %798, %cst_354 {dimension_numbers = #tpu.dot_dimension_numbers<[1], [0], [0], [1], [0, 0, 1, 1], [], []>} : vector<2x32xf32>, vector<32x128xf32>, vector<2x128xf32> -> vector<2x128xf32>
    %800 = arith.addf %797, %799 : vector<2x128xf32>
    %c0_355 = arith.constant 0 : index
    %c0_356 = arith.constant 0 : index
    %801 = vector.load %arg7[%c0_355, %c0_356] : memref<1x128xf32, #tpu.memory_space<vmem>>, vector<1x128xf32>
    %802 = vector.broadcast %801 : vector<1x128xf32> to vector<2x128xf32>
    %803 = arith.addf %800, %802 : vector<2x128xf32>
    %804 = vector.extract_strided_slice %803 {offsets = [0, 0], sizes = [2, 32], strides = [1, 1]} : vector<2x128xf32> to vector<2x32xf32>
    %805 = arith.negf %804 : vector<2x32xf32>
    %806 = math.exp %805 : vector<2x32xf32>
    %cst_357 = arith.constant 1.000000e+00 : f32
    %807 = vector.broadcast %cst_357 : f32 to vector<2x32xf32>
    %808 = arith.addf %807, %806 : vector<2x32xf32>
    %809 = arith.divf %807, %808 : vector<2x32xf32>
    %810 = vector.extract_strided_slice %803 {offsets = [0, 32], sizes = [2, 32], strides = [1, 1]} : vector<2x128xf32> to vector<2x32xf32>
    %811 = arith.negf %810 : vector<2x32xf32>
    %812 = math.exp %811 : vector<2x32xf32>
    %cst_358 = arith.constant 1.000000e+00 : f32
    %813 = vector.broadcast %cst_358 : f32 to vector<2x32xf32>
    %814 = arith.addf %813, %812 : vector<2x32xf32>
    %815 = arith.divf %813, %814 : vector<2x32xf32>
    %816 = vector.extract_strided_slice %803 {offsets = [0, 64], sizes = [2, 32], strides = [1, 1]} : vector<2x128xf32> to vector<2x32xf32>
    %817 = math.tanh %816 : vector<2x32xf32>
    %818 = vector.extract_strided_slice %803 {offsets = [0, 96], sizes = [2, 32], strides = [1, 1]} : vector<2x128xf32> to vector<2x32xf32>
    %819 = arith.negf %818 : vector<2x32xf32>
    %820 = math.exp %819 : vector<2x32xf32>
    %cst_359 = arith.constant 1.000000e+00 : f32
    %821 = vector.broadcast %cst_359 : f32 to vector<2x32xf32>
    %822 = arith.addf %821, %820 : vector<2x32xf32>
    %823 = arith.divf %821, %822 : vector<2x32xf32>
    %824 = arith.mulf %815, %728 : vector<2x32xf32>
    %825 = arith.mulf %809, %817 : vector<2x32xf32>
    %826 = arith.addf %824, %825 : vector<2x32xf32>
    %827 = math.tanh %826 : vector<2x32xf32>
    %828 = arith.mulf %823, %827 : vector<2x32xf32>
    %c0_360 = arith.constant 0 : index
    %c1_361 = arith.constant 1 : index
    %829 = vector.load %arg2[%c0_360, %c1_361] : memref<2x10xi32, #tpu.memory_space<vmem>>, vector<2x1xi32>
    %830 = tpu.iota {dimensions = array<i32: 1>} : vector<2x24xi32>
    %831 = vector.broadcast %829 : vector<2x1xi32> to vector<2x24xi32>
    %832 = arith.cmpi eq, %830, %831 : vector<2x24xi32>
    %833 = arith.extui %832 : vector<2x24xi1> to vector<2x24xi32>
    %834 = arith.sitofp %833 : vector<2x24xi32> to vector<2x24xf32>
    %c0_362 = arith.constant 0 : index
    %c0_363 = arith.constant 0 : index
    %835 = vector.load %arg4[%c0_362, %c0_363] : memref<24x16xf32, #tpu.memory_space<vmem>>, vector<24x16xf32>
    %cst_364 = arith.constant dense<0.000000e+00> : vector<2x16xf32>
    %836 = tpu.matmul %834, %835, %cst_364 {dimension_numbers = #tpu.dot_dimension_numbers<[1], [0], [0], [1], [0, 0, 1, 1], [], []>} : vector<2x24xf32>, vector<24x16xf32>, vector<2x16xf32> -> vector<2x16xf32>
    %c0_365 = arith.constant 0 : index
    %c0_366 = arith.constant 0 : index
    %837 = vector.load %arg8[%c0_365, %c0_366] : memref<16x128xf32, #tpu.memory_space<vmem>>, vector<16x128xf32>
    %cst_367 = arith.constant dense<0.000000e+00> : vector<2x128xf32>
    %838 = tpu.matmul %836, %837, %cst_367 {dimension_numbers = #tpu.dot_dimension_numbers<[1], [0], [0], [1], [0, 0, 1, 1], [], []>} : vector<2x16xf32>, vector<16x128xf32>, vector<2x128xf32> -> vector<2x128xf32>
    %c0_368 = arith.constant 0 : index
    %c0_369 = arith.constant 0 : index
    %839 = vector.load %arg9[%c0_368, %c0_369] : memref<32x128xf32, #tpu.memory_space<vmem>>, vector<32x128xf32>
    %cst_370 = arith.constant dense<0.000000e+00> : vector<2x128xf32>
    %840 = tpu.matmul %771, %839, %cst_370 {dimension_numbers = #tpu.dot_dimension_numbers<[1], [0], [0], [1], [0, 0, 1, 1], [], []>} : vector<2x32xf32>, vector<32x128xf32>, vector<2x128xf32> -> vector<2x128xf32>
    %841 = arith.addf %838, %840 : vector<2x128xf32>
    %c0_371 = arith.constant 0 : index
    %c0_372 = arith.constant 0 : index
    %842 = vector.load %arg10[%c0_371, %c0_372] : memref<1x128xf32, #tpu.memory_space<vmem>>, vector<1x128xf32>
    %843 = vector.broadcast %842 : vector<1x128xf32> to vector<2x128xf32>
    %844 = arith.addf %841, %843 : vector<2x128xf32>
    %845 = vector.extract_strided_slice %844 {offsets = [0, 0], sizes = [2, 32], strides = [1, 1]} : vector<2x128xf32> to vector<2x32xf32>
    %846 = arith.negf %845 : vector<2x32xf32>
    %847 = math.exp %846 : vector<2x32xf32>
    %cst_373 = arith.constant 1.000000e+00 : f32
    %848 = vector.broadcast %cst_373 : f32 to vector<2x32xf32>
    %849 = arith.addf %848, %847 : vector<2x32xf32>
    %850 = arith.divf %848, %849 : vector<2x32xf32>
    %851 = vector.extract_strided_slice %844 {offsets = [0, 32], sizes = [2, 32], strides = [1, 1]} : vector<2x128xf32> to vector<2x32xf32>
    %852 = arith.negf %851 : vector<2x32xf32>
    %853 = math.exp %852 : vector<2x32xf32>
    %cst_374 = arith.constant 1.000000e+00 : f32
    %854 = vector.broadcast %cst_374 : f32 to vector<2x32xf32>
    %855 = arith.addf %854, %853 : vector<2x32xf32>
    %856 = arith.divf %854, %855 : vector<2x32xf32>
    %857 = vector.extract_strided_slice %844 {offsets = [0, 64], sizes = [2, 32], strides = [1, 1]} : vector<2x128xf32> to vector<2x32xf32>
    %858 = math.tanh %857 : vector<2x32xf32>
    %859 = vector.extract_strided_slice %844 {offsets = [0, 96], sizes = [2, 32], strides = [1, 1]} : vector<2x128xf32> to vector<2x32xf32>
    %860 = arith.negf %859 : vector<2x32xf32>
    %861 = math.exp %860 : vector<2x32xf32>
    %cst_375 = arith.constant 1.000000e+00 : f32
    %862 = vector.broadcast %cst_375 : f32 to vector<2x32xf32>
    %863 = arith.addf %862, %861 : vector<2x32xf32>
    %864 = arith.divf %862, %863 : vector<2x32xf32>
    %865 = arith.mulf %856, %769 : vector<2x32xf32>
    %866 = arith.mulf %850, %858 : vector<2x32xf32>
    %867 = arith.addf %865, %866 : vector<2x32xf32>
    %868 = math.tanh %867 : vector<2x32xf32>
    %869 = arith.mulf %864, %868 : vector<2x32xf32>
    %870 = vector.extract_strided_slice %828 {offsets = [0, 0], sizes = [1, 32], strides = [1, 1]} : vector<2x32xf32> to vector<1x32xf32>
    %c0_376 = arith.constant 0 : index
    %c8_377 = arith.constant 8 : index
    %c0_378 = arith.constant 0 : index
    %871 = vector.load %arg26[%c0_376, %c8_377, %c0_378] : memref<2x10x64xf32, #tpu.memory_space<vmem>>, vector<1x1x32xf32>
    %872 = vector.shape_cast %871 : vector<1x1x32xf32> to vector<1x32xf32>
    %873 = vector.shape_cast %870 : vector<1x32xf32> to vector<1x1x32xf32>
    tpu.vector_store %arg26[%c0_376, %c8_377, %c0_378], %873 {strides = array<i32>} : memref<2x10x64xf32, #tpu.memory_space<vmem>>, vector<1x1x32xf32>,
    %874 = vector.extract_strided_slice %869 {offsets = [0, 0], sizes = [1, 32], strides = [1, 1]} : vector<2x32xf32> to vector<1x32xf32>
    %c0_379 = arith.constant 0 : index
    %c1_380 = arith.constant 1 : index
    %c32_381 = arith.constant 32 : index
    %875 = vector.load %arg26[%c0_379, %c1_380, %c32_381] : memref<2x10x64xf32, #tpu.memory_space<vmem>>, vector<1x1x32xf32>
    %876 = vector.shape_cast %875 : vector<1x1x32xf32> to vector<1x32xf32>
    %877 = vector.shape_cast %874 : vector<1x32xf32> to vector<1x1x32xf32>
    tpu.vector_store %arg26[%c0_379, %c1_380, %c32_381], %877 {strides = array<i32>} : memref<2x10x64xf32, #tpu.memory_space<vmem>>, vector<1x1x32xf32>,
    %878 = vector.extract_strided_slice %828 {offsets = [1, 0], sizes = [1, 32], strides = [1, 1]} : vector<2x32xf32> to vector<1x32xf32>
    %c1_382 = arith.constant 1 : index
    %c8_383 = arith.constant 8 : index
    %c0_384 = arith.constant 0 : index
    %879 = vector.load %arg26[%c1_382, %c8_383, %c0_384] : memref<2x10x64xf32, #tpu.memory_space<vmem>>, vector<1x1x32xf32>
    %880 = vector.shape_cast %879 : vector<1x1x32xf32> to vector<1x32xf32>
    %881 = vector.shape_cast %878 : vector<1x32xf32> to vector<1x1x32xf32>
    tpu.vector_store %arg26[%c1_382, %c8_383, %c0_384], %881 {strides = array<i32>} : memref<2x10x64xf32, #tpu.memory_space<vmem>>, vector<1x1x32xf32>,
    %882 = vector.extract_strided_slice %869 {offsets = [1, 0], sizes = [1, 32], strides = [1, 1]} : vector<2x32xf32> to vector<1x32xf32>
    %c1_385 = arith.constant 1 : index
    %c1_386 = arith.constant 1 : index
    %c32_387 = arith.constant 32 : index
    %883 = vector.load %arg26[%c1_385, %c1_386, %c32_387] : memref<2x10x64xf32, #tpu.memory_space<vmem>>, vector<1x1x32xf32>
    %884 = vector.shape_cast %883 : vector<1x1x32xf32> to vector<1x32xf32>
    %885 = vector.shape_cast %882 : vector<1x32xf32> to vector<1x1x32xf32>
    tpu.vector_store %arg26[%c1_385, %c1_386, %c32_387], %885 {strides = array<i32>} : memref<2x10x64xf32, #tpu.memory_space<vmem>>, vector<1x1x32xf32>,
    %c0_388 = arith.constant 0 : index
    %c9_389 = arith.constant 9 : index
    %886 = vector.load %arg2[%c0_388, %c9_389] : memref<2x10xi32, #tpu.memory_space<vmem>>, vector<2x1xi32>
    %887 = tpu.iota {dimensions = array<i32: 1>} : vector<2x24xi32>
    %888 = vector.broadcast %886 : vector<2x1xi32> to vector<2x24xi32>
    %889 = arith.cmpi eq, %887, %888 : vector<2x24xi32>
    %890 = arith.extui %889 : vector<2x24xi1> to vector<2x24xi32>
    %891 = arith.sitofp %890 : vector<2x24xi32> to vector<2x24xf32>
    %c0_390 = arith.constant 0 : index
    %c0_391 = arith.constant 0 : index
    %892 = vector.load %arg4[%c0_390, %c0_391] : memref<24x16xf32, #tpu.memory_space<vmem>>, vector<24x16xf32>
    %cst_392 = arith.constant dense<0.000000e+00> : vector<2x16xf32>
    %893 = tpu.matmul %891, %892, %cst_392 {dimension_numbers = #tpu.dot_dimension_numbers<[1], [0], [0], [1], [0, 0, 1, 1], [], []>} : vector<2x24xf32>, vector<24x16xf32>, vector<2x16xf32> -> vector<2x16xf32>
    %c0_393 = arith.constant 0 : index
    %c0_394 = arith.constant 0 : index
    %894 = vector.load %arg5[%c0_393, %c0_394] : memref<16x128xf32, #tpu.memory_space<vmem>>, vector<16x128xf32>
    %cst_395 = arith.constant dense<0.000000e+00> : vector<2x128xf32>
    %895 = tpu.matmul %893, %894, %cst_395 {dimension_numbers = #tpu.dot_dimension_numbers<[1], [0], [0], [1], [0, 0, 1, 1], [], []>} : vector<2x16xf32>, vector<16x128xf32>, vector<2x128xf32> -> vector<2x128xf32>
    %c0_396 = arith.constant 0 : index
    %c0_397 = arith.constant 0 : index
    %896 = vector.load %arg6[%c0_396, %c0_397] : memref<32x128xf32, #tpu.memory_space<vmem>>, vector<32x128xf32>
    %cst_398 = arith.constant dense<0.000000e+00> : vector<2x128xf32>
    %897 = tpu.matmul %828, %896, %cst_398 {dimension_numbers = #tpu.dot_dimension_numbers<[1], [0], [0], [1], [0, 0, 1, 1], [], []>} : vector<2x32xf32>, vector<32x128xf32>, vector<2x128xf32> -> vector<2x128xf32>
    %898 = arith.addf %895, %897 : vector<2x128xf32>
    %c0_399 = arith.constant 0 : index
    %c0_400 = arith.constant 0 : index
    %899 = vector.load %arg7[%c0_399, %c0_400] : memref<1x128xf32, #tpu.memory_space<vmem>>, vector<1x128xf32>
    %900 = vector.broadcast %899 : vector<1x128xf32> to vector<2x128xf32>
    %901 = arith.addf %898, %900 : vector<2x128xf32>
    %902 = vector.extract_strided_slice %901 {offsets = [0, 0], sizes = [2, 32], strides = [1, 1]} : vector<2x128xf32> to vector<2x32xf32>
    %903 = arith.negf %902 : vector<2x32xf32>
    %904 = math.exp %903 : vector<2x32xf32>
    %cst_401 = arith.constant 1.000000e+00 : f32
    %905 = vector.broadcast %cst_401 : f32 to vector<2x32xf32>
    %906 = arith.addf %905, %904 : vector<2x32xf32>
    %907 = arith.divf %905, %906 : vector<2x32xf32>
    %908 = vector.extract_strided_slice %901 {offsets = [0, 32], sizes = [2, 32], strides = [1, 1]} : vector<2x128xf32> to vector<2x32xf32>
    %909 = arith.negf %908 : vector<2x32xf32>
    %910 = math.exp %909 : vector<2x32xf32>
    %cst_402 = arith.constant 1.000000e+00 : f32
    %911 = vector.broadcast %cst_402 : f32 to vector<2x32xf32>
    %912 = arith.addf %911, %910 : vector<2x32xf32>
    %913 = arith.divf %911, %912 : vector<2x32xf32>
    %914 = vector.extract_strided_slice %901 {offsets = [0, 64], sizes = [2, 32], strides = [1, 1]} : vector<2x128xf32> to vector<2x32xf32>
    %915 = math.tanh %914 : vector<2x32xf32>
    %916 = vector.extract_strided_slice %901 {offsets = [0, 96], sizes = [2, 32], strides = [1, 1]} : vector<2x128xf32> to vector<2x32xf32>
    %917 = arith.negf %916 : vector<2x32xf32>
    %918 = math.exp %917 : vector<2x32xf32>
    %cst_403 = arith.constant 1.000000e+00 : f32
    %919 = vector.broadcast %cst_403 : f32 to vector<2x32xf32>
    %920 = arith.addf %919, %918 : vector<2x32xf32>
    %921 = arith.divf %919, %920 : vector<2x32xf32>
    %922 = arith.mulf %913, %826 : vector<2x32xf32>
    %923 = arith.mulf %907, %915 : vector<2x32xf32>
    %924 = arith.addf %922, %923 : vector<2x32xf32>
    %925 = math.tanh %924 : vector<2x32xf32>
    %926 = arith.mulf %921, %925 : vector<2x32xf32>
    %c0_404 = arith.constant 0 : index
    %c0_405 = arith.constant 0 : index
    %927 = vector.load %arg2[%c0_404, %c0_405] : memref<2x10xi32, #tpu.memory_space<vmem>>, vector<2x1xi32>
    %928 = tpu.iota {dimensions = array<i32: 1>} : vector<2x24xi32>
    %929 = vector.broadcast %927 : vector<2x1xi32> to vector<2x24xi32>
    %930 = arith.cmpi eq, %928, %929 : vector<2x24xi32>
    %931 = arith.extui %930 : vector<2x24xi1> to vector<2x24xi32>
    %932 = arith.sitofp %931 : vector<2x24xi32> to vector<2x24xf32>
    %c0_406 = arith.constant 0 : index
    %c0_407 = arith.constant 0 : index
    %933 = vector.load %arg4[%c0_406, %c0_407] : memref<24x16xf32, #tpu.memory_space<vmem>>, vector<24x16xf32>
    %cst_408 = arith.constant dense<0.000000e+00> : vector<2x16xf32>
    %934 = tpu.matmul %932, %933, %cst_408 {dimension_numbers = #tpu.dot_dimension_numbers<[1], [0], [0], [1], [0, 0, 1, 1], [], []>} : vector<2x24xf32>, vector<24x16xf32>, vector<2x16xf32> -> vector<2x16xf32>
    %c0_409 = arith.constant 0 : index
    %c0_410 = arith.constant 0 : index
    %935 = vector.load %arg8[%c0_409, %c0_410] : memref<16x128xf32, #tpu.memory_space<vmem>>, vector<16x128xf32>
    %cst_411 = arith.constant dense<0.000000e+00> : vector<2x128xf32>
    %936 = tpu.matmul %934, %935, %cst_411 {dimension_numbers = #tpu.dot_dimension_numbers<[1], [0], [0], [1], [0, 0, 1, 1], [], []>} : vector<2x16xf32>, vector<16x128xf32>, vector<2x128xf32> -> vector<2x128xf32>
    %c0_412 = arith.constant 0 : index
    %c0_413 = arith.constant 0 : index
    %937 = vector.load %arg9[%c0_412, %c0_413] : memref<32x128xf32, #tpu.memory_space<vmem>>, vector<32x128xf32>
    %cst_414 = arith.constant dense<0.000000e+00> : vector<2x128xf32>
    %938 = tpu.matmul %869, %937, %cst_414 {dimension_numbers = #tpu.dot_dimension_numbers<[1], [0], [0], [1], [0, 0, 1, 1], [], []>} : vector<2x32xf32>, vector<32x128xf32>, vector<2x128xf32> -> vector<2x128xf32>
    %939 = arith.addf %936, %938 : vector<2x128xf32>
    %c0_415 = arith.constant 0 : index
    %c0_416 = arith.constant 0 : index
    %940 = vector.load %arg10[%c0_415, %c0_416] : memref<1x128xf32, #tpu.memory_space<vmem>>, vector<1x128xf32>
    %941 = vector.broadcast %940 : vector<1x128xf32> to vector<2x128xf32>
    %942 = arith.addf %939, %941 : vector<2x128xf32>
    %943 = vector.extract_strided_slice %942 {offsets = [0, 0], sizes = [2, 32], strides = [1, 1]} : vector<2x128xf32> to vector<2x32xf32>
    %944 = arith.negf %943 : vector<2x32xf32>
    %945 = math.exp %944 : vector<2x32xf32>
    %cst_417 = arith.constant 1.000000e+00 : f32
    %946 = vector.broadcast %cst_417 : f32 to vector<2x32xf32>
    %947 = arith.addf %946, %945 : vector<2x32xf32>
    %948 = arith.divf %946, %947 : vector<2x32xf32>
    %949 = vector.extract_strided_slice %942 {offsets = [0, 32], sizes = [2, 32], strides = [1, 1]} : vector<2x128xf32> to vector<2x32xf32>
    %950 = arith.negf %949 : vector<2x32xf32>
    %951 = math.exp %950 : vector<2x32xf32>
    %cst_418 = arith.constant 1.000000e+00 : f32
    %952 = vector.broadcast %cst_418 : f32 to vector<2x32xf32>
    %953 = arith.addf %952, %951 : vector<2x32xf32>
    %954 = arith.divf %952, %953 : vector<2x32xf32>
    %955 = vector.extract_strided_slice %942 {offsets = [0, 64], sizes = [2, 32], strides = [1, 1]} : vector<2x128xf32> to vector<2x32xf32>
    %956 = math.tanh %955 : vector<2x32xf32>
    %957 = vector.extract_strided_slice %942 {offsets = [0, 96], sizes = [2, 32], strides = [1, 1]} : vector<2x128xf32> to vector<2x32xf32>
    %958 = arith.negf %957 : vector<2x32xf32>
    %959 = math.exp %958 : vector<2x32xf32>
    %cst_419 = arith.constant 1.000000e+00 : f32
    %960 = vector.broadcast %cst_419 : f32 to vector<2x32xf32>
    %961 = arith.addf %960, %959 : vector<2x32xf32>
    %962 = arith.divf %960, %961 : vector<2x32xf32>
    %963 = arith.mulf %954, %867 : vector<2x32xf32>
    %964 = arith.mulf %948, %956 : vector<2x32xf32>
    %965 = arith.addf %963, %964 : vector<2x32xf32>
    %966 = math.tanh %965 : vector<2x32xf32>
    %967 = arith.mulf %962, %966 : vector<2x32xf32>
    %968 = vector.extract_strided_slice %926 {offsets = [0, 0], sizes = [1, 32], strides = [1, 1]} : vector<2x32xf32> to vector<1x32xf32>
    %c0_420 = arith.constant 0 : index
    %c9_421 = arith.constant 9 : index
    %c0_422 = arith.constant 0 : index
    %969 = vector.load %arg26[%c0_420, %c9_421, %c0_422] : memref<2x10x64xf32, #tpu.memory_space<vmem>>, vector<1x1x32xf32>
    %970 = vector.shape_cast %969 : vector<1x1x32xf32> to vector<1x32xf32>
    %971 = vector.shape_cast %968 : vector<1x32xf32> to vector<1x1x32xf32>
    tpu.vector_store %arg26[%c0_420, %c9_421, %c0_422], %971 {strides = array<i32>} : memref<2x10x64xf32, #tpu.memory_space<vmem>>, vector<1x1x32xf32>,
    %972 = vector.extract_strided_slice %967 {offsets = [0, 0], sizes = [1, 32], strides = [1, 1]} : vector<2x32xf32> to vector<1x32xf32>
    %c0_423 = arith.constant 0 : index
    %c0_424 = arith.constant 0 : index
    %c32_425 = arith.constant 32 : index
    %973 = vector.load %arg26[%c0_423, %c0_424, %c32_425] : memref<2x10x64xf32, #tpu.memory_space<vmem>>, vector<1x1x32xf32>
    %974 = vector.shape_cast %973 : vector<1x1x32xf32> to vector<1x32xf32>
    %975 = vector.shape_cast %972 : vector<1x32xf32> to vector<1x1x32xf32>
    tpu.vector_store %arg26[%c0_423, %c0_424, %c32_425], %975 {strides = array<i32>} : memref<2x10x64xf32, #tpu.memory_space<vmem>>, vector<1x1x32xf32>,
    %976 = vector.extract_strided_slice %926 {offsets = [1, 0], sizes = [1, 32], strides = [1, 1]} : vector<2x32xf32> to vector<1x32xf32>
    %c1_426 = arith.constant 1 : index
    %c9_427 = arith.constant 9 : index
    %c0_428 = arith.constant 0 : index
    %977 = vector.load %arg26[%c1_426, %c9_427, %c0_428] : memref<2x10x64xf32, #tpu.memory_space<vmem>>, vector<1x1x32xf32>
    %978 = vector.shape_cast %977 : vector<1x1x32xf32> to vector<1x32xf32>
    %979 = vector.shape_cast %976 : vector<1x32xf32> to vector<1x1x32xf32>
    tpu.vector_store %arg26[%c1_426, %c9_427, %c0_428], %979 {strides = array<i32>} : memref<2x10x64xf32, #tpu.memory_space<vmem>>, vector<1x1x32xf32>,
    %980 = vector.extract_strided_slice %967 {offsets = [1, 0], sizes = [1, 32], strides = [1, 1]} : vector<2x32xf32> to vector<1x32xf32>
    %c1_429 = arith.constant 1 : index
    %c0_430 = arith.constant 0 : index
    %c32_431 = arith.constant 32 : index
    %981 = vector.load %arg26[%c1_429, %c0_430, %c32_431] : memref<2x10x64xf32, #tpu.memory_space<vmem>>, vector<1x1x32xf32>
    %982 = vector.shape_cast %981 : vector<1x1x32xf32> to vector<1x32xf32>
    %983 = vector.shape_cast %980 : vector<1x32xf32> to vector<1x1x32xf32>
    tpu.vector_store %arg26[%c1_429, %c0_430, %c32_431], %983 {strides = array<i32>} : memref<2x10x64xf32, #tpu.memory_space<vmem>>, vector<1x1x32xf32>,
    %c0_432 = arith.constant 0 : index
    %c0_433 = arith.constant 0 : index
    %984 = vector.load %arg11[%c0_432, %c0_433] : memref<64x32xf32, #tpu.memory_space<vmem>>, vector<32x32xf32>
    %cst_434 = arith.constant dense<0.000000e+00> : vector<2x32xf32>
    %985 = tpu.matmul %926, %984, %cst_434 {dimension_numbers = #tpu.dot_dimension_numbers<[1], [0], [0], [1], [0, 0, 1, 1], [], []>} : vector<2x32xf32>, vector<32x32xf32>, vector<2x32xf32> -> vector<2x32xf32>
    %c32_435 = arith.constant 32 : index
    %c0_436 = arith.constant 0 : index
    %986 = vector.load %arg11[%c32_435, %c0_436] : memref<64x32xf32, #tpu.memory_space<vmem>>, vector<32x32xf32>
    %cst_437 = arith.constant dense<0.000000e+00> : vector<2x32xf32>
    %987 = tpu.matmul %967, %986, %cst_437 {dimension_numbers = #tpu.dot_dimension_numbers<[1], [0], [0], [1], [0, 0, 1, 1], [], []>} : vector<2x32xf32>, vector<32x32xf32>, vector<2x32xf32> -> vector<2x32xf32>
    %988 = arith.addf %985, %987 : vector<2x32xf32>
    %c0_438 = arith.constant 0 : index
    %c0_439 = arith.constant 0 : index
    %989 = vector.load %arg12[%c0_438, %c0_439] : memref<1x32xf32, #tpu.memory_space<vmem>>, vector<1x32xf32>
    %990 = vector.broadcast %989 : vector<1x32xf32> to vector<2x32xf32>
    %991 = arith.addf %988, %990 : vector<2x32xf32>
    %c0_440 = arith.constant 0 : index
    %c0_441 = arith.constant 0 : index
    %992 = vector.load %arg13[%c0_440, %c0_441] : memref<64x32xf32, #tpu.memory_space<vmem>>, vector<32x32xf32>
    %cst_442 = arith.constant dense<0.000000e+00> : vector<2x32xf32>
    %993 = tpu.matmul %924, %992, %cst_442 {dimension_numbers = #tpu.dot_dimension_numbers<[1], [0], [0], [1], [0, 0, 1, 1], [], []>} : vector<2x32xf32>, vector<32x32xf32>, vector<2x32xf32> -> vector<2x32xf32>
    %c32_443 = arith.constant 32 : index
    %c0_444 = arith.constant 0 : index
    %994 = vector.load %arg13[%c32_443, %c0_444] : memref<64x32xf32, #tpu.memory_space<vmem>>, vector<32x32xf32>
    %cst_445 = arith.constant dense<0.000000e+00> : vector<2x32xf32>
    %995 = tpu.matmul %965, %994, %cst_445 {dimension_numbers = #tpu.dot_dimension_numbers<[1], [0], [0], [1], [0, 0, 1, 1], [], []>} : vector<2x32xf32>, vector<32x32xf32>, vector<2x32xf32> -> vector<2x32xf32>
    %996 = arith.addf %993, %995 : vector<2x32xf32>
    %c0_446 = arith.constant 0 : index
    %c0_447 = arith.constant 0 : index
    %997 = vector.load %arg14[%c0_446, %c0_447] : memref<1x32xf32, #tpu.memory_space<vmem>>, vector<1x32xf32>
    %998 = vector.broadcast %997 : vector<1x32xf32> to vector<2x32xf32>
    %999 = arith.addf %996, %998 : vector<2x32xf32>
    %c0_448 = arith.constant 0 : index
    %c0_449 = arith.constant 0 : index
    %c0_450 = arith.constant 0 : index
    %1000 = vector.load %arg26[%c0_448, %c0_449, %c0_450] : memref<2x10x64xf32, #tpu.memory_space<vmem>>, vector<2x10x64xf32>
    %c0_451 = arith.constant 0 : index
    %c0_452 = arith.constant 0 : index
    %c0_453 = arith.constant 0 : index
    %1001 = vector.load %arg26[%c0_451, %c0_452, %c0_453] : memref<2x10x64xf32, #tpu.memory_space<vmem>>, vector<1x10x64xf32>
    %1002 = vector.shape_cast %1001 : vector<1x10x64xf32> to vector<10x64xf32>
    %c1_454 = arith.constant 1 : index
    %c0_455 = arith.constant 0 : index
    %c0_456 = arith.constant 0 : index
    %1003 = vector.load %arg26[%c1_454, %c0_455, %c0_456] : memref<2x10x64xf32, #tpu.memory_space<vmem>>, vector<1x10x64xf32>
    %1004 = vector.shape_cast %1003 : vector<1x10x64xf32> to vector<10x64xf32>
    %c0_457 = arith.constant 0 : index
    %c0_458 = arith.constant 0 : index
    %1005 = vector.load %arg17[%c0_457, %c0_458] : memref<1x64xf32, #tpu.memory_space<vmem>>, vector<1x64xf32>
    %1006 = vector.shape_cast %1005 : vector<1x64xf32> to vector<1x1x64xf32>
    %1007 = vector.broadcast %1006 : vector<1x1x64xf32> to vector<2x10x64xf32>
    %1008 = arith.mulf %1000, %1007 : vector<2x10x64xf32>
    %cst_459 = arith.constant dense<0.000000e+00> : vector<2x10xf32>
    %1009 = vector.multi_reduction <add>, %1008, %cst_459 [2] : vector<2x10x64xf32> to vector<2x10xf32>
    %c0_460 = arith.constant 0 : index
    %c0_461 = arith.constant 0 : index
    %1010 = vector.load %arg18[%c0_460, %c0_461] : memref<1x1xf32, #tpu.memory_space<vmem>>, vector<1x1xf32>
    %1011 = vector.broadcast %1010 : vector<1x1xf32> to vector<2x10xf32>
    %1012 = arith.addf %1009, %1011 : vector<2x10xf32>
    %cst_462 = arith.constant 0.000000e+00 : f32
    %1013 = vector.broadcast %cst_462 : f32 to vector<1x2x24xf32>
    %c0_463 = arith.constant 0 : index
    %c0_464 = arith.constant 0 : index
    %c0_465 = arith.constant 0 : index
    %1014 = vector.load %arg25[%c0_463, %c0_464, %c0_465] : memref<8x2x24xf32, #tpu.memory_space<vmem>>, vector<1x2x24xf32>
    tpu.vector_store %arg25[%c0_463, %c0_464, %c0_465], %1013 {strides = array<i32>} : memref<8x2x24xf32, #tpu.memory_space<vmem>>, vector<1x2x24xf32>,
    %1015 = tpu.iota {dimensions = array<i32: 1>} : vector<2x24xi32>
    %c0_466 = arith.constant 0 : index
    %c0_467 = arith.constant 0 : index
    %1016 = vector.load %arg3[%c0_466, %c0_467] : memref<2x8xi32, #tpu.memory_space<vmem>>, vector<2x1xi32>
    %1017 = tpu.iota {dimensions = array<i32: 1>} : vector<2x24xi32>
    %1018 = vector.broadcast %1016 : vector<2x1xi32> to vector<2x24xi32>
    %1019 = arith.cmpi eq, %1017, %1018 : vector<2x24xi32>
    %1020 = arith.extui %1019 : vector<2x24xi1> to vector<2x24xi32>
    %1021 = arith.sitofp %1020 : vector<2x24xi32> to vector<2x24xf32>
    %c0_468 = arith.constant 0 : index
    %c0_469 = arith.constant 0 : index
    %1022 = vector.load %arg15[%c0_468, %c0_469] : memref<24x16xf32, #tpu.memory_space<vmem>>, vector<24x16xf32>
    %cst_470 = arith.constant dense<0.000000e+00> : vector<2x16xf32>
    %1023 = tpu.matmul %1021, %1022, %cst_470 {dimension_numbers = #tpu.dot_dimension_numbers<[1], [0], [0], [1], [0, 0, 1, 1], [], []>} : vector<2x24xf32>, vector<24x16xf32>, vector<2x16xf32> -> vector<2x16xf32>
    %c0_471 = arith.constant 0 : index
    %c0_472 = arith.constant 0 : index
    %1024 = vector.load %arg16[%c0_471, %c0_472] : memref<1x32xf32, #tpu.memory_space<vmem>>, vector<1x32xf32>
    %1025 = vector.broadcast %1024 : vector<1x32xf32> to vector<2x32xf32>
    %1026 = arith.mulf %991, %1025 : vector<2x32xf32>
    %cst_473 = arith.constant dense<0.000000e+00> : vector<2xf32>
    %1027 = vector.multi_reduction <add>, %1026, %cst_473 [1] : vector<2x32xf32> to vector<2xf32>
    %1028 = vector.shape_cast %1027 : vector<2xf32> to vector<2x1xf32>
    %1029 = vector.broadcast %1028 : vector<2x1xf32> to vector<2x10xf32>
    %1030 = arith.addf %1029, %1012 : vector<2x10xf32>
    %cst_474 = arith.constant 0.000000e+00 : f32
    %1031 = vector.broadcast %cst_474 : f32 to vector<2x10xf32>
    %1032 = arith.maximumf %1030, %1031 : vector<2x10xf32>
    %cst_475 = arith.constant dense<0xFF800000> : vector<2xf32>
    %1033 = vector.multi_reduction <maximumf>, %1032, %cst_475 [1] : vector<2x10xf32> to vector<2xf32>
    %1034 = vector.shape_cast %1033 : vector<2xf32> to vector<2x1xf32>
    %1035 = vector.broadcast %1034 : vector<2x1xf32> to vector<2x10xf32>
    %1036 = arith.subf %1032, %1035 : vector<2x10xf32>
    %1037 = math.exp %1036 : vector<2x10xf32>
    %cst_476 = arith.constant dense<0.000000e+00> : vector<2xf32>
    %1038 = vector.multi_reduction <add>, %1037, %cst_476 [1] : vector<2x10xf32> to vector<2xf32>
    %1039 = vector.shape_cast %1038 : vector<2xf32> to vector<2x1xf32>
    %1040 = tpu.reciprocal %1039 {approx = true} : vector<2x1xf32> -> vector<2x1xf32>
    %1041 = vector.broadcast %1040 : vector<2x1xf32> to vector<2x10xf32>
    %1042 = arith.mulf %1037, %1041 : vector<2x10xf32>
    %1043 = vector.extract_strided_slice %1042 {offsets = [0, 0], sizes = [1, 10], strides = [1, 1]} : vector<2x10xf32> to vector<1x10xf32>
    %cst_477 = arith.constant dense<0.000000e+00> : vector<1x64xf32>
    %1044 = tpu.matmul %1043, %1002, %cst_477 {dimension_numbers = #tpu.dot_dimension_numbers<[1], [0], [0], [1], [0, 0, 1, 1], [], []>} : vector<1x10xf32>, vector<10x64xf32>, vector<1x64xf32> -> vector<1x64xf32>
    %1045 = vector.extract_strided_slice %1042 {offsets = [1, 0], sizes = [1, 10], strides = [1, 1]} : vector<2x10xf32> to vector<1x10xf32>
    %cst_478 = arith.constant dense<0.000000e+00> : vector<1x64xf32>
    %1046 = tpu.matmul %1045, %1004, %cst_478 {dimension_numbers = #tpu.dot_dimension_numbers<[1], [0], [0], [1], [0, 0, 1, 1], [], []>} : vector<1x10xf32>, vector<10x64xf32>, vector<1x64xf32> -> vector<1x64xf32>
    %1047 = tpu.concatenate %1044, %1046 in 0 : vector<1x64xf32>, vector<1x64xf32> -> vector<2x64xf32>
    %c0_479 = arith.constant 0 : index
    %c0_480 = arith.constant 0 : index
    %1048 = vector.load %arg19[%c0_479, %c0_480] : memref<64x128xf32, #tpu.memory_space<vmem>>, vector<64x128xf32>
    %cst_481 = arith.constant dense<0.000000e+00> : vector<2x128xf32>
    %1049 = tpu.matmul %1047, %1048, %cst_481 {dimension_numbers = #tpu.dot_dimension_numbers<[1], [0], [0], [1], [0, 0, 1, 1], [], []>} : vector<2x64xf32>, vector<64x128xf32>, vector<2x128xf32> -> vector<2x128xf32>
    %c0_482 = arith.constant 0 : index
    %c0_483 = arith.constant 0 : index
    %1050 = vector.load %arg20[%c0_482, %c0_483] : memref<16x128xf32, #tpu.memory_space<vmem>>, vector<16x128xf32>
    %cst_484 = arith.constant dense<0.000000e+00> : vector<2x128xf32>
    %1051 = tpu.matmul %1023, %1050, %cst_484 {dimension_numbers = #tpu.dot_dimension_numbers<[1], [0], [0], [1], [0, 0, 1, 1], [], []>} : vector<2x16xf32>, vector<16x128xf32>, vector<2x128xf32> -> vector<2x128xf32>
    %1052 = arith.addf %1049, %1051 : vector<2x128xf32>
    %c0_485 = arith.constant 0 : index
    %c0_486 = arith.constant 0 : index
    %1053 = vector.load %arg21[%c0_485, %c0_486] : memref<32x128xf32, #tpu.memory_space<vmem>>, vector<32x128xf32>
    %cst_487 = arith.constant dense<0.000000e+00> : vector<2x128xf32>
    %1054 = tpu.matmul %991, %1053, %cst_487 {dimension_numbers = #tpu.dot_dimension_numbers<[1], [0], [0], [1], [0, 0, 1, 1], [], []>} : vector<2x32xf32>, vector<32x128xf32>, vector<2x128xf32> -> vector<2x128xf32>
    %1055 = arith.addf %1052, %1054 : vector<2x128xf32>
    %c0_488 = arith.constant 0 : index
    %c0_489 = arith.constant 0 : index
    %1056 = vector.load %arg22[%c0_488, %c0_489] : memref<1x128xf32, #tpu.memory_space<vmem>>, vector<1x128xf32>
    %1057 = vector.broadcast %1056 : vector<1x128xf32> to vector<2x128xf32>
    %1058 = arith.addf %1055, %1057 : vector<2x128xf32>
    %1059 = vector.extract_strided_slice %1058 {offsets = [0, 0], sizes = [2, 32], strides = [1, 1]} : vector<2x128xf32> to vector<2x32xf32>
    %1060 = arith.negf %1059 : vector<2x32xf32>
    %1061 = math.exp %1060 : vector<2x32xf32>
    %cst_490 = arith.constant 1.000000e+00 : f32
    %1062 = vector.broadcast %cst_490 : f32 to vector<2x32xf32>
    %1063 = arith.addf %1062, %1061 : vector<2x32xf32>
    %1064 = arith.divf %1062, %1063 : vector<2x32xf32>
    %1065 = vector.extract_strided_slice %1058 {offsets = [0, 32], sizes = [2, 32], strides = [1, 1]} : vector<2x128xf32> to vector<2x32xf32>
    %1066 = arith.negf %1065 : vector<2x32xf32>
    %1067 = math.exp %1066 : vector<2x32xf32>
    %cst_491 = arith.constant 1.000000e+00 : f32
    %1068 = vector.broadcast %cst_491 : f32 to vector<2x32xf32>
    %1069 = arith.addf %1068, %1067 : vector<2x32xf32>
    %1070 = arith.divf %1068, %1069 : vector<2x32xf32>
    %1071 = vector.extract_strided_slice %1058 {offsets = [0, 64], sizes = [2, 32], strides = [1, 1]} : vector<2x128xf32> to vector<2x32xf32>
    %1072 = math.tanh %1071 : vector<2x32xf32>
    %1073 = vector.extract_strided_slice %1058 {offsets = [0, 96], sizes = [2, 32], strides = [1, 1]} : vector<2x128xf32> to vector<2x32xf32>
    %1074 = arith.negf %1073 : vector<2x32xf32>
    %1075 = math.exp %1074 : vector<2x32xf32>
    %cst_492 = arith.constant 1.000000e+00 : f32
    %1076 = vector.broadcast %cst_492 : f32 to vector<2x32xf32>
    %1077 = arith.addf %1076, %1075 : vector<2x32xf32>
    %1078 = arith.divf %1076, %1077 : vector<2x32xf32>
    %1079 = arith.mulf %1070, %999 : vector<2x32xf32>
    %1080 = arith.mulf %1064, %1072 : vector<2x32xf32>
    %1081 = arith.addf %1079, %1080 : vector<2x32xf32>
    %1082 = math.tanh %1081 : vector<2x32xf32>
    %1083 = arith.mulf %1078, %1082 : vector<2x32xf32>
    %c0_493 = arith.constant 0 : index
    %c0_494 = arith.constant 0 : index
    %1084 = vector.load %arg23[%c0_493, %c0_494] : memref<32x24xf32, #tpu.memory_space<vmem>>, vector<32x24xf32>
    %cst_495 = arith.constant dense<0.000000e+00> : vector<2x24xf32>
    %1085 = tpu.matmul %1083, %1084, %cst_495 {dimension_numbers = #tpu.dot_dimension_numbers<[1], [0], [0], [1], [0, 0, 1, 1], [], []>} : vector<2x32xf32>, vector<32x24xf32>, vector<2x24xf32> -> vector<2x24xf32>
    %c0_496 = arith.constant 0 : index
    %c0_497 = arith.constant 0 : index
    %1086 = vector.load %arg24[%c0_496, %c0_497] : memref<1x24xf32, #tpu.memory_space<vmem>>, vector<1x24xf32>
    %1087 = vector.broadcast %1086 : vector<1x24xf32> to vector<2x24xf32>
    %1088 = arith.addf %1085, %1087 : vector<2x24xf32>
    %1089 = vector.shape_cast %1088 : vector<2x24xf32> to vector<1x2x24xf32>
    %c1_498 = arith.constant 1 : index
    %c0_499 = arith.constant 0 : index
    %c0_500 = arith.constant 0 : index
    %1090 = vector.load %arg25[%c1_498, %c0_499, %c0_500] : memref<8x2x24xf32, #tpu.memory_space<vmem>>, vector<1x2x24xf32>
    tpu.vector_store %arg25[%c1_498, %c0_499, %c0_500], %1089 {strides = array<i32>} : memref<8x2x24xf32, #tpu.memory_space<vmem>>, vector<1x2x24xf32>,
    %cst_501 = arith.constant dense<0xFF800000> : vector<2xf32>
    %1091 = vector.multi_reduction <maximumf>, %1088, %cst_501 [1] : vector<2x24xf32> to vector<2xf32>
    %1092 = vector.shape_cast %1091 : vector<2xf32> to vector<2x1xf32>
    %1093 = vector.broadcast %1092 : vector<2x1xf32> to vector<2x24xf32>
    %1094 = arith.cmpf oeq, %1088, %1093 : vector<2x24xf32>
    %c24_i32 = arith.constant 24 : i32
    %1095 = vector.broadcast %c24_i32 : i32 to vector<2x24xi32>
    %1096 = arith.select %1094, %1015, %1095 : vector<2x24xi1>, vector<2x24xi32>
    %cst_502 = arith.constant dense<2147483647> : vector<2xi32>
    %1097 = vector.multi_reduction <minsi>, %1096, %cst_502 [1] : vector<2x24xi32> to vector<2xi32>
    %1098 = vector.shape_cast %1097 : vector<2xi32> to vector<2x1xi32>
    %c1_503 = arith.constant 1 : index
    %1099 = memref.load %arg1[%c1_503] : memref<8xi32, #tpu.memory_space<smem>>
    %c0_i32 = arith.constant 0 : i32
    %1100 = arith.cmpi sgt, %1099, %c0_i32 : i32
    %c0_504 = arith.constant 0 : index
    %c1_505 = arith.constant 1 : index
    %1101 = vector.load %arg3[%c0_504, %c1_505] : memref<2x8xi32, #tpu.memory_space<vmem>>, vector<2x1xi32>
    %1102 = arith.select %1100, %1101, %1098 : vector<2x1xi32>
    %1103 = tpu.iota {dimensions = array<i32: 1>} : vector<2x24xi32>
    %1104 = vector.broadcast %1102 : vector<2x1xi32> to vector<2x24xi32>
    %1105 = arith.cmpi eq, %1103, %1104 : vector<2x24xi32>
    %1106 = arith.extui %1105 : vector<2x24xi1> to vector<2x24xi32>
    %1107 = arith.sitofp %1106 : vector<2x24xi32> to vector<2x24xf32>
    %c0_506 = arith.constant 0 : index
    %c0_507 = arith.constant 0 : index
    %1108 = vector.load %arg15[%c0_506, %c0_507] : memref<24x16xf32, #tpu.memory_space<vmem>>, vector<24x16xf32>
    %cst_508 = arith.constant dense<0.000000e+00> : vector<2x16xf32>
    %1109 = tpu.matmul %1107, %1108, %cst_508 {dimension_numbers = #tpu.dot_dimension_numbers<[1], [0], [0], [1], [0, 0, 1, 1], [], []>} : vector<2x24xf32>, vector<24x16xf32>, vector<2x16xf32> -> vector<2x16xf32>
    %c0_509 = arith.constant 0 : index
    %c0_510 = arith.constant 0 : index
    %1110 = vector.load %arg16[%c0_509, %c0_510] : memref<1x32xf32, #tpu.memory_space<vmem>>, vector<1x32xf32>
    %1111 = vector.broadcast %1110 : vector<1x32xf32> to vector<2x32xf32>
    %1112 = arith.mulf %1083, %1111 : vector<2x32xf32>
    %cst_511 = arith.constant dense<0.000000e+00> : vector<2xf32>
    %1113 = vector.multi_reduction <add>, %1112, %cst_511 [1] : vector<2x32xf32> to vector<2xf32>
    %1114 = vector.shape_cast %1113 : vector<2xf32> to vector<2x1xf32>
    %1115 = vector.broadcast %1114 : vector<2x1xf32> to vector<2x10xf32>
    %1116 = arith.addf %1115, %1012 : vector<2x10xf32>
    %cst_512 = arith.constant 0.000000e+00 : f32
    %1117 = vector.broadcast %cst_512 : f32 to vector<2x10xf32>
    %1118 = arith.maximumf %1116, %1117 : vector<2x10xf32>
    %cst_513 = arith.constant dense<0xFF800000> : vector<2xf32>
    %1119 = vector.multi_reduction <maximumf>, %1118, %cst_513 [1] : vector<2x10xf32> to vector<2xf32>
    %1120 = vector.shape_cast %1119 : vector<2xf32> to vector<2x1xf32>
    %1121 = vector.broadcast %1120 : vector<2x1xf32> to vector<2x10xf32>
    %1122 = arith.subf %1118, %1121 : vector<2x10xf32>
    %1123 = math.exp %1122 : vector<2x10xf32>
    %cst_514 = arith.constant dense<0.000000e+00> : vector<2xf32>
    %1124 = vector.multi_reduction <add>, %1123, %cst_514 [1] : vector<2x10xf32> to vector<2xf32>
    %1125 = vector.shape_cast %1124 : vector<2xf32> to vector<2x1xf32>
    %1126 = tpu.reciprocal %1125 {approx = true} : vector<2x1xf32> -> vector<2x1xf32>
    %1127 = vector.broadcast %1126 : vector<2x1xf32> to vector<2x10xf32>
    %1128 = arith.mulf %1123, %1127 : vector<2x10xf32>
    %1129 = vector.extract_strided_slice %1128 {offsets = [0, 0], sizes = [1, 10], strides = [1, 1]} : vector<2x10xf32> to vector<1x10xf32>
    %cst_515 = arith.constant dense<0.000000e+00> : vector<1x64xf32>
    %1130 = tpu.matmul %1129, %1002, %cst_515 {dimension_numbers = #tpu.dot_dimension_numbers<[1], [0], [0], [1], [0, 0, 1, 1], [], []>} : vector<1x10xf32>, vector<10x64xf32>, vector<1x64xf32> -> vector<1x64xf32>
    %1131 = vector.extract_strided_slice %1128 {offsets = [1, 0], sizes = [1, 10], strides = [1, 1]} : vector<2x10xf32> to vector<1x10xf32>
    %cst_516 = arith.constant dense<0.000000e+00> : vector<1x64xf32>
    %1132 = tpu.matmul %1131, %1004, %cst_516 {dimension_numbers = #tpu.dot_dimension_numbers<[1], [0], [0], [1], [0, 0, 1, 1], [], []>} : vector<1x10xf32>, vector<10x64xf32>, vector<1x64xf32> -> vector<1x64xf32>
    %1133 = tpu.concatenate %1130, %1132 in 0 : vector<1x64xf32>, vector<1x64xf32> -> vector<2x64xf32>
    %c0_517 = arith.constant 0 : index
    %c0_518 = arith.constant 0 : index
    %1134 = vector.load %arg19[%c0_517, %c0_518] : memref<64x128xf32, #tpu.memory_space<vmem>>, vector<64x128xf32>
    %cst_519 = arith.constant dense<0.000000e+00> : vector<2x128xf32>
    %1135 = tpu.matmul %1133, %1134, %cst_519 {dimension_numbers = #tpu.dot_dimension_numbers<[1], [0], [0], [1], [0, 0, 1, 1], [], []>} : vector<2x64xf32>, vector<64x128xf32>, vector<2x128xf32> -> vector<2x128xf32>
    %c0_520 = arith.constant 0 : index
    %c0_521 = arith.constant 0 : index
    %1136 = vector.load %arg20[%c0_520, %c0_521] : memref<16x128xf32, #tpu.memory_space<vmem>>, vector<16x128xf32>
    %cst_522 = arith.constant dense<0.000000e+00> : vector<2x128xf32>
    %1137 = tpu.matmul %1109, %1136, %cst_522 {dimension_numbers = #tpu.dot_dimension_numbers<[1], [0], [0], [1], [0, 0, 1, 1], [], []>} : vector<2x16xf32>, vector<16x128xf32>, vector<2x128xf32> -> vector<2x128xf32>
    %1138 = arith.addf %1135, %1137 : vector<2x128xf32>
    %c0_523 = arith.constant 0 : index
    %c0_524 = arith.constant 0 : index
    %1139 = vector.load %arg21[%c0_523, %c0_524] : memref<32x128xf32, #tpu.memory_space<vmem>>, vector<32x128xf32>
    %cst_525 = arith.constant dense<0.000000e+00> : vector<2x128xf32>
    %1140 = tpu.matmul %1083, %1139, %cst_525 {dimension_numbers = #tpu.dot_dimension_numbers<[1], [0], [0], [1], [0, 0, 1, 1], [], []>} : vector<2x32xf32>, vector<32x128xf32>, vector<2x128xf32> -> vector<2x128xf32>
    %1141 = arith.addf %1138, %1140 : vector<2x128xf32>
    %c0_526 = arith.constant 0 : index
    %c0_527 = arith.constant 0 : index
    %1142 = vector.load %arg22[%c0_526, %c0_527] : memref<1x128xf32, #tpu.memory_space<vmem>>, vector<1x128xf32>
    %1143 = vector.broadcast %1142 : vector<1x128xf32> to vector<2x128xf32>
    %1144 = arith.addf %1141, %1143 : vector<2x128xf32>
    %1145 = vector.extract_strided_slice %1144 {offsets = [0, 0], sizes = [2, 32], strides = [1, 1]} : vector<2x128xf32> to vector<2x32xf32>
    %1146 = arith.negf %1145 : vector<2x32xf32>
    %1147 = math.exp %1146 : vector<2x32xf32>
    %cst_528 = arith.constant 1.000000e+00 : f32
    %1148 = vector.broadcast %cst_528 : f32 to vector<2x32xf32>
    %1149 = arith.addf %1148, %1147 : vector<2x32xf32>
    %1150 = arith.divf %1148, %1149 : vector<2x32xf32>
    %1151 = vector.extract_strided_slice %1144 {offsets = [0, 32], sizes = [2, 32], strides = [1, 1]} : vector<2x128xf32> to vector<2x32xf32>
    %1152 = arith.negf %1151 : vector<2x32xf32>
    %1153 = math.exp %1152 : vector<2x32xf32>
    %cst_529 = arith.constant 1.000000e+00 : f32
    %1154 = vector.broadcast %cst_529 : f32 to vector<2x32xf32>
    %1155 = arith.addf %1154, %1153 : vector<2x32xf32>
    %1156 = arith.divf %1154, %1155 : vector<2x32xf32>
    %1157 = vector.extract_strided_slice %1144 {offsets = [0, 64], sizes = [2, 32], strides = [1, 1]} : vector<2x128xf32> to vector<2x32xf32>
    %1158 = math.tanh %1157 : vector<2x32xf32>
    %1159 = vector.extract_strided_slice %1144 {offsets = [0, 96], sizes = [2, 32], strides = [1, 1]} : vector<2x128xf32> to vector<2x32xf32>
    %1160 = arith.negf %1159 : vector<2x32xf32>
    %1161 = math.exp %1160 : vector<2x32xf32>
    %cst_530 = arith.constant 1.000000e+00 : f32
    %1162 = vector.broadcast %cst_530 : f32 to vector<2x32xf32>
    %1163 = arith.addf %1162, %1161 : vector<2x32xf32>
    %1164 = arith.divf %1162, %1163 : vector<2x32xf32>
    %1165 = arith.mulf %1156, %1081 : vector<2x32xf32>
    %1166 = arith.mulf %1150, %1158 : vector<2x32xf32>
    %1167 = arith.addf %1165, %1166 : vector<2x32xf32>
    %1168 = math.tanh %1167 : vector<2x32xf32>
    %1169 = arith.mulf %1164, %1168 : vector<2x32xf32>
    %c0_531 = arith.constant 0 : index
    %c0_532 = arith.constant 0 : index
    %1170 = vector.load %arg23[%c0_531, %c0_532] : memref<32x24xf32, #tpu.memory_space<vmem>>, vector<32x24xf32>
    %cst_533 = arith.constant dense<0.000000e+00> : vector<2x24xf32>
    %1171 = tpu.matmul %1169, %1170, %cst_533 {dimension_numbers = #tpu.dot_dimension_numbers<[1], [0], [0], [1], [0, 0, 1, 1], [], []>} : vector<2x32xf32>, vector<32x24xf32>, vector<2x24xf32> -> vector<2x24xf32>
    %c0_534 = arith.constant 0 : index
    %c0_535 = arith.constant 0 : index
    %1172 = vector.load %arg24[%c0_534, %c0_535] : memref<1x24xf32, #tpu.memory_space<vmem>>, vector<1x24xf32>
    %1173 = vector.broadcast %1172 : vector<1x24xf32> to vector<2x24xf32>
    %1174 = arith.addf %1171, %1173 : vector<2x24xf32>
    %1175 = vector.shape_cast %1174 : vector<2x24xf32> to vector<1x2x24xf32>
    %c2_536 = arith.constant 2 : index
    %c0_537 = arith.constant 0 : index
    %c0_538 = arith.constant 0 : index
    %1176 = vector.load %arg25[%c2_536, %c0_537, %c0_538] : memref<8x2x24xf32, #tpu.memory_space<vmem>>, vector<1x2x24xf32>
    tpu.vector_store %arg25[%c2_536, %c0_537, %c0_538], %1175 {strides = array<i32>} : memref<8x2x24xf32, #tpu.memory_space<vmem>>, vector<1x2x24xf32>,
    %cst_539 = arith.constant dense<0xFF800000> : vector<2xf32>
    %1177 = vector.multi_reduction <maximumf>, %1174, %cst_539 [1] : vector<2x24xf32> to vector<2xf32>
    %1178 = vector.shape_cast %1177 : vector<2xf32> to vector<2x1xf32>
    %1179 = vector.broadcast %1178 : vector<2x1xf32> to vector<2x24xf32>
    %1180 = arith.cmpf oeq, %1174, %1179 : vector<2x24xf32>
    %c24_i32_540 = arith.constant 24 : i32
    %1181 = vector.broadcast %c24_i32_540 : i32 to vector<2x24xi32>
    %1182 = arith.select %1180, %1015, %1181 : vector<2x24xi1>, vector<2x24xi32>
    %cst_541 = arith.constant dense<2147483647> : vector<2xi32>
    %1183 = vector.multi_reduction <minsi>, %1182, %cst_541 [1] : vector<2x24xi32> to vector<2xi32>
    %1184 = vector.shape_cast %1183 : vector<2xi32> to vector<2x1xi32>
    %c2_542 = arith.constant 2 : index
    %1185 = memref.load %arg1[%c2_542] : memref<8xi32, #tpu.memory_space<smem>>
    %c0_i32_543 = arith.constant 0 : i32
    %1186 = arith.cmpi sgt, %1185, %c0_i32_543 : i32
    %c0_544 = arith.constant 0 : index
    %c2_545 = arith.constant 2 : index
    %1187 = vector.load %arg3[%c0_544, %c2_545] : memref<2x8xi32, #tpu.memory_space<vmem>>, vector<2x1xi32>
    %1188 = arith.select %1186, %1187, %1184 : vector<2x1xi32>
    %1189 = tpu.iota {dimensions = array<i32: 1>} : vector<2x24xi32>
    %1190 = vector.broadcast %1188 : vector<2x1xi32> to vector<2x24xi32>
    %1191 = arith.cmpi eq, %1189, %1190 : vector<2x24xi32>
    %1192 = arith.extui %1191 : vector<2x24xi1> to vector<2x24xi32>
    %1193 = arith.sitofp %1192 : vector<2x24xi32> to vector<2x24xf32>
    %c0_546 = arith.constant 0 : index
    %c0_547 = arith.constant 0 : index
    %1194 = vector.load %arg15[%c0_546, %c0_547] : memref<24x16xf32, #tpu.memory_space<vmem>>, vector<24x16xf32>
    %cst_548 = arith.constant dense<0.000000e+00> : vector<2x16xf32>
    %1195 = tpu.matmul %1193, %1194, %cst_548 {dimension_numbers = #tpu.dot_dimension_numbers<[1], [0], [0], [1], [0, 0, 1, 1], [], []>} : vector<2x24xf32>, vector<24x16xf32>, vector<2x16xf32> -> vector<2x16xf32>
    %c0_549 = arith.constant 0 : index
    %c0_550 = arith.constant 0 : index
    %1196 = vector.load %arg16[%c0_549, %c0_550] : memref<1x32xf32, #tpu.memory_space<vmem>>, vector<1x32xf32>
    %1197 = vector.broadcast %1196 : vector<1x32xf32> to vector<2x32xf32>
    %1198 = arith.mulf %1169, %1197 : vector<2x32xf32>
    %cst_551 = arith.constant dense<0.000000e+00> : vector<2xf32>
    %1199 = vector.multi_reduction <add>, %1198, %cst_551 [1] : vector<2x32xf32> to vector<2xf32>
    %1200 = vector.shape_cast %1199 : vector<2xf32> to vector<2x1xf32>
    %1201 = vector.broadcast %1200 : vector<2x1xf32> to vector<2x10xf32>
    %1202 = arith.addf %1201, %1012 : vector<2x10xf32>
    %cst_552 = arith.constant 0.000000e+00 : f32
    %1203 = vector.broadcast %cst_552 : f32 to vector<2x10xf32>
    %1204 = arith.maximumf %1202, %1203 : vector<2x10xf32>
    %cst_553 = arith.constant dense<0xFF800000> : vector<2xf32>
    %1205 = vector.multi_reduction <maximumf>, %1204, %cst_553 [1] : vector<2x10xf32> to vector<2xf32>
    %1206 = vector.shape_cast %1205 : vector<2xf32> to vector<2x1xf32>
    %1207 = vector.broadcast %1206 : vector<2x1xf32> to vector<2x10xf32>
    %1208 = arith.subf %1204, %1207 : vector<2x10xf32>
    %1209 = math.exp %1208 : vector<2x10xf32>
    %cst_554 = arith.constant dense<0.000000e+00> : vector<2xf32>
    %1210 = vector.multi_reduction <add>, %1209, %cst_554 [1] : vector<2x10xf32> to vector<2xf32>
    %1211 = vector.shape_cast %1210 : vector<2xf32> to vector<2x1xf32>
    %1212 = tpu.reciprocal %1211 {approx = true} : vector<2x1xf32> -> vector<2x1xf32>
    %1213 = vector.broadcast %1212 : vector<2x1xf32> to vector<2x10xf32>
    %1214 = arith.mulf %1209, %1213 : vector<2x10xf32>
    %1215 = vector.extract_strided_slice %1214 {offsets = [0, 0], sizes = [1, 10], strides = [1, 1]} : vector<2x10xf32> to vector<1x10xf32>
    %cst_555 = arith.constant dense<0.000000e+00> : vector<1x64xf32>
    %1216 = tpu.matmul %1215, %1002, %cst_555 {dimension_numbers = #tpu.dot_dimension_numbers<[1], [0], [0], [1], [0, 0, 1, 1], [], []>} : vector<1x10xf32>, vector<10x64xf32>, vector<1x64xf32> -> vector<1x64xf32>
    %1217 = vector.extract_strided_slice %1214 {offsets = [1, 0], sizes = [1, 10], strides = [1, 1]} : vector<2x10xf32> to vector<1x10xf32>
    %cst_556 = arith.constant dense<0.000000e+00> : vector<1x64xf32>
    %1218 = tpu.matmul %1217, %1004, %cst_556 {dimension_numbers = #tpu.dot_dimension_numbers<[1], [0], [0], [1], [0, 0, 1, 1], [], []>} : vector<1x10xf32>, vector<10x64xf32>, vector<1x64xf32> -> vector<1x64xf32>
    %1219 = tpu.concatenate %1216, %1218 in 0 : vector<1x64xf32>, vector<1x64xf32> -> vector<2x64xf32>
    %c0_557 = arith.constant 0 : index
    %c0_558 = arith.constant 0 : index
    %1220 = vector.load %arg19[%c0_557, %c0_558] : memref<64x128xf32, #tpu.memory_space<vmem>>, vector<64x128xf32>
    %cst_559 = arith.constant dense<0.000000e+00> : vector<2x128xf32>
    %1221 = tpu.matmul %1219, %1220, %cst_559 {dimension_numbers = #tpu.dot_dimension_numbers<[1], [0], [0], [1], [0, 0, 1, 1], [], []>} : vector<2x64xf32>, vector<64x128xf32>, vector<2x128xf32> -> vector<2x128xf32>
    %c0_560 = arith.constant 0 : index
    %c0_561 = arith.constant 0 : index
    %1222 = vector.load %arg20[%c0_560, %c0_561] : memref<16x128xf32, #tpu.memory_space<vmem>>, vector<16x128xf32>
    %cst_562 = arith.constant dense<0.000000e+00> : vector<2x128xf32>
    %1223 = tpu.matmul %1195, %1222, %cst_562 {dimension_numbers = #tpu.dot_dimension_numbers<[1], [0], [0], [1], [0, 0, 1, 1], [], []>} : vector<2x16xf32>, vector<16x128xf32>, vector<2x128xf32> -> vector<2x128xf32>
    %1224 = arith.addf %1221, %1223 : vector<2x128xf32>
    %c0_563 = arith.constant 0 : index
    %c0_564 = arith.constant 0 : index
    %1225 = vector.load %arg21[%c0_563, %c0_564] : memref<32x128xf32, #tpu.memory_space<vmem>>, vector<32x128xf32>
    %cst_565 = arith.constant dense<0.000000e+00> : vector<2x128xf32>
    %1226 = tpu.matmul %1169, %1225, %cst_565 {dimension_numbers = #tpu.dot_dimension_numbers<[1], [0], [0], [1], [0, 0, 1, 1], [], []>} : vector<2x32xf32>, vector<32x128xf32>, vector<2x128xf32> -> vector<2x128xf32>
    %1227 = arith.addf %1224, %1226 : vector<2x128xf32>
    %c0_566 = arith.constant 0 : index
    %c0_567 = arith.constant 0 : index
    %1228 = vector.load %arg22[%c0_566, %c0_567] : memref<1x128xf32, #tpu.memory_space<vmem>>, vector<1x128xf32>
    %1229 = vector.broadcast %1228 : vector<1x128xf32> to vector<2x128xf32>
    %1230 = arith.addf %1227, %1229 : vector<2x128xf32>
    %1231 = vector.extract_strided_slice %1230 {offsets = [0, 0], sizes = [2, 32], strides = [1, 1]} : vector<2x128xf32> to vector<2x32xf32>
    %1232 = arith.negf %1231 : vector<2x32xf32>
    %1233 = math.exp %1232 : vector<2x32xf32>
    %cst_568 = arith.constant 1.000000e+00 : f32
    %1234 = vector.broadcast %cst_568 : f32 to vector<2x32xf32>
    %1235 = arith.addf %1234, %1233 : vector<2x32xf32>
    %1236 = arith.divf %1234, %1235 : vector<2x32xf32>
    %1237 = vector.extract_strided_slice %1230 {offsets = [0, 32], sizes = [2, 32], strides = [1, 1]} : vector<2x128xf32> to vector<2x32xf32>
    %1238 = arith.negf %1237 : vector<2x32xf32>
    %1239 = math.exp %1238 : vector<2x32xf32>
    %cst_569 = arith.constant 1.000000e+00 : f32
    %1240 = vector.broadcast %cst_569 : f32 to vector<2x32xf32>
    %1241 = arith.addf %1240, %1239 : vector<2x32xf32>
    %1242 = arith.divf %1240, %1241 : vector<2x32xf32>
    %1243 = vector.extract_strided_slice %1230 {offsets = [0, 64], sizes = [2, 32], strides = [1, 1]} : vector<2x128xf32> to vector<2x32xf32>
    %1244 = math.tanh %1243 : vector<2x32xf32>
    %1245 = vector.extract_strided_slice %1230 {offsets = [0, 96], sizes = [2, 32], strides = [1, 1]} : vector<2x128xf32> to vector<2x32xf32>
    %1246 = arith.negf %1245 : vector<2x32xf32>
    %1247 = math.exp %1246 : vector<2x32xf32>
    %cst_570 = arith.constant 1.000000e+00 : f32
    %1248 = vector.broadcast %cst_570 : f32 to vector<2x32xf32>
    %1249 = arith.addf %1248, %1247 : vector<2x32xf32>
    %1250 = arith.divf %1248, %1249 : vector<2x32xf32>
    %1251 = arith.mulf %1242, %1167 : vector<2x32xf32>
    %1252 = arith.mulf %1236, %1244 : vector<2x32xf32>
    %1253 = arith.addf %1251, %1252 : vector<2x32xf32>
    %1254 = math.tanh %1253 : vector<2x32xf32>
    %1255 = arith.mulf %1250, %1254 : vector<2x32xf32>
    %c0_571 = arith.constant 0 : index
    %c0_572 = arith.constant 0 : index
    %1256 = vector.load %arg23[%c0_571, %c0_572] : memref<32x24xf32, #tpu.memory_space<vmem>>, vector<32x24xf32>
    %cst_573 = arith.constant dense<0.000000e+00> : vector<2x24xf32>
    %1257 = tpu.matmul %1255, %1256, %cst_573 {dimension_numbers = #tpu.dot_dimension_numbers<[1], [0], [0], [1], [0, 0, 1, 1], [], []>} : vector<2x32xf32>, vector<32x24xf32>, vector<2x24xf32> -> vector<2x24xf32>
    %c0_574 = arith.constant 0 : index
    %c0_575 = arith.constant 0 : index
    %1258 = vector.load %arg24[%c0_574, %c0_575] : memref<1x24xf32, #tpu.memory_space<vmem>>, vector<1x24xf32>
    %1259 = vector.broadcast %1258 : vector<1x24xf32> to vector<2x24xf32>
    %1260 = arith.addf %1257, %1259 : vector<2x24xf32>
    %1261 = vector.shape_cast %1260 : vector<2x24xf32> to vector<1x2x24xf32>
    %c3_576 = arith.constant 3 : index
    %c0_577 = arith.constant 0 : index
    %c0_578 = arith.constant 0 : index
    %1262 = vector.load %arg25[%c3_576, %c0_577, %c0_578] : memref<8x2x24xf32, #tpu.memory_space<vmem>>, vector<1x2x24xf32>
    tpu.vector_store %arg25[%c3_576, %c0_577, %c0_578], %1261 {strides = array<i32>} : memref<8x2x24xf32, #tpu.memory_space<vmem>>, vector<1x2x24xf32>,
    %cst_579 = arith.constant dense<0xFF800000> : vector<2xf32>
    %1263 = vector.multi_reduction <maximumf>, %1260, %cst_579 [1] : vector<2x24xf32> to vector<2xf32>
    %1264 = vector.shape_cast %1263 : vector<2xf32> to vector<2x1xf32>
    %1265 = vector.broadcast %1264 : vector<2x1xf32> to vector<2x24xf32>
    %1266 = arith.cmpf oeq, %1260, %1265 : vector<2x24xf32>
    %c24_i32_580 = arith.constant 24 : i32
    %1267 = vector.broadcast %c24_i32_580 : i32 to vector<2x24xi32>
    %1268 = arith.select %1266, %1015, %1267 : vector<2x24xi1>, vector<2x24xi32>
    %cst_581 = arith.constant dense<2147483647> : vector<2xi32>
    %1269 = vector.multi_reduction <minsi>, %1268, %cst_581 [1] : vector<2x24xi32> to vector<2xi32>
    %1270 = vector.shape_cast %1269 : vector<2xi32> to vector<2x1xi32>
    %c3_582 = arith.constant 3 : index
    %1271 = memref.load %arg1[%c3_582] : memref<8xi32, #tpu.memory_space<smem>>
    %c0_i32_583 = arith.constant 0 : i32
    %1272 = arith.cmpi sgt, %1271, %c0_i32_583 : i32
    %c0_584 = arith.constant 0 : index
    %c3_585 = arith.constant 3 : index
    %1273 = vector.load %arg3[%c0_584, %c3_585] : memref<2x8xi32, #tpu.memory_space<vmem>>, vector<2x1xi32>
    %1274 = arith.select %1272, %1273, %1270 : vector<2x1xi32>
    %1275 = tpu.iota {dimensions = array<i32: 1>} : vector<2x24xi32>
    %1276 = vector.broadcast %1274 : vector<2x1xi32> to vector<2x24xi32>
    %1277 = arith.cmpi eq, %1275, %1276 : vector<2x24xi32>
    %1278 = arith.extui %1277 : vector<2x24xi1> to vector<2x24xi32>
    %1279 = arith.sitofp %1278 : vector<2x24xi32> to vector<2x24xf32>
    %c0_586 = arith.constant 0 : index
    %c0_587 = arith.constant 0 : index
    %1280 = vector.load %arg15[%c0_586, %c0_587] : memref<24x16xf32, #tpu.memory_space<vmem>>, vector<24x16xf32>
    %cst_588 = arith.constant dense<0.000000e+00> : vector<2x16xf32>
    %1281 = tpu.matmul %1279, %1280, %cst_588 {dimension_numbers = #tpu.dot_dimension_numbers<[1], [0], [0], [1], [0, 0, 1, 1], [], []>} : vector<2x24xf32>, vector<24x16xf32>, vector<2x16xf32> -> vector<2x16xf32>
    %c0_589 = arith.constant 0 : index
    %c0_590 = arith.constant 0 : index
    %1282 = vector.load %arg16[%c0_589, %c0_590] : memref<1x32xf32, #tpu.memory_space<vmem>>, vector<1x32xf32>
    %1283 = vector.broadcast %1282 : vector<1x32xf32> to vector<2x32xf32>
    %1284 = arith.mulf %1255, %1283 : vector<2x32xf32>
    %cst_591 = arith.constant dense<0.000000e+00> : vector<2xf32>
    %1285 = vector.multi_reduction <add>, %1284, %cst_591 [1] : vector<2x32xf32> to vector<2xf32>
    %1286 = vector.shape_cast %1285 : vector<2xf32> to vector<2x1xf32>
    %1287 = vector.broadcast %1286 : vector<2x1xf32> to vector<2x10xf32>
    %1288 = arith.addf %1287, %1012 : vector<2x10xf32>
    %cst_592 = arith.constant 0.000000e+00 : f32
    %1289 = vector.broadcast %cst_592 : f32 to vector<2x10xf32>
    %1290 = arith.maximumf %1288, %1289 : vector<2x10xf32>
    %cst_593 = arith.constant dense<0xFF800000> : vector<2xf32>
    %1291 = vector.multi_reduction <maximumf>, %1290, %cst_593 [1] : vector<2x10xf32> to vector<2xf32>
    %1292 = vector.shape_cast %1291 : vector<2xf32> to vector<2x1xf32>
    %1293 = vector.broadcast %1292 : vector<2x1xf32> to vector<2x10xf32>
    %1294 = arith.subf %1290, %1293 : vector<2x10xf32>
    %1295 = math.exp %1294 : vector<2x10xf32>
    %cst_594 = arith.constant dense<0.000000e+00> : vector<2xf32>
    %1296 = vector.multi_reduction <add>, %1295, %cst_594 [1] : vector<2x10xf32> to vector<2xf32>
    %1297 = vector.shape_cast %1296 : vector<2xf32> to vector<2x1xf32>
    %1298 = tpu.reciprocal %1297 {approx = true} : vector<2x1xf32> -> vector<2x1xf32>
    %1299 = vector.broadcast %1298 : vector<2x1xf32> to vector<2x10xf32>
    %1300 = arith.mulf %1295, %1299 : vector<2x10xf32>
    %1301 = vector.extract_strided_slice %1300 {offsets = [0, 0], sizes = [1, 10], strides = [1, 1]} : vector<2x10xf32> to vector<1x10xf32>
    %cst_595 = arith.constant dense<0.000000e+00> : vector<1x64xf32>
    %1302 = tpu.matmul %1301, %1002, %cst_595 {dimension_numbers = #tpu.dot_dimension_numbers<[1], [0], [0], [1], [0, 0, 1, 1], [], []>} : vector<1x10xf32>, vector<10x64xf32>, vector<1x64xf32> -> vector<1x64xf32>
    %1303 = vector.extract_strided_slice %1300 {offsets = [1, 0], sizes = [1, 10], strides = [1, 1]} : vector<2x10xf32> to vector<1x10xf32>
    %cst_596 = arith.constant dense<0.000000e+00> : vector<1x64xf32>
    %1304 = tpu.matmul %1303, %1004, %cst_596 {dimension_numbers = #tpu.dot_dimension_numbers<[1], [0], [0], [1], [0, 0, 1, 1], [], []>} : vector<1x10xf32>, vector<10x64xf32>, vector<1x64xf32> -> vector<1x64xf32>
    %1305 = tpu.concatenate %1302, %1304 in 0 : vector<1x64xf32>, vector<1x64xf32> -> vector<2x64xf32>
    %c0_597 = arith.constant 0 : index
    %c0_598 = arith.constant 0 : index
    %1306 = vector.load %arg19[%c0_597, %c0_598] : memref<64x128xf32, #tpu.memory_space<vmem>>, vector<64x128xf32>
    %cst_599 = arith.constant dense<0.000000e+00> : vector<2x128xf32>
    %1307 = tpu.matmul %1305, %1306, %cst_599 {dimension_numbers = #tpu.dot_dimension_numbers<[1], [0], [0], [1], [0, 0, 1, 1], [], []>} : vector<2x64xf32>, vector<64x128xf32>, vector<2x128xf32> -> vector<2x128xf32>
    %c0_600 = arith.constant 0 : index
    %c0_601 = arith.constant 0 : index
    %1308 = vector.load %arg20[%c0_600, %c0_601] : memref<16x128xf32, #tpu.memory_space<vmem>>, vector<16x128xf32>
    %cst_602 = arith.constant dense<0.000000e+00> : vector<2x128xf32>
    %1309 = tpu.matmul %1281, %1308, %cst_602 {dimension_numbers = #tpu.dot_dimension_numbers<[1], [0], [0], [1], [0, 0, 1, 1], [], []>} : vector<2x16xf32>, vector<16x128xf32>, vector<2x128xf32> -> vector<2x128xf32>
    %1310 = arith.addf %1307, %1309 : vector<2x128xf32>
    %c0_603 = arith.constant 0 : index
    %c0_604 = arith.constant 0 : index
    %1311 = vector.load %arg21[%c0_603, %c0_604] : memref<32x128xf32, #tpu.memory_space<vmem>>, vector<32x128xf32>
    %cst_605 = arith.constant dense<0.000000e+00> : vector<2x128xf32>
    %1312 = tpu.matmul %1255, %1311, %cst_605 {dimension_numbers = #tpu.dot_dimension_numbers<[1], [0], [0], [1], [0, 0, 1, 1], [], []>} : vector<2x32xf32>, vector<32x128xf32>, vector<2x128xf32> -> vector<2x128xf32>
    %1313 = arith.addf %1310, %1312 : vector<2x128xf32>
    %c0_606 = arith.constant 0 : index
    %c0_607 = arith.constant 0 : index
    %1314 = vector.load %arg22[%c0_606, %c0_607] : memref<1x128xf32, #tpu.memory_space<vmem>>, vector<1x128xf32>
    %1315 = vector.broadcast %1314 : vector<1x128xf32> to vector<2x128xf32>
    %1316 = arith.addf %1313, %1315 : vector<2x128xf32>
    %1317 = vector.extract_strided_slice %1316 {offsets = [0, 0], sizes = [2, 32], strides = [1, 1]} : vector<2x128xf32> to vector<2x32xf32>
    %1318 = arith.negf %1317 : vector<2x32xf32>
    %1319 = math.exp %1318 : vector<2x32xf32>
    %cst_608 = arith.constant 1.000000e+00 : f32
    %1320 = vector.broadcast %cst_608 : f32 to vector<2x32xf32>
    %1321 = arith.addf %1320, %1319 : vector<2x32xf32>
    %1322 = arith.divf %1320, %1321 : vector<2x32xf32>
    %1323 = vector.extract_strided_slice %1316 {offsets = [0, 32], sizes = [2, 32], strides = [1, 1]} : vector<2x128xf32> to vector<2x32xf32>
    %1324 = arith.negf %1323 : vector<2x32xf32>
    %1325 = math.exp %1324 : vector<2x32xf32>
    %cst_609 = arith.constant 1.000000e+00 : f32
    %1326 = vector.broadcast %cst_609 : f32 to vector<2x32xf32>
    %1327 = arith.addf %1326, %1325 : vector<2x32xf32>
    %1328 = arith.divf %1326, %1327 : vector<2x32xf32>
    %1329 = vector.extract_strided_slice %1316 {offsets = [0, 64], sizes = [2, 32], strides = [1, 1]} : vector<2x128xf32> to vector<2x32xf32>
    %1330 = math.tanh %1329 : vector<2x32xf32>
    %1331 = vector.extract_strided_slice %1316 {offsets = [0, 96], sizes = [2, 32], strides = [1, 1]} : vector<2x128xf32> to vector<2x32xf32>
    %1332 = arith.negf %1331 : vector<2x32xf32>
    %1333 = math.exp %1332 : vector<2x32xf32>
    %cst_610 = arith.constant 1.000000e+00 : f32
    %1334 = vector.broadcast %cst_610 : f32 to vector<2x32xf32>
    %1335 = arith.addf %1334, %1333 : vector<2x32xf32>
    %1336 = arith.divf %1334, %1335 : vector<2x32xf32>
    %1337 = arith.mulf %1328, %1253 : vector<2x32xf32>
    %1338 = arith.mulf %1322, %1330 : vector<2x32xf32>
    %1339 = arith.addf %1337, %1338 : vector<2x32xf32>
    %1340 = math.tanh %1339 : vector<2x32xf32>
    %1341 = arith.mulf %1336, %1340 : vector<2x32xf32>
    %c0_611 = arith.constant 0 : index
    %c0_612 = arith.constant 0 : index
    %1342 = vector.load %arg23[%c0_611, %c0_612] : memref<32x24xf32, #tpu.memory_space<vmem>>, vector<32x24xf32>
    %cst_613 = arith.constant dense<0.000000e+00> : vector<2x24xf32>
    %1343 = tpu.matmul %1341, %1342, %cst_613 {dimension_numbers = #tpu.dot_dimension_numbers<[1], [0], [0], [1], [0, 0, 1, 1], [], []>} : vector<2x32xf32>, vector<32x24xf32>, vector<2x24xf32> -> vector<2x24xf32>
    %c0_614 = arith.constant 0 : index
    %c0_615 = arith.constant 0 : index
    %1344 = vector.load %arg24[%c0_614, %c0_615] : memref<1x24xf32, #tpu.memory_space<vmem>>, vector<1x24xf32>
    %1345 = vector.broadcast %1344 : vector<1x24xf32> to vector<2x24xf32>
    %1346 = arith.addf %1343, %1345 : vector<2x24xf32>
    %1347 = vector.shape_cast %1346 : vector<2x24xf32> to vector<1x2x24xf32>
    %c4_616 = arith.constant 4 : index
    %c0_617 = arith.constant 0 : index
    %c0_618 = arith.constant 0 : index
    %1348 = vector.load %arg25[%c4_616, %c0_617, %c0_618] : memref<8x2x24xf32, #tpu.memory_space<vmem>>, vector<1x2x24xf32>
    tpu.vector_store %arg25[%c4_616, %c0_617, %c0_618], %1347 {strides = array<i32>} : memref<8x2x24xf32, #tpu.memory_space<vmem>>, vector<1x2x24xf32>,
    %cst_619 = arith.constant dense<0xFF800000> : vector<2xf32>
    %1349 = vector.multi_reduction <maximumf>, %1346, %cst_619 [1] : vector<2x24xf32> to vector<2xf32>
    %1350 = vector.shape_cast %1349 : vector<2xf32> to vector<2x1xf32>
    %1351 = vector.broadcast %1350 : vector<2x1xf32> to vector<2x24xf32>
    %1352 = arith.cmpf oeq, %1346, %1351 : vector<2x24xf32>
    %c24_i32_620 = arith.constant 24 : i32
    %1353 = vector.broadcast %c24_i32_620 : i32 to vector<2x24xi32>
    %1354 = arith.select %1352, %1015, %1353 : vector<2x24xi1>, vector<2x24xi32>
    %cst_621 = arith.constant dense<2147483647> : vector<2xi32>
    %1355 = vector.multi_reduction <minsi>, %1354, %cst_621 [1] : vector<2x24xi32> to vector<2xi32>
    %1356 = vector.shape_cast %1355 : vector<2xi32> to vector<2x1xi32>
    %c4_622 = arith.constant 4 : index
    %1357 = memref.load %arg1[%c4_622] : memref<8xi32, #tpu.memory_space<smem>>
    %c0_i32_623 = arith.constant 0 : i32
    %1358 = arith.cmpi sgt, %1357, %c0_i32_623 : i32
    %c0_624 = arith.constant 0 : index
    %c4_625 = arith.constant 4 : index
    %1359 = vector.load %arg3[%c0_624, %c4_625] : memref<2x8xi32, #tpu.memory_space<vmem>>, vector<2x1xi32>
    %1360 = arith.select %1358, %1359, %1356 : vector<2x1xi32>
    %1361 = tpu.iota {dimensions = array<i32: 1>} : vector<2x24xi32>
    %1362 = vector.broadcast %1360 : vector<2x1xi32> to vector<2x24xi32>
    %1363 = arith.cmpi eq, %1361, %1362 : vector<2x24xi32>
    %1364 = arith.extui %1363 : vector<2x24xi1> to vector<2x24xi32>
    %1365 = arith.sitofp %1364 : vector<2x24xi32> to vector<2x24xf32>
    %c0_626 = arith.constant 0 : index
    %c0_627 = arith.constant 0 : index
    %1366 = vector.load %arg15[%c0_626, %c0_627] : memref<24x16xf32, #tpu.memory_space<vmem>>, vector<24x16xf32>
    %cst_628 = arith.constant dense<0.000000e+00> : vector<2x16xf32>
    %1367 = tpu.matmul %1365, %1366, %cst_628 {dimension_numbers = #tpu.dot_dimension_numbers<[1], [0], [0], [1], [0, 0, 1, 1], [], []>} : vector<2x24xf32>, vector<24x16xf32>, vector<2x16xf32> -> vector<2x16xf32>
    %c0_629 = arith.constant 0 : index
    %c0_630 = arith.constant 0 : index
    %1368 = vector.load %arg16[%c0_629, %c0_630] : memref<1x32xf32, #tpu.memory_space<vmem>>, vector<1x32xf32>
    %1369 = vector.broadcast %1368 : vector<1x32xf32> to vector<2x32xf32>
    %1370 = arith.mulf %1341, %1369 : vector<2x32xf32>
    %cst_631 = arith.constant dense<0.000000e+00> : vector<2xf32>
    %1371 = vector.multi_reduction <add>, %1370, %cst_631 [1] : vector<2x32xf32> to vector<2xf32>
    %1372 = vector.shape_cast %1371 : vector<2xf32> to vector<2x1xf32>
    %1373 = vector.broadcast %1372 : vector<2x1xf32> to vector<2x10xf32>
    %1374 = arith.addf %1373, %1012 : vector<2x10xf32>
    %cst_632 = arith.constant 0.000000e+00 : f32
    %1375 = vector.broadcast %cst_632 : f32 to vector<2x10xf32>
    %1376 = arith.maximumf %1374, %1375 : vector<2x10xf32>
    %cst_633 = arith.constant dense<0xFF800000> : vector<2xf32>
    %1377 = vector.multi_reduction <maximumf>, %1376, %cst_633 [1] : vector<2x10xf32> to vector<2xf32>
    %1378 = vector.shape_cast %1377 : vector<2xf32> to vector<2x1xf32>
    %1379 = vector.broadcast %1378 : vector<2x1xf32> to vector<2x10xf32>
    %1380 = arith.subf %1376, %1379 : vector<2x10xf32>
    %1381 = math.exp %1380 : vector<2x10xf32>
    %cst_634 = arith.constant dense<0.000000e+00> : vector<2xf32>
    %1382 = vector.multi_reduction <add>, %1381, %cst_634 [1] : vector<2x10xf32> to vector<2xf32>
    %1383 = vector.shape_cast %1382 : vector<2xf32> to vector<2x1xf32>
    %1384 = tpu.reciprocal %1383 {approx = true} : vector<2x1xf32> -> vector<2x1xf32>
    %1385 = vector.broadcast %1384 : vector<2x1xf32> to vector<2x10xf32>
    %1386 = arith.mulf %1381, %1385 : vector<2x10xf32>
    %1387 = vector.extract_strided_slice %1386 {offsets = [0, 0], sizes = [1, 10], strides = [1, 1]} : vector<2x10xf32> to vector<1x10xf32>
    %cst_635 = arith.constant dense<0.000000e+00> : vector<1x64xf32>
    %1388 = tpu.matmul %1387, %1002, %cst_635 {dimension_numbers = #tpu.dot_dimension_numbers<[1], [0], [0], [1], [0, 0, 1, 1], [], []>} : vector<1x10xf32>, vector<10x64xf32>, vector<1x64xf32> -> vector<1x64xf32>
    %1389 = vector.extract_strided_slice %1386 {offsets = [1, 0], sizes = [1, 10], strides = [1, 1]} : vector<2x10xf32> to vector<1x10xf32>
    %cst_636 = arith.constant dense<0.000000e+00> : vector<1x64xf32>
    %1390 = tpu.matmul %1389, %1004, %cst_636 {dimension_numbers = #tpu.dot_dimension_numbers<[1], [0], [0], [1], [0, 0, 1, 1], [], []>} : vector<1x10xf32>, vector<10x64xf32>, vector<1x64xf32> -> vector<1x64xf32>
    %1391 = tpu.concatenate %1388, %1390 in 0 : vector<1x64xf32>, vector<1x64xf32> -> vector<2x64xf32>
    %c0_637 = arith.constant 0 : index
    %c0_638 = arith.constant 0 : index
    %1392 = vector.load %arg19[%c0_637, %c0_638] : memref<64x128xf32, #tpu.memory_space<vmem>>, vector<64x128xf32>
    %cst_639 = arith.constant dense<0.000000e+00> : vector<2x128xf32>
    %1393 = tpu.matmul %1391, %1392, %cst_639 {dimension_numbers = #tpu.dot_dimension_numbers<[1], [0], [0], [1], [0, 0, 1, 1], [], []>} : vector<2x64xf32>, vector<64x128xf32>, vector<2x128xf32> -> vector<2x128xf32>
    %c0_640 = arith.constant 0 : index
    %c0_641 = arith.constant 0 : index
    %1394 = vector.load %arg20[%c0_640, %c0_641] : memref<16x128xf32, #tpu.memory_space<vmem>>, vector<16x128xf32>
    %cst_642 = arith.constant dense<0.000000e+00> : vector<2x128xf32>
    %1395 = tpu.matmul %1367, %1394, %cst_642 {dimension_numbers = #tpu.dot_dimension_numbers<[1], [0], [0], [1], [0, 0, 1, 1], [], []>} : vector<2x16xf32>, vector<16x128xf32>, vector<2x128xf32> -> vector<2x128xf32>
    %1396 = arith.addf %1393, %1395 : vector<2x128xf32>
    %c0_643 = arith.constant 0 : index
    %c0_644 = arith.constant 0 : index
    %1397 = vector.load %arg21[%c0_643, %c0_644] : memref<32x128xf32, #tpu.memory_space<vmem>>, vector<32x128xf32>
    %cst_645 = arith.constant dense<0.000000e+00> : vector<2x128xf32>
    %1398 = tpu.matmul %1341, %1397, %cst_645 {dimension_numbers = #tpu.dot_dimension_numbers<[1], [0], [0], [1], [0, 0, 1, 1], [], []>} : vector<2x32xf32>, vector<32x128xf32>, vector<2x128xf32> -> vector<2x128xf32>
    %1399 = arith.addf %1396, %1398 : vector<2x128xf32>
    %c0_646 = arith.constant 0 : index
    %c0_647 = arith.constant 0 : index
    %1400 = vector.load %arg22[%c0_646, %c0_647] : memref<1x128xf32, #tpu.memory_space<vmem>>, vector<1x128xf32>
    %1401 = vector.broadcast %1400 : vector<1x128xf32> to vector<2x128xf32>
    %1402 = arith.addf %1399, %1401 : vector<2x128xf32>
    %1403 = vector.extract_strided_slice %1402 {offsets = [0, 0], sizes = [2, 32], strides = [1, 1]} : vector<2x128xf32> to vector<2x32xf32>
    %1404 = arith.negf %1403 : vector<2x32xf32>
    %1405 = math.exp %1404 : vector<2x32xf32>
    %cst_648 = arith.constant 1.000000e+00 : f32
    %1406 = vector.broadcast %cst_648 : f32 to vector<2x32xf32>
    %1407 = arith.addf %1406, %1405 : vector<2x32xf32>
    %1408 = arith.divf %1406, %1407 : vector<2x32xf32>
    %1409 = vector.extract_strided_slice %1402 {offsets = [0, 32], sizes = [2, 32], strides = [1, 1]} : vector<2x128xf32> to vector<2x32xf32>
    %1410 = arith.negf %1409 : vector<2x32xf32>
    %1411 = math.exp %1410 : vector<2x32xf32>
    %cst_649 = arith.constant 1.000000e+00 : f32
    %1412 = vector.broadcast %cst_649 : f32 to vector<2x32xf32>
    %1413 = arith.addf %1412, %1411 : vector<2x32xf32>
    %1414 = arith.divf %1412, %1413 : vector<2x32xf32>
    %1415 = vector.extract_strided_slice %1402 {offsets = [0, 64], sizes = [2, 32], strides = [1, 1]} : vector<2x128xf32> to vector<2x32xf32>
    %1416 = math.tanh %1415 : vector<2x32xf32>
    %1417 = vector.extract_strided_slice %1402 {offsets = [0, 96], sizes = [2, 32], strides = [1, 1]} : vector<2x128xf32> to vector<2x32xf32>
    %1418 = arith.negf %1417 : vector<2x32xf32>
    %1419 = math.exp %1418 : vector<2x32xf32>
    %cst_650 = arith.constant 1.000000e+00 : f32
    %1420 = vector.broadcast %cst_650 : f32 to vector<2x32xf32>
    %1421 = arith.addf %1420, %1419 : vector<2x32xf32>
    %1422 = arith.divf %1420, %1421 : vector<2x32xf32>
    %1423 = arith.mulf %1414, %1339 : vector<2x32xf32>
    %1424 = arith.mulf %1408, %1416 : vector<2x32xf32>
    %1425 = arith.addf %1423, %1424 : vector<2x32xf32>
    %1426 = math.tanh %1425 : vector<2x32xf32>
    %1427 = arith.mulf %1422, %1426 : vector<2x32xf32>
    %c0_651 = arith.constant 0 : index
    %c0_652 = arith.constant 0 : index
    %1428 = vector.load %arg23[%c0_651, %c0_652] : memref<32x24xf32, #tpu.memory_space<vmem>>, vector<32x24xf32>
    %cst_653 = arith.constant dense<0.000000e+00> : vector<2x24xf32>
    %1429 = tpu.matmul %1427, %1428, %cst_653 {dimension_numbers = #tpu.dot_dimension_numbers<[1], [0], [0], [1], [0, 0, 1, 1], [], []>} : vector<2x32xf32>, vector<32x24xf32>, vector<2x24xf32> -> vector<2x24xf32>
    %c0_654 = arith.constant 0 : index
    %c0_655 = arith.constant 0 : index
    %1430 = vector.load %arg24[%c0_654, %c0_655] : memref<1x24xf32, #tpu.memory_space<vmem>>, vector<1x24xf32>
    %1431 = vector.broadcast %1430 : vector<1x24xf32> to vector<2x24xf32>
    %1432 = arith.addf %1429, %1431 : vector<2x24xf32>
    %1433 = vector.shape_cast %1432 : vector<2x24xf32> to vector<1x2x24xf32>
    %c5_656 = arith.constant 5 : index
    %c0_657 = arith.constant 0 : index
    %c0_658 = arith.constant 0 : index
    %1434 = vector.load %arg25[%c5_656, %c0_657, %c0_658] : memref<8x2x24xf32, #tpu.memory_space<vmem>>, vector<1x2x24xf32>
    tpu.vector_store %arg25[%c5_656, %c0_657, %c0_658], %1433 {strides = array<i32>} : memref<8x2x24xf32, #tpu.memory_space<vmem>>, vector<1x2x24xf32>,
    %cst_659 = arith.constant dense<0xFF800000> : vector<2xf32>
    %1435 = vector.multi_reduction <maximumf>, %1432, %cst_659 [1] : vector<2x24xf32> to vector<2xf32>
    %1436 = vector.shape_cast %1435 : vector<2xf32> to vector<2x1xf32>
    %1437 = vector.broadcast %1436 : vector<2x1xf32> to vector<2x24xf32>
    %1438 = arith.cmpf oeq, %1432, %1437 : vector<2x24xf32>
    %c24_i32_660 = arith.constant 24 : i32
    %1439 = vector.broadcast %c24_i32_660 : i32 to vector<2x24xi32>
    %1440 = arith.select %1438, %1015, %1439 : vector<2x24xi1>, vector<2x24xi32>
    %cst_661 = arith.constant dense<2147483647> : vector<2xi32>
    %1441 = vector.multi_reduction <minsi>, %1440, %cst_661 [1] : vector<2x24xi32> to vector<2xi32>
    %1442 = vector.shape_cast %1441 : vector<2xi32> to vector<2x1xi32>
    %c5_662 = arith.constant 5 : index
    %1443 = memref.load %arg1[%c5_662] : memref<8xi32, #tpu.memory_space<smem>>
    %c0_i32_663 = arith.constant 0 : i32
    %1444 = arith.cmpi sgt, %1443, %c0_i32_663 : i32
    %c0_664 = arith.constant 0 : index
    %c5_665 = arith.constant 5 : index
    %1445 = vector.load %arg3[%c0_664, %c5_665] : memref<2x8xi32, #tpu.memory_space<vmem>>, vector<2x1xi32>
    %1446 = arith.select %1444, %1445, %1442 : vector<2x1xi32>
    %1447 = tpu.iota {dimensions = array<i32: 1>} : vector<2x24xi32>
    %1448 = vector.broadcast %1446 : vector<2x1xi32> to vector<2x24xi32>
    %1449 = arith.cmpi eq, %1447, %1448 : vector<2x24xi32>
    %1450 = arith.extui %1449 : vector<2x24xi1> to vector<2x24xi32>
    %1451 = arith.sitofp %1450 : vector<2x24xi32> to vector<2x24xf32>
    %c0_666 = arith.constant 0 : index
    %c0_667 = arith.constant 0 : index
    %1452 = vector.load %arg15[%c0_666, %c0_667] : memref<24x16xf32, #tpu.memory_space<vmem>>, vector<24x16xf32>
    %cst_668 = arith.constant dense<0.000000e+00> : vector<2x16xf32>
    %1453 = tpu.matmul %1451, %1452, %cst_668 {dimension_numbers = #tpu.dot_dimension_numbers<[1], [0], [0], [1], [0, 0, 1, 1], [], []>} : vector<2x24xf32>, vector<24x16xf32>, vector<2x16xf32> -> vector<2x16xf32>
    %c0_669 = arith.constant 0 : index
    %c0_670 = arith.constant 0 : index
    %1454 = vector.load %arg16[%c0_669, %c0_670] : memref<1x32xf32, #tpu.memory_space<vmem>>, vector<1x32xf32>
    %1455 = vector.broadcast %1454 : vector<1x32xf32> to vector<2x32xf32>
    %1456 = arith.mulf %1427, %1455 : vector<2x32xf32>
    %cst_671 = arith.constant dense<0.000000e+00> : vector<2xf32>
    %1457 = vector.multi_reduction <add>, %1456, %cst_671 [1] : vector<2x32xf32> to vector<2xf32>
    %1458 = vector.shape_cast %1457 : vector<2xf32> to vector<2x1xf32>
    %1459 = vector.broadcast %1458 : vector<2x1xf32> to vector<2x10xf32>
    %1460 = arith.addf %1459, %1012 : vector<2x10xf32>
    %cst_672 = arith.constant 0.000000e+00 : f32
    %1461 = vector.broadcast %cst_672 : f32 to vector<2x10xf32>
    %1462 = arith.maximumf %1460, %1461 : vector<2x10xf32>
    %cst_673 = arith.constant dense<0xFF800000> : vector<2xf32>
    %1463 = vector.multi_reduction <maximumf>, %1462, %cst_673 [1] : vector<2x10xf32> to vector<2xf32>
    %1464 = vector.shape_cast %1463 : vector<2xf32> to vector<2x1xf32>
    %1465 = vector.broadcast %1464 : vector<2x1xf32> to vector<2x10xf32>
    %1466 = arith.subf %1462, %1465 : vector<2x10xf32>
    %1467 = math.exp %1466 : vector<2x10xf32>
    %cst_674 = arith.constant dense<0.000000e+00> : vector<2xf32>
    %1468 = vector.multi_reduction <add>, %1467, %cst_674 [1] : vector<2x10xf32> to vector<2xf32>
    %1469 = vector.shape_cast %1468 : vector<2xf32> to vector<2x1xf32>
    %1470 = tpu.reciprocal %1469 {approx = true} : vector<2x1xf32> -> vector<2x1xf32>
    %1471 = vector.broadcast %1470 : vector<2x1xf32> to vector<2x10xf32>
    %1472 = arith.mulf %1467, %1471 : vector<2x10xf32>
    %1473 = vector.extract_strided_slice %1472 {offsets = [0, 0], sizes = [1, 10], strides = [1, 1]} : vector<2x10xf32> to vector<1x10xf32>
    %cst_675 = arith.constant dense<0.000000e+00> : vector<1x64xf32>
    %1474 = tpu.matmul %1473, %1002, %cst_675 {dimension_numbers = #tpu.dot_dimension_numbers<[1], [0], [0], [1], [0, 0, 1, 1], [], []>} : vector<1x10xf32>, vector<10x64xf32>, vector<1x64xf32> -> vector<1x64xf32>
    %1475 = vector.extract_strided_slice %1472 {offsets = [1, 0], sizes = [1, 10], strides = [1, 1]} : vector<2x10xf32> to vector<1x10xf32>
    %cst_676 = arith.constant dense<0.000000e+00> : vector<1x64xf32>
    %1476 = tpu.matmul %1475, %1004, %cst_676 {dimension_numbers = #tpu.dot_dimension_numbers<[1], [0], [0], [1], [0, 0, 1, 1], [], []>} : vector<1x10xf32>, vector<10x64xf32>, vector<1x64xf32> -> vector<1x64xf32>
    %1477 = tpu.concatenate %1474, %1476 in 0 : vector<1x64xf32>, vector<1x64xf32> -> vector<2x64xf32>
    %c0_677 = arith.constant 0 : index
    %c0_678 = arith.constant 0 : index
    %1478 = vector.load %arg19[%c0_677, %c0_678] : memref<64x128xf32, #tpu.memory_space<vmem>>, vector<64x128xf32>
    %cst_679 = arith.constant dense<0.000000e+00> : vector<2x128xf32>
    %1479 = tpu.matmul %1477, %1478, %cst_679 {dimension_numbers = #tpu.dot_dimension_numbers<[1], [0], [0], [1], [0, 0, 1, 1], [], []>} : vector<2x64xf32>, vector<64x128xf32>, vector<2x128xf32> -> vector<2x128xf32>
    %c0_680 = arith.constant 0 : index
    %c0_681 = arith.constant 0 : index
    %1480 = vector.load %arg20[%c0_680, %c0_681] : memref<16x128xf32, #tpu.memory_space<vmem>>, vector<16x128xf32>
    %cst_682 = arith.constant dense<0.000000e+00> : vector<2x128xf32>
    %1481 = tpu.matmul %1453, %1480, %cst_682 {dimension_numbers = #tpu.dot_dimension_numbers<[1], [0], [0], [1], [0, 0, 1, 1], [], []>} : vector<2x16xf32>, vector<16x128xf32>, vector<2x128xf32> -> vector<2x128xf32>
    %1482 = arith.addf %1479, %1481 : vector<2x128xf32>
    %c0_683 = arith.constant 0 : index
    %c0_684 = arith.constant 0 : index
    %1483 = vector.load %arg21[%c0_683, %c0_684] : memref<32x128xf32, #tpu.memory_space<vmem>>, vector<32x128xf32>
    %cst_685 = arith.constant dense<0.000000e+00> : vector<2x128xf32>
    %1484 = tpu.matmul %1427, %1483, %cst_685 {dimension_numbers = #tpu.dot_dimension_numbers<[1], [0], [0], [1], [0, 0, 1, 1], [], []>} : vector<2x32xf32>, vector<32x128xf32>, vector<2x128xf32> -> vector<2x128xf32>
    %1485 = arith.addf %1482, %1484 : vector<2x128xf32>
    %c0_686 = arith.constant 0 : index
    %c0_687 = arith.constant 0 : index
    %1486 = vector.load %arg22[%c0_686, %c0_687] : memref<1x128xf32, #tpu.memory_space<vmem>>, vector<1x128xf32>
    %1487 = vector.broadcast %1486 : vector<1x128xf32> to vector<2x128xf32>
    %1488 = arith.addf %1485, %1487 : vector<2x128xf32>
    %1489 = vector.extract_strided_slice %1488 {offsets = [0, 0], sizes = [2, 32], strides = [1, 1]} : vector<2x128xf32> to vector<2x32xf32>
    %1490 = arith.negf %1489 : vector<2x32xf32>
    %1491 = math.exp %1490 : vector<2x32xf32>
    %cst_688 = arith.constant 1.000000e+00 : f32
    %1492 = vector.broadcast %cst_688 : f32 to vector<2x32xf32>
    %1493 = arith.addf %1492, %1491 : vector<2x32xf32>
    %1494 = arith.divf %1492, %1493 : vector<2x32xf32>
    %1495 = vector.extract_strided_slice %1488 {offsets = [0, 32], sizes = [2, 32], strides = [1, 1]} : vector<2x128xf32> to vector<2x32xf32>
    %1496 = arith.negf %1495 : vector<2x32xf32>
    %1497 = math.exp %1496 : vector<2x32xf32>
    %cst_689 = arith.constant 1.000000e+00 : f32
    %1498 = vector.broadcast %cst_689 : f32 to vector<2x32xf32>
    %1499 = arith.addf %1498, %1497 : vector<2x32xf32>
    %1500 = arith.divf %1498, %1499 : vector<2x32xf32>
    %1501 = vector.extract_strided_slice %1488 {offsets = [0, 64], sizes = [2, 32], strides = [1, 1]} : vector<2x128xf32> to vector<2x32xf32>
    %1502 = math.tanh %1501 : vector<2x32xf32>
    %1503 = vector.extract_strided_slice %1488 {offsets = [0, 96], sizes = [2, 32], strides = [1, 1]} : vector<2x128xf32> to vector<2x32xf32>
    %1504 = arith.negf %1503 : vector<2x32xf32>
    %1505 = math.exp %1504 : vector<2x32xf32>
    %cst_690 = arith.constant 1.000000e+00 : f32
    %1506 = vector.broadcast %cst_690 : f32 to vector<2x32xf32>
    %1507 = arith.addf %1506, %1505 : vector<2x32xf32>
    %1508 = arith.divf %1506, %1507 : vector<2x32xf32>
    %1509 = arith.mulf %1500, %1425 : vector<2x32xf32>
    %1510 = arith.mulf %1494, %1502 : vector<2x32xf32>
    %1511 = arith.addf %1509, %1510 : vector<2x32xf32>
    %1512 = math.tanh %1511 : vector<2x32xf32>
    %1513 = arith.mulf %1508, %1512 : vector<2x32xf32>
    %c0_691 = arith.constant 0 : index
    %c0_692 = arith.constant 0 : index
    %1514 = vector.load %arg23[%c0_691, %c0_692] : memref<32x24xf32, #tpu.memory_space<vmem>>, vector<32x24xf32>
    %cst_693 = arith.constant dense<0.000000e+00> : vector<2x24xf32>
    %1515 = tpu.matmul %1513, %1514, %cst_693 {dimension_numbers = #tpu.dot_dimension_numbers<[1], [0], [0], [1], [0, 0, 1, 1], [], []>} : vector<2x32xf32>, vector<32x24xf32>, vector<2x24xf32> -> vector<2x24xf32>
    %c0_694 = arith.constant 0 : index
    %c0_695 = arith.constant 0 : index
    %1516 = vector.load %arg24[%c0_694, %c0_695] : memref<1x24xf32, #tpu.memory_space<vmem>>, vector<1x24xf32>
    %1517 = vector.broadcast %1516 : vector<1x24xf32> to vector<2x24xf32>
    %1518 = arith.addf %1515, %1517 : vector<2x24xf32>
    %1519 = vector.shape_cast %1518 : vector<2x24xf32> to vector<1x2x24xf32>
    %c6_696 = arith.constant 6 : index
    %c0_697 = arith.constant 0 : index
    %c0_698 = arith.constant 0 : index
    %1520 = vector.load %arg25[%c6_696, %c0_697, %c0_698] : memref<8x2x24xf32, #tpu.memory_space<vmem>>, vector<1x2x24xf32>
    tpu.vector_store %arg25[%c6_696, %c0_697, %c0_698], %1519 {strides = array<i32>} : memref<8x2x24xf32, #tpu.memory_space<vmem>>, vector<1x2x24xf32>,
    %cst_699 = arith.constant dense<0xFF800000> : vector<2xf32>
    %1521 = vector.multi_reduction <maximumf>, %1518, %cst_699 [1] : vector<2x24xf32> to vector<2xf32>
    %1522 = vector.shape_cast %1521 : vector<2xf32> to vector<2x1xf32>
    %1523 = vector.broadcast %1522 : vector<2x1xf32> to vector<2x24xf32>
    %1524 = arith.cmpf oeq, %1518, %1523 : vector<2x24xf32>
    %c24_i32_700 = arith.constant 24 : i32
    %1525 = vector.broadcast %c24_i32_700 : i32 to vector<2x24xi32>
    %1526 = arith.select %1524, %1015, %1525 : vector<2x24xi1>, vector<2x24xi32>
    %cst_701 = arith.constant dense<2147483647> : vector<2xi32>
    %1527 = vector.multi_reduction <minsi>, %1526, %cst_701 [1] : vector<2x24xi32> to vector<2xi32>
    %1528 = vector.shape_cast %1527 : vector<2xi32> to vector<2x1xi32>
    %c6_702 = arith.constant 6 : index
    %1529 = memref.load %arg1[%c6_702] : memref<8xi32, #tpu.memory_space<smem>>
    %c0_i32_703 = arith.constant 0 : i32
    %1530 = arith.cmpi sgt, %1529, %c0_i32_703 : i32
    %c0_704 = arith.constant 0 : index
    %c6_705 = arith.constant 6 : index
    %1531 = vector.load %arg3[%c0_704, %c6_705] : memref<2x8xi32, #tpu.memory_space<vmem>>, vector<2x1xi32>
    %1532 = arith.select %1530, %1531, %1528 : vector<2x1xi32>
    %1533 = tpu.iota {dimensions = array<i32: 1>} : vector<2x24xi32>
    %1534 = vector.broadcast %1532 : vector<2x1xi32> to vector<2x24xi32>
    %1535 = arith.cmpi eq, %1533, %1534 : vector<2x24xi32>
    %1536 = arith.extui %1535 : vector<2x24xi1> to vector<2x24xi32>
    %1537 = arith.sitofp %1536 : vector<2x24xi32> to vector<2x24xf32>
    %c0_706 = arith.constant 0 : index
    %c0_707 = arith.constant 0 : index
    %1538 = vector.load %arg15[%c0_706, %c0_707] : memref<24x16xf32, #tpu.memory_space<vmem>>, vector<24x16xf32>
    %cst_708 = arith.constant dense<0.000000e+00> : vector<2x16xf32>
    %1539 = tpu.matmul %1537, %1538, %cst_708 {dimension_numbers = #tpu.dot_dimension_numbers<[1], [0], [0], [1], [0, 0, 1, 1], [], []>} : vector<2x24xf32>, vector<24x16xf32>, vector<2x16xf32> -> vector<2x16xf32>
    %c0_709 = arith.constant 0 : index
    %c0_710 = arith.constant 0 : index
    %1540 = vector.load %arg16[%c0_709, %c0_710] : memref<1x32xf32, #tpu.memory_space<vmem>>, vector<1x32xf32>
    %1541 = vector.broadcast %1540 : vector<1x32xf32> to vector<2x32xf32>
    %1542 = arith.mulf %1513, %1541 : vector<2x32xf32>
    %cst_711 = arith.constant dense<0.000000e+00> : vector<2xf32>
    %1543 = vector.multi_reduction <add>, %1542, %cst_711 [1] : vector<2x32xf32> to vector<2xf32>
    %1544 = vector.shape_cast %1543 : vector<2xf32> to vector<2x1xf32>
    %1545 = vector.broadcast %1544 : vector<2x1xf32> to vector<2x10xf32>
    %1546 = arith.addf %1545, %1012 : vector<2x10xf32>
    %cst_712 = arith.constant 0.000000e+00 : f32
    %1547 = vector.broadcast %cst_712 : f32 to vector<2x10xf32>
    %1548 = arith.maximumf %1546, %1547 : vector<2x10xf32>
    %cst_713 = arith.constant dense<0xFF800000> : vector<2xf32>
    %1549 = vector.multi_reduction <maximumf>, %1548, %cst_713 [1] : vector<2x10xf32> to vector<2xf32>
    %1550 = vector.shape_cast %1549 : vector<2xf32> to vector<2x1xf32>
    %1551 = vector.broadcast %1550 : vector<2x1xf32> to vector<2x10xf32>
    %1552 = arith.subf %1548, %1551 : vector<2x10xf32>
    %1553 = math.exp %1552 : vector<2x10xf32>
    %cst_714 = arith.constant dense<0.000000e+00> : vector<2xf32>
    %1554 = vector.multi_reduction <add>, %1553, %cst_714 [1] : vector<2x10xf32> to vector<2xf32>
    %1555 = vector.shape_cast %1554 : vector<2xf32> to vector<2x1xf32>
    %1556 = tpu.reciprocal %1555 {approx = true} : vector<2x1xf32> -> vector<2x1xf32>
    %1557 = vector.broadcast %1556 : vector<2x1xf32> to vector<2x10xf32>
    %1558 = arith.mulf %1553, %1557 : vector<2x10xf32>
    %1559 = vector.extract_strided_slice %1558 {offsets = [0, 0], sizes = [1, 10], strides = [1, 1]} : vector<2x10xf32> to vector<1x10xf32>
    %cst_715 = arith.constant dense<0.000000e+00> : vector<1x64xf32>
    %1560 = tpu.matmul %1559, %1002, %cst_715 {dimension_numbers = #tpu.dot_dimension_numbers<[1], [0], [0], [1], [0, 0, 1, 1], [], []>} : vector<1x10xf32>, vector<10x64xf32>, vector<1x64xf32> -> vector<1x64xf32>
    %1561 = vector.extract_strided_slice %1558 {offsets = [1, 0], sizes = [1, 10], strides = [1, 1]} : vector<2x10xf32> to vector<1x10xf32>
    %cst_716 = arith.constant dense<0.000000e+00> : vector<1x64xf32>
    %1562 = tpu.matmul %1561, %1004, %cst_716 {dimension_numbers = #tpu.dot_dimension_numbers<[1], [0], [0], [1], [0, 0, 1, 1], [], []>} : vector<1x10xf32>, vector<10x64xf32>, vector<1x64xf32> -> vector<1x64xf32>
    %1563 = tpu.concatenate %1560, %1562 in 0 : vector<1x64xf32>, vector<1x64xf32> -> vector<2x64xf32>
    %c0_717 = arith.constant 0 : index
    %c0_718 = arith.constant 0 : index
    %1564 = vector.load %arg19[%c0_717, %c0_718] : memref<64x128xf32, #tpu.memory_space<vmem>>, vector<64x128xf32>
    %cst_719 = arith.constant dense<0.000000e+00> : vector<2x128xf32>
    %1565 = tpu.matmul %1563, %1564, %cst_719 {dimension_numbers = #tpu.dot_dimension_numbers<[1], [0], [0], [1], [0, 0, 1, 1], [], []>} : vector<2x64xf32>, vector<64x128xf32>, vector<2x128xf32> -> vector<2x128xf32>
    %c0_720 = arith.constant 0 : index
    %c0_721 = arith.constant 0 : index
    %1566 = vector.load %arg20[%c0_720, %c0_721] : memref<16x128xf32, #tpu.memory_space<vmem>>, vector<16x128xf32>
    %cst_722 = arith.constant dense<0.000000e+00> : vector<2x128xf32>
    %1567 = tpu.matmul %1539, %1566, %cst_722 {dimension_numbers = #tpu.dot_dimension_numbers<[1], [0], [0], [1], [0, 0, 1, 1], [], []>} : vector<2x16xf32>, vector<16x128xf32>, vector<2x128xf32> -> vector<2x128xf32>
    %1568 = arith.addf %1565, %1567 : vector<2x128xf32>
    %c0_723 = arith.constant 0 : index
    %c0_724 = arith.constant 0 : index
    %1569 = vector.load %arg21[%c0_723, %c0_724] : memref<32x128xf32, #tpu.memory_space<vmem>>, vector<32x128xf32>
    %cst_725 = arith.constant dense<0.000000e+00> : vector<2x128xf32>
    %1570 = tpu.matmul %1513, %1569, %cst_725 {dimension_numbers = #tpu.dot_dimension_numbers<[1], [0], [0], [1], [0, 0, 1, 1], [], []>} : vector<2x32xf32>, vector<32x128xf32>, vector<2x128xf32> -> vector<2x128xf32>
    %1571 = arith.addf %1568, %1570 : vector<2x128xf32>
    %c0_726 = arith.constant 0 : index
    %c0_727 = arith.constant 0 : index
    %1572 = vector.load %arg22[%c0_726, %c0_727] : memref<1x128xf32, #tpu.memory_space<vmem>>, vector<1x128xf32>
    %1573 = vector.broadcast %1572 : vector<1x128xf32> to vector<2x128xf32>
    %1574 = arith.addf %1571, %1573 : vector<2x128xf32>
    %1575 = vector.extract_strided_slice %1574 {offsets = [0, 0], sizes = [2, 32], strides = [1, 1]} : vector<2x128xf32> to vector<2x32xf32>
    %1576 = arith.negf %1575 : vector<2x32xf32>
    %1577 = math.exp %1576 : vector<2x32xf32>
    %cst_728 = arith.constant 1.000000e+00 : f32
    %1578 = vector.broadcast %cst_728 : f32 to vector<2x32xf32>
    %1579 = arith.addf %1578, %1577 : vector<2x32xf32>
    %1580 = arith.divf %1578, %1579 : vector<2x32xf32>
    %1581 = vector.extract_strided_slice %1574 {offsets = [0, 32], sizes = [2, 32], strides = [1, 1]} : vector<2x128xf32> to vector<2x32xf32>
    %1582 = arith.negf %1581 : vector<2x32xf32>
    %1583 = math.exp %1582 : vector<2x32xf32>
    %cst_729 = arith.constant 1.000000e+00 : f32
    %1584 = vector.broadcast %cst_729 : f32 to vector<2x32xf32>
    %1585 = arith.addf %1584, %1583 : vector<2x32xf32>
    %1586 = arith.divf %1584, %1585 : vector<2x32xf32>
    %1587 = vector.extract_strided_slice %1574 {offsets = [0, 64], sizes = [2, 32], strides = [1, 1]} : vector<2x128xf32> to vector<2x32xf32>
    %1588 = math.tanh %1587 : vector<2x32xf32>
    %1589 = vector.extract_strided_slice %1574 {offsets = [0, 96], sizes = [2, 32], strides = [1, 1]} : vector<2x128xf32> to vector<2x32xf32>
    %1590 = arith.negf %1589 : vector<2x32xf32>
    %1591 = math.exp %1590 : vector<2x32xf32>
    %cst_730 = arith.constant 1.000000e+00 : f32
    %1592 = vector.broadcast %cst_730 : f32 to vector<2x32xf32>
    %1593 = arith.addf %1592, %1591 : vector<2x32xf32>
    %1594 = arith.divf %1592, %1593 : vector<2x32xf32>
    %1595 = arith.mulf %1586, %1511 : vector<2x32xf32>
    %1596 = arith.mulf %1580, %1588 : vector<2x32xf32>
    %1597 = arith.addf %1595, %1596 : vector<2x32xf32>
    %1598 = math.tanh %1597 : vector<2x32xf32>
    %1599 = arith.mulf %1594, %1598 : vector<2x32xf32>
    %c0_731 = arith.constant 0 : index
    %c0_732 = arith.constant 0 : index
    %1600 = vector.load %arg23[%c0_731, %c0_732] : memref<32x24xf32, #tpu.memory_space<vmem>>, vector<32x24xf32>
    %cst_733 = arith.constant dense<0.000000e+00> : vector<2x24xf32>
    %1601 = tpu.matmul %1599, %1600, %cst_733 {dimension_numbers = #tpu.dot_dimension_numbers<[1], [0], [0], [1], [0, 0, 1, 1], [], []>} : vector<2x32xf32>, vector<32x24xf32>, vector<2x24xf32> -> vector<2x24xf32>
    %c0_734 = arith.constant 0 : index
    %c0_735 = arith.constant 0 : index
    %1602 = vector.load %arg24[%c0_734, %c0_735] : memref<1x24xf32, #tpu.memory_space<vmem>>, vector<1x24xf32>
    %1603 = vector.broadcast %1602 : vector<1x24xf32> to vector<2x24xf32>
    %1604 = arith.addf %1601, %1603 : vector<2x24xf32>
    %1605 = vector.shape_cast %1604 : vector<2x24xf32> to vector<1x2x24xf32>
    %c7_736 = arith.constant 7 : index
    %c0_737 = arith.constant 0 : index
    %c0_738 = arith.constant 0 : index
    %1606 = vector.load %arg25[%c7_736, %c0_737, %c0_738] : memref<8x2x24xf32, #tpu.memory_space<vmem>>, vector<1x2x24xf32>
    tpu.vector_store %arg25[%c7_736, %c0_737, %c0_738], %1605 {strides = array<i32>} : memref<8x2x24xf32, #tpu.memory_space<vmem>>, vector<1x2x24xf32>,
    return
  }
  func.func @transform_0(%arg0: i32, %arg1: memref<8xi32, #tpu.memory_space<smem>>) -> (i32, i32) {
    %c0_i32 = arith.constant 0 : i32
    %c0_i32_0 = arith.constant 0 : i32
    %c0_i32_1 = arith.constant 0 : i32
    return %c0_i32, %c0_i32_0 : i32, i32
  }
  func.func @transform_1(%arg0: i32, %arg1: memref<8xi32, #tpu.memory_space<smem>>) -> (i32, i32) {
    %c0_i32 = arith.constant 0 : i32
    %c0_i32_0 = arith.constant 0 : i32
    %c0_i32_1 = arith.constant 0 : i32
    return %c0_i32, %c0_i32_0 : i32, i32
  }
  func.func @transform_2(%arg0: i32, %arg1: memref<8xi32, #tpu.memory_space<smem>>) -> (i32, i32) {
    %c0_i32 = arith.constant 0 : i32
    %c0_i32_0 = arith.constant 0 : i32
    %c0_i32_1 = arith.constant 0 : i32
    return %c0_i32, %c0_i32_0 : i32, i32
  }
  func.func @transform_3(%arg0: i32, %arg1: memref<8xi32, #tpu.memory_space<smem>>) -> (i32, i32) {
    %c0_i32 = arith.constant 0 : i32
    %c0_i32_0 = arith.constant 0 : i32
    %c0_i32_1 = arith.constant 0 : i32
    return %c0_i32, %c0_i32_0 : i32, i32
  }
  func.func @transform_4(%arg0: i32, %arg1: memref<8xi32, #tpu.memory_space<smem>>) -> (i32, i32) {
    %c0_i32 = arith.constant 0 : i32
    %c0_i32_0 = arith.constant 0 : i32
    %c0_i32_1 = arith.constant 0 : i32
    return %c0_i32, %c0_i32_0 : i32, i32
  }
  func.func @transform_5(%arg0: i32, %arg1: memref<8xi32, #tpu.memory_space<smem>>) -> (i32, i32) {
    %c0_i32 = arith.constant 0 : i32
    %c0_i32_0 = arith.constant 0 : i32
    %c0_i32_1 = arith.constant 0 : i32
    return %c0_i32, %c0_i32_0 : i32, i32
  }
  func.func @transform_6(%arg0: i32, %arg1: memref<8xi32, #tpu.memory_space<smem>>) -> (i32, i32) {
    %c0_i32 = arith.constant 0 : i32
    %c0_i32_0 = arith.constant 0 : i32
    %c0_i32_1 = arith.constant 0 : i32
    return %c0_i32, %c0_i32_0 : i32, i32
  }
  func.func @transform_7(%arg0: i32, %arg1: memref<8xi32, #tpu.memory_space<smem>>) -> (i32, i32) {
    %c0_i32 = arith.constant 0 : i32
    %c0_i32_0 = arith.constant 0 : i32
    %c0_i32_1 = arith.constant 0 : i32
    return %c0_i32, %c0_i32_0 : i32, i32
  }
  func.func @transform_8(%arg0: i32, %arg1: memref<8xi32, #tpu.memory_space<smem>>) -> (i32, i32) {
    %c0_i32 = arith.constant 0 : i32
    %c0_i32_0 = arith.constant 0 : i32
    %c0_i32_1 = arith.constant 0 : i32
    return %c0_i32, %c0_i32_0 : i32, i32
  }
  func.func @transform_9(%arg0: i32, %arg1: memref<8xi32, #tpu.memory_space<smem>>) -> (i32, i32) {
    %c0_i32 = arith.constant 0 : i32
    %c0_i32_0 = arith.constant 0 : i32
    %c0_i32_1 = arith.constant 0 : i32
    return %c0_i32, %c0_i32_0 : i32, i32
  }
  func.func @transform_10(%arg0: i32, %arg1: memref<8xi32, #tpu.memory_space<smem>>) -> (i32, i32) {
    %c0_i32 = arith.constant 0 : i32
    %c0_i32_0 = arith.constant 0 : i32
    %c0_i32_1 = arith.constant 0 : i32
    return %c0_i32, %c0_i32_0 : i32, i32
  }
  func.func @transform_11(%arg0: i32, %arg1: memref<8xi32, #tpu.memory_space<smem>>) -> (i32, i32) {
    %c0_i32 = arith.constant 0 : i32
    %c0_i32_0 = arith.constant 0 : i32
    %c0_i32_1 = arith.constant 0 : i32
    return %c0_i32, %c0_i32_0 : i32, i32
  }
  func.func @transform_12(%arg0: i32, %arg1: memref<8xi32, #tpu.memory_space<smem>>) -> (i32, i32) {
    %c0_i32 = arith.constant 0 : i32
    %c0_i32_0 = arith.constant 0 : i32
    %c0_i32_1 = arith.constant 0 : i32
    return %c0_i32, %c0_i32_0 : i32, i32
  }
  func.func @transform_13(%arg0: i32, %arg1: memref<8xi32, #tpu.memory_space<smem>>) -> (i32, i32) {
    %c0_i32 = arith.constant 0 : i32
    %c0_i32_0 = arith.constant 0 : i32
    %c0_i32_1 = arith.constant 0 : i32
    return %c0_i32, %c0_i32_0 : i32, i32
  }
  func.func @transform_14(%arg0: i32, %arg1: memref<8xi32, #tpu.memory_space<smem>>) -> (i32, i32) {
    %c0_i32 = arith.constant 0 : i32
    %c0_i32_0 = arith.constant 0 : i32
    %c0_i32_1 = arith.constant 0 : i32
    return %c0_i32, %c0_i32_0 : i32, i32
  }
  func.func @transform_15(%arg0: i32, %arg1: memref<8xi32, #tpu.memory_space<smem>>) -> (i32, i32) {
    %c0_i32 = arith.constant 0 : i32
    %c0_i32_0 = arith.constant 0 : i32
    %c0_i32_1 = arith.constant 0 : i32
    return %c0_i32, %c0_i32_0 : i32, i32
  }
  func.func @transform_16(%arg0: i32, %arg1: memref<8xi32, #tpu.memory_space<smem>>) -> (i32, i32) {
    %c0_i32 = arith.constant 0 : i32
    %c0_i32_0 = arith.constant 0 : i32
    %c0_i32_1 = arith.constant 0 : i32
    return %c0_i32, %c0_i32_0 : i32, i32
  }
  func.func @transform_17(%arg0: i32, %arg1: memref<8xi32, #tpu.memory_space<smem>>) -> (i32, i32) {
    %c0_i32 = arith.constant 0 : i32
    %c0_i32_0 = arith.constant 0 : i32
    %c0_i32_1 = arith.constant 0 : i32
    return %c0_i32, %c0_i32_0 : i32, i32
  }
  func.func @transform_18(%arg0: i32, %arg1: memref<8xi32, #tpu.memory_space<smem>>) -> (i32, i32) {
    %c0_i32 = arith.constant 0 : i32
    %c0_i32_0 = arith.constant 0 : i32
    %c0_i32_1 = arith.constant 0 : i32
    return %c0_i32, %c0_i32_0 : i32, i32
  }
  func.func @transform_19(%arg0: i32, %arg1: memref<8xi32, #tpu.memory_space<smem>>) -> (i32, i32) {
    %c0_i32 = arith.constant 0 : i32
    %c0_i32_0 = arith.constant 0 : i32
    %c0_i32_1 = arith.constant 0 : i32
    return %c0_i32, %c0_i32_0 : i32, i32
  }
  func.func @transform_20(%arg0: i32, %arg1: memref<8xi32, #tpu.memory_space<smem>>) -> (i32, i32) {
    %c0_i32 = arith.constant 0 : i32
    %c0_i32_0 = arith.constant 0 : i32
    %c0_i32_1 = arith.constant 0 : i32
    return %c0_i32, %c0_i32_0 : i32, i32
  }
  func.func @transform_21(%arg0: i32, %arg1: memref<8xi32, #tpu.memory_space<smem>>) -> (i32, i32) {
    %c0_i32 = arith.constant 0 : i32
    %c0_i32_0 = arith.constant 0 : i32
    %c0_i32_1 = arith.constant 0 : i32
    return %c0_i32, %c0_i32_0 : i32, i32
  }
  func.func @transform_22(%arg0: i32, %arg1: memref<8xi32, #tpu.memory_space<smem>>) -> (i32, i32) {
    %c0_i32 = arith.constant 0 : i32
    %c0_i32_0 = arith.constant 0 : i32
    %c0_i32_1 = arith.constant 0 : i32
    return %c0_i32, %c0_i32_0 : i32, i32
  }
  func.func @transform_23(%arg0: i32, %arg1: memref<8xi32, #tpu.memory_space<smem>>) -> (i32, i32, i32) {
    %c0_i32 = arith.constant 0 : i32
    %c0_i32_0 = arith.constant 0 : i32
    %c0_i32_1 = arith.constant 0 : i32
    %c0_i32_2 = arith.constant 0 : i32
    return %c0_i32, %c0_i32_0, %c0_i32_1 : i32, i32, i32
  }
}

</mosaic_0001>

<bundles_post_ra>
// kernel: seq2seq_forward.1
= control target key start
LH: loop header
LB: loop body
LE: loop exit
PB: predicated region body
PF: predicated region fallthrough
CT: control target
= control target key end

     0   :  { %s15002_s0 = inlined_call_operand.vmem [shape: s32[8], index: 0, kind: input, shape index: {}]   ;;  %s15003_s1 = inlined_call_operand.vmem [shape: s32[2,10], index: 1, kind: input, shape index: {}]   ;;  %s15004_s2 = inlined_call_operand.vmem [shape: s32[2,8], index: 2, kind: input, shape index: {}]   ;;  %s15005_s3 = inlined_call_operand.vmem [shape: f32[24,16], index: 3, kind: input, shape index: {}]   ;;  %s15006_s4 = inlined_call_operand.vmem [shape: f32[16,128], index: 4, kind: input, shape index: {}]   ;;  %s15007_s5 = inlined_call_operand.vmem [shape: f32[32,128], index: 5, kind: input, shape index: {}]   ;;  %s15008_s6 = inlined_call_operand.vmem [shape: f32[1,128], index: 6, kind: input, shape index: {}]   ;;  %s15009_s7 = inlined_call_operand.vmem [shape: f32[16,128], index: 7, kind: input, shape index: {}]   ;;  %s15010_s8 = inlined_call_operand.vmem [shape: f32[32,128], index: 8, kind: input, shape index: {}]   ;;  %s15011_s9 = inlined_call_operand.vmem [shape: f32[1,128], index: 9, kind: input, shape index: {}]   ;;  %s15012_s10 = inlined_call_operand.vmem [shape: f32[64,32], index: 10, kind: input, shape index: {}]   ;;  %s15013_s11 = inlined_call_operand.vmem [shape: f32[1,32], index: 11, kind: input, shape index: {}]   ;;  %s15014_s12 = inlined_call_operand.vmem [shape: f32[64,32], index: 12, kind: input, shape index: {}]   ;;  %s15015_s13 = inlined_call_operand.vmem [shape: f32[1,32], index: 13, kind: input, shape index: {}]   ;;  %s15016_s14 = inlined_call_operand.vmem [shape: f32[24,16], index: 14, kind: input, shape index: {}]   ;;  %s15017_s15 = inlined_call_operand.vmem [shape: f32[1,32], index: 15, kind: input, shape index: {}]   ;;  %s15018_s16 = inlined_call_operand.vmem [shape: f32[1,64], index: 16, kind: input, shape index: {}]   ;;  %s15019_s18 = inlined_call_operand.vmem [shape: f32[64,128], index: 18, kind: input, shape index: {}]   ;;  %s15020_s19 = inlined_call_operand.vmem [shape: f32[16,128], index: 19, kind: input, shape index: {}]   ;;  %s15021_s20 = inlined_call_operand.vmem [shape: f32[32,128], index: 20, kind: input, shape index: {}]   ;;  %s15022_s21 = inlined_call_operand.vmem [shape: f32[1,128], index: 21, kind: input, shape index: {}]   ;;  %s15023_s22 = inlined_call_operand.vmem [shape: f32[32,24], index: 22, kind: input, shape index: {}]   ;;  %s15024_s23 = inlined_call_operand.vmem [shape: f32[1,24], index: 23, kind: input, shape index: {}]   ;;  %s15025_s24 = inlined_call_operand.hbm [shape: f32[8,2,24], index: 24, kind: output, shape index: {}]   ;;  %s15026_s17 = inlined_call_operand.<no memory space> [shape: f32[1,1], index: 17, kind: input, shape index: {}]  }
   0x1   :  { %15035 = sst [smem:[#allocation10_spill]] %s15002_s0  ;;  %v33_v0 = vstv %s15026_s17 }
   0x2   :  { %15036 = sst [smem:[#allocation11_spill]] %s15003_s1  ;;  %s15045_s27 = sld [smem:[#allocation10_spill]]  ;;  %34 = vst [vmem:[#allocation5] sm:$0x1] %v33_v0 }
   0x3   :  { %15037 = sst [smem:[#allocation12_spill]] %s15004_s2 }
   0x4   :  { %15038 = sst [smem:[#allocation13_spill]] %s15005_s3 }
   0x5   :  { %15039 = sst [smem:[#allocation14_spill]] %s15006_s4 }
   0x6   :  { %15040 = sst [smem:[#allocation15_spill]] %s15007_s5 }
   0x7   :  { %15041 = sst [smem:[#allocation16_spill]] %s15008_s6 }
   0x8   :  { %15042 = sst [smem:[#allocation17_spill]] %s15009_s7 }
   0x9   :  { %15043 = sst [smem:[#allocation18_spill]] %s15010_s8 }
   0xa   :  { %15044 = sst [smem:[#allocation19_spill]] %s15015_s13  ;;  %s29_s13 = sshll.u32 %s15045_s27, 4  ;;  %s30_s13 = int_to_ptr.vmem [resolvable:$true] %s29_s13 }
   0xb   :  { %s13010_s2 = scalar_lea.vmem %s30_s13, 16  ;;  %p13015_p1 = scmp.lt.s32.totalorder %s30_s13, %s30_s13 }
   0xc   :  { %p13011_p0 = scmp.ne.s32.totalorder %s30_s13, %s13010_s2  ;;  %p13016_p2 = scmp.lt.s32.totalorder %s13010_s2, %s13010_s2 }
   0xe   :  { %p13017_p3 = por %p13016_p2, %p13015_p1 }
  0x10   :  { %p13018_p4 = pnand %p13017_p3, %p13011_p0 }
  0x12   :  { %13021 = shalt.err (!%p13018_p4)  }
  0x13   :  { %s13048_s29 = smov [#allocation4]  }
  0x14   :  { %32 = dma.vmem_to_smem %s30_s13, 16, %s13048_s29, [#allocation3] }
  0x15   :  { %13044 = dma.done.wait [#allocation3], 16 }
  0x16   :  { %13045 = vsyncadd [#allocation3], 4294967280 }
  0x17   :  { %36 = sfence }
  0x18   :  { %s15046_s30 = sld [smem:[#allocation11_spill]]  ;;  %s15047_s25 = sld [smem:[#allocation13_spill]]  ;;  %v13049_v4 = vmov 0   ;;  %v13050_v5 = vmov 0.0|0.0  }
  0x19   :  { %12740 = vset.pattern.permute.xlu0 %v13049_v4  ;;  %12190 = vmatprep.subr.bf16.mxu0 %v13050_v5 }
  0x1e   :  { %v84_v1 = vld [vmem:[%s15046_s30] sm:$0x3]  ;;  %v94_v3 = vld [vmem:[%s15047_s25 + $0x8] sm:$0xff] }
  0x1f   :  { %v93_v2 = vld [vmem:[%s15047_s25] sm:$0xff] }
  0x20   :  { %v13210_v6 = vpack.c.bf16 %v94_v3, %v93_v2 }
  0x21   :  { %37 = vsyncpa [#allocation7], 0  ;;  %88 = vperm.xlu0 %12740, %v84_v1   ;;  %12193 = vmatprep.subr.bf16.mxu1 %v13050_v5  ;;  %vm13051_vm0 = vmmov 0   ;;  %v13052_v7 = vmov 0.0   ;;  %v13220_v8 = vld [vmem:[%s15047_s25 + $0x10] sm:$0xff]  ;;  %s15048_s27 = sld [smem:[#allocation15_spill]]  ;;  %v85_v16 = vlaneseq }
  0x22   :  { %12192 = vmatpush3.bf16.msra.mxu0 %v13210_v6  ;;  %11115 = vmatprep.mubr.msk.f32.mxu0 %vm13051_vm0, %v13052_v7  ;;  %v13053_v14 = vmov 9   ;;  %s15049_s8 = sld [smem:[#allocation14_spill]]  ;;  %vm96_vm1 = vcmask 195584   ;;  %s15050_s26 = sld [smem:[#allocation17_spill]]  ;;  %v13288_v28 = vld [vmem:[%s15046_s30] sm:$0x3] }
  0x23   :  { %11113 = vmatprep.subr.mxu0 %v13052_v7  ;;  %11126 = vmatprep.mubr.msk.f32.mxu1 %vm13051_vm0, %v13052_v7  ;;  %v13254_v17 = vand.u32 127, %v85_v16  ;;  %v13054_v29 = vmov 1   ;;  %s15051_s3 = sld [smem:[#allocation18_spill]]  ;;  %vm250_vm4 = vcmask 130048   ;;  %s15052_s29 = sld [smem:[#allocation16_spill]]  ;;  %v13055_v49 = vmov 8  }
  0x24   :  { %12742 = vset.pattern.permute.xlu1 %v13054_v29  ;;  %s13056_s0 = smov 64   ;;  %v13348_v59 = vld [vmem:[%s15011_s9] ss:$0 sm:$0xff]  ;;  %s13057_s4 = smov 32   ;;  %vm176_vm6 = vcmask 261120   ;;  %vm620_vm7 = vcmask 253952  }
  0x25   :  { %12741 = vset.pattern.permute.xlu0 %v13053_v14  ;;  %635 = vperm.xlu1 %12742, %v13288_v28   ;;  %vm629_vm8 = vcmask 254977   ;;  %s10550_s5 = sld [smem:[#allocation4 + $0x2]]  ;;  %s10565_s7 = sld [smem:[#allocation4 + $0x3]] }
  0x26   :  { %11114 = vmatpush3.msra.mxu0 %v13220_v8  ;;  %357 = vperm.xlu0 %12741, %v84_v1  }
  0x27   :  { %v172_v9 = vld [vmem:[%s15048_s27] sm:$0xff]  ;;  %v173_v10 = vld [vmem:[%s15048_s27 + $0x8] sm:$0xff]  ;;  %v174_v12 = vld [vmem:[%s15048_s27 + $0x10] sm:$0xff]  ;;  %12199 = vmatprep.subr.bf16.mxu0 %v13050_v5 }
  0x28   :  { %v13230_v11 = vpack.c.bf16 %v173_v10, %v172_v9  ;;  %v175_v13 = vld [vmem:[%s15048_s27 + $0x18] sm:$0xff]  ;;  %v170_v18 = vld [vmem:[%s15049_s8] sm:$0xff]  ;;  %v171_v19 = vld [vmem:[%s15049_s8 + $0x8] sm:$0xff] }
  0x29   :  { %v13240_v15 = vpack.c.bf16 %v175_v13, %v174_v12  ;;  %v13262_v21 = vpack.c.bf16 %v171_v19, %v170_v18  ;;  %v435_v25 = vld [vmem:[%s15050_s26] sm:$0xff]  ;;  %v436_v26 = vld [vmem:[%s15050_s26 + $0x8] sm:$0xff]  ;;  %v439_v35 = vld [vmem:[%s15051_s3 + $0x10] sm:$0xff]  ;;  %12743 = vset.pattern.permute.xlu1 %v13055_v49 }
  0x2a   :  { %12195 = vmatpush3.bf16.msra.mxu1 %v13230_v11  ;;  %v13282_v27 = vpack.c.bf16 %v436_v26, %v435_v25  ;;  %v437_v32 = vld [vmem:[%s15051_s3] sm:$0xff]  ;;  %v438_v33 = vld [vmem:[%s15051_s3 + $0x8] sm:$0xff]  ;;  %v440_v36 = vld [vmem:[%s15051_s3 + $0x18] sm:$0xff] }
  0x2b   :  { %12196 = vmatprep.subr.bf16.mxu1 %v13050_v5  ;;  %v13299_v34 = vpack.c.bf16 %v438_v33, %v437_v32  ;;  %v13309_v39 = vpack.c.bf16 %v440_v36, %v439_v35  ;;  %v13340_v45 = vld [vmem:[%s15052_s29] ss:$0 sm:$0xff]  ;;  %p7200_p6 = scmp.gt.s32.totalorder %s10550_s5, 0  ;;  %p7840_p7 = scmp.gt.s32.totalorder %s10565_s7, 0 }
  0x2d   :  { %s7202_s28 = scalar_select %p7200_p6, 1, 0 }
  0x2e   :  { %12198 = vmatpush3.bf16.msra.mxu1 %v13240_v15  ;;  %s7842_s17 = scalar_select %p7840_p7, 1, 0 }
  0x2f   :  { %12202 = vmatprep.subr.bf16.mxu1 %v13050_v5 }
  0x31   :  { %11127 = vmatmul.mubr.f32.vlgmr.msra.gmra.mrb[0].mxu1 %v13052_v7 }
  0x32   :  { %12204 = vmatpush3.bf16.msra.mxu1 %v13210_v6  ;;  %11142 = vmatprep.mubr.msk.f32.mxu1 %vm13051_vm0, %v13052_v7 }
  0x33   :  { %11140 = vmatprep.subr.mxu1 %v13052_v7 }
  0x36   :  { %11141 = vmatpush3.msra.mxu1 %v13220_v8 }
  0x37   :  { %12211 = vmatprep.subr.bf16.mxu1 %v13050_v5 }
  0xa0   :  { %v89_v20 = vpop.permute.xlu0 %88 }
  0xa1   :  { %vm90_vm2 = vcmp.eq.s32.totalorder %v13254_v17, %v89_v20 }
  0xa2   :  { %v10395_v22 = vsel %vm90_vm2, 1.0, %v13052_v7 }
  0xa3   :  { %11116 = vmatmul.mubr.msk.f32.vlgmr.msra.gmra.mrb[0].mxu0 %vm96_vm1, %v10395_v22 }
  0xa4   :  { %12201 = vmatpush3.bf16.msra.mxu0 %v13262_v21  ;;  %11133 = vmatprep.mubr.msk.f32.mxu0 %vm13051_vm0, %v13052_v7  ;;  %v636_v42 = vpop.permute.xlu1 %635 }
  0xa5   :  { %v358_v23 = vpop.permute.xlu0 %357  ;;  %12205 = vmatprep.subr.bf16.mxu0 %v13050_v5  ;;  %vm637_vm5 = vcmp.eq.s32.totalorder %v13254_v17, %v636_v42 }
  0xa6   :  { %vm359_vm3 = vcmp.eq.s32.totalorder %v13254_v17, %v358_v23  ;;  %v10405_v43 = vsel %vm637_vm5, 1.0, %v13052_v7 }
  0xa7   :  { %v10400_v24 = vsel %vm359_vm3, 1.0, %v13052_v7 }
  0xa8   :  { %11143 = vmatmul.mubr.msk.f32.vlgmr.msra.gmra.mrb[2].mxu1 %vm96_vm1, %v10400_v24 }
  0xa9   :  { %11160 = vmatprep.mubr.msk.f32.mxu1 %vm13051_vm0, %v13052_v7  ;;  %12213 = vmatpush3.bf16.msra.mxu1 %v13282_v27 }
  0xaa   :  { %12217 = vmatprep.subr.bf16.mxu1 %v13050_v5 }
 0x104   :  { %v246_v30 = vpop.f32.mrb[0].mxu1 }
 0x105   :  { %v11128_v31 = vpop.f32.mrb[1].mxu1 }
 0x176   :  { %v166_v37 = vpop.f32.mrb[0].mxu0 }
 0x177   :  { %v11117_v38 = vpop.f32.mrb[1].mxu0  ;;  %11134 = vmatmul.mubr.msk.f32.vlgmr.msra.gmra.mrb[2].mxu0 %vm250_vm4, %v166_v37  ;;  %v1175_v37 = vld [vmem:[%s15046_s30] sm:$0x3] }
 0x178   :  { %12207 = vmatpush3.bf16.msra.mxu0 %v13299_v34  ;;  %11153 = vmatprep.mubr.msk.f32.mxu0 %vm13051_vm0, %v13052_v7  ;;  %v13058_v38 = vmov 2  }
 0x179   :  { %12208 = vmatprep.subr.bf16.mxu0 %v13050_v5 }
 0x17b   :  { %v431_v40 = vpop.f32.mrb[2].mxu1 }
 0x17c   :  { %12210 = vmatpush3.bf16.msra.mxu0 %v13309_v39  ;;  %11161 = vmatmul.mubr.msk.f32.vlgmr.msra.gmra.mrb[4].mxu1 %vm250_vm4, %v431_v40  ;;  %v11144_v41 = vpop.f32.mrb[3].mxu1 }
 0x17d   :  { %12214 = vmatprep.subr.bf16.mxu0 %v13050_v5  ;;  %12219 = vmatpush3.bf16.msra.mxu1 %v13230_v11 }
 0x17e   :  { %12220 = vmatprep.subr.bf16.mxu1 %v13050_v5  ;;  %11180 = vmatprep.mubr.msk.f32.mxu1 %vm13051_vm0, %v13052_v7 }
 0x17f   :  { %11154 = vmatmul.mubr.f32.vlgmr.msra.gmra.mrb[4].mxu0 %v13052_v7 }
 0x180   :  { %12216 = vmatpush3.bf16.msra.mxu0 %v13210_v6  ;;  %11169 = vmatprep.mubr.msk.f32.mxu0 %vm13051_vm0, %v13052_v7 }
 0x181   :  { %11167 = vmatprep.subr.mxu0 %v13052_v7  ;;  %12222 = vmatpush3.bf16.msra.mxu1 %v13240_v15 }
 0x182   :  { %12226 = vmatprep.subr.bf16.mxu1 %v13050_v5 }
 0x184   :  { %11168 = vmatpush3.msra.mxu0 %v13220_v8 }
 0x185   :  { %12223 = vmatprep.subr.bf16.mxu0 %v13050_v5  ;;  %11170 = vmatmul.mubr.msk.f32.vlgmr.msra.gmra.mrb[6].mxu0 %vm96_vm1, %v10405_v43 }
 0x186   :  { %12225 = vmatpush3.bf16.msra.mxu0 %v13262_v21  ;;  %11187 = vmatprep.mubr.msk.f32.mxu0 %vm13051_vm0, %v13052_v7 }
 0x187   :  { %12229 = vmatprep.subr.bf16.mxu0 %v13050_v5 }
 0x24a   :  { %v320_v44 = vpop.f32.mrb[2].mxu0 }
 0x24b   :  { %v321_v46 = vadd.f32 %v320_v44, %v246_v30  ;;  %v11135_v47 = vpop.f32.mrb[3].mxu0 }
 0x24d   :  { %v331_v48 = vadd.f32 %v13340_v45, %v321_v46 }
 0x24f   :  { %12766 = vtanh.f32 %v331_v48  ;;  %v580_v51 = vpop.f32.mrb[4].mxu1  ;;  %v10399_v56 = vmul.f32 -1.442695, %v331_v48 }
 0x250   :  { %v11162_v54 = vpop.f32.mrb[5].mxu1 }
 0x251   :  { %12768 = vpow2.f32 %v10399_v56 }
 0x252   :  { %v507_v50 = vpop.f32.mrb[4].mxu0 }
 0x253   :  { %v581_v52 = vadd.f32 %v580_v51, %v507_v50  ;;  %v11155_v53 = vpop.f32.mrb[5].mxu0 }
 0x254   :  { %v13059_v53 = vmov 7  }
 0x255   :  { %v591_v60 = vadd.f32 %v13348_v59, %v581_v52 }
 0x257   :  { %v10404_v13 = vmul.f32 -1.442695, %v591_v60 }
 0x258   :  { %v712_v1 = vpop.f32.mrb[6].mxu0 }
 0x259   :  { %v12767_v55 = vpop.eup %12766  ;;  %v11171_v2 = vpop.f32.mrb[7].mxu0  ;;  %11188 = vmatmul.mubr.msk.f32.vlgmr.msra.gmra.mrb[8].mxu0 %vm250_vm4, %v712_v1 }
 0x25a   :  { %341 = vrot.lane.b32.xlu1 %v12767_v55, %s13056_s0  ;;  %12231 = vmatpush3.bf16.msra.mxu0 %v13299_v34 }
 0x25b   :  { %v12769_v57 = vpop.eup %12768  ;;  %11207 = vmatprep.mubr.msk.f32.mxu0 %vm13051_vm0, %v13052_v7  ;;  %12232 = vmatprep.subr.bf16.mxu0 %v13050_v5 }
 0x25c   :  { %v335_v58 = vadd.f32 1.0, %v12769_v57 }
 0x25e   :  { %12770 = vrcp.f32 %v335_v58  ;;  %12234 = vmatpush3.bf16.msra.mxu0 %v13309_v39 }
 0x25f   :  { %12772 = vtanh.f32 %v591_v60  ;;  %12238 = vmatprep.subr.bf16.mxu0 %v13050_v5 }
 0x268   :  { %v12771_v61 = vpop.eup %12770 }
 0x269   :  { %v12773_v0 = vpop.eup %12772  ;;  %v339_v3 = vmul.f32 0.0, %v12771_v61 }
 0x2cc   :  { %v342_v62 = vpop.permute.xlu1 %341 }
 0x2cd   :  { %v344_v63 = vmul.f32 %v12771_v61, %v342_v62 }
 0x2cf   :  { %346 = vrot.lane.b32.xlu1 %v344_v63, %s13057_s4 }
 0x2d3   :  { %900 = vperm.xlu1 %12743, %v13288_v28  }
 0x2d7   :  { %601 = vrot.lane.b32.xlu1 %v12773_v0, %s13056_s0 }
 0x2d8   :  { %12744 = vset.pattern.permute.xlu1 %v13058_v38 }
 0x32c   :  { %v863_v26 = vpop.f32.mrb[8].mxu0 }
 0x32d   :  { %v11189_v28 = vpop.f32.mrb[9].mxu0 }
 0x341   :  { %v347_v9 = vpop.permute.xlu1 %346 }
 0x342   :  { %v13361_v10 = vadd.f32 %v347_v9, %v339_v3 }
 0x344   :  { %12774 = vtanh.f32 %v13361_v10 }
 0x345   :  { %12776 = vpow2.f32 %v10404_v13 }
 0x34e   :  { %v12775_v12 = vpop.eup %12774 }
 0x34f   :  { %352 = vrot.lane.b32.xlu0 %v12775_v12, %s13056_s0  ;;  %v12777_v14 = vpop.eup %12776 }
 0x350   :  { %v595_v18 = vadd.f32 1.0, %v12777_v14 }
 0x352   :  { %12778 = vrcp.f32 %v595_v18  ;;  %v901_v19 = vpop.permute.xlu1 %900 }
 0x353   :  { %vm902_vm9 = vcmp.eq.s32.totalorder %v13254_v17, %v901_v19 }
 0x354   :  { %v10411_v35 = vsel %vm902_vm9, 1.0, %v13052_v7 }
 0x356   :  { %v602_v24 = vpop.permute.xlu1 %601 }
 0x35c   :  { %v12779_v23 = vpop.eup %12778 }
 0x35d   :  { %v604_v25 = vmul.f32 %v12779_v23, %v602_v24  ;;  %v599_v31 = vmul.f32 0.0, %v12779_v23 }
 0x3c1   :  { %v353_v20 = vpop.permute.xlu0 %352 }
 0x3c2   :  { %v355_v22 = vmul.f32 %v12771_v61, %v353_v20 }
 0x3c4   :  { %617 = vrot.lane.b32.xlu0 %v355_v22, %s13057_s4 }
 0x3c8   :  { %606 = vrot.lane.b32.xlu0 %v604_v25, %s13057_s4 }
 0x436   :  { %v618_v30 = vpop.permute.xlu0 %617 }
 0x437   :  { %11181 = vmatmul.mubr.msk.f32.vlgmr.msra.gmra.mrb[6].mxu1 %vm176_vm6, %v618_v30  ;;  %621 = vst.msk [vmem:[#allocation2] sm:$0x1] %vm620_vm7, %v618_v30 }
 0x438   :  { %630 = vst.msk [vmem:[#allocation2 + $0xf] sm:$0x2] %vm629_vm8, %v618_v30  ;;  %12228 = vmatpush3.bf16.msra.mxu1 %v13210_v6  ;;  %11196 = vmatprep.mubr.msk.f32.mxu1 %vm13051_vm0, %v13052_v7 }
 0x439   :  { %11194 = vmatprep.subr.mxu1 %v13052_v7 }
 0x43a   :  { %v607_v32 = vpop.permute.xlu0 %606 }
 0x43b   :  { %v13375_v33 = vadd.f32 %v607_v32, %v599_v31 }
 0x43c   :  { %11195 = vmatpush3.msra.mxu1 %v13220_v8 }
 0x43d   :  { %12780 = vtanh.f32 %v13375_v33  ;;  %11197 = vmatmul.mubr.msk.f32.vlgmr.msra.gmra.mrb[8].mxu1 %vm96_vm1, %v10411_v35  ;;  %12235 = vmatprep.subr.bf16.mxu1 %v13050_v5 }
 0x43e   :  { %12237 = vmatpush3.bf16.msra.mxu1 %v13282_v27  ;;  %11214 = vmatprep.mubr.msk.f32.mxu1 %vm13051_vm0, %v13052_v7 }
 0x43f   :  { %12241 = vmatprep.subr.bf16.mxu1 %v13050_v5 }
 0x447   :  { %v12781_v36 = vpop.eup %12780 }
 0x448   :  { %612 = vrot.lane.b32.xlu1 %v12781_v36, %s13056_s0 }
 0x44c   :  { %1177 = vperm.xlu1 %12744, %v1175_v37  }
 0x450   :  { %12745 = vset.pattern.permute.xlu1 %v13059_v53 }
 0x4ba   :  { %v613_v40 = vpop.permute.xlu1 %612 }
 0x4bb   :  { %v13391_v41 = vmul.f32 %v12779_v23, %v613_v40 }
 0x4bd   :  { %984 = vrot.lane.b32.xlu0 %v13391_v41, %s13057_s4 }
 0x4cb   :  { %v1178_v52 = vpop.permute.xlu1 %1177 }
 0x4cc   :  { %vm1179_vm10 = vcmp.eq.s32.totalorder %v13254_v17, %v1178_v52 }
 0x4cd   :  { %v10417_v54 = vsel %vm1179_vm10, 1.0, %v13052_v7 }
 0x50a   :  { %v790_v42 = vpop.f32.mrb[6].mxu1 }
 0x50b   :  { %v864_v43 = vadd.f32 %v863_v26, %v790_v42  ;;  %v11182_v44 = vpop.f32.mrb[7].mxu1 }
 0x50c   :  { %v1717_v44 = vld [vmem:[%s15046_s30] sm:$0x3] }
 0x50d   :  { %v874_v46 = vadd.f32 %v13340_v45, %v864_v43 }
 0x50f   :  { %12782 = vtanh.f32 %v874_v46  ;;  %v10410_v55 = vmul.f32 -1.442695, %v874_v46  ;;  %v13060_v46 = vmov 3  }
 0x510   :  { %v974_v47 = vpop.f32.mrb[8].mxu1 }
 0x511   :  { %v11198_v48 = vpop.f32.mrb[9].mxu1  ;;  %11215 = vmatmul.mubr.msk.f32.vlgmr.msra.gmra.mrb[10].mxu1 %vm250_vm4, %v974_v47  ;;  %12784 = vpow2.f32 %v10410_v55 }
 0x512   :  { %12243 = vmatpush3.bf16.msra.mxu1 %v13230_v11  ;;  %11234 = vmatprep.mubr.msk.f32.mxu1 %vm13051_vm0, %v13052_v7 }
 0x513   :  { %12244 = vmatprep.subr.bf16.mxu1 %v13050_v5 }
 0x516   :  { %12246 = vmatpush3.bf16.msra.mxu1 %v13240_v15 }
 0x517   :  { %12250 = vmatprep.subr.bf16.mxu1 %v13050_v5 }
 0x519   :  { %v12783_v50 = vpop.eup %12782 }
 0x51a   :  { %884 = vrot.lane.b32.xlu0 %v12783_v50, %s13056_s0 }
 0x51b   :  { %v12785_v56 = vpop.eup %12784 }
 0x51c   :  { %v878_v57 = vadd.f32 1.0, %v12785_v56 }
 0x51e   :  { %12786 = vrcp.f32 %v878_v57 }
 0x528   :  { %v12787_v58 = vpop.eup %12786 }
 0x529   :  { %v882_v0 = vmul.f32 %v12787_v58, %v13361_v10 }
 0x52f   :  { %v985_v51 = vpop.permute.xlu0 %984 }
 0x530   :  { %11208 = vmatmul.mubr.msk.f32.vlgmr.msra.gmra.mrb[10].mxu0 %vm176_vm6, %v985_v51 }
 0x531   :  { %12240 = vmatpush3.bf16.msra.mxu0 %v13210_v6  ;;  %11223 = vmatprep.mubr.msk.f32.mxu0 %vm13051_vm0, %v13052_v7 }
 0x532   :  { %11221 = vmatprep.subr.mxu0 %v13052_v7 }
 0x535   :  { %11222 = vmatpush3.msra.mxu0 %v13220_v8 }
 0x536   :  { %12247 = vmatprep.subr.bf16.mxu0 %v13050_v5  ;;  %11224 = vmatmul.mubr.msk.f32.vlgmr.msra.gmra.mrb[12].mxu0 %vm96_vm1, %v10417_v54 }
 0x537   :  { %12249 = vmatpush3.bf16.msra.mxu0 %v13262_v21  ;;  %11241 = vmatprep.mubr.msk.f32.mxu0 %vm13051_vm0, %v13052_v7 }
 0x538   :  { %12253 = vmatprep.subr.bf16.mxu0 %v13050_v5 }
 0x58c   :  { %v885_v60 = vpop.permute.xlu0 %884 }
 0x58d   :  { %v887_v61 = vmul.f32 %v12787_v58, %v885_v60 }
 0x58f   :  { %889 = vrot.lane.b32.xlu1 %v887_v61, %s13057_s4  ;;  %v13061_v61 = vmov 6  }
 0x593   :  { %1442 = vperm.xlu1 %12745, %v1175_v37  }
 0x597   :  { %12746 = vset.pattern.permute.xlu1 %v13060_v46 }
 0x5e4   :  { %v1127_v62 = vpop.f32.mrb[10].mxu1 }
 0x5e5   :  { %v11216_v63 = vpop.f32.mrb[11].mxu1 }
 0x601   :  { %v890_v1 = vpop.permute.xlu1 %889 }
 0x602   :  { %v13421_v2 = vadd.f32 %v890_v1, %v882_v0 }
 0x603   :  { %v1054_v3 = vpop.f32.mrb[10].mxu0 }
 0x604   :  { %12788 = vtanh.f32 %v13421_v2  ;;  %v1128_v9 = vadd.f32 %v1127_v62, %v1054_v3  ;;  %v11209_v12 = vpop.f32.mrb[11].mxu0 }
 0x606   :  { %v1138_v13 = vadd.f32 %v13348_v59, %v1128_v9 }
 0x608   :  { %12790 = vtanh.f32 %v1138_v13  ;;  %v10416_v10 = vmul.f32 -1.442695, %v1138_v13 }
 0x609   :  { %v1254_v19 = vpop.f32.mrb[12].mxu0 }
 0x60a   :  { %v11225_v20 = vpop.f32.mrb[13].mxu0  ;;  %11242 = vmatmul.mubr.msk.f32.vlgmr.msra.gmra.mrb[14].mxu0 %vm250_vm4, %v1254_v19  ;;  %12792 = vpow2.f32 %v10416_v10 }
 0x60b   :  { %12255 = vmatpush3.bf16.msra.mxu0 %v13299_v34  ;;  %11261 = vmatprep.mubr.msk.f32.mxu0 %vm13051_vm0, %v13052_v7 }
 0x60c   :  { %12256 = vmatprep.subr.bf16.mxu0 %v13050_v5 }
 0x60e   :  { %v12789_v14 = vpop.eup %12788 }
 0x60f   :  { %895 = vrot.lane.b32.xlu0 %v12789_v14, %s13056_s0  ;;  %12258 = vmatpush3.bf16.msra.mxu0 %v13309_v39 }
 0x610   :  { %12262 = vmatprep.subr.bf16.mxu0 %v13050_v5 }
 0x612   :  { %v12791_v18 = vpop.eup %12790  ;;  %v1443_v24 = vpop.permute.xlu1 %1442 }
 0x613   :  { %1148 = vrot.lane.b32.xlu1 %v12791_v18, %s13056_s0  ;;  %vm1444_vm11 = vcmp.eq.s32.totalorder %v13254_v17, %v1443_v24 }
 0x614   :  { %v12793_v22 = vpop.eup %12792  ;;  %v10423_v40 = vsel %vm1444_vm11, 1.0, %v13052_v7 }
 0x615   :  { %v1142_v23 = vadd.f32 1.0, %v12793_v22 }
 0x617   :  { %12794 = vrcp.f32 %v1142_v23 }
 0x621   :  { %v12795_v28 = vpop.eup %12794 }
 0x622   :  { %v1146_v35 = vmul.f32 %v12795_v28, %v13375_v33 }
 0x681   :  { %v896_v25 = vpop.permute.xlu0 %895 }
 0x682   :  { %v898_v26 = vmul.f32 %v12787_v58, %v896_v25 }
 0x684   :  { %1164 = vrot.lane.b32.xlu0 %v898_v26, %s13057_s4 }
 0x685   :  { %v1149_v30 = vpop.permute.xlu1 %1148 }
 0x686   :  { %v1151_v31 = vmul.f32 %v12795_v28, %v1149_v30 }
 0x688   :  { %1153 = vrot.lane.b32.xlu0 %v1151_v31, %s13057_s4 }
 0x6dd   :  { %v1405_v42 = vpop.f32.mrb[14].mxu0 }
 0x6de   :  { %v11243_v43 = vpop.f32.mrb[15].mxu0 }
 0x6f6   :  { %v1165_v32 = vpop.permute.xlu0 %1164 }
 0x6f7   :  { %11235 = vmatmul.mubr.msk.f32.vlgmr.msra.gmra.mrb[12].mxu1 %vm176_vm6, %v1165_v32  ;;  %1167 = vst.msk [vmem:[#allocation2 + $0x1] sm:$0x1] %vm620_vm7, %v1165_v32 }
 0x6f8   :  { %1173 = vst.msk [vmem:[#allocation2 + $0x10] sm:$0x2] %vm629_vm8, %v1165_v32  ;;  %12252 = vmatpush3.bf16.msra.mxu1 %v13210_v6  ;;  %11250 = vmatprep.mubr.msk.f32.mxu1 %vm13051_vm0, %v13052_v7 }
 0x6f9   :  { %11248 = vmatprep.subr.mxu1 %v13052_v7 }
 0x6fa   :  { %v1154_v36 = vpop.permute.xlu0 %1153 }
 0x6fb   :  { %v13445_v37 = vadd.f32 %v1154_v36, %v1146_v35 }
 0x6fc   :  { %11249 = vmatpush3.msra.mxu1 %v13220_v8 }
 0x6fd   :  { %12796 = vtanh.f32 %v13445_v37  ;;  %11251 = vmatmul.mubr.msk.f32.vlgmr.msra.gmra.mrb[14].mxu1 %vm96_vm1, %v10423_v40  ;;  %12259 = vmatprep.subr.bf16.mxu1 %v13050_v5 }
 0x6fe   :  { %12261 = vmatpush3.bf16.msra.mxu1 %v13282_v27  ;;  %11268 = vmatprep.mubr.msk.f32.mxu1 %vm13051_vm0, %v13052_v7 }
 0x6ff   :  { %12265 = vmatprep.subr.bf16.mxu1 %v13050_v5 }
 0x707   :  { %v12797_v33 = vpop.eup %12796 }
 0x708   :  { %1159 = vrot.lane.b32.xlu1 %v12797_v33, %s13056_s0 }
 0x70c   :  { %1719 = vperm.xlu1 %12746, %v1717_v44  }
 0x710   :  { %12747 = vset.pattern.permute.xlu1 %v13061_v61 }
 0x77a   :  { %v1160_v47 = vpop.permute.xlu1 %1159 }
 0x77b   :  { %v13461_v48 = vmul.f32 %v12795_v28, %v1160_v47 }
 0x77d   :  { %1526 = vrot.lane.b32.xlu0 %v13461_v48, %s13057_s4 }
 0x78b   :  { %v1720_v60 = vpop.permute.xlu1 %1719 }
 0x78c   :  { %vm1721_vm12 = vcmp.eq.s32.totalorder %v13254_v17, %v1720_v60 }
 0x78d   :  { %v10429_v62 = vsel %vm1721_vm12, 1.0, %v13052_v7 }
 0x7ca   :  { %v1332_v50 = vpop.f32.mrb[12].mxu1 }
 0x7cb   :  { %v1406_v51 = vadd.f32 %v1405_v42, %v1332_v50  ;;  %v11236_v52 = vpop.f32.mrb[13].mxu1 }
 0x7cd   :  { %v1416_v54 = vadd.f32 %v13340_v45, %v1406_v51 }
 0x7cf   :  { %12798 = vtanh.f32 %v1416_v54  ;;  %v10422_v63 = vmul.f32 -1.442695, %v1416_v54 }
 0x7d0   :  { %v1516_v55 = vpop.f32.mrb[14].mxu1 }
 0x7d1   :  { %v11252_v56 = vpop.f32.mrb[15].mxu1  ;;  %11269 = vmatmul.mubr.msk.f32.vlgmr.msra.gmra.mrb[16].mxu1 %vm250_vm4, %v1516_v55  ;;  %12800 = vpow2.f32 %v10422_v63  ;;  %v2259_v55 = vld [vmem:[%s15046_s30] sm:$0x3] }
 0x7d2   :  { %12267 = vmatpush3.bf16.msra.mxu1 %v13230_v11  ;;  %11288 = vmatprep.mubr.msk.f32.mxu1 %vm13051_vm0, %v13052_v7  ;;  %v13062_v56 = vmov 4  }
 0x7d3   :  { %12268 = vmatprep.subr.bf16.mxu1 %v13050_v5 }
 0x7d6   :  { %12270 = vmatpush3.bf16.msra.mxu1 %v13240_v15 }
 0x7d7   :  { %12274 = vmatprep.subr.bf16.mxu1 %v13050_v5 }
 0x7d9   :  { %v12799_v57 = vpop.eup %12798 }
 0x7da   :  { %1426 = vrot.lane.b32.xlu0 %v12799_v57, %s13056_s0 }
 0x7db   :  { %v12801_v0 = vpop.eup %12800 }
 0x7dc   :  { %v1420_v1 = vadd.f32 1.0, %v12801_v0 }
 0x7de   :  { %12802 = vrcp.f32 %v1420_v1 }
 0x7e8   :  { %v12803_v3 = vpop.eup %12802 }
 0x7e9   :  { %v1424_v18 = vmul.f32 %v12803_v3, %v13421_v2 }
 0x7ef   :  { %v1527_v58 = vpop.permute.xlu0 %1526 }
 0x7f0   :  { %11262 = vmatmul.mubr.msk.f32.vlgmr.msra.gmra.mrb[16].mxu0 %vm176_vm6, %v1527_v58 }
 0x7f1   :  { %12264 = vmatpush3.bf16.msra.mxu0 %v13210_v6  ;;  %11277 = vmatprep.mubr.msk.f32.mxu0 %vm13051_vm0, %v13052_v7 }
 0x7f2   :  { %11275 = vmatprep.subr.mxu0 %v13052_v7 }
 0x7f5   :  { %11276 = vmatpush3.msra.mxu0 %v13220_v8 }
 0x7f6   :  { %12271 = vmatprep.subr.bf16.mxu0 %v13050_v5  ;;  %11278 = vmatmul.mubr.msk.f32.vlgmr.msra.gmra.mrb[18].mxu0 %vm96_vm1, %v10429_v62 }
 0x7f7   :  { %12273 = vmatpush3.bf16.msra.mxu0 %v13262_v21  ;;  %11295 = vmatprep.mubr.msk.f32.mxu0 %vm13051_vm0, %v13052_v7 }
 0x7f8   :  { %12277 = vmatprep.subr.bf16.mxu0 %v13050_v5 }
 0x84c   :  { %v1427_v9 = vpop.permute.xlu0 %1426 }
 0x84d   :  { %v1429_v12 = vmul.f32 %v12803_v3, %v1427_v9 }
 0x84f   :  { %1431 = vrot.lane.b32.xlu1 %v1429_v12, %s13057_s4 }
 0x853   :  { %1984 = vperm.xlu1 %12747, %v1717_v44  }
 0x857   :  { %12748 = vset.pattern.permute.xlu1 %v13062_v56 }
 0x8a4   :  { %v1669_v13 = vpop.f32.mrb[16].mxu1 }
 0x8a5   :  { %v11270_v14 = vpop.f32.mrb[17].mxu1 }
 0x8c1   :  { %v1432_v19 = vpop.permute.xlu1 %1431 }
 0x8c2   :  { %v13491_v20 = vadd.f32 %v1432_v19, %v1424_v18 }
 0x8c3   :  { %v1596_v10 = vpop.f32.mrb[16].mxu0 }
 0x8c4   :  { %12804 = vtanh.f32 %v13491_v20  ;;  %v1670_v22 = vadd.f32 %v1669_v13, %v1596_v10  ;;  %v11263_v23 = vpop.f32.mrb[17].mxu0 }
 0x8c6   :  { %v1680_v24 = vadd.f32 %v13348_v59, %v1670_v22 }
 0x8c8   :  { %12806 = vtanh.f32 %v1680_v24  ;;  %v10428_v2 = vmul.f32 -1.442695, %v1680_v24 }
 0x8c9   :  { %v1796_v28 = vpop.f32.mrb[18].mxu0 }
 0x8ca   :  { %v11279_v30 = vpop.f32.mrb[19].mxu0  ;;  %11296 = vmatmul.mubr.msk.f32.vlgmr.msra.gmra.mrb[20].mxu0 %vm250_vm4, %v1796_v28  ;;  %12808 = vpow2.f32 %v10428_v2 }
 0x8cb   :  { %12279 = vmatpush3.bf16.msra.mxu0 %v13299_v34  ;;  %11315 = vmatprep.mubr.msk.f32.mxu0 %vm13051_vm0, %v13052_v7 }
 0x8cc   :  { %12280 = vmatprep.subr.bf16.mxu0 %v13050_v5 }
 0x8ce   :  { %v12805_v25 = vpop.eup %12804 }
 0x8cf   :  { %1437 = vrot.lane.b32.xlu0 %v12805_v25, %s13056_s0  ;;  %12282 = vmatpush3.bf16.msra.mxu0 %v13309_v39 }
 0x8d0   :  { %12286 = vmatprep.subr.bf16.mxu0 %v13050_v5 }
 0x8d2   :  { %v12807_v26 = vpop.eup %12806  ;;  %v1985_v35 = vpop.permute.xlu1 %1984 }
 0x8d3   :  { %1690 = vrot.lane.b32.xlu1 %v12807_v26, %s13056_s0  ;;  %vm1986_vm13 = vcmp.eq.s32.totalorder %v13254_v17, %v1985_v35 }
 0x8d4   :  { %v12809_v31 = vpop.eup %12808  ;;  %v10435_v51 = vsel %vm1986_vm13, 1.0, %v13052_v7 }
 0x8d5   :  { %v1684_v32 = vadd.f32 1.0, %v12809_v31 }
 0x8d7   :  { %12810 = vrcp.f32 %v1684_v32 }
 0x8e1   :  { %v12811_v34 = vpop.eup %12810 }
 0x8e2   :  { %v1688_v44 = vmul.f32 %v12811_v34, %v13445_v37 }
 0x941   :  { %v1438_v36 = vpop.permute.xlu0 %1437 }
 0x942   :  { %v1440_v40 = vmul.f32 %v12803_v3, %v1438_v36 }
 0x944   :  { %1706 = vrot.lane.b32.xlu0 %v1440_v40, %s13057_s4 }
 0x945   :  { %v1691_v33 = vpop.permute.xlu1 %1690 }
 0x946   :  { %v1693_v42 = vmul.f32 %v12811_v34, %v1691_v33 }
 0x948   :  { %1695 = vrot.lane.b32.xlu0 %v1693_v42, %s13057_s4 }
 0x99d   :  { %v1947_v52 = vpop.f32.mrb[20].mxu0 }
 0x99e   :  { %v11297_v54 = vpop.f32.mrb[21].mxu0 }
 0x9b6   :  { %v1707_v43 = vpop.permute.xlu0 %1706 }
 0x9b7   :  { %11289 = vmatmul.mubr.msk.f32.vlgmr.msra.gmra.mrb[18].mxu1 %vm176_vm6, %v1707_v43  ;;  %1709 = vst.msk [vmem:[#allocation2 + $0x2] sm:$0x1] %vm620_vm7, %v1707_v43 }
 0x9b8   :  { %1715 = vst.msk [vmem:[#allocation2 + $0x11] sm:$0x2] %vm629_vm8, %v1707_v43  ;;  %12276 = vmatpush3.bf16.msra.mxu1 %v13210_v6  ;;  %11304 = vmatprep.mubr.msk.f32.mxu1 %vm13051_vm0, %v13052_v7 }
 0x9b9   :  { %11302 = vmatprep.subr.mxu1 %v13052_v7 }
 0x9ba   :  { %v1696_v47 = vpop.permute.xlu0 %1695 }
 0x9bb   :  { %v13515_v50 = vadd.f32 %v1696_v47, %v1688_v44 }
 0x9bc   :  { %11303 = vmatpush3.msra.mxu1 %v13220_v8 }
 0x9bd   :  { %12812 = vtanh.f32 %v13515_v50  ;;  %11305 = vmatmul.mubr.msk.f32.vlgmr.msra.gmra.mrb[20].mxu1 %vm96_vm1, %v10435_v51  ;;  %12283 = vmatprep.subr.bf16.mxu1 %v13050_v5 }
 0x9be   :  { %12285 = vmatpush3.bf16.msra.mxu1 %v13282_v27  ;;  %11322 = vmatprep.mubr.msk.f32.mxu1 %vm13051_vm0, %v13052_v7 }
 0x9bf   :  { %12289 = vmatprep.subr.bf16.mxu1 %v13050_v5 }
 0x9c7   :  { %v12813_v37 = vpop.eup %12812 }
 0x9c8   :  { %1701 = vrot.lane.b32.xlu1 %v12813_v37, %s13056_s0 }
 0x9cc   :  { %2261 = vperm.xlu1 %12748, %v2259_v55  }
 0xa3a   :  { %v1702_v57 = vpop.permute.xlu1 %1701 }
 0xa3b   :  { %v13531_v58 = vmul.f32 %v12811_v34, %v1702_v57 }
 0xa3d   :  { %2068 = vrot.lane.b32.xlu0 %v13531_v58, %s13057_s4 }
 0xa8a   :  { %v1874_v60 = vpop.f32.mrb[18].mxu1 }
 0xa8b   :  { %v1948_v62 = vadd.f32 %v1947_v52, %v1874_v60  ;;  %v11290_v63 = vpop.f32.mrb[19].mxu1 }
 0xa8d   :  { %v1958_v0 = vadd.f32 %v13340_v45, %v1948_v62 }
 0xa8f   :  { %12814 = vtanh.f32 %v1958_v0  ;;  %v10434_v14 = vmul.f32 -1.442695, %v1958_v0  ;;  %v2607_v0 = vld [vmem:[%s15051_s3 + $0x8] sm:$0xff] }
 0xa90   :  { %v2058_v1 = vpop.f32.mrb[20].mxu1 }
 0xa91   :  { %v11306_v3 = vpop.f32.mrb[21].mxu1  ;;  %11323 = vmatmul.mubr.msk.f32.vlgmr.msra.gmra.mrb[22].mxu1 %vm250_vm4, %v2058_v1  ;;  %12816 = vpow2.f32 %v10434_v14 }
 0xa92   :  { %12291 = vmatpush3.bf16.msra.mxu1 %v13230_v11  ;;  %11342 = vmatprep.mubr.msk.f32.mxu1 %vm13051_vm0, %v13052_v7  ;;  %v2262_v11 = vpop.permute.xlu1 %2261 }
 0xa93   :  { %12292 = vmatprep.subr.bf16.mxu1 %v13050_v5  ;;  %vm2263_vm14 = vcmp.eq.s32.totalorder %v13254_v17, %v2262_v11 }
 0xa94   :  { %v10441_v13 = vsel %vm2263_vm14, 1.0, %v13052_v7 }
 0xa96   :  { %12294 = vmatpush3.bf16.msra.mxu1 %v13240_v15  ;;  %v13063_v15 = vmov 5  }
 0xa97   :  { %12298 = vmatprep.subr.bf16.mxu1 %v13050_v5  ;;  %12749 = vset.pattern.permute.xlu1 %v13063_v15 }
 0xa99   :  { %v12815_v9 = vpop.eup %12814 }
 0xa9a   :  { %1968 = vrot.lane.b32.xlu0 %v12815_v9, %s13056_s0 }
 0xa9b   :  { %v12817_v18 = vpop.eup %12816 }
 0xa9c   :  { %v1962_v19 = vadd.f32 1.0, %v12817_v18 }
 0xa9e   :  { %12818 = vrcp.f32 %v1962_v19 }
 0xaa8   :  { %v12819_v10 = vpop.eup %12818 }
 0xaaf   :  { %v2069_v12 = vpop.permute.xlu0 %2068 }
 0xab0   :  { %11316 = vmatmul.mubr.msk.f32.vlgmr.msra.gmra.mrb[22].mxu0 %vm176_vm6, %v2069_v12 }
 0xab1   :  { %12288 = vmatpush3.bf16.msra.mxu0 %v13210_v6  ;;  %11331 = vmatprep.mubr.msk.f32.mxu0 %vm13051_vm0, %v13052_v7 }
 0xab2   :  { %11329 = vmatprep.subr.mxu0 %v13052_v7 }
 0xab5   :  { %11330 = vmatpush3.msra.mxu0 %v13220_v8 }
 0xab6   :  { %12295 = vmatprep.subr.bf16.mxu0 %v13050_v5  ;;  %11332 = vmatmul.mubr.msk.f32.vlgmr.msra.gmra.mrb[24].mxu0 %vm96_vm1, %v10441_v13 }
 0xab7   :  { %12297 = vmatpush3.bf16.msra.mxu0 %v13262_v21  ;;  %11349 = vmatprep.mubr.msk.f32.mxu0 %vm13051_vm0, %v13052_v7  ;;  %v1966_v21 = vmul.f32 %v12819_v10, %v13491_v20 }
 0xab8   :  { %12301 = vmatprep.subr.bf16.mxu0 %v13050_v5 }
 0xb0c   :  { %v1969_v22 = vpop.permute.xlu0 %1968 }
 0xb0d   :  { %v1971_v23 = vmul.f32 %v12819_v10, %v1969_v22  ;;  %v2809_v22 = vld [vmem:[%s15047_s25 + $0x8] sm:$0xff] }
 0xb0f   :  { %1973 = vrot.lane.b32.xlu1 %v1971_v23, %s13057_s4 }
 0xb13   :  { %2526 = vperm.xlu1 %12749, %v2259_v55  }
 0xb64   :  { %v2211_v24 = vpop.f32.mrb[22].mxu1 }
 0xb65   :  { %v11324_v25 = vpop.f32.mrb[23].mxu1 }
 0xb66   :  { %v13635_v25 = vld [vmem:[%s15047_s25 + $0x10] sm:$0xff] }
 0xb81   :  { %v1974_v26 = vpop.permute.xlu1 %1973 }
 0xb82   :  { %v13561_v28 = vadd.f32 %v1974_v26, %v1966_v21 }
 0xb83   :  { %v2138_v30 = vpop.f32.mrb[22].mxu0 }
 0xb84   :  { %12820 = vtanh.f32 %v13561_v28  ;;  %v2212_v2 = vadd.f32 %v2211_v24, %v2138_v30  ;;  %v11317_v31 = vpop.f32.mrb[23].mxu0 }
 0xb85   :  { %v2884_v31 = vld [vmem:[%s15049_s8] sm:$0xff] }
 0xb86   :  { %v2222_v32 = vadd.f32 %v13348_v59, %v2212_v2 }
 0xb88   :  { %12822 = vtanh.f32 %v2222_v32  ;;  %v10440_v20 = vmul.f32 -1.442695, %v2222_v32  ;;  %v2885_v32 = vld [vmem:[%s15049_s8 + $0x8] sm:$0xff] }
 0xb89   :  { %v2338_v40 = vpop.f32.mrb[24].mxu0 }
 0xb8a   :  { %v11333_v34 = vpop.f32.mrb[25].mxu0  ;;  %11350 = vmatmul.mubr.msk.f32.vlgmr.msra.gmra.mrb[26].mxu0 %vm250_vm4, %v2338_v40  ;;  %12824 = vpow2.f32 %v10440_v20 }
 0xb8b   :  { %11369 = vmatprep.mubr.msk.f32.mxu0 %vm13051_vm0, %v13052_v7 }
 0xb8e   :  { %v12821_v35 = vpop.eup %12820 }
 0xb8f   :  { %1979 = vrot.lane.b32.xlu0 %v12821_v35, %s13056_s0  ;;  %v13649_v35 = vpack.c.bf16 %v2885_v32, %v2884_v31  ;;  %v3150_v32 = vld [vmem:[%s15051_s3 + $0x10] sm:$0xff] }
 0xb92   :  { %v12823_v36 = vpop.eup %12822  ;;  %v2527_v43 = vpop.permute.xlu1 %2526 }
 0xb93   :  { %2232 = vrot.lane.b32.xlu1 %v12823_v36, %s13056_s0  ;;  %vm2528_vm15 = vcmp.eq.s32.totalorder %v13254_v17, %v2527_v43 }
 0xb94   :  { %v12825_v33 = vpop.eup %12824  ;;  %v10447_v62 = vsel %vm2528_vm15, 1.0, %v13052_v7 }
 0xb95   :  { %v2226_v42 = vadd.f32 1.0, %v12825_v33 }
 0xb97   :  { %12826 = vrcp.f32 %v2226_v42 }
 0xba1   :  { %v12827_v51 = vpop.eup %12826 }
 0xba2   :  { %v2230_v55 = vmul.f32 %v12827_v51, %v13515_v50 }
 0xc01   :  { %v1980_v44 = vpop.permute.xlu0 %1979 }
 0xc02   :  { %v1982_v47 = vmul.f32 %v12819_v10, %v1980_v44  ;;  %v2808_v10 = vld [vmem:[%s15047_s25] sm:$0xff]  ;;  %s15055_s25 = sld [smem:[#allocation12_spill]] }
 0xc04   :  { %2248 = vrot.lane.b32.xlu0 %v1982_v47, %s13057_s4 }
 0xc05   :  { %v2233_v37 = vpop.permute.xlu1 %2232 }
 0xc06   :  { %v2235_v52 = vmul.f32 %v12827_v51, %v2233_v37 }
 0xc08   :  { %2237 = vrot.lane.b32.xlu0 %v2235_v52, %s13057_s4 }
 0xc5d   :  { %v2489_v50 = vpop.f32.mrb[26].mxu0 }
 0xc5e   :  { %v11351_v63 = vpop.f32.mrb[27].mxu0 }
 0xc76   :  { %v2249_v54 = vpop.permute.xlu0 %2248 }
 0xc77   :  { %11343 = vmatmul.mubr.msk.f32.vlgmr.msra.gmra.mrb[24].mxu1 %vm176_vm6, %v2249_v54  ;;  %2251 = vst.msk [vmem:[#allocation2 + $0x3] sm:$0x1] %vm620_vm7, %v2249_v54 }
 0xc78   :  { %2257 = vst.msk [vmem:[#allocation2 + $0x12] sm:$0x2] %vm629_vm8, %v2249_v54  ;;  %12300 = vmatpush3.bf16.msra.mxu1 %v13210_v6  ;;  %11358 = vmatprep.mubr.msk.f32.mxu1 %vm13051_vm0, %v13052_v7 }
 0xc79   :  { %11356 = vmatprep.subr.mxu1 %v13052_v7 }
 0xc7a   :  { %v2238_v57 = vpop.permute.xlu0 %2237 }
 0xc7b   :  { %v13581_v60 = vadd.f32 %v2238_v57, %v2230_v55 }
 0xc7c   :  { %11357 = vmatpush3.msra.mxu1 %v13220_v8  ;;  %v2801_v8 = vld [vmem:[%s15046_s30] sm:$0x3] }
 0xc7d   :  { %12828 = vtanh.f32 %v13581_v60  ;;  %11359 = vmatmul.mubr.msk.f32.vlgmr.msra.gmra.mrb[26].mxu1 %vm96_vm1, %v10447_v62  ;;  %12307 = vmatprep.subr.bf16.mxu1 %v13050_v5  ;;  %v2887_v62 = vld [vmem:[%s15048_s27 + $0x8] sm:$0xff] }
 0xc7e   :  { %12309 = vmatpush3.bf16.msra.mxu1 %v13282_v27  ;;  %11376 = vmatprep.mubr.msk.f32.mxu1 %vm13051_vm0, %v13052_v7  ;;  %v2606_v27 = vld [vmem:[%s15051_s3] sm:$0xff] }
 0xc7f   :  { %12313 = vmatprep.subr.bf16.mxu1 %v13050_v5  ;;  %v13603_v1 = vpack.c.bf16 %v2607_v0, %v2606_v27 }
 0xc81   :  { %12303 = vmatpush3.bf16.msra.mxu0 %v13603_v1 }
 0xc82   :  { %12304 = vmatprep.subr.bf16.mxu0 %v13050_v5 }
 0xc85   :  { %12306 = vmatpush3.bf16.msra.mxu0 %v13309_v39 }
 0xc86   :  { %12310 = vmatprep.subr.bf16.mxu0 %v13050_v5 }
 0xc87   :  { %v12829_v6 = vpop.eup %12828 }
 0xc88   :  { %2243 = vrot.lane.b32.xlu1 %v12829_v6, %s13056_s0  ;;  %v2888_v6 = vld [vmem:[%s15048_s27 + $0x10] sm:$0xff] }
 0xc8c   :  { %2803 = vperm.xlu1 %12749, %v2801_v8  }
 0xc90   :  { %12750 = vset.pattern.permute.xlu1 %v13062_v56 }
 0xcfa   :  { %v2244_v3 = vpop.permute.xlu1 %2243 }
 0xcfb   :  { %v13609_v9 = vmul.f32 %v12827_v51, %v2244_v3 }
 0xcfd   :  { %2610 = vrot.lane.b32.xlu0 %v13609_v9, %s13057_s4 }
 0xd0b   :  { %v2804_v23 = vpop.permute.xlu1 %2803 }
 0xd0c   :  { %vm2805_vm2 = vcmp.eq.s32.totalorder %v13254_v17, %v2804_v23 }
 0xd0d   :  { %v10453_v21 = vsel %vm2805_vm2, 1.0, %v13052_v7  ;;  %vm626_vm2 = vcmask 516352  }
 0xd4a   :  { %v2416_v12 = vpop.f32.mrb[24].mxu1 }
 0xd4b   :  { %v2490_v11 = vadd.f32 %v2489_v50, %v2416_v12  ;;  %v11344_v13 = vpop.f32.mrb[25].mxu1  ;;  %v2889_v50 = vld [vmem:[%s15048_s27 + $0x18] sm:$0xff] }
 0xd4c   :  { %v13682_v63 = vpack.c.bf16 %v2889_v50, %v2888_v6 }
 0xd4d   :  { %v2500_v14 = vadd.f32 %v13340_v45, %v2490_v11  ;;  %v13624_v45 = vpack.c.bf16 %v2809_v22, %v2808_v10 }
 0xd4f   :  { %12830 = vtanh.f32 %v2500_v14  ;;  %v10446_v26 = vmul.f32 -1.442695, %v2500_v14 }
 0xd50   :  { %v2600_v18 = vpop.f32.mrb[26].mxu1 }
 0xd51   :  { %v11360_v19 = vpop.f32.mrb[27].mxu1  ;;  %11377 = vmatmul.mubr.msk.f32.vlgmr.msra.gmra.mrb[28].mxu1 %vm250_vm4, %v2600_v18  ;;  %12832 = vpow2.f32 %v10446_v26 }
 0xd52   :  { %11396 = vmatprep.mubr.msk.f32.mxu1 %vm13051_vm0, %v13052_v7 }
 0xd59   :  { %v12831_v39 = vpop.eup %12830 }
 0xd5a   :  { %2510 = vrot.lane.b32.xlu0 %v12831_v39, %s13056_s0 }
 0xd5b   :  { %v12833_v30 = vpop.eup %12832 }
 0xd5c   :  { %v2504_v2 = vadd.f32 1.0, %v12833_v30 }
 0xd5e   :  { %12834 = vrcp.f32 %v2504_v2  ;;  %v3147_v2 = vld [vmem:[%s15050_s26 + $0x8] sm:$0xff] }
 0xd68   :  { %v12835_v36 = vpop.eup %12834 }
 0xd69   :  { %v2508_v42 = vmul.f32 %v12835_v36, %v13561_v28 }
 0xd6f   :  { %v2611_v24 = vpop.permute.xlu0 %2610 }
 0xd70   :  { %11370 = vmatmul.mubr.msk.f32.vlgmr.msra.gmra.mrb[28].mxu0 %vm176_vm6, %v2611_v24 }
 0xd71   :  { %12312 = vmatpush3.bf16.msra.mxu0 %v13624_v45  ;;  %11385 = vmatprep.mubr.msk.f32.mxu0 %vm13051_vm0, %v13052_v7 }
 0xd72   :  { %11383 = vmatprep.subr.mxu0 %v13052_v7 }
 0xd75   :  { %11384 = vmatpush3.msra.mxu0 %v13635_v25 }
 0xd76   :  { %11386 = vmatmul.mubr.msk.f32.vlgmr.msra.gmra.mrb[30].mxu0 %vm96_vm1, %v10453_v21  ;;  %12319 = vmatprep.subr.bf16.mxu0 %v13050_v5 }
 0xd77   :  { %11403 = vmatprep.mubr.msk.f32.mxu0 %vm13051_vm0, %v13052_v7  ;;  %12321 = vmatpush3.bf16.msra.mxu0 %v13649_v35 }
 0xd78   :  { %12325 = vmatprep.subr.bf16.mxu0 %v13050_v5 }
 0xdcc   :  { %v2511_v40 = vpop.permute.xlu0 %2510 }
 0xdcd   :  { %v2513_v34 = vmul.f32 %v12835_v36, %v2511_v40 }
 0xdcf   :  { %2515 = vrot.lane.b32.xlu1 %v2513_v34, %s13057_s4  ;;  %v3343_v34 = vld [vmem:[%s15046_s30] sm:$0x3] }
 0xdd3   :  { %3068 = vperm.xlu1 %12750, %v2801_v8  }
 0xdd7   :  { %12751 = vset.pattern.permute.xlu1 %v13061_v61 }
 0xe24   :  { %v2753_v20 = vpop.f32.mrb[28].mxu1 }
 0xe25   :  { %v11378_v33 = vpop.f32.mrb[29].mxu1 }
 0xe41   :  { %v2516_v43 = vpop.permute.xlu1 %2515 }
 0xe42   :  { %v13656_v44 = vadd.f32 %v2516_v43, %v2508_v42  ;;  %v13739_v43 = vld [vmem:[%s15052_s29] ss:$0 sm:$0xff]  ;;  %s10580_s29 = sld [smem:[#allocation4 + $0x4]] }
 0xe43   :  { %v2680_v47 = vpop.f32.mrb[28].mxu0 }
 0xe44   :  { %12836 = vtanh.f32 %v13656_v44  ;;  %v2754_v51 = vadd.f32 %v2753_v20, %v2680_v47  ;;  %v11371_v37 = vpop.f32.mrb[29].mxu0 }
 0xe46   :  { %v2764_v52 = vadd.f32 %v13348_v59, %v2754_v51  ;;  %v2886_v59 = vld [vmem:[%s15048_s27] sm:$0xff]  ;;  %s15056_s27 = sld [smem:[#allocation19_spill]] }
 0xe47   :  { %v13676_v8 = vpack.c.bf16 %v2887_v62, %v2886_v59 }
 0xe48   :  { %12838 = vtanh.f32 %v2764_v52  ;;  %v10452_v27 = vmul.f32 -1.442695, %v2764_v52  ;;  %p8480_p8 = scmp.gt.s32.totalorder %s10580_s29, 0 }
 0xe49   :  { %v2880_v54 = vpop.f32.mrb[30].mxu0  ;;  %12315 = vmatpush3.bf16.msra.mxu1 %v13676_v8 }
 0xe4a   :  { %v11387_v55 = vpop.f32.mrb[31].mxu0  ;;  %11404 = vmatmul.mubr.msk.f32.vlgmr.msra.gmra.mrb[32].mxu0 %vm250_vm4, %v2880_v54  ;;  %12316 = vmatprep.subr.bf16.mxu1 %v13050_v5  ;;  %12840 = vpow2.f32 %v10452_v27 }
 0xe4b   :  { %12327 = vmatpush3.bf16.msra.mxu0 %v13603_v1  ;;  %11423 = vmatprep.mubr.msk.f32.mxu0 %vm13051_vm0, %v13052_v7 }
 0xe4c   :  { %12328 = vmatprep.subr.bf16.mxu0 %v13050_v5 }
 0xe4d   :  { %12318 = vmatpush3.bf16.msra.mxu1 %v13682_v63 }
 0xe4e   :  { %v12837_v28 = vpop.eup %12836  ;;  %12322 = vmatprep.subr.bf16.mxu1 %v13050_v5 }
 0xe4f   :  { %2521 = vrot.lane.b32.xlu0 %v12837_v28, %s13056_s0 }
 0xe52   :  { %v12839_v57 = vpop.eup %12838  ;;  %v3069_v12 = vpop.permute.xlu1 %3068 }
 0xe53   :  { %2774 = vrot.lane.b32.xlu1 %v12839_v57, %s13056_s0  ;;  %vm3070_vm3 = vcmp.eq.s32.totalorder %v13254_v17, %v3069_v12 }
 0xe54   :  { %v12841_v0 = vpop.eup %12840  ;;  %v10459_v26 = vsel %vm3070_vm3, 1.0, %v13052_v7  ;;  %vm631_vm3 = vcmask 517377  }
 0xe55   :  { %v2768_v3 = vadd.f32 1.0, %v12841_v0 }
 0xe57   :  { %12842 = vrcp.f32 %v2768_v3 }
 0xe61   :  { %v12843_v14 = vpop.eup %12842 }
 0xe62   :  { %v2772_v23 = vmul.f32 %v12843_v14, %v13581_v60  ;;  %v3146_v60 = vld [vmem:[%s15050_s26] sm:$0xff] }
 0xe63   :  { %v13714_v31 = vpack.c.bf16 %v3147_v2, %v3146_v60 }
 0xec1   :  { %v2522_v11 = vpop.permute.xlu0 %2521 }
 0xec2   :  { %v2524_v13 = vmul.f32 %v12835_v36, %v2522_v11  ;;  %v3151_v36 = vld [vmem:[%s15051_s3 + $0x18] sm:$0xff] }
 0xec3   :  { %v13724_v40 = vpack.c.bf16 %v3151_v36, %v3150_v32 }
 0xec4   :  { %2790 = vrot.lane.b32.xlu0 %v2524_v13, %s13057_s4 }
 0xec5   :  { %v2775_v18 = vpop.permute.xlu1 %2774  ;;  %12330 = vmatpush3.bf16.msra.mxu0 %v13724_v40 }
 0xec6   :  { %v2777_v19 = vmul.f32 %v12843_v14, %v2775_v18  ;;  %12334 = vmatprep.subr.bf16.mxu0 %v13050_v5 }
 0xec8   :  { %2779 = vrot.lane.b32.xlu0 %v2777_v19, %s13057_s4 }
 0xf1d   :  { %v3031_v39 = vpop.f32.mrb[32].mxu0 }
 0xf1e   :  { %v11405_v10 = vpop.f32.mrb[33].mxu0 }
 0xf36   :  { %v2791_v22 = vpop.permute.xlu0 %2790 }
 0xf37   :  { %11397 = vmatmul.mubr.msk.f32.vlgmr.msra.gmra.mrb[30].mxu1 %vm176_vm6, %v2791_v22  ;;  %2793 = vst.msk [vmem:[#allocation2 + $0x4] sm:$0x1] %vm620_vm7, %v2791_v22 }
 0xf38   :  { %2799 = vst.msk [vmem:[#allocation2 + $0x13] sm:$0x2] %vm629_vm8, %v2791_v22  ;;  %12324 = vmatpush3.bf16.msra.mxu1 %v13624_v45  ;;  %11412 = vmatprep.mubr.msk.f32.mxu1 %vm13051_vm0, %v13052_v7 }
 0xf39   :  { %11410 = vmatprep.subr.mxu1 %v13052_v7 }
 0xf3a   :  { %v2780_v24 = vpop.permute.xlu0 %2779 }
 0xf3b   :  { %v13698_v21 = vadd.f32 %v2780_v24, %v2772_v23 }
 0xf3c   :  { %11411 = vmatpush3.msra.mxu1 %v13635_v25 }
 0xf3d   :  { %12844 = vtanh.f32 %v13698_v21  ;;  %11413 = vmatmul.mubr.msk.f32.vlgmr.msra.gmra.mrb[32].mxu1 %vm96_vm1, %v10459_v26  ;;  %12331 = vmatprep.subr.bf16.mxu1 %v13050_v5 }
 0xf3e   :  { %11430 = vmatprep.mubr.msk.f32.mxu1 %vm13051_vm0, %v13052_v7  ;;  %12333 = vmatpush3.bf16.msra.mxu1 %v13714_v31 }
 0xf3f   :  { %12337 = vmatprep.subr.bf16.mxu1 %v13050_v5 }
 0xf47   :  { %v12845_v30 = vpop.eup %12844 }
 0xf48   :  { %2785 = vrot.lane.b32.xlu1 %v12845_v30, %s13056_s0 }
 0xf4c   :  { %3345 = vperm.xlu1 %12751, %v3343_v34  }
 0xf50   :  { %12752 = vset.pattern.permute.xlu1 %v13060_v46 }
 0xfba   :  { %v2786_v20 = vpop.permute.xlu1 %2785 }
 0xfbb   :  { %v13732_v33 = vmul.f32 %v12843_v14, %v2786_v20 }
 0xfbd   :  { %3152 = vrot.lane.b32.xlu0 %v13732_v33, %s13057_s4 }
 0xfcb   :  { %v3346_v57 = vpop.permute.xlu1 %3345 }
 0xfcc   :  { %vm3347_vm5 = vcmp.eq.s32.totalorder %v13254_v17, %v3346_v57 }
 0xfcd   :  { %v10465_v59 = vsel %vm3347_vm5, 1.0, %v13052_v7  ;;  %vm5860_vm5 = vcmask 517120  }
0x100a   :  { %v2958_v42 = vpop.f32.mrb[30].mxu1 }
0x100b   :  { %v3032_v47 = vadd.f32 %v3031_v39, %v2958_v42  ;;  %v11398_v51 = vpop.f32.mrb[31].mxu1  ;;  %v13772_v39 = vld [vmem:[%s15011_s9] ss:$0 sm:$0xff] }
0x100d   :  { %v3042_v37 = vadd.f32 %v13739_v43, %v3032_v47 }
0x100f   :  { %12846 = vtanh.f32 %v3042_v37  ;;  %v10458_v62 = vmul.f32 -1.442695, %v3042_v37 }
0x1010   :  { %v3142_v52 = vpop.f32.mrb[32].mxu1 }
0x1011   :  { %v11414_v54 = vpop.f32.mrb[33].mxu1  ;;  %11431 = vmatmul.mubr.msk.f32.vlgmr.msra.gmra.mrb[34].mxu1 %vm250_vm4, %v3142_v52  ;;  %12848 = vpow2.f32 %v10458_v62 }
0x1012   :  { %12339 = vmatpush3.bf16.msra.mxu1 %v13676_v8  ;;  %11450 = vmatprep.mubr.msk.f32.mxu1 %vm13051_vm0, %v13052_v7 }
0x1013   :  { %12340 = vmatprep.subr.bf16.mxu1 %v13050_v5 }
0x1016   :  { %12342 = vmatpush3.bf16.msra.mxu1 %v13682_v63 }
0x1017   :  { %12346 = vmatprep.subr.bf16.mxu1 %v13050_v5 }
0x1019   :  { %v12847_v55 = vpop.eup %12846 }
0x101a   :  { %3052 = vrot.lane.b32.xlu0 %v12847_v55, %s13056_s0 }
0x101b   :  { %v12849_v6 = vpop.eup %12848 }
0x101c   :  { %v3046_v50 = vadd.f32 1.0, %v12849_v6 }
0x101e   :  { %12850 = vrcp.f32 %v3046_v50 }
0x1028   :  { %v12851_v27 = vpop.eup %12850 }
0x1029   :  { %v3050_v13 = vmul.f32 %v12851_v27, %v13656_v44 }
0x102f   :  { %v3153_v28 = vpop.permute.xlu0 %3152 }
0x1030   :  { %11424 = vmatmul.mubr.msk.f32.vlgmr.msra.gmra.mrb[34].mxu0 %vm176_vm6, %v3153_v28 }
0x1031   :  { %12336 = vmatpush3.bf16.msra.mxu0 %v13624_v45  ;;  %11439 = vmatprep.mubr.msk.f32.mxu0 %vm13051_vm0, %v13052_v7 }
0x1032   :  { %11437 = vmatprep.subr.mxu0 %v13052_v7 }
0x1035   :  { %11438 = vmatpush3.msra.mxu0 %v13635_v25 }
0x1036   :  { %12343 = vmatprep.subr.bf16.mxu0 %v13050_v5  ;;  %11440 = vmatmul.mubr.msk.f32.vlgmr.msra.gmra.mrb[36].mxu0 %vm96_vm1, %v10465_v59  ;;  %v3885_v59 = vld [vmem:[%s15046_s30] sm:$0x3] }
0x1037   :  { %12345 = vmatpush3.bf16.msra.mxu0 %v13649_v35  ;;  %11457 = vmatprep.mubr.msk.f32.mxu0 %vm13051_vm0, %v13052_v7 }
0x1038   :  { %12349 = vmatprep.subr.bf16.mxu0 %v13050_v5 }
0x108c   :  { %v3053_v0 = vpop.permute.xlu0 %3052 }
0x108d   :  { %v3055_v3 = vmul.f32 %v12851_v27, %v3053_v0 }
0x108f   :  { %3057 = vrot.lane.b32.xlu1 %v3055_v3, %s13057_s4 }
0x1093   :  { %3610 = vperm.xlu1 %12752, %v3343_v34  }
0x1097   :  { %12753 = vset.pattern.permute.xlu1 %v13059_v53 }
0x10e4   :  { %v3295_v12 = vpop.f32.mrb[34].mxu1 }
0x10e5   :  { %v11432_v11 = vpop.f32.mrb[35].mxu1 }
0x1101   :  { %v3058_v14 = vpop.permute.xlu1 %3057 }
0x1102   :  { %v13767_v18 = vadd.f32 %v3058_v14, %v3050_v13 }
0x1103   :  { %v3222_v19 = vpop.f32.mrb[34].mxu0 }
0x1104   :  { %12852 = vtanh.f32 %v13767_v18  ;;  %v3296_v10 = vadd.f32 %v3295_v12, %v3222_v19  ;;  %v11425_v22 = vpop.f32.mrb[35].mxu0 }
0x1106   :  { %v3306_v23 = vadd.f32 %v13772_v39, %v3296_v10 }
0x1108   :  { %12854 = vtanh.f32 %v3306_v23  ;;  %v10464_v30 = vmul.f32 -1.442695, %v3306_v23 }
0x1109   :  { %v3422_v24 = vpop.f32.mrb[36].mxu0 }
0x110a   :  { %v11441_v26 = vpop.f32.mrb[37].mxu0  ;;  %11458 = vmatmul.mubr.msk.f32.vlgmr.msra.gmra.mrb[38].mxu0 %vm250_vm4, %v3422_v24  ;;  %12856 = vpow2.f32 %v10464_v30 }
0x110b   :  { %12351 = vmatpush3.bf16.msra.mxu0 %v13603_v1  ;;  %11477 = vmatprep.mubr.msk.f32.mxu0 %vm13051_vm0, %v13052_v7 }
0x110c   :  { %12352 = vmatprep.subr.bf16.mxu0 %v13050_v5 }
0x110e   :  { %v12853_v53 = vpop.eup %12852 }
0x110f   :  { %3063 = vrot.lane.b32.xlu0 %v12853_v53, %s13056_s0  ;;  %12354 = vmatpush3.bf16.msra.mxu0 %v13724_v40 }
0x1110   :  { %12358 = vmatprep.subr.bf16.mxu0 %v13050_v5 }
0x1112   :  { %v12855_v44 = vpop.eup %12854  ;;  %v3611_v32 = vpop.permute.xlu1 %3610 }
0x1113   :  { %3316 = vrot.lane.b32.xlu1 %v12855_v44, %s13056_s0  ;;  %vm3612_vm9 = vcmp.eq.s32.totalorder %v13254_v17, %v3611_v32 }
0x1114   :  { %v12857_v60 = vpop.eup %12856  ;;  %v10471_v55 = vsel %vm3612_vm9, 1.0, %v13052_v7  ;;  %vm13065_vm9 = vmmov 1  }
0x1115   :  { %v3310_v2 = vadd.f32 1.0, %v12857_v60 }
0x1117   :  { %12858 = vrcp.f32 %v3310_v2 }
0x1121   :  { %v12859_v20 = vpop.eup %12858 }
0x1122   :  { %v3314_v37 = vmul.f32 %v12859_v20, %v13698_v21 }
0x1181   :  { %v3064_v36 = vpop.permute.xlu0 %3063 }
0x1182   :  { %v3066_v34 = vmul.f32 %v12851_v27, %v3064_v36 }
0x1184   :  { %3332 = vrot.lane.b32.xlu0 %v3066_v34, %s13057_s4 }
0x1185   :  { %v3317_v42 = vpop.permute.xlu1 %3316 }
0x1186   :  { %v3319_v47 = vmul.f32 %v12859_v20, %v3317_v42 }
0x1188   :  { %3321 = vrot.lane.b32.xlu0 %v3319_v47, %s13057_s4 }
0x11dd   :  { %v3573_v28 = vpop.f32.mrb[38].mxu0 }
0x11de   :  { %v11459_v57 = vpop.f32.mrb[39].mxu0 }
0x11f6   :  { %v13787_v51 = vpop.permute.xlu0 %3332 }
0x11f7   :  { %11451 = vmatmul.mubr.msk.f32.vlgmr.msra.gmra.mrb[36].mxu1 %vm176_vm6, %v13787_v51 }
0x11f8   :  { %12348 = vmatpush3.bf16.msra.mxu1 %v13624_v45  ;;  %11466 = vmatprep.mubr.msk.f32.mxu1 %vm13051_vm0, %v13052_v7 }
0x11f9   :  { %11464 = vmatprep.subr.mxu1 %v13052_v7 }
0x11fa   :  { %v3322_v52 = vpop.permute.xlu0 %3321 }
0x11fb   :  { %v13797_v54 = vadd.f32 %v3322_v52, %v3314_v37 }
0x11fc   :  { %11465 = vmatpush3.msra.mxu1 %v13635_v25 }
0x11fd   :  { %12860 = vtanh.f32 %v13797_v54  ;;  %11467 = vmatmul.mubr.msk.f32.vlgmr.msra.gmra.mrb[38].mxu1 %vm96_vm1, %v10471_v55  ;;  %12355 = vmatprep.subr.bf16.mxu1 %v13050_v5 }
0x11fe   :  { %12357 = vmatpush3.bf16.msra.mxu1 %v13714_v31  ;;  %11484 = vmatprep.mubr.msk.f32.mxu1 %vm13051_vm0, %v13052_v7 }
0x11ff   :  { %12361 = vmatprep.subr.bf16.mxu1 %v13050_v5 }
0x1207   :  { %v12861_v21 = vpop.eup %12860 }
0x1208   :  { %3327 = vrot.lane.b32.xlu1 %v12861_v21, %s13056_s0 }
0x120c   :  { %3887 = vperm.xlu1 %12753, %v3885_v59  }
0x1210   :  { %12754 = vset.pattern.permute.xlu1 %v13058_v38 }
0x127a   :  { %v3328_v62 = vpop.permute.xlu1 %3327 }
0x127b   :  { %v13813_v6 = vmul.f32 %v12859_v20, %v3328_v62 }
0x127d   :  { %3694 = vrot.lane.b32.xlu0 %v13813_v6, %s13057_s4 }
0x128b   :  { %v3888_v19 = vpop.permute.xlu1 %3887 }
0x128c   :  { %vm3889_vm10 = vcmp.eq.s32.totalorder %v13254_v17, %v3888_v19 }
0x128d   :  { %v10477_v10 = vsel %vm3889_vm10, 1.0, %v13052_v7 }
0x12ca   :  { %v3500_v50 = vpop.f32.mrb[36].mxu1 }
0x12cb   :  { %v3574_v27 = vadd.f32 %v3573_v28, %v3500_v50  ;;  %v11452_v0 = vpop.f32.mrb[37].mxu1 }
0x12cd   :  { %v3584_v3 = vadd.f32 %v13739_v43, %v3574_v27 }
0x12cf   :  { %12862 = vtanh.f32 %v3584_v3  ;;  %v10470_v22 = vmul.f32 -1.442695, %v3584_v3 }
0x12d0   :  { %v3684_v12 = vpop.f32.mrb[38].mxu1 }
0x12d1   :  { %v11468_v11 = vpop.f32.mrb[39].mxu1  ;;  %11485 = vmatmul.mubr.msk.f32.vlgmr.msra.gmra.mrb[40].mxu1 %vm250_vm4, %v3684_v12  ;;  %12864 = vpow2.f32 %v10470_v22  ;;  %v4427_v22 = vld [vmem:[%s15046_s30] sm:$0x3] }
0x12d2   :  { %12363 = vmatpush3.bf16.msra.mxu1 %v13676_v8  ;;  %11504 = vmatprep.mubr.msk.f32.mxu1 %vm13051_vm0, %v13052_v7 }
0x12d3   :  { %12364 = vmatprep.subr.bf16.mxu1 %v13050_v5 }
0x12d6   :  { %12366 = vmatpush3.bf16.msra.mxu1 %v13682_v63 }
0x12d7   :  { %12370 = vmatprep.subr.bf16.mxu1 %v13050_v5 }
0x12d9   :  { %v12863_v13 = vpop.eup %12862 }
0x12da   :  { %3594 = vrot.lane.b32.xlu0 %v12863_v13, %s13056_s0 }
0x12db   :  { %v12865_v23 = vpop.eup %12864 }
0x12dc   :  { %v3588_v53 = vadd.f32 1.0, %v12865_v23 }
0x12de   :  { %12866 = vrcp.f32 %v3588_v53 }
0x12e8   :  { %v12867_v44 = vpop.eup %12866 }
0x12e9   :  { %v3592_v2 = vmul.f32 %v12867_v44, %v13767_v18 }
0x12ef   :  { %v3695_v14 = vpop.permute.xlu0 %3694 }
0x12f0   :  { %11478 = vmatmul.mubr.msk.f32.vlgmr.msra.gmra.mrb[40].mxu0 %vm176_vm6, %v3695_v14 }
0x12f1   :  { %12360 = vmatpush3.bf16.msra.mxu0 %v13624_v45  ;;  %11493 = vmatprep.mubr.msk.f32.mxu0 %vm13051_vm0, %v13052_v7 }
0x12f2   :  { %11491 = vmatprep.subr.mxu0 %v13052_v7 }
0x12f5   :  { %11492 = vmatpush3.msra.mxu0 %v13635_v25 }
0x12f6   :  { %12367 = vmatprep.subr.bf16.mxu0 %v13050_v5  ;;  %11494 = vmatmul.mubr.msk.f32.vlgmr.msra.gmra.mrb[42].mxu0 %vm96_vm1, %v10477_v10 }
0x12f7   :  { %12369 = vmatpush3.bf16.msra.mxu0 %v13649_v35  ;;  %11511 = vmatprep.mubr.msk.f32.mxu0 %vm13051_vm0, %v13052_v7 }
0x12f8   :  { %12373 = vmatprep.subr.bf16.mxu0 %v13050_v5 }
0x134c   :  { %v3595_v24 = vpop.permute.xlu0 %3594 }
0x134d   :  { %v3597_v26 = vmul.f32 %v12867_v44, %v3595_v24 }
0x134f   :  { %3599 = vrot.lane.b32.xlu1 %v3597_v26, %s13057_s4 }
0x1353   :  { %4152 = vperm.xlu1 %12754, %v3885_v59  }
0x1357   :  { %12755 = vset.pattern.permute.xlu1 %v13055_v49 }
0x13a4   :  { %v3837_v30 = vpop.f32.mrb[40].mxu1 }
0x13a5   :  { %v11486_v60 = vpop.f32.mrb[41].mxu1 }
0x13c1   :  { %v3600_v32 = vpop.permute.xlu1 %3599 }
0x13c2   :  { %v13843_v36 = vadd.f32 %v3600_v32, %v3592_v2 }
0x13c3   :  { %v3764_v34 = vpop.f32.mrb[40].mxu0 }
0x13c4   :  { %12868 = vtanh.f32 %v13843_v36  ;;  %v3838_v20 = vadd.f32 %v3837_v30, %v3764_v34  ;;  %v11479_v42 = vpop.f32.mrb[41].mxu0 }
0x13c6   :  { %v3848_v47 = vadd.f32 %v13772_v39, %v3838_v20 }
0x13c8   :  { %12870 = vtanh.f32 %v3848_v47  ;;  %v10476_v18 = vmul.f32 -1.442695, %v3848_v47 }
0x13c9   :  { %v3964_v49 = vpop.f32.mrb[42].mxu0 }
0x13ca   :  { %v11495_v55 = vpop.f32.mrb[43].mxu0  ;;  %11512 = vmatmul.mubr.msk.f32.vlgmr.msra.gmra.mrb[44].mxu0 %vm250_vm4, %v3964_v49  ;;  %12872 = vpow2.f32 %v10476_v18 }
0x13cb   :  { %12375 = vmatpush3.bf16.msra.mxu0 %v13603_v1  ;;  %11531 = vmatprep.mubr.msk.f32.mxu0 %vm13051_vm0, %v13052_v7 }
0x13cc   :  { %12376 = vmatprep.subr.bf16.mxu0 %v13050_v5 }
0x13ce   :  { %v12869_v37 = vpop.eup %12868 }
0x13cf   :  { %3605 = vrot.lane.b32.xlu0 %v12869_v37, %s13056_s0  ;;  %12378 = vmatpush3.bf16.msra.mxu0 %v13724_v40 }
0x13d0   :  { %12382 = vmatprep.subr.bf16.mxu0 %v13050_v5 }
0x13d2   :  { %v12871_v52 = vpop.eup %12870  ;;  %v4153_v57 = vpop.permute.xlu1 %4152 }
0x13d3   :  { %3858 = vrot.lane.b32.xlu1 %v12871_v52, %s13056_s0  ;;  %vm4154_vm11 = vcmp.eq.s32.totalorder %v13254_v17, %v4153_v57 }
0x13d4   :  { %v12873_v21 = vpop.eup %12872  ;;  %v10483_v14 = vsel %vm4154_vm11, 1.0, %v13052_v7  ;;  %vm5977_vm11 = vcmask 254976  }
0x13d5   :  { %v3852_v28 = vadd.f32 1.0, %v12873_v21 }
0x13d7   :  { %12874 = vrcp.f32 %v3852_v28 }
0x13e1   :  { %v12875_v50 = vpop.eup %12874 }
0x13e2   :  { %v3856_v12 = vmul.f32 %v12875_v50, %v13797_v54 }
0x1441   :  { %v3606_v59 = vpop.permute.xlu0 %3605 }
0x1442   :  { %v3608_v62 = vmul.f32 %v12867_v44, %v3606_v59 }
0x1444   :  { %3874 = vrot.lane.b32.xlu0 %v3608_v62, %s13057_s4 }
0x1445   :  { %v3859_v27 = vpop.permute.xlu1 %3858 }
0x1446   :  { %v3861_v0 = vmul.f32 %v12875_v50, %v3859_v27 }
0x1448   :  { %3863 = vrot.lane.b32.xlu0 %v3861_v0, %s13057_s4 }
0x149d   :  { %v4115_v19 = vpop.f32.mrb[44].mxu0 }
0x149e   :  { %v11513_v10 = vpop.f32.mrb[45].mxu0 }
0x14b6   :  { %v13858_v3 = vpop.permute.xlu0 %3874 }
0x14b7   :  { %11505 = vmatmul.mubr.msk.f32.vlgmr.msra.gmra.mrb[42].mxu1 %vm176_vm6, %v13858_v3 }
0x14b8   :  { %12372 = vmatpush3.bf16.msra.mxu1 %v13624_v45  ;;  %11520 = vmatprep.mubr.msk.f32.mxu1 %vm13051_vm0, %v13052_v7 }
0x14b9   :  { %11518 = vmatprep.subr.mxu1 %v13052_v7 }
0x14ba   :  { %v3864_v11 = vpop.permute.xlu0 %3863 }
0x14bb   :  { %v13868_v13 = vadd.f32 %v3864_v11, %v3856_v12 }
0x14bc   :  { %11519 = vmatpush3.msra.mxu1 %v13635_v25 }
0x14bd   :  { %12876 = vtanh.f32 %v13868_v13  ;;  %11521 = vmatmul.mubr.msk.f32.vlgmr.msra.gmra.mrb[44].mxu1 %vm96_vm1, %v10483_v14  ;;  %12379 = vmatprep.subr.bf16.mxu1 %v13050_v5 }
0x14be   :  { %12381 = vmatpush3.bf16.msra.mxu1 %v13714_v31  ;;  %11538 = vmatprep.mubr.msk.f32.mxu1 %vm13051_vm0, %v13052_v7 }
0x14bf   :  { %12385 = vmatprep.subr.bf16.mxu1 %v13050_v5 }
0x14c7   :  { %v12877_v54 = vpop.eup %12876 }
0x14c8   :  { %3869 = vrot.lane.b32.xlu1 %v12877_v54, %s13056_s0 }
0x14cc   :  { %4429 = vperm.xlu1 %12755, %v4427_v22  }
0x14d0   :  { %12756 = vset.pattern.permute.xlu1 %v13054_v29 }
0x153a   :  { %v3870_v23 = vpop.permute.xlu1 %3869 }
0x153b   :  { %v13884_v53 = vmul.f32 %v12875_v50, %v3870_v23 }
0x153d   :  { %4236 = vrot.lane.b32.xlu0 %v13884_v53, %s13057_s4 }
0x154b   :  { %v4430_v20 = vpop.permute.xlu1 %4429 }
0x154c   :  { %vm4431_vm12 = vcmp.eq.s32.totalorder %v13254_v17, %v4430_v20 }
0x154d   :  { %v10489_v42 = vsel %vm4431_vm12, 1.0, %v13052_v7  ;;  %vm5994_vm12 = vcmask 130112  }
0x158a   :  { %v4042_v44 = vpop.f32.mrb[42].mxu1 }
0x158b   :  { %v4116_v24 = vadd.f32 %v4115_v19, %v4042_v44  ;;  %v11506_v26 = vpop.f32.mrb[43].mxu1 }
0x158d   :  { %v4126_v30 = vadd.f32 %v13739_v43, %v4116_v24 }
0x158f   :  { %12878 = vtanh.f32 %v4126_v30  ;;  %v10482_v47 = vmul.f32 -1.442695, %v4126_v30 }
0x1590   :  { %v4226_v60 = vpop.f32.mrb[44].mxu1 }
0x1591   :  { %v11522_v2 = vpop.f32.mrb[45].mxu1  ;;  %11539 = vmatmul.mubr.msk.f32.vlgmr.msra.gmra.mrb[46].mxu1 %vm250_vm4, %v4226_v60  ;;  %12880 = vpow2.f32 %v10482_v47 }
0x1592   :  { %12387 = vmatpush3.bf16.msra.mxu1 %v13676_v8  ;;  %11558 = vmatprep.mubr.msk.f32.mxu1 %vm13051_vm0, %v13052_v7 }
0x1593   :  { %12388 = vmatprep.subr.bf16.mxu1 %v13050_v5 }
0x1596   :  { %12390 = vmatpush3.bf16.msra.mxu1 %v13682_v63 }
0x1597   :  { %12394 = vmatprep.subr.bf16.mxu1 %v13050_v5 }
0x1599   :  { %v12879_v32 = vpop.eup %12878 }
0x159a   :  { %4136 = vrot.lane.b32.xlu0 %v12879_v32, %s13056_s0 }
0x159b   :  { %v12881_v37 = vpop.eup %12880 }
0x159c   :  { %v4130_v52 = vadd.f32 1.0, %v12881_v37 }
0x159e   :  { %12882 = vrcp.f32 %v4130_v52 }
0x15a8   :  { %v12883_v49 = vpop.eup %12882 }
0x15a9   :  { %v4134_v57 = vmul.f32 %v12883_v49, %v13843_v36 }
0x15af   :  { %v4237_v34 = vpop.permute.xlu0 %4236 }
0x15b0   :  { %11532 = vmatmul.mubr.msk.f32.vlgmr.msra.gmra.mrb[46].mxu0 %vm176_vm6, %v4237_v34 }
0x15b1   :  { %12384 = vmatpush3.bf16.msra.mxu0 %v13624_v45  ;;  %11547 = vmatprep.mubr.msk.f32.mxu0 %vm13051_vm0, %v13052_v7 }
0x15b2   :  { %11545 = vmatprep.subr.mxu0 %v13052_v7 }
0x15b5   :  { %11546 = vmatpush3.msra.mxu0 %v13635_v25 }
0x15b6   :  { %12391 = vmatprep.subr.bf16.mxu0 %v13050_v5  ;;  %11548 = vmatmul.mubr.msk.f32.vlgmr.msra.gmra.mrb[48].mxu0 %vm96_vm1, %v10489_v42 }
0x15b7   :  { %12393 = vmatpush3.bf16.msra.mxu0 %v13649_v35  ;;  %11565 = vmatprep.mubr.msk.f32.mxu0 %vm13051_vm0, %v13052_v7 }
0x15b8   :  { %12397 = vmatprep.subr.bf16.mxu0 %v13050_v5 }
0x160c   :  { %v4137_v55 = vpop.permute.xlu0 %4136 }
0x160d   :  { %v4139_v18 = vmul.f32 %v12883_v49, %v4137_v55 }
0x160f   :  { %4141 = vrot.lane.b32.xlu1 %v4139_v18, %s13057_s4 }
0x1613   :  { %4694 = vperm.xlu1 %12756, %v4427_v22  }
0x1617   :  { %12757 = vset.pattern.permute.xlu1 %v13049_v4 }
0x1664   :  { %v4379_v21 = vpop.f32.mrb[46].mxu1 }
0x1665   :  { %v11540_v28 = vpop.f32.mrb[47].mxu1 }
0x1681   :  { %v4142_v59 = vpop.permute.xlu1 %4141 }
0x1682   :  { %v13914_v62 = vadd.f32 %v4142_v59, %v4134_v57 }
0x1683   :  { %v4306_v50 = vpop.f32.mrb[46].mxu0 }
0x1684   :  { %12884 = vtanh.f32 %v13914_v62  ;;  %v4380_v27 = vadd.f32 %v4379_v21, %v4306_v50  ;;  %v11533_v0 = vpop.f32.mrb[47].mxu0 }
0x1686   :  { %v4390_v12 = vadd.f32 %v13772_v39, %v4380_v27 }
0x1688   :  { %12886 = vtanh.f32 %v4390_v12  ;;  %v10488_v36 = vmul.f32 -1.442695, %v4390_v12 }
0x1689   :  { %v4506_v54 = vpop.f32.mrb[48].mxu0 }
0x168a   :  { %v11549_v19 = vpop.f32.mrb[49].mxu0  ;;  %11566 = vmatmul.mubr.msk.f32.vlgmr.msra.gmra.mrb[50].mxu0 %vm250_vm4, %v4506_v54  ;;  %12888 = vpow2.f32 %v10488_v36 }
0x168b   :  { %12399 = vmatpush3.bf16.msra.mxu0 %v13603_v1  ;;  %11585 = vmatprep.mubr.msk.f32.mxu0 %vm13051_vm0, %v13052_v7 }
0x168c   :  { %12400 = vmatprep.subr.bf16.mxu0 %v13050_v5 }
0x168e   :  { %v12885_v11 = vpop.eup %12884 }
0x168f   :  { %4147 = vrot.lane.b32.xlu0 %v12885_v11, %s13056_s0  ;;  %12402 = vmatpush3.bf16.msra.mxu0 %v13724_v40 }
0x1690   :  { %12406 = vmatprep.subr.bf16.mxu0 %v13050_v5 }
0x1692   :  { %v12887_v14 = vpop.eup %12886  ;;  %v4695_v23 = vpop.permute.xlu1 %4694 }
0x1693   :  { %4400 = vrot.lane.b32.xlu1 %v12887_v14, %s13056_s0  ;;  %vm4696_vm13 = vcmp.eq.s32.totalorder %v13254_v17, %v4695_v23  ;;  %v4969_v14 = vld [vmem:[%s15046_s30] sm:$0x3]  ;;  %s13064_s30 = smov 96  }
0x1694   :  { %v12889_v10 = vpop.eup %12888  ;;  %v10495_v20 = vsel %vm4696_vm13, 1.0, %v13052_v7  ;;  %vm6005_vm13 = vcmask 1041409  }
0x1695   :  { %v4394_v22 = vadd.f32 1.0, %v12889_v10 }
0x1697   :  { %12890 = vrcp.f32 %v4394_v22 }
0x16a1   :  { %v12891_v1 = vpop.eup %12890 }
0x16a2   :  { %v4398_v2 = vmul.f32 %v12891_v1, %v13868_v13 }
0x1701   :  { %v4148_v44 = vpop.permute.xlu0 %4147 }
0x1702   :  { %v4150_v24 = vmul.f32 %v12883_v49, %v4148_v44 }
0x1704   :  { %4416 = vrot.lane.b32.xlu0 %v4150_v24, %s13057_s4 }
0x1705   :  { %v4401_v26 = vpop.permute.xlu1 %4400 }
0x1706   :  { %v4403_v30 = vmul.f32 %v12891_v1, %v4401_v26 }
0x1708   :  { %4405 = vrot.lane.b32.xlu0 %v4403_v30, %s13057_s4 }
0x175d   :  { %v4657_v42 = vpop.f32.mrb[50].mxu0 }
0x175e   :  { %v11567_v47 = vpop.f32.mrb[51].mxu0 }
0x1776   :  { %v13929_v60 = vpop.permute.xlu0 %4416 }
0x1777   :  { %11559 = vmatmul.mubr.msk.f32.vlgmr.msra.gmra.mrb[48].mxu1 %vm176_vm6, %v13929_v60 }
0x1778   :  { %12396 = vmatpush3.bf16.msra.mxu1 %v13624_v45  ;;  %11574 = vmatprep.mubr.msk.f32.mxu1 %vm13051_vm0, %v13052_v7 }
0x1779   :  { %11572 = vmatprep.subr.mxu1 %v13052_v7 }
0x177a   :  { %v4406_v32 = vpop.permute.xlu0 %4405 }
0x177b   :  { %v13939_v34 = vadd.f32 %v4406_v32, %v4398_v2 }
0x177c   :  { %11573 = vmatpush3.msra.mxu1 %v13635_v25 }
0x177d   :  { %12892 = vtanh.f32 %v13939_v34  ;;  %11575 = vmatmul.mubr.msk.f32.vlgmr.msra.gmra.mrb[50].mxu1 %vm96_vm1, %v10495_v20  ;;  %12403 = vmatprep.subr.bf16.mxu1 %v13050_v5 }
0x177e   :  { %12405 = vmatpush3.bf16.msra.mxu1 %v13714_v31  ;;  %11592 = vmatprep.mubr.msk.f32.mxu1 %vm13051_vm0, %v13052_v7 }
0x177f   :  { %12409 = vmatprep.subr.bf16.mxu1 %v13050_v5 }
0x1787   :  { %v12893_v13 = vpop.eup %12892 }
0x1788   :  { %4411 = vrot.lane.b32.xlu1 %v12893_v13, %s13056_s0 }
0x17fa   :  { %v4412_v37 = vpop.permute.xlu1 %4411 }
0x17fb   :  { %v13951_v52 = vmul.f32 %v12891_v1, %v4412_v37 }
0x17fd   :  { %4778 = vrot.lane.b32.xlu0 %v13951_v52, %s13057_s4 }
0x184a   :  { %v4584_v49 = vpop.f32.mrb[48].mxu1 }
0x184b   :  { %v4658_v55 = vadd.f32 %v4657_v42, %v4584_v49  ;;  %v11560_v18 = vpop.f32.mrb[49].mxu1 }
0x184d   :  { %v4668_v21 = vadd.f32 %v13739_v43, %v4658_v55 }
0x184f   :  { %12894 = vtanh.f32 %v4668_v21 }
0x1850   :  { %v4768_v28 = vpop.f32.mrb[50].mxu1 }
0x1851   :  { %v11576_v57 = vpop.f32.mrb[51].mxu1  ;;  %11593 = vmatmul.mubr.msk.f32.vlgmr.msra.gmra.mrb[52].mxu1 %vm250_vm4, %v4768_v28 }
0x1852   :  { %12411 = vmatpush3.bf16.msra.mxu1 %v13676_v8  ;;  %11612 = vmatprep.mubr.msk.f32.mxu1 %vm13051_vm0, %v13052_v7  ;;  %v10494_v8 = vmul.f32 -1.442695, %v4668_v21 }
0x1853   :  { %12412 = vmatprep.subr.bf16.mxu1 %v13050_v5 }
0x1854   :  { %12896 = vpow2.f32 %v10494_v8 }
0x1856   :  { %12414 = vmatpush3.bf16.msra.mxu1 %v13682_v63 }
0x1857   :  { %12418 = vmatprep.subr.bf16.mxu1 %v13050_v5 }
0x1859   :  { %v12895_v59 = vpop.eup %12894 }
0x185a   :  { %4678 = vrot.lane.b32.xlu1 %v12895_v59, %s13056_s0 }
0x185e   :  { %v12897_v63 = vpop.eup %12896 }
0x185f   :  { %v4672_v27 = vadd.f32 1.0, %v12897_v63 }
0x1861   :  { %12898 = vrcp.f32 %v4672_v27 }
0x186b   :  { %v12899_v0 = vpop.eup %12898 }
0x186c   :  { %v4676_v36 = vmul.f32 %v12899_v0, %v13914_v62 }
0x186f   :  { %v4779_v50 = vpop.permute.xlu0 %4778 }
0x1870   :  { %11586 = vmatmul.mubr.msk.f32.vlgmr.msra.gmra.mrb[52].mxu0 %vm176_vm6, %v4779_v50 }
0x1871   :  { %12408 = vmatpush3.bf16.msra.mxu0 %v13624_v45  ;;  %11601 = vmatprep.mubr.msk.f32.mxu0 %vm13051_vm0, %v13052_v7 }
0x1872   :  { %11599 = vmatprep.subr.mxu0 %v13052_v7 }
0x1875   :  { %11600 = vmatpush3.msra.mxu0 %v13635_v25 }
0x1876   :  { %12415 = vmatprep.subr.bf16.mxu0 %v13050_v5 }
0x18cc   :  { %v4679_v12 = vpop.permute.xlu1 %4678 }
0x18cd   :  { %v4681_v11 = vmul.f32 %v12899_v0, %v4679_v12 }
0x18cf   :  { %4683 = vrot.lane.b32.xlu0 %v4681_v11, %s13057_s4 }
0x18d3   :  { %4971 = vperm.xlu0 %12741, %v4969_v14  }
0x18d7   :  { %12758 = vset.pattern.permute.xlu0 %v13049_v4 }
0x1924   :  { %v4921_v54 = vpop.f32.mrb[52].mxu1 }
0x1925   :  { %v11594_v19 = vpop.f32.mrb[53].mxu1 }
0x1941   :  { %v4684_v10 = vpop.permute.xlu0 %4683 }
0x1942   :  { %v13977_v22 = vadd.f32 %v4684_v10, %v4676_v36 }
0x1943   :  { %v4848_v23 = vpop.f32.mrb[52].mxu0 }
0x1944   :  { %12900 = vtanh.f32 %v13977_v22  ;;  %v4922_v44 = vadd.f32 %v4921_v54, %v4848_v23  ;;  %v11587_v24 = vpop.f32.mrb[53].mxu0 }
0x1946   :  { %v4932_v1 = vadd.f32 %v13772_v39, %v4922_v44 }
0x1948   :  { %12902 = vtanh.f32 %v4932_v1  ;;  %v10500_v2 = vmul.f32 -1.442695, %v4932_v1 }
0x194a   :  { %12904 = vpow2.f32 %v10500_v2 }
0x194e   :  { %v12901_v26 = vpop.eup %12900 }
0x194f   :  { %4689 = vrot.lane.b32.xlu1 %v12901_v26, %s13056_s0 }
0x1952   :  { %v4972_v30 = vpop.permute.xlu0 %4971  ;;  %v12903_v62 = vpop.eup %12902 }
0x1953   :  { %vm4973_vm14 = vcmp.eq.s32.totalorder %v13254_v17, %v4972_v30  ;;  %5236 = vperm.xlu1 %12757, %v4969_v14  }
0x1954   :  { %v10501_v4 = vsel %vm4973_vm14, 1.0, %v13052_v7  ;;  %v12905_v13 = vpop.eup %12904  ;;  %vm6010_vm14 = vcmask 74752  }
0x1955   :  { %11602 = vmatmul.mubr.msk.f32.vlgmr.msra.gmra.mrb[54].mxu0 %vm96_vm1, %v10501_v4  ;;  %v4936_v42 = vadd.f32 1.0, %v12905_v13 }
0x1956   :  { %12417 = vmatpush3.bf16.msra.mxu0 %v13649_v35  ;;  %11619 = vmatprep.mubr.msk.f32.mxu0 %vm13051_vm0, %v13052_v7 }
0x1957   :  { %4942 = vrot.lane.b32.xlu1 %v12903_v62, %s13056_s0  ;;  %12421 = vmatprep.subr.bf16.mxu0 %v13050_v5  ;;  %12906 = vrcp.f32 %v4936_v42 }
0x1961   :  { %v12907_v37 = vpop.eup %12906 }
0x19c1   :  { %v4690_v32 = vpop.permute.xlu1 %4689 }
0x19c2   :  { %v4692_v20 = vmul.f32 %v12899_v0, %v4690_v32 }
0x19c4   :  { %4958 = vrot.lane.b32.xlu0 %v4692_v20, %s13057_s4 }
0x19d2   :  { %v5237_v47 = vpop.permute.xlu1 %5236 }
0x19d3   :  { %vm5238_vm15 = vcmp.eq.s32.totalorder %v13254_v17, %v5237_v47 }
0x19d4   :  { %v10507_v28 = vsel %vm5238_vm15, 1.0, %v13052_v7 }
0x19d6   :  { %v4943_v49 = vpop.permute.xlu1 %4942 }
0x19d7   :  { %v4945_v35 = vmul.f32 %v12907_v37, %v4943_v49  ;;  %v5511_v49 = vld [vmem:[%s15012_s10] sm:$0xff] }
0x19d9   :  { %4947 = vrot.lane.b32.xlu0 %v4945_v35, %s13057_s4  ;;  %v5513_v35 = vld [vmem:[%s15012_s10 + $0x10] sm:$0xff] }
0x1a28   :  { %v5048_v55 = vpop.f32.mrb[54].mxu0 }
0x1a29   :  { %v11603_v18 = vpop.f32.mrb[55].mxu0  ;;  %11620 = vmatmul.mubr.msk.f32.vlgmr.msra.gmra.mrb[56].mxu0 %vm250_vm4, %v5048_v55 }
0x1a2a   :  { %11639 = vmatprep.mubr.msk.f32.mxu0 %vm13051_vm0, %v13052_v7  ;;  %v5514_v18 = vld [vmem:[%s15012_s10 + $0x18] sm:$0xff] }
0x1a36   :  { %v13995_v21 = vpop.permute.xlu0 %4958 }
0x1a37   :  { %11613 = vmatmul.mubr.msk.f32.vlgmr.msra.gmra.mrb[54].mxu1 %vm176_vm6, %v13995_v21 }
0x1a38   :  { %12420 = vmatpush3.bf16.msra.mxu1 %v13624_v45  ;;  %11628 = vmatprep.mubr.msk.f32.mxu1 %vm13051_vm0, %v13052_v7  ;;  %v4940_v45 = vmul.f32 %v12907_v37, %v13939_v34 }
0x1a39   :  { %11626 = vmatprep.subr.mxu1 %v13052_v7 }
0x1a3c   :  { %11627 = vmatpush3.msra.mxu1 %v13635_v25  ;;  %v5316_v25 = vld [vmem:[%s15051_s3] sm:$0xff] }
0x1a3d   :  { %11629 = vmatmul.mubr.msk.f32.vlgmr.msra.gmra.mrb[56].mxu1 %vm96_vm1, %v10507_v28  ;;  %12427 = vmatprep.subr.bf16.mxu1 %v13050_v5 }
0x1a3e   :  { %12429 = vmatpush3.bf16.msra.mxu1 %v13714_v31  ;;  %11646 = vmatprep.mubr.msk.f32.mxu1 %vm13051_vm0, %v13052_v7  ;;  %v5317_v31 = vld [vmem:[%s15051_s3 + $0x8] sm:$0xff]  ;;  %s10535_s3 = sld [smem:[#allocation4 + $0x1]] }
0x1a3f   :  { %12436 = vmatprep.subr.bf16.mxu1 %v13050_v5  ;;  %v12422_v8 = vpack.c.bf16 %v5317_v31, %v5316_v25 }
0x1a41   :  { %12423 = vmatpush3.bf16.msra.mxu0 %v12422_v8 }
0x1a42   :  { %12424 = vmatprep.subr.bf16.mxu0 %v13050_v5 }
0x1a44   :  { %p6560_p5 = scmp.gt.s32.totalorder %s10535_s3, 0 }
0x1a45   :  { %12426 = vmatpush3.bf16.msra.mxu0 %v13724_v40 }
0x1a46   :  { %12430 = vmatprep.subr.bf16.mxu0 %v13050_v5 }
0x1a4b   :  { %v4948_v57 = vpop.permute.xlu0 %4947 }
0x1a4c   :  { %v14013_v59 = vadd.f32 %v4948_v57, %v4940_v45 }
0x1a4e   :  { %12908 = vtanh.f32 %v14013_v59 }
0x1a58   :  { %v12909_v50 = vpop.eup %12908 }
0x1a59   :  { %4953 = vrot.lane.b32.xlu1 %v12909_v50, %s13056_s0 }
0x1acb   :  { %v4954_v34 = vpop.permute.xlu1 %4953 }
0x1acc   :  { %v14026_v63 = vmul.f32 %v12907_v37, %v4954_v34 }
0x1ace   :  { %5320 = vrot.lane.b32.xlu0 %v14026_v63, %s13057_s4 }
0x1afc   :  { %v5199_v27 = vpop.f32.mrb[56].mxu0 }
0x1afd   :  { %v11621_v0 = vpop.f32.mrb[57].mxu0 }
0x1b0a   :  { %v5126_v12 = vpop.f32.mrb[54].mxu1 }
0x1b0b   :  { %v5200_v11 = vadd.f32 %v5199_v27, %v5126_v12  ;;  %v11614_v14 = vpop.f32.mrb[55].mxu1 }
0x1b0d   :  { %v5210_v54 = vadd.f32 %v13739_v43, %v5200_v11 }
0x1b0f   :  { %12910 = vtanh.f32 %v5210_v54  ;;  %v10506_v23 = vmul.f32 -1.442695, %v5210_v54  ;;  %v5517_v54 = vld [vmem:[%s15012_s10 + $0x30] sm:$0xff] }
0x1b10   :  { %v5310_v19 = vpop.f32.mrb[56].mxu1 }
0x1b11   :  { %v11630_v36 = vpop.f32.mrb[57].mxu1  ;;  %11647 = vmatmul.mubr.msk.f32.vlgmr.msra.gmra.mrb[58].mxu1 %vm250_vm4, %v5310_v19  ;;  %12912 = vpow2.f32 %v10506_v23 }
0x1b12   :  { %11668 = vmatprep.mubr.msk.f32.mxu1 %vm13051_vm0, %v13052_v7  ;;  %v5518_v36 = vld [vmem:[%s15012_s10 + $0x38] sm:$0xff] }
0x1b19   :  { %v12911_v40 = vpop.eup %12910 }
0x1b1a   :  { %5220 = vrot.lane.b32.xlu1 %v12911_v40, %s13056_s0  ;;  %v12434_v40 = vpack.c.bf16 %v5518_v36, %v5517_v54  ;;  %v5989_v36 = vadd.s32 4294967288, %v13254_v17 }
0x1b1b   :  { %v12913_v43 = vpop.eup %12912 }
0x1b1c   :  { %v5214_v44 = vadd.f32 1.0, %v12913_v43 }
0x1b1e   :  { %12914 = vrcp.f32 %v5214_v44 }
0x1b28   :  { %v12915_v24 = vpop.eup %12914 }
0x1b29   :  { %v5218_v62 = vmul.f32 %v12915_v24, %v13977_v22  ;;  %v5512_v22 = vld [vmem:[%s15012_s10 + $0x8] sm:$0xff] }
0x1b2a   :  { %v12437_v55 = vpack.c.bf16 %v5512_v22, %v5511_v49 }
0x1b2c   :  { %12438 = vmatpush3.bf16.msra.mxu1 %v12437_v55  ;;  %v5674_v55 = vld [vmem:[%s15014_s12 + $0x8] sm:$0xff] }
0x1b2d   :  { %12439 = vmatprep.subr.bf16.mxu1 %v13050_v5 }
0x1b40   :  { %v5321_v10 = vpop.permute.xlu0 %5320 }
0x1b41   :  { %11640 = vmatmul.mubr.msk.f32.vlgmr.msra.gmra.mrb[58].mxu0 %vm176_vm6, %v5321_v10 }
0x1b42   :  { %11657 = vmatprep.mubr.msk.f32.mxu0 %vm13051_vm0, %v13052_v7 }
0x1b8c   :  { %v5221_v1 = vpop.permute.xlu1 %5220 }
0x1b8d   :  { %v5223_v26 = vmul.f32 %v12915_v24, %v5221_v1 }
0x1b8f   :  { %5225 = vrot.lane.b32.xlu1 %v5223_v26, %s13057_s4 }
0x1be4   :  { %v5463_v30 = vpop.f32.mrb[58].mxu1 }
0x1be5   :  { %v11648_v4 = vpop.f32.mrb[59].mxu1 }
0x1c01   :  { %v5226_v2 = vpop.permute.xlu1 %5225 }
0x1c02   :  { %v14040_v32 = vadd.f32 %v5226_v2, %v5218_v62 }
0x1c04   :  { %12916 = vtanh.f32 %v14040_v32 }
0x1c0e   :  { %v12917_v20 = vpop.eup %12916 }
0x1c0f   :  { %5231 = vrot.lane.b32.xlu1 %v12917_v20, %s13056_s0 }
0x1c14   :  { %v5390_v13 = vpop.f32.mrb[58].mxu0 }
0x1c15   :  { %v5464_v42 = vadd.f32 %v5463_v30, %v5390_v13  ;;  %v11641_v47 = vpop.f32.mrb[59].mxu0 }
0x1c17   :  { %v5474_v37 = vadd.f32 %v13772_v39, %v5464_v42  ;;  %v12440_v39 = vpack.c.bf16 %v5514_v18, %v5513_v35  ;;  %v5673_v35 = vld [vmem:[%s15014_s12] sm:$0xff] }
0x1c18   :  { %v12449_v18 = vpack.c.bf16 %v5674_v55, %v5673_v35 }
0x1c19   :  { %12918 = vtanh.f32 %v5474_v37  ;;  %12441 = vmatpush3.bf16.msra.mxu1 %v12440_v39  ;;  %v10512_v45 = vmul.f32 -1.442695, %v5474_v37  ;;  %v10520_v39 = vld [vmem:[#allocation5] ss:$0 sm:$0xff] }
0x1c1a   :  { %12448 = vmatprep.subr.bf16.mxu1 %v13050_v5 }
0x1c1b   :  { %12920 = vpow2.f32 %v10512_v45  ;;  %v5676_v45 = vld [vmem:[%s15014_s12 + $0x18] sm:$0xff] }
0x1c23   :  { %v12919_v28 = vpop.eup %12918 }
0x1c24   :  { %5484 = vrot.lane.b32.xlu0 %v12919_v28, %s13056_s0  ;;  %v5675_v28 = vld [vmem:[%s15014_s12 + $0x10] sm:$0xff] }
0x1c25   :  { %v12921_v25 = vpop.eup %12920 }
0x1c26   :  { %v5478_v31 = vadd.f32 1.0, %v12921_v25  ;;  %v5678_v25 = vld [vmem:[%s15014_s12 + $0x28] sm:$0xff] }
0x1c28   :  { %12922 = vrcp.f32 %v5478_v31 }
0x1c32   :  { %v12923_v8 = vpop.eup %12922 }
0x1c33   :  { %v5482_v12 = vmul.f32 %v12923_v8, %v14013_v59  ;;  %v5516_v59 = vld [vmem:[%s15012_s10 + $0x28] sm:$0xff] }
0x1c81   :  { %v5232_v57 = vpop.permute.xlu1 %5231 }
0x1c82   :  { %v5234_v50 = vmul.f32 %v12915_v24, %v5232_v57  ;;  %v12452_v57 = vpack.c.bf16 %v5676_v45, %v5675_v28  ;;  %v5893_v28 = vld [vmem:[%s15016_s14] sm:$0xff]  ;;  %v5894_v45 = vld [vmem:[%s15016_s14 + $0x8] sm:$0xff] }
0x1c84   :  { %5500 = vrot.lane.b32.xlu1 %v5234_v50, %s13057_s4  ;;  %v5677_v50 = vld [vmem:[%s15014_s12 + $0x20] sm:$0xff] }
0x1c85   :  { %v12443_v31 = vpack.c.bf16 %v5678_v25, %v5677_v50  ;;  %v5886_v50 = vld [vmem:[%s15055_s25] sm:$0x3]  ;;  %v14246_v25 = vld [vmem:[%s15016_s14 + $0x10] sm:$0xff] }
0x1c88   :  { %623 = vrot.lane.b32.xlu1 %v13391_v41, %s13056_s0 }
0x1c8c   :  { %1711 = vrot.lane.b32.xlu1 %v13531_v58, %s13056_s0 }
0x1c90   :  { %2795 = vrot.lane.b32.xlu1 %v13732_v33, %s13056_s0 }
0x1c94   :  { %3879 = vrot.lane.b32.xlu1 %v13884_v53, %s13056_s0 }
0x1c96   :  { %v5485_v34 = vpop.permute.xlu0 %5484 }
0x1c97   :  { %v5487_v27 = vmul.f32 %v12923_v8, %v5485_v34  ;;  %v5680_v34 = vld [vmem:[%s15014_s12 + $0x38] sm:$0xff] }
0x1c98   :  { %4963 = vrot.lane.b32.xlu1 %v14026_v63, %s13056_s0 }
0x1c99   :  { %5489 = vrot.lane.b32.xlu0 %v5487_v27, %s13057_s4 }
0x1cf6   :  { %v5501_v0 = vpop.permute.xlu1 %5500 }
0x1cf7   :  { %11669 = vmatmul.mubr.msk.f32.vlgmr.msra.gmra.mrb[60].mxu1 %vm176_vm6, %v5501_v0 }
0x1cf8   :  { %11690 = vmatprep.mubr.msk.f32.mxu1 %vm13051_vm0, %v13052_v7  ;;  %12450 = vmatpush3.bf16.msra.mxu1 %v12449_v18 }
0x1cf9   :  { %12451 = vmatprep.subr.bf16.mxu1 %v13050_v5 }
0x1cfa   :  { %v624_v41 = vpop.permute.xlu1 %623 }
0x1cfb   :  { %627 = vst.msk [vmem:[#allocation2 + $0x9] sm:$0x1] %vm626_vm2, %v624_v41 }
0x1cfc   :  { %632 = vst.msk [vmem:[#allocation2 + $0x18] sm:$0x2] %vm631_vm3, %v624_v41  ;;  %12453 = vmatpush3.bf16.msra.mxu1 %v12452_v57  ;;  %v14236_v57 = vpack.c.bf16 %v5894_v45, %v5893_v28  ;;  %v10518_v45 = vld [vmem:[%s15056_s27] ss:$0 sm:$0xff]  ;;  %s8482_s27 = scalar_select %p8480_p8, 1, 0 }
0x1cfd   :  { %5503 = vst.msk [vmem:[#allocation2 + $0x9] sm:$0x1] %vm620_vm7, %v5501_v0  ;;  %12457 = vmatprep.subr.bf16.mxu1 %v13050_v5 }
0x1cfe   :  { %5509 = vst.msk [vmem:[#allocation2 + $0x18] sm:$0x2] %vm629_vm8, %v5501_v0  ;;  %v1712_v58 = vpop.permute.xlu1 %1711 }
0x1cff   :  { %1714 = vst.msk [vmem:[#allocation2 + $0x7] sm:$0x1] %vm626_vm2, %v1712_v58 }
0x1d00   :  { %1716 = vst.msk [vmem:[#allocation2 + $0x16] sm:$0x2] %vm631_vm3, %v1712_v58 }
0x1d01   :  { %4419 = vst.msk [vmem:[#allocation2 + $0x7] sm:$0x1] %vm620_vm7, %v13929_v60 }
0x1d02   :  { %4425 = vst.msk [vmem:[#allocation2 + $0x16] sm:$0x2] %vm629_vm8, %v13929_v60  ;;  %v2796_v33 = vpop.permute.xlu1 %2795 }
0x1d03   :  { %2798 = vst.msk [vmem:[#allocation2 + $0x5] sm:$0x1] %vm626_vm2, %v2796_v33 }
0x1d04   :  { %2800 = vst.msk [vmem:[#allocation2 + $0x14] sm:$0x2] %vm631_vm3, %v2796_v33 }
0x1d05   :  { %3335 = vst.msk [vmem:[#allocation2 + $0x5] sm:$0x1] %vm620_vm7, %v13787_v51 }
0x1d06   :  { %3341 = vst.msk [vmem:[#allocation2 + $0x14] sm:$0x2] %vm629_vm8, %v13787_v51  ;;  %v3880_v53 = vpop.permute.xlu1 %3879  ;;  %v5515_v51 = vld [vmem:[%s15012_s10 + $0x20] sm:$0xff] }
0x1d07   :  { %3882 = vst.msk [vmem:[#allocation2 + $0x3] sm:$0x1] %vm626_vm2, %v3880_v53  ;;  %v12431_v19 = vpack.c.bf16 %v5516_v59, %v5515_v51 }
0x1d08   :  { %3884 = vst.msk [vmem:[#allocation2 + $0x12] sm:$0x2] %vm631_vm3, %v3880_v53 }
0x1d09   :  { %12432 = vmatpush3.bf16.msra.mxu0 %v12431_v19  ;;  %v5986_v19 = vshrl.u32 %v85_v16, 7 }
0x1d0a   :  { %v4964_v63 = vpop.permute.xlu1 %4963  ;;  %12433 = vmatprep.subr.bf16.mxu0 %v13050_v5 }
0x1d0b   :  { %4966 = vst.msk [vmem:[#allocation2 + $0x1] sm:$0x1] %vm626_vm2, %v4964_v63  ;;  %v5490_v60 = vpop.permute.xlu0 %5489 }
0x1d0c   :  { %4968 = vst.msk [vmem:[#allocation2 + $0x10] sm:$0x2] %vm631_vm3, %v4964_v63  ;;  %v14096_v11 = vadd.f32 %v5490_v60, %v5482_v12  ;;  %v10515_v63 = vld [vmem:[%s15013_s11] ss:$0 sm:$0xff] }
0x1d0d   :  { %12435 = vmatpush3.bf16.msra.mxu0 %v12434_v40 }
0x1d0e   :  { %12924 = vtanh.f32 %v14096_v11  ;;  %12442 = vmatprep.subr.bf16.mxu0 %v13050_v5 }
0x1d18   :  { %v12925_v14 = vpop.eup %12924 }
0x1d19   :  { %5495 = vrot.lane.b32.xlu0 %v12925_v14, %s13056_s0 }
0x1d8b   :  { %v5496_v10 = vpop.permute.xlu0 %5495 }
0x1d8c   :  { %v5498_v23 = vmul.f32 %v12923_v8, %v5496_v10  ;;  %v5679_v8 = vld [vmem:[%s15014_s12 + $0x30] sm:$0xff]  ;;  %v5987_v10 = vsub.s32 %v13254_v17, %v5986_v19 }
0x1d8d   :  { %v12446_v27 = vpack.c.bf16 %v5680_v34, %v5679_v8  ;;  %v6189_v8 = vld [vmem:[%s15020_s19] sm:$0xff]  ;;  %v6190_v34 = vld [vmem:[%s15020_s19 + $0x8] sm:$0xff] }
0x1d8e   :  { %5519 = vrot.lane.b32.xlu0 %v5498_v23, %s13057_s4 }
0x1d92   :  { %1169 = vrot.lane.b32.xlu0 %v13461_v48, %s13056_s0 }
0x1d96   :  { %2253 = vrot.lane.b32.xlu0 %v13609_v9, %s13056_s0 }
0x1d9a   :  { %3337 = vrot.lane.b32.xlu0 %v13813_v6, %s13056_s0  ;;  %v10519_v6 = vld [vmem:[%s15018_s16] ss:$0 sm:$0xff]  ;;  %s6562_s16 = scalar_select %p6560_p5, 1, 0 }
0x1d9e   :  { %4421 = vrot.lane.b32.xlu0 %v13951_v52, %s13056_s0 }
0x1da2   :  { %5505 = vrot.lane.b32.xlu0 %v5498_v23, %s13056_s0  ;;  %v5992_v23 = vsub.s32 %v5989_v36, %v5986_v19  ;;  %v6186_v19 = vld [vmem:[%s15019_s18 + $0x28] sm:$0xff] }
0x1dca   :  { %v14124_v43 = vpop.f32.mrb[60].mxu1 }
0x1dcb   :  { %v11670_v44 = vpop.f32.mrb[61].mxu1 }
0x1e00   :  { %v5520_v24 = vpop.permute.xlu0 %5519 }
0x1e01   :  { %11658 = vmatmul.mubr.msk.f32.vlgmr.msra.gmra.mrb[60].mxu0 %vm176_vm6, %v5520_v24 }
0x1e02   :  { %11679 = vmatprep.mubr.msk.f32.mxu0 %vm13051_vm0, %v13052_v7  ;;  %12444 = vmatpush3.bf16.msra.mxu0 %v12443_v31 }
0x1e03   :  { %12445 = vmatprep.subr.bf16.mxu0 %v13050_v5 }
0x1e04   :  { %v1170_v48 = vpop.permute.xlu0 %1169 }
0x1e05   :  { %1172 = vst.msk [vmem:[#allocation2 + $0x8] sm:$0x1] %vm626_vm2, %v1170_v48 }
0x1e06   :  { %1174 = vst.msk [vmem:[#allocation2 + $0x17] sm:$0x2] %vm631_vm3, %v1170_v48  ;;  %12447 = vmatpush3.bf16.msra.mxu0 %v12446_v27 }
0x1e07   :  { %4961 = vst.msk [vmem:[#allocation2 + $0x8] sm:$0x1] %vm620_vm7, %v13995_v21  ;;  %12454 = vmatprep.subr.bf16.mxu0 %v13050_v5 }
0x1e08   :  { %4967 = vst.msk [vmem:[#allocation2 + $0x17] sm:$0x2] %vm629_vm8, %v13995_v21  ;;  %v2254_v9 = vpop.permute.xlu0 %2253 }
0x1e09   :  { %2256 = vst.msk [vmem:[#allocation2 + $0x6] sm:$0x1] %vm626_vm2, %v2254_v9 }
0x1e0a   :  { %2258 = vst.msk [vmem:[#allocation2 + $0x15] sm:$0x2] %vm631_vm3, %v2254_v9 }
0x1e0b   :  { %3877 = vst.msk [vmem:[#allocation2 + $0x6] sm:$0x1] %vm620_vm7, %v13858_v3  ;;  %vm5856_vm7 = vcmask 523264  }
0x1e0c   :  { %3883 = vst.msk [vmem:[#allocation2 + $0x15] sm:$0x2] %vm629_vm8, %v13858_v3  ;;  %v3338_v52 = vpop.permute.xlu0 %3337  ;;  %vm6026_vm8 = vcmask 1041408  }
0x1e0d   :  { %3340 = vst.msk [vmem:[#allocation2 + $0x4] sm:$0x1] %vm626_vm2, %v3338_v52  ;;  %vm14192_vm10 = vmpackc.low %vm6026_vm8, %vm13065_vm9 }
0x1e0e   :  { %3342 = vst.msk [vmem:[#allocation2 + $0x13] sm:$0x2] %vm631_vm3, %v3338_v52  ;;  %v5840_v21 = vld [vmem:[#allocation2 + $0x8] sm:$0x3] }
0x1e0f   :  { %v5853_v1 = vmul.f32 %v10519_v6, %v5840_v21  ;;  %v5842_v2 = vld [vmem:[#allocation2 + $0x18] sm:$0x3] }
0x1e10   :  { %v4422_v26 = vpop.permute.xlu0 %4421  ;;  %v5855_v49 = vmul.f32 %v10519_v6, %v5842_v2 }
0x1e11   :  { %v5861_v30 = vsel %vm5860_vm5, %v5853_v1, 0.0  ;;  %4424 = vst.msk [vmem:[#allocation2 + $0x2] sm:$0x1] %vm626_vm2, %v4422_v26 }
0x1e12   :  { %4426 = vst.msk [vmem:[#allocation2 + $0x11] sm:$0x2] %vm631_vm3, %v4422_v26  ;;  %5862 = vadd.xlane.f32.xlu0 %v5861_v30  ;;  %v5867_v22 = vsel %vm5860_vm5, %v5855_v49, 0.0  ;;  %vm5884_vm5 = vcmask 189440  }
0x1e13   :  { %5885 = vst.msk [vmem:[#allocation6] sm:$0x3] %vm5884_vm5, %v13052_v7 }
0x1e14   :  { %v5506_v3 = vpop.permute.xlu0 %5505 }
0x1e15   :  { %5508 = vst.msk [vmem:[#allocation2] sm:$0x1] %vm626_vm2, %v5506_v3  ;;  %vm6022_vm2 = vcmask 80896  }
0x1e16   :  { %5510 = vst.msk [vmem:[#allocation2 + $0xf] sm:$0x2] %vm631_vm3, %v5506_v3  ;;  %vm6179_vm3 = vcmask 1040384  }
0x1e1c   :  { %v5839_v62 = vld [vmem:[#allocation2] sm:$0xff] }
0x1e1d   :  { %v14151_v4 = vld [vmem:[#allocation2 + $0x10] sm:$0xff]  ;;  %v5852_v13 = vmul.f32 %v10519_v6, %v5839_v62  ;;  %v14154_v42 = vpack.c.bf16 %v5840_v21, %v5839_v62 }
0x1e1e   :  { %v5854_v20 = vmul.f32 %v10519_v6, %v14151_v4 }
0x1e1f   :  { %v5857_v37 = vsel %vm5856_vm7, %v5852_v13, 0.0 }
0x1e20   :  { %v5864_v47 = vsel %vm5856_vm7, %v5854_v20, 0.0  ;;  %5858 = vadd.xlane.f32.xlu1 %v5857_v37 }
0x1e21   :  { %5865 = vadd.xlane.f32.xlu0 %v5864_v47 }
0x1e24   :  { %5868 = vadd.xlane.f32.xlu1 %v5867_v22 }
0x1e35   :  { %5877 = vperm.xlu1 %12757, %v10520_v39  }
0x1e39   :  { %5757 = vrot.lane.b32.xlu1 %v14040_v32, %s13064_s30 }
0x1e3a   :  { %12761 = vset.pattern.permute.xlu1 %v13060_v46 }
0x1e3d   :  { %5682 = vrot.lane.b32.xlu1 %v14096_v11, %s13064_s30  ;;  %v14213_v11 = vld [vmem:[%s15017_s15] ss:$0 sm:$0xff] }
0x1e9f   :  { %v5863_v54 = vpop.xlane.xlu0 %5862 }
0x1ead   :  { %v5859_v32 = vpop.xlane.xlu1 %5858 }
0x1eae   :  { %v5866_v40 = vpop.xlane.xlu0 %5865 }
0x1eb1   :  { %v5869_v0 = vpop.xlane.xlu1 %5868 }
0x1eb5   :  { %v5878_v41 = vpop.permute.xlu1 %5877 }
0x1eb6   :  { %v5881_v44 = vadd.f32 %v5878_v41, %v5863_v54  ;;  %v5882_v24 = vadd.f32 %v5878_v41, %v5866_v40  ;;  %v5883_v48 = vadd.f32 %v5878_v41, %v5869_v0  ;;  %v6185_v54 = vld [vmem:[%s15019_s18 + $0x20] sm:$0xff]  ;;  %v6187_v40 = vld [vmem:[%s15019_s18 + $0x30] sm:$0xff] }
0x1eb7   :  { %v14305_v36 = vpack.c.bf16 %v6186_v19, %v6185_v54  ;;  %v6454_v54 = vld [vmem:[%s15023_s22 + $0x18] sm:$0xff] }
0x1eb8   :  { %v5993_v6 = vrot.slane %v5881_v44, %v5992_v23  ;;  %v5999_v52 = vrot.slane %v5882_v24, %v5987_v10  ;;  %v6003_v21 = vrot.slane %v5883_v48, %v5992_v23  ;;  %v6338_v44 = vld [vmem:[%s15021_s20 + $0x8] sm:$0xff]  ;;  %v6339_v48 = vld [vmem:[%s15021_s20 + $0x10] sm:$0xff] }
0x1eb9   :  { %v5758_v33 = vpop.permute.xlu1 %5757 }
0x1eba   :  { %11691 = vmatmul.mubr.msk.f32.vlgmr.msra.gmra.mrb[62].mxu1 %vm176_vm6, %v5758_v33  ;;  %v6004_v26 = vsel %vm5994_vm12, %v6003_v21, %v5999_v52  ;;  %v5844_v33 = vld [vmem:[#allocation2 + $0x18] sm:$0x3] }
0x1ebb   :  { %12460 = vmatpush3.bf16.msk.msra.mxu1 %vm14192_vm10, %v14154_v42  ;;  %11706 = vmatprep.mubr.msk.f32.mxu1 %vm13051_vm0, %v13052_v7 }
0x1ebc   :  { %12461 = vmatprep.subr.bf16.mxu1 %v13050_v5 }
0x1ebd   :  { %v5683_v46 = vpop.permute.xlu1 %5682 }
0x1ebe   :  { %11680 = vmatmul.mubr.msk.f32.vlgmr.msra.gmra.mrb[62].mxu0 %vm176_vm6, %v5683_v46  ;;  %v6181_v46 = vld [vmem:[%s15019_s18] sm:$0xff] }
0x1ebf   :  { %11699 = vmatprep.mubr.msk.f32.mxu0 %vm13051_vm0, %v13052_v7  ;;  %12456 = vmatpush3.bf16.msra.mxu0 %v14236_v57 }
0x1ec0   :  { %11697 = vmatprep.subr.mxu0 %v13052_v7 }
0x1ec3   :  { %11698 = vmatpush3.msra.mxu0 %v14246_v25 }
0x1ec4   :  { %12465 = vmatprep.subr.bf16.mxu0 %v13050_v5 }
0x1ed4   :  { %v5589_v53 = vpop.f32.mrb[60].mxu0 }
0x1ed5   :  { %v5662_v12 = vadd.f32 %v14124_v43, %v5589_v53  ;;  %v11659_v60 = vpop.f32.mrb[61].mxu0  ;;  %v5880_v43 = vadd.f32 %v5878_v41, %v5859_v32  ;;  %v14257_v32 = vpack.c.bf16 %v6190_v34, %v6189_v8  ;;  %v6182_v53 = vld [vmem:[%s15019_s18 + $0x8] sm:$0xff] }
0x1ed7   :  { %v14215_v14 = vadd.f32 %v10515_v63, %v5662_v12  ;;  %v5988_v9 = vrot.slane %v5880_v43, %v5987_v10  ;;  %v14272_v63 = vpack.c.bf16 %v5844_v33, %v14151_v4  ;;  %v14281_v12 = vpack.c.bf16 %v6182_v53, %v6181_v46  ;;  %v6183_v4 = vld [vmem:[%s15019_s18 + $0x10] sm:$0xff]  ;;  %v6188_v10 = vld [vmem:[%s15019_s18 + $0x38] sm:$0xff]  ;;  %v6337_v43 = vld [vmem:[%s15021_s20] sm:$0xff] }
0x1ed8   :  { %v14315_v23 = vpack.c.bf16 %v6188_v10, %v6187_v40  ;;  %v14325_v24 = vpack.c.bf16 %v6338_v44, %v6337_v43 }
0x1ed9   :  { %v5976_v51 = vmul.f32 %v14213_v11, %v14215_v14  ;;  %v5995_v1 = vsel %vm5994_vm12, %v5993_v6, %v5988_v9  ;;  %v6340_v9 = vld [vmem:[%s15021_s20 + $0x18] sm:$0xff] }
0x1eda   :  { %v14223_v16 = vsel %vm6005_vm13, %v6004_v26, %v5995_v1  ;;  %v14335_v21 = vpack.c.bf16 %v6340_v9, %v6339_v48 }
0x1edb   :  { %v5978_v59 = vsel %vm5977_vm11, %v5976_v51, 0.0  ;;  %v6184_v51 = vld [vmem:[%s15019_s18 + $0x18] sm:$0xff] }
0x1edc   :  { %5979 = vadd.xlane.f32.xlu0 %v5978_v59  ;;  %v14295_v59 = vpack.c.bf16 %v6184_v51, %v6183_v4  ;;  %v6453_v4 = vld [vmem:[%s15023_s22 + $0x10] sm:$0xff] }
0x1edd   :  { %v14385_v19 = vpack.c.bf16 %v6454_v54, %v6453_v4 }
0x1f69   :  { %v5980_v30 = vpop.xlane.xlu0 %5979 }
0x1f6a   :  { %v6008_v3 = vadd.f32 %v14223_v16, %v5980_v30 }
0x1f6c   :  { %v6009_v62 = vmax.f32 %v6008_v3, 0.0 }
0x1f6e   :  { %v6011_v2 = vsel %vm6010_vm14, %v6009_v62, -inf }
0x1f6f   :  { %6012 = vmax.xlane.f32.xlu0 %v6011_v2 }
0x1f8d   :  { %v5827_v20 = vpop.f32.mrb[62].mxu1 }
0x1f8e   :  { %v11692_v13 = vpop.f32.mrb[63].mxu1 }
0x1f91   :  { %v5752_v47 = vpop.f32.mrb[62].mxu0 }
0x1f92   :  { %v14227_v37 = vadd.f32 %v5827_v20, %v5752_v47  ;;  %v11681_v49 = vpop.f32.mrb[63].mxu0 }
0x1ffc   :  { %v6013_v22 = vpop.xlane.xlu0 %6012 }
0x1ffd   :  { %v6014_v35 = vsub.f32 %v6009_v62, %v6013_v22 }
0x1fff   :  { %v6015_v55 = vmul.f32 1.442695, %v6014_v35 }
0x2001   :  { %12926 = vpow2.f32 %v6015_v55  ;;  %v14357_v55 = vld [vmem:[%s15022_s21] ss:$0 sm:$0xff] }
0x200b   :  { %v12927_v18 = vpop.eup %12926 }
0x200c   :  { %v6017_v39 = vsel %vm6010_vm14, %v12927_v18, 0.0 }
0x200d   :  { %6018 = vadd.xlane.f32.xlu0 %v6017_v39 }
0x2023   :  { %5888 = vperm.xlu0 %12758, %v5886_v50   ;;  %v5838_v50 = vadd.f32 %v10518_v45, %v14227_v37  ;;  %v6451_v37 = vld [vmem:[%s15023_s22] sm:$0xff] }
0x2027   :  { %12759 = vset.pattern.permute.xlu0 %v13054_v29 }
0x209a   :  { %v6019_v31 = vpop.xlane.xlu0 %6018 }
0x209b   :  { %12928 = vrcp.f32 %v6019_v31 }
0x20a2   :  { %v5889_v27 = vpop.permute.xlu0 %5888 }
0x20a3   :  { %vm5890_vm15 = vcmp.eq.s32.totalorder %v13254_v17, %v5889_v27 }
0x20a4   :  { %v10521_v0 = vsel %vm5890_vm15, 1.0, %v13052_v7 }
0x20a5   :  { %v12929_v41 = vpop.eup %12928  ;;  %11700 = vmatmul.mubr.msk.f32.vlgmr.msra.gmra.mrb[64].mxu0 %vm96_vm1, %v10521_v0 }
0x20a6   :  { %v6021_v29 = vmul.f32 %v12929_v41, %v12927_v18  ;;  %12467 = vmatpush3.bf16.msra.mxu0 %v14257_v32  ;;  %11720 = vmatprep.mubr.msk.f32.mxu0 %vm13051_vm0, %v13052_v7 }
0x20a7   :  { %12480 = vmatprep.subr.bf16.mxu0 %v13050_v5 }
0x20a8   :  { %11707 = vmatmul.mubr.msk.f32.vlgmr.msra.gmra.mrb[64].mxu1 %vm6022_vm2, %v6021_v29  ;;  %v6100_v60 = vrot.slane %v6021_v29, 1 }
0x20a9   :  { %12464 = vmatpush3.bf16.msk.msra.mxu1 %vm14192_vm10, %v14272_v63  ;;  %11713 = vmatprep.mubr.msk.f32.mxu1 %vm13051_vm0, %v13052_v7 }
0x20aa   :  { %12468 = vmatprep.subr.bf16.mxu1 %v13050_v5 }
0x20ac   :  { %11714 = vmatmul.mubr.msk.f32.vlgmr.msra.gmra.mrb[66].mxu1 %vm6022_vm2, %v6100_v60  ;;  %v6452_v60 = vld [vmem:[%s15023_s22 + $0x8] sm:$0xff] }
0x20ad   :  { %12470 = vmatpush3.bf16.msra.mxu1 %v14281_v12  ;;  %11739 = vmatprep.mubr.msk.f32.mxu1 %vm13051_vm0, %v13052_v7  ;;  %v14379_v51 = vpack.c.bf16 %v6452_v60, %v6451_v37  ;;  %v6563_v60 = vstv %s6562_s16 }
0x20ae   :  { %12471 = vmatprep.subr.bf16.mxu1 %v13050_v5  ;;  %vm6564_vm12 = vcmp.eq.s32.totalorder %v6563_v60, 1 }
0x20b1   :  { %12473 = vmatpush3.bf16.msra.mxu1 %v14295_v59 }
0x20b2   :  { %12474 = vmatprep.subr.bf16.mxu1 %v13050_v5 }
0x20b5   :  { %12476 = vmatpush3.bf16.msra.mxu1 %v14305_v36 }
0x20b6   :  { %12477 = vmatprep.subr.bf16.mxu1 %v13050_v5 }
0x20b9   :  { %12479 = vmatpush3.bf16.msra.mxu1 %v14315_v23 }
0x20ba   :  { %12492 = vmatprep.subr.bf16.mxu1 %v13050_v5 }
0x2178   :  { %v5965_v6 = vpop.f32.mrb[64].mxu0 }
0x2179   :  { %11721 = vmatmul.mubr.msk.f32.vlgmr.msra.gmra.mrb[66].mxu0 %vm250_vm4, %v5965_v6  ;;  %v11701_v52 = vpop.f32.mrb[65].mxu0 }
0x217a   :  { %12482 = vmatpush3.bf16.msra.mxu0 %v14325_v24  ;;  %11750 = vmatprep.mubr.msk.f32.mxu0 %vm13051_vm0, %v13052_v7 }
0x217b   :  { %v6096_v1 = vpop.f32.mrb[64].mxu1  ;;  %12483 = vmatprep.subr.bf16.mxu0 %v13050_v5 }
0x217c   :  { %v11708_v26 = vpop.f32.mrb[65].mxu1 }
0x217e   :  { %12485 = vmatpush3.bf16.msra.mxu0 %v14335_v21 }
0x217f   :  { %v6172_v30 = vpop.f32.mrb[66].mxu1  ;;  %12486 = vmatprep.subr.bf16.mxu0 %v13050_v5 }
0x2180   :  { %v6177_v3 = vrot.slane %v6172_v30, 7  ;;  %v11715_v62 = vpop.f32.mrb[67].mxu1 }
0x2181   :  { %11751 = vmatmul.mubr.msk.f32.vlgmr.msra.gmra.mrb[68].mxu0 %vm176_vm6, %v14215_v14 }
0x2182   :  { %v6180_v2 = vsel %vm6179_vm3, %v6096_v1, %v6177_v3  ;;  %11761 = vmatprep.mubr.msk.f32.mxu0 %vm13051_vm0, %v13052_v7  ;;  %12488 = vmatpush3.bf16.msra.mxu0 %v14379_v51  ;;  %v14411_v1 = vld [vmem:[%s15024_s23] ss:$0 sm:$0xff] }
0x2183   :  { %11740 = vmatmul.mubr.msk.f32.vlgmr.msra.gmra.mrb[68].mxu1 %vm5856_vm7, %v6180_v2  ;;  %12489 = vmatprep.subr.bf16.mxu0 %v13050_v5 }
0x2184   :  { %12494 = vmatpush3.bf16.msra.mxu1 %v14236_v57  ;;  %11770 = vmatprep.mubr.msk.f32.mxu1 %vm13051_vm0, %v13052_v7 }
0x2185   :  { %11768 = vmatprep.subr.mxu1 %v13052_v7 }
0x2186   :  { %12491 = vmatpush3.bf16.msra.mxu0 %v14385_v19 }
0x2187   :  { %12495 = vmatprep.subr.bf16.mxu0 %v13050_v5 }
0x2188   :  { %11769 = vmatpush3.msra.mxu1 %v14246_v25 }
0x2189   :  { %12503 = vmatprep.subr.bf16.mxu1 %v13050_v5 }
0x224c   :  { %v6260_v20 = vpop.f32.mrb[66].mxu0 }
0x224d   :  { %v11722_v14 = vpop.f32.mrb[67].mxu0 }
0x2254   :  { %v6410_v13 = vpop.f32.mrb[68].mxu0 }
0x2255   :  { %v11752_v47 = vpop.f32.mrb[69].mxu0 }
0x2256   :  { %v6333_v49 = vpop.f32.mrb[68].mxu1 }
0x2257   :  { %v6334_v22 = vadd.f32 %v6333_v49, %v6260_v20  ;;  %v11741_v35 = vpop.f32.mrb[69].mxu1 }
0x2259   :  { %v6414_v18 = vadd.f32 %v6410_v13, %v6334_v22 }
0x225b   :  { %v6422_v39 = vadd.f32 %v14357_v55, %v6414_v18 }
0x225d   :  { %12930 = vtanh.f32 %v6422_v39  ;;  %v10532_v31 = vmul.f32 -1.442695, %v6422_v39 }
0x225f   :  { %12932 = vpow2.f32 %v10532_v31 }
0x2267   :  { %v12931_v28 = vpop.eup %12930 }
0x2268   :  { %6436 = vrot.lane.b32.xlu1 %v12931_v28, %s13056_s0 }
0x2269   :  { %v12933_v8 = vpop.eup %12932 }
0x226a   :  { %v6426_v34 = vadd.f32 1.0, %v12933_v8 }
0x226c   :  { %6431 = vrot.lane.b32.xlu1 %v5838_v50, %s13057_s4  ;;  %12934 = vrcp.f32 %v6426_v34 }
0x2276   :  { %v12935_v27 = vpop.eup %12934 }
0x22da   :  { %v6437_v0 = vpop.permute.xlu1 %6436 }
0x22db   :  { %v6439_v41 = vmul.f32 %v12935_v27, %v6437_v0 }
0x22dd   :  { %6441 = vrot.lane.b32.xlu1 %v6439_v41, %s13057_s4 }
0x22de   :  { %v6432_v29 = vpop.permute.xlu1 %6431 }
0x22df   :  { %v6434_v33 = vmul.f32 %v12935_v27, %v6432_v29 }
0x234f   :  { %v6442_v46 = vpop.permute.xlu1 %6441 }
0x2350   :  { %v14367_v53 = vadd.f32 %v6442_v46, %v6434_v33 }
0x2352   :  { %12936 = vtanh.f32 %v14367_v53 }
0x235c   :  { %v12937_v40 = vpop.eup %12936 }
0x235d   :  { %6447 = vrot.lane.b32.xlu1 %v12937_v40, %s13056_s0 }
0x23cf   :  { %v6448_v10 = vpop.permute.xlu1 %6447 }
0x23d0   :  { %v6450_v43 = vmul.f32 %v12935_v27, %v6448_v10  ;;  %v6561_v10 = vld [vmem:[%s15055_s25] sm:$0x3] }
0x23d2   :  { %6463 = vrot.lane.b32.xlu1 %v6450_v43, %s13057_s4 }
0x23d6   :  { %6654 = vrot.lane.b32.xlu1 %v14213_v11, %s13064_s30 }
0x2444   :  { %v14396_v44 = vpop.permute.xlu1 %6463 }
0x2445   :  { %11762 = vmatmul.mubr.msk.f32.vlgmr.msra.gmra.mrb[70].mxu0 %vm176_vm6, %v14396_v44 }
0x2446   :  { %12498 = vmatpush3.bf16.msk.msra.mxu0 %vm14192_vm10, %v14154_v42  ;;  %11777 = vmatprep.mubr.msk.f32.mxu0 %vm13051_vm0, %v13052_v7 }
0x2447   :  { %12499 = vmatprep.subr.bf16.mxu0 %v13050_v5 }
0x2448   :  { %v6655_v48 = vpop.permute.xlu1 %6654 }
0x2449   :  { %v6657_v9 = vmul.f32 %v6655_v48, %v6450_v43 }
0x244b   :  { %6659 = vrot.lane.b32.xlu1 %v6657_v9, %s13057_s4 }
0x24bd   :  { %v6660_v6 = vpop.permute.xlu1 %6659 }
0x24be   :  { %v6662_v52 = vsel %vm5977_vm11, %v6660_v6, 0.0 }
0x24bf   :  { %6663 = vadd.xlane.f32.xlu0 %v6662_v52 }
0x2518   :  { %v6533_v26 = vpop.f32.mrb[70].mxu0 }
0x2519   :  { %v6534_v30 = vadd.f32 %v14411_v1, %v6533_v26  ;;  %v11763_v3 = vpop.f32.mrb[71].mxu0 }
0x251b   :  { %6538 = vst.msk [vmem:[#allocation6 + $0x2] sm:$0x3] %vm5884_vm5, %v6534_v30  ;;  %v6539_v62 = vsel %vm5884_vm5, %v6534_v30, -inf }
0x251c   :  { %6540 = vmax.xlane.f32.xlu1 %v6539_v62 }
0x254c   :  { %v6664_v2 = vpop.xlane.xlu0 %6663 }
0x254d   :  { %v6665_v20 = vadd.f32 %v6664_v2, %v14223_v16 }
0x254f   :  { %v6666_v14 = vmax.f32 %v6665_v20, 0.0 }
0x2551   :  { %v6667_v13 = vsel %vm6010_vm14, %v6666_v14, -inf }
0x2552   :  { %6668 = vmax.xlane.f32.xlu1 %v6667_v13 }
0x25a9   :  { %v6541_v47 = vpop.xlane.xlu1 %6540 }
0x25aa   :  { %vm6542_vm8 = vcmp.eq.f32.partialorder %v6534_v30, %v6541_v47 }
0x25ab   :  { %v6543_v49 = vsel %vm6542_vm8, %v13254_v17, 24 }
0x25ac   :  { %v6544_v22 = vsel %vm5884_vm5, %v6543_v49, 2147483647 }
0x25ad   :  { %v6546_v35 = vshra.s32 %v6544_v22, 16  ;;  %v6545_v8 = vand.u32 65535, %v6544_v22 }
0x25af   :  { %v6548_v18 = vcvt.s32.f32 %v6546_v35  ;;  %v6547_v27 = vcvt.s32.f32 %v6545_v8 }
0x25b1   :  { %6549 = vmin.xlane.f32.xlu0 %v6548_v18 }
0x25df   :  { %v6669_v39 = vpop.xlane.xlu1 %6668 }
0x25e0   :  { %v6670_v28 = vsub.f32 %v6666_v14, %v6669_v39 }
0x25e2   :  { %v6671_v45 = vmul.f32 1.442695, %v6670_v28 }
0x25e4   :  { %12938 = vpow2.f32 %v6671_v45 }
0x25ee   :  { %v12939_v50 = vpop.eup %12938 }
0x25ef   :  { %v6673_v31 = vsel %vm6010_vm14, %v12939_v50, 0.0 }
0x25f0   :  { %6674 = vadd.xlane.f32.xlu1 %v6673_v31 }
0x263e   :  { %v6550_v34 = vpop.xlane.xlu0 %6549 }
0x263f   :  { %vm6551_vm9 = vcmp.eq.f32.partialorder %v6548_v18, %v6550_v34  ;;  %v6556_v37 = vcvt.f32.s32 %v6550_v34 }
0x2640   :  { %v6552_v0 = vsel %vm6551_vm9, %v6547_v27, inf }
0x2641   :  { %6553 = vmin.xlane.f32.xlu0 %v6552_v0  ;;  %v6557_v54 = vshll.u32 %v6556_v37, 16 }
0x267d   :  { %v6675_v41 = vpop.xlane.xlu1 %6674 }
0x267e   :  { %12940 = vrcp.f32 %v6675_v41 }
0x2688   :  { %v12941_v29 = vpop.eup %12940 }
0x2689   :  { %v6677_v33 = vmul.f32 %v12941_v29, %v12939_v50 }
0x268b   :  { %11778 = vmatmul.mubr.msk.f32.vlgmr.msra.gmra.mrb[72].mxu0 %vm6022_vm2, %v6677_v33  ;;  %v6751_v46 = vrot.slane %v6677_v33, 1 }
0x268c   :  { %12502 = vmatpush3.bf16.msk.msra.mxu0 %vm14192_vm10, %v14272_v63  ;;  %11784 = vmatprep.mubr.msk.f32.mxu0 %vm13051_vm0, %v13052_v7 }
0x268d   :  { %12506 = vmatprep.subr.bf16.mxu0 %v13050_v5 }
0x268f   :  { %11785 = vmatmul.mubr.msk.f32.vlgmr.msra.gmra.mrb[74].mxu0 %vm6022_vm2, %v6751_v46 }
0x2690   :  { %12508 = vmatpush3.bf16.msra.mxu0 %v14281_v12  ;;  %11810 = vmatprep.mubr.msk.f32.mxu0 %vm13051_vm0, %v13052_v7 }
0x2691   :  { %12509 = vmatprep.subr.bf16.mxu0 %v13050_v5 }
0x2694   :  { %12511 = vmatpush3.bf16.msra.mxu0 %v14295_v59 }
0x2695   :  { %12512 = vmatprep.subr.bf16.mxu0 %v13050_v5 }
0x2698   :  { %12514 = vmatpush3.bf16.msra.mxu0 %v14305_v36 }
0x2699   :  { %12515 = vmatprep.subr.bf16.mxu0 %v13050_v5 }
0x269c   :  { %12517 = vmatpush3.bf16.msra.mxu0 %v14315_v23 }
0x269d   :  { %12530 = vmatprep.subr.bf16.mxu0 %v13050_v5 }
0x26ce   :  { %v6554_v4 = vpop.xlane.xlu0 %6553 }
0x26cf   :  { %v6555_v40 = vcvt.f32.s32 %v6554_v4 }
0x26d1   :  { %v6558_v43 = vadd.s32 %v6557_v54, %v6555_v40 }
0x26d3   :  { %v6565_v48 = vsel %vm6564_vm12, %v6561_v10, %v6558_v43 }
0x26d4   :  { %6567 = vperm.xlu0 %12759, %v6565_v48  }
0x26d8   :  { %12760 = vset.pattern.permute.xlu0 %v13058_v38 }
0x2753   :  { %v6568_v9 = vpop.permute.xlu0 %6567 }
0x2754   :  { %vm6569_vm13 = vcmp.eq.s32.totalorder %v13254_v17, %v6568_v9 }
0x2755   :  { %v10536_v6 = vsel %vm6569_vm13, 1.0, %v13052_v7 }
0x2756   :  { %11771 = vmatmul.mubr.msk.f32.vlgmr.msra.gmra.mrb[70].mxu1 %vm96_vm1, %v10536_v6 }
0x2757   :  { %12505 = vmatpush3.bf16.msra.mxu1 %v14257_v32  ;;  %11791 = vmatprep.mubr.msk.f32.mxu1 %vm13051_vm0, %v13052_v7 }
0x2758   :  { %12518 = vmatprep.subr.bf16.mxu1 %v13050_v5 }
0x275e   :  { %v6747_v52 = vpop.f32.mrb[72].mxu0 }
0x275f   :  { %v11779_v26 = vpop.f32.mrb[73].mxu0 }
0x2762   :  { %v6820_v30 = vpop.f32.mrb[74].mxu0 }
0x2763   :  { %v6825_v3 = vrot.slane %v6820_v30, 7  ;;  %v11786_v62 = vpop.f32.mrb[75].mxu0 }
0x2765   :  { %v6827_v38 = vsel %vm6179_vm3, %v6747_v52, %v6825_v3 }
0x2766   :  { %11811 = vmatmul.mubr.msk.f32.vlgmr.msra.gmra.mrb[76].mxu0 %vm5856_vm7, %v6827_v38 }
0x2767   :  { %12532 = vmatpush3.bf16.msra.mxu0 %v14236_v57  ;;  %11841 = vmatprep.mubr.msk.f32.mxu0 %vm13051_vm0, %v13052_v7 }
0x2768   :  { %11839 = vmatprep.subr.mxu0 %v13052_v7 }
0x276b   :  { %11840 = vmatpush3.msra.mxu0 %v14246_v25 }
0x276c   :  { %12541 = vmatprep.subr.bf16.mxu0 %v13050_v5 }
0x2829   :  { %v6644_v2 = vpop.f32.mrb[70].mxu1 }
0x282a   :  { %v11772_v20 = vpop.f32.mrb[71].mxu1  ;;  %11792 = vmatmul.mubr.msk.f32.vlgmr.msra.gmra.mrb[72].mxu1 %vm250_vm4, %v6644_v2 }
0x282b   :  { %12520 = vmatpush3.bf16.msra.mxu1 %v14325_v24  ;;  %11821 = vmatprep.mubr.msk.f32.mxu1 %vm13051_vm0, %v13052_v7 }
0x282c   :  { %12521 = vmatprep.subr.bf16.mxu1 %v13050_v5 }
0x282f   :  { %12523 = vmatpush3.bf16.msra.mxu1 %v14335_v21 }
0x2830   :  { %12524 = vmatprep.subr.bf16.mxu1 %v13050_v5 }
0x2832   :  { %11822 = vmatmul.mubr.msk.f32.vlgmr.msra.gmra.mrb[74].mxu1 %vm176_vm6, %v14396_v44 }
0x2833   :  { %12526 = vmatpush3.bf16.msra.mxu1 %v14379_v51  ;;  %11832 = vmatprep.mubr.msk.f32.mxu1 %vm13051_vm0, %v13052_v7 }
0x2834   :  { %12527 = vmatprep.subr.bf16.mxu1 %v13050_v5 }
0x2837   :  { %12529 = vmatpush3.bf16.msra.mxu1 %v14385_v19 }
0x2838   :  { %12533 = vmatprep.subr.bf16.mxu1 %v13050_v5 }
0x2839   :  { %v6980_v57 = vpop.f32.mrb[76].mxu0 }
0x283a   :  { %v11812_v25 = vpop.f32.mrb[77].mxu0 }
0x28fd   :  { %v6907_v14 = vpop.f32.mrb[72].mxu1 }
0x28fe   :  { %v6981_v13 = vadd.f32 %v6980_v57, %v6907_v14  ;;  %v11793_v47 = vpop.f32.mrb[73].mxu1 }
0x2905   :  { %v7054_v49 = vpop.f32.mrb[74].mxu1 }
0x2906   :  { %v7058_v22 = vadd.f32 %v7054_v49, %v6981_v13  ;;  %v11823_v35 = vpop.f32.mrb[75].mxu1 }
0x2908   :  { %v7066_v44 = vadd.f32 %v14357_v55, %v7058_v22 }
0x290a   :  { %12942 = vtanh.f32 %v7066_v44  ;;  %v10547_v39 = vmul.f32 -1.442695, %v7066_v44 }
0x290c   :  { %12944 = vpow2.f32 %v10547_v39 }
0x2914   :  { %v12943_v18 = vpop.eup %12942 }
0x2915   :  { %7076 = vrot.lane.b32.xlu1 %v12943_v18, %s13056_s0 }
0x2916   :  { %v12945_v28 = vpop.eup %12944 }
0x2917   :  { %v7070_v45 = vadd.f32 1.0, %v12945_v28 }
0x2919   :  { %12946 = vrcp.f32 %v7070_v45  ;;  %v7203_v45 = vstv %s7202_s28 }
0x291a   :  { %vm7204_vm9 = vcmp.eq.s32.totalorder %v7203_v45, 1 }
0x2923   :  { %v12947_v50 = vpop.eup %12946 }
0x2924   :  { %v7074_v34 = vmul.f32 %v12947_v50, %v14367_v53 }
0x2987   :  { %v7077_v31 = vpop.permute.xlu1 %7076 }
0x2988   :  { %v7079_v8 = vmul.f32 %v12947_v50, %v7077_v31 }
0x298a   :  { %7081 = vrot.lane.b32.xlu1 %v7079_v8, %s13057_s4 }
0x29fc   :  { %v7082_v27 = vpop.permute.xlu1 %7081 }
0x29fd   :  { %v14477_v0 = vadd.f32 %v7082_v27, %v7074_v34  ;;  %v7201_v34 = vld [vmem:[%s15055_s25] sm:$0x3] }
0x29ff   :  { %12948 = vtanh.f32 %v14477_v0 }
0x2a09   :  { %v12949_v41 = vpop.eup %12948 }
0x2a0a   :  { %7087 = vrot.lane.b32.xlu1 %v12949_v41, %s13056_s0 }
0x2a7c   :  { %v7088_v29 = vpop.permute.xlu1 %7087 }
0x2a7d   :  { %v7090_v33 = vmul.f32 %v12947_v50, %v7088_v29 }
0x2a7f   :  { %7103 = vrot.lane.b32.xlu1 %v7090_v33, %s13057_s4 }
0x2a83   :  { %7294 = vrot.lane.b32.xlu1 %v14213_v11, %s13064_s30 }
0x2af1   :  { %v14484_v46 = vpop.permute.xlu1 %7103 }
0x2af2   :  { %11833 = vmatmul.mubr.msk.f32.vlgmr.msra.gmra.mrb[76].mxu1 %vm176_vm6, %v14484_v46 }
0x2af3   :  { %12536 = vmatpush3.bf16.msk.msra.mxu1 %vm14192_vm10, %v14154_v42  ;;  %11848 = vmatprep.mubr.msk.f32.mxu1 %vm13051_vm0, %v13052_v7 }
0x2af4   :  { %12537 = vmatprep.subr.bf16.mxu1 %v13050_v5 }
0x2af5   :  { %v7295_v53 = vpop.permute.xlu1 %7294 }
0x2af6   :  { %v7297_v37 = vmul.f32 %v7295_v53, %v7090_v33 }
0x2af8   :  { %7299 = vrot.lane.b32.xlu1 %v7297_v37, %s13057_s4 }
0x2b6a   :  { %v7300_v60 = vpop.permute.xlu1 %7299 }
0x2b6b   :  { %v7302_v4 = vsel %vm5977_vm11, %v7300_v60, 0.0 }
0x2b6c   :  { %7303 = vadd.xlane.f32.xlu0 %v7302_v4 }
0x2bc5   :  { %v7173_v54 = vpop.f32.mrb[76].mxu1 }
0x2bc6   :  { %v7174_v40 = vadd.f32 %v14411_v1, %v7173_v54  ;;  %v11834_v10 = vpop.f32.mrb[77].mxu1 }
0x2bc8   :  { %7178 = vst.msk [vmem:[#allocation6 + $0x4] sm:$0x3] %vm5884_vm5, %v7174_v40  ;;  %v7179_v43 = vsel %vm5884_vm5, %v7174_v40, -inf }
0x2bc9   :  { %7180 = vmax.xlane.f32.xlu1 %v7179_v43 }
0x2bf9   :  { %v7304_v48 = vpop.xlane.xlu0 %7303 }
0x2bfa   :  { %v7305_v9 = vadd.f32 %v7304_v48, %v14223_v16 }
0x2bfc   :  { %v7306_v6 = vmax.f32 %v7305_v9, 0.0 }
0x2bfe   :  { %v7307_v52 = vsel %vm6010_vm14, %v7306_v6, -inf }
0x2bff   :  { %7308 = vmax.xlane.f32.xlu1 %v7307_v52 }
0x2c56   :  { %v7181_v26 = vpop.xlane.xlu1 %7180 }
0x2c57   :  { %vm7182_vm15 = vcmp.eq.f32.partialorder %v7174_v40, %v7181_v26 }
0x2c58   :  { %v7183_v30 = vsel %vm7182_vm15, %v13254_v17, 24 }
0x2c59   :  { %v7184_v3 = vsel %vm5884_vm5, %v7183_v30, 2147483647 }
0x2c5a   :  { %v7186_v62 = vshra.s32 %v7184_v3, 16  ;;  %v7185_v13 = vand.u32 65535, %v7184_v3 }
0x2c5c   :  { %v7188_v38 = vcvt.s32.f32 %v7186_v62  ;;  %v7187_v49 = vcvt.s32.f32 %v7185_v13 }
0x2c5e   :  { %7189 = vmin.xlane.f32.xlu0 %v7188_v38 }
0x2c8c   :  { %v7309_v2 = vpop.xlane.xlu1 %7308 }
0x2c8d   :  { %v7310_v20 = vsub.f32 %v7306_v6, %v7309_v2 }
0x2c8f   :  { %v7311_v57 = vmul.f32 1.442695, %v7310_v20 }
0x2c91   :  { %12950 = vpow2.f32 %v7311_v57 }
0x2c9b   :  { %v12951_v25 = vpop.eup %12950 }
0x2c9c   :  { %v7313_v14 = vsel %vm6010_vm14, %v12951_v25, 0.0 }
0x2c9d   :  { %7314 = vadd.xlane.f32.xlu1 %v7313_v14 }
0x2ceb   :  { %v7190_v47 = vpop.xlane.xlu0 %7189 }
0x2cec   :  { %vm7191_vm8 = vcmp.eq.f32.partialorder %v7188_v38, %v7190_v47  ;;  %v7196_v28 = vcvt.f32.s32 %v7190_v47 }
0x2ced   :  { %v7192_v22 = vsel %vm7191_vm8, %v7187_v49, inf }
0x2cee   :  { %7193 = vmin.xlane.f32.xlu0 %v7192_v22  ;;  %v7197_v31 = vshll.u32 %v7196_v28, 16 }
0x2d2a   :  { %v7315_v35 = vpop.xlane.xlu1 %7314 }
0x2d2b   :  { %12952 = vrcp.f32 %v7315_v35 }
0x2d35   :  { %v12953_v44 = vpop.eup %12952 }
0x2d36   :  { %v7317_v18 = vmul.f32 %v12953_v44, %v12951_v25 }
0x2d38   :  { %11849 = vmatmul.mubr.msk.f32.vlgmr.msra.gmra.mrb[78].mxu1 %vm6022_vm2, %v7317_v18  ;;  %v7391_v39 = vrot.slane %v7317_v18, 1 }
0x2d39   :  { %12540 = vmatpush3.bf16.msk.msra.mxu1 %vm14192_vm10, %v14272_v63  ;;  %11855 = vmatprep.mubr.msk.f32.mxu1 %vm13051_vm0, %v13052_v7 }
0x2d3a   :  { %12544 = vmatprep.subr.bf16.mxu1 %v13050_v5 }
0x2d3c   :  { %11856 = vmatmul.mubr.msk.f32.vlgmr.msra.gmra.mrb[80].mxu1 %vm6022_vm2, %v7391_v39 }
0x2d3d   :  { %12546 = vmatpush3.bf16.msra.mxu1 %v14281_v12  ;;  %11881 = vmatprep.mubr.msk.f32.mxu1 %vm13051_vm0, %v13052_v7 }
0x2d3e   :  { %12547 = vmatprep.subr.bf16.mxu1 %v13050_v5 }
0x2d41   :  { %12549 = vmatpush3.bf16.msra.mxu1 %v14295_v59 }
0x2d42   :  { %12550 = vmatprep.subr.bf16.mxu1 %v13050_v5 }
0x2d45   :  { %12552 = vmatpush3.bf16.msra.mxu1 %v14305_v36 }
0x2d46   :  { %12553 = vmatprep.subr.bf16.mxu1 %v13050_v5 }
0x2d49   :  { %12555 = vmatpush3.bf16.msra.mxu1 %v14315_v23 }
0x2d4a   :  { %12568 = vmatprep.subr.bf16.mxu1 %v13050_v5 }
0x2d7b   :  { %v7194_v50 = vpop.xlane.xlu0 %7193 }
0x2d7c   :  { %v7195_v8 = vcvt.f32.s32 %v7194_v50 }
0x2d7e   :  { %v7198_v27 = vadd.s32 %v7197_v31, %v7195_v8 }
0x2d80   :  { %v7205_v41 = vsel %vm7204_vm9, %v7201_v34, %v7198_v27 }
0x2d81   :  { %7207 = vperm.xlu0 %12760, %v7205_v41  }
0x2d85   :  { %12762 = vset.pattern.permute.xlu0 %v13062_v56 }
0x2e00   :  { %v7208_v29 = vpop.permute.xlu0 %7207 }
0x2e01   :  { %vm7209_vm12 = vcmp.eq.s32.totalorder %v13254_v17, %v7208_v29 }
0x2e02   :  { %v10551_v33 = vsel %vm7209_vm12, 1.0, %v13052_v7 }
0x2e03   :  { %11842 = vmatmul.mubr.msk.f32.vlgmr.msra.gmra.mrb[78].mxu0 %vm96_vm1, %v10551_v33 }
0x2e04   :  { %12543 = vmatpush3.bf16.msra.mxu0 %v14257_v32  ;;  %11862 = vmatprep.mubr.msk.f32.mxu0 %vm13051_vm0, %v13052_v7 }
0x2e05   :  { %12556 = vmatprep.subr.bf16.mxu0 %v13050_v5 }
0x2e0b   :  { %v7387_v53 = vpop.f32.mrb[78].mxu1 }
0x2e0c   :  { %v11850_v37 = vpop.f32.mrb[79].mxu1 }
0x2e0f   :  { %v7460_v60 = vpop.f32.mrb[80].mxu1 }
0x2e10   :  { %v7465_v4 = vrot.slane %v7460_v60, 7  ;;  %v11857_v54 = vpop.f32.mrb[81].mxu1 }
0x2e12   :  { %v7467_v56 = vsel %vm6179_vm3, %v7387_v53, %v7465_v4 }
0x2e13   :  { %11882 = vmatmul.mubr.msk.f32.vlgmr.msra.gmra.mrb[82].mxu1 %vm5856_vm7, %v7467_v56 }
0x2e14   :  { %11912 = vmatprep.mubr.msk.f32.mxu1 %vm13051_vm0, %v13052_v7 }
0x2ed6   :  { %v7284_v40 = vpop.f32.mrb[78].mxu0 }
0x2ed7   :  { %v11843_v10 = vpop.f32.mrb[79].mxu0  ;;  %11863 = vmatmul.mubr.msk.f32.vlgmr.msra.gmra.mrb[80].mxu0 %vm250_vm4, %v7284_v40 }
0x2ed8   :  { %12558 = vmatpush3.bf16.msra.mxu0 %v14325_v24  ;;  %11892 = vmatprep.mubr.msk.f32.mxu0 %vm13051_vm0, %v13052_v7 }
0x2ed9   :  { %12559 = vmatprep.subr.bf16.mxu0 %v13050_v5 }
0x2edc   :  { %12561 = vmatpush3.bf16.msra.mxu0 %v14335_v21 }
0x2edd   :  { %12562 = vmatprep.subr.bf16.mxu0 %v13050_v5 }
0x2edf   :  { %11893 = vmatmul.mubr.msk.f32.vlgmr.msra.gmra.mrb[82].mxu0 %vm176_vm6, %v14484_v46 }
0x2ee0   :  { %12564 = vmatpush3.bf16.msra.mxu0 %v14379_v51  ;;  %11903 = vmatprep.mubr.msk.f32.mxu0 %vm13051_vm0, %v13052_v7 }
0x2ee1   :  { %12565 = vmatprep.subr.bf16.mxu0 %v13050_v5 }
0x2ee4   :  { %12567 = vmatpush3.bf16.msra.mxu0 %v14385_v19 }
0x2ee5   :  { %12571 = vmatprep.subr.bf16.mxu0 %v13050_v5 }
0x2ee6   :  { %v7620_v32 = vpop.f32.mrb[82].mxu1 }
0x2ee7   :  { %v11883_v24 = vpop.f32.mrb[83].mxu1 }
0x2faa   :  { %v7547_v43 = vpop.f32.mrb[80].mxu0 }
0x2fab   :  { %v7621_v21 = vadd.f32 %v7620_v32, %v7547_v43  ;;  %v11864_v48 = vpop.f32.mrb[81].mxu0  ;;  %v7852_v43 = vld [vmem:[%s15016_s14] sm:$0xff] }
0x2fb2   :  { %v7694_v9 = vpop.f32.mrb[82].mxu0 }
0x2fb3   :  { %v7698_v6 = vadd.f32 %v7694_v9, %v7621_v21  ;;  %v11894_v52 = vpop.f32.mrb[83].mxu0  ;;  %v7853_v21 = vld [vmem:[%s15016_s14 + $0x8] sm:$0xff] }
0x2fb4   :  { %v14589_v48 = vpack.c.bf16 %v7853_v21, %v7852_v43 }
0x2fb5   :  { %v7706_v46 = vadd.f32 %v14357_v55, %v7698_v6 }
0x2fb6   :  { %12570 = vmatpush3.bf16.msra.mxu1 %v14589_v48 }
0x2fb7   :  { %12954 = vtanh.f32 %v7706_v46  ;;  %v10562_v30 = vmul.f32 -1.442695, %v7706_v46  ;;  %11910 = vmatprep.subr.mxu1 %v13052_v7 }
0x2fb9   :  { %12956 = vpow2.f32 %v10562_v30 }
0x2fc1   :  { %v12955_v26 = vpop.eup %12954 }
0x2fc2   :  { %7716 = vrot.lane.b32.xlu1 %v12955_v26, %s13056_s0  ;;  %v7843_v26 = vstv %s7842_s17 }
0x2fc3   :  { %v12957_v3 = vpop.eup %12956  ;;  %vm7844_vm8 = vcmp.eq.s32.totalorder %v7843_v26, 1 }
0x2fc4   :  { %v7710_v62 = vadd.f32 1.0, %v12957_v3 }
0x2fc6   :  { %12958 = vrcp.f32 %v7710_v62 }
0x2fd0   :  { %v12959_v38 = vpop.eup %12958 }
0x2fd1   :  { %v7714_v57 = vmul.f32 %v12959_v38, %v14477_v0 }
0x3034   :  { %v7717_v2 = vpop.permute.xlu1 %7716 }
0x3035   :  { %v7719_v20 = vmul.f32 %v12959_v38, %v7717_v2  ;;  %v8116_v2 = vld [vmem:[%s15020_s19] sm:$0xff] }
0x3037   :  { %7721 = vrot.lane.b32.xlu1 %v7719_v20, %s13057_s4  ;;  %v8117_v20 = vld [vmem:[%s15020_s19 + $0x8] sm:$0xff] }
0x30a9   :  { %v7722_v25 = vpop.permute.xlu1 %7721 }
0x30aa   :  { %v14556_v14 = vadd.f32 %v7722_v25, %v7714_v57  ;;  %v14628_v25 = vpack.c.bf16 %v8117_v20, %v8116_v2 }
0x30ac   :  { %12960 = vtanh.f32 %v14556_v14 }
0x30b6   :  { %v12961_v13 = vpop.eup %12960 }
0x30b7   :  { %7727 = vrot.lane.b32.xlu1 %v12961_v13, %s13056_s0 }
0x3129   :  { %v7728_v47 = vpop.permute.xlu1 %7727 }
0x312a   :  { %v7730_v49 = vmul.f32 %v12959_v38, %v7728_v47 }
0x312c   :  { %7743 = vrot.lane.b32.xlu1 %v7730_v49, %s13057_s4 }
0x3130   :  { %7934 = vrot.lane.b32.xlu1 %v14213_v11, %s13064_s30 }
0x319e   :  { %v14563_v22 = vpop.permute.xlu1 %7743 }
0x319f   :  { %11904 = vmatmul.mubr.msk.f32.vlgmr.msra.gmra.mrb[84].mxu0 %vm176_vm6, %v14563_v22 }
0x31a0   :  { %12574 = vmatpush3.bf16.msk.msra.mxu0 %vm14192_vm10, %v14154_v42  ;;  %11919 = vmatprep.mubr.msk.f32.mxu0 %vm13051_vm0, %v13052_v7 }
0x31a1   :  { %12575 = vmatprep.subr.bf16.mxu0 %v13050_v5 }
0x31a2   :  { %v7935_v0 = vpop.permute.xlu1 %7934 }
0x31a3   :  { %v7937_v35 = vmul.f32 %v7935_v0, %v7730_v49 }
0x31a5   :  { %7939 = vrot.lane.b32.xlu1 %v7937_v35, %s13057_s4 }
0x3217   :  { %v7940_v44 = vpop.permute.xlu1 %7939 }
0x3218   :  { %v7942_v11 = vsel %vm5977_vm11, %v7940_v44, 0.0 }
0x3219   :  { %7943 = vadd.xlane.f32.xlu0 %v7942_v11 }
0x3272   :  { %v7813_v18 = vpop.f32.mrb[84].mxu0 }
0x3273   :  { %v7814_v39 = vadd.f32 %v14411_v1, %v7813_v18  ;;  %v11905_v28 = vpop.f32.mrb[85].mxu0  ;;  %v8264_v18 = vld [vmem:[%s15021_s20] sm:$0xff] }
0x3275   :  { %7818 = vst.msk [vmem:[#allocation6 + $0x6] sm:$0x3] %vm5884_vm5, %v7814_v39  ;;  %v7819_v45 = vsel %vm5884_vm5, %v7814_v39, -inf }
0x3276   :  { %7820 = vmax.xlane.f32.xlu1 %v7819_v45  ;;  %v8266_v45 = vld [vmem:[%s15021_s20 + $0x10] sm:$0xff] }
0x32a6   :  { %v7944_v50 = vpop.xlane.xlu0 %7943 }
0x32a7   :  { %v7945_v31 = vadd.f32 %v7944_v50, %v14223_v16  ;;  %v8267_v50 = vld [vmem:[%s15021_s20 + $0x18] sm:$0xff] }
0x32a9   :  { %v7946_v8 = vmax.f32 %v7945_v31, 0.0 }
0x32ab   :  { %v7947_v34 = vsel %vm6010_vm14, %v7946_v8, -inf }
0x32ac   :  { %7948 = vmax.xlane.f32.xlu0 %v7947_v34  ;;  %v14661_v34 = vpack.c.bf16 %v8267_v50, %v8266_v45 }
0x3303   :  { %v7821_v27 = vpop.xlane.xlu1 %7820 }
0x3304   :  { %vm7822_vm13 = vcmp.eq.f32.partialorder %v7814_v39, %v7821_v27  ;;  %v8265_v39 = vld [vmem:[%s15021_s20 + $0x8] sm:$0xff] }
0x3305   :  { %v7823_v41 = vsel %vm7822_vm13, %v13254_v17, 24  ;;  %v14651_v28 = vpack.c.bf16 %v8265_v39, %v8264_v18 }
0x3306   :  { %v7824_v29 = vsel %vm5884_vm5, %v7823_v41, 2147483647 }
0x3307   :  { %v7826_v33 = vshra.s32 %v7824_v29, 16  ;;  %v7825_v40 = vand.u32 65535, %v7824_v29 }
0x3309   :  { %v7828_v53 = vcvt.s32.f32 %v7826_v33  ;;  %v7827_v32 = vcvt.s32.f32 %v7825_v40 }
0x330b   :  { %7829 = vmin.xlane.f32.xlu1 %v7828_v53 }
0x3339   :  { %v7949_v37 = vpop.xlane.xlu0 %7948 }
0x333a   :  { %v7950_v60 = vsub.f32 %v7946_v8, %v7949_v37 }
0x333c   :  { %v7951_v4 = vmul.f32 1.442695, %v7950_v60 }
0x333e   :  { %12962 = vpow2.f32 %v7951_v4 }
0x3348   :  { %v12963_v54 = vpop.eup %12962 }
0x3349   :  { %v7953_v56 = vsel %vm6010_vm14, %v12963_v54, 0.0 }
0x334a   :  { %7954 = vadd.xlane.f32.xlu0 %v7953_v56 }
0x3398   :  { %v7830_v10 = vpop.xlane.xlu1 %7829 }
0x3399   :  { %vm7831_vm15 = vcmp.eq.f32.partialorder %v7828_v53, %v7830_v10 }
0x339a   :  { %v7832_v24 = vsel %vm7831_vm15, %v7827_v32, inf }
0x339b   :  { %7833 = vmin.xlane.f32.xlu1 %v7832_v24 }
0x33d7   :  { %v7955_v9 = vpop.xlane.xlu0 %7954 }
0x33d8   :  { %12964 = vrcp.f32 %v7955_v9  ;;  %v14687_v9 = vld [vmem:[%s15017_s15] ss:$0 sm:$0xff] }
0x33e2   :  { %v12965_v6 = vpop.eup %12964 }
0x33e3   :  { %v7957_v52 = vmul.f32 %v12965_v6, %v12963_v54 }
0x33e5   :  { %11920 = vmatmul.mubr.msk.f32.vlgmr.msra.gmra.mrb[86].mxu0 %vm6022_vm2, %v7957_v52  ;;  %v8031_v46 = vrot.slane %v7957_v52, 1 }
0x33e6   :  { %12578 = vmatpush3.bf16.msk.msra.mxu0 %vm14192_vm10, %v14272_v63  ;;  %11926 = vmatprep.mubr.msk.f32.mxu0 %vm13051_vm0, %v13052_v7 }
0x33e7   :  { %12582 = vmatprep.subr.bf16.mxu0 %v13050_v5 }
0x33e9   :  { %11927 = vmatmul.mubr.msk.f32.vlgmr.msra.gmra.mrb[88].mxu0 %vm6022_vm2, %v8031_v46 }
0x33ea   :  { %12584 = vmatpush3.bf16.msra.mxu0 %v14281_v12  ;;  %11952 = vmatprep.mubr.msk.f32.mxu0 %vm13051_vm0, %v13052_v7  ;;  %v7836_v12 = vcvt.f32.s32 %v7830_v10 }
0x33eb   :  { %12585 = vmatprep.subr.bf16.mxu0 %v13050_v5 }
0x33ec   :  { %v7837_v3 = vshll.u32 %v7836_v12, 16 }
0x33ee   :  { %12587 = vmatpush3.bf16.msra.mxu0 %v14295_v59  ;;  %v7841_v59 = vld [vmem:[%s15055_s25] sm:$0x3] }
0x33ef   :  { %12588 = vmatprep.subr.bf16.mxu0 %v13050_v5 }
0x33f2   :  { %12590 = vmatpush3.bf16.msra.mxu0 %v14305_v36 }
0x33f3   :  { %12591 = vmatprep.subr.bf16.mxu0 %v13050_v5 }
0x33f6   :  { %12593 = vmatpush3.bf16.msra.mxu0 %v14315_v23  ;;  %v14617_v23 = vld [vmem:[%s15016_s14 + $0x10] sm:$0xff] }
0x33f7   :  { %12606 = vmatprep.subr.bf16.mxu0 %v13050_v5  ;;  %11911 = vmatpush3.msra.mxu1 %v14617_v23 }
0x33f8   :  { %12579 = vmatprep.subr.bf16.mxu1 %v13050_v5 }
0x3428   :  { %v7834_v30 = vpop.xlane.xlu1 %7833 }
0x3429   :  { %v7835_v62 = vcvt.f32.s32 %v7834_v30 }
0x342b   :  { %v7838_v36 = vadd.s32 %v7837_v3, %v7835_v62 }
0x342d   :  { %v7845_v38 = vsel %vm7844_vm8, %v7841_v59, %v7838_v36 }
0x342e   :  { %7847 = vperm.xlu1 %12761, %v7845_v38  }
0x3432   :  { %12764 = vset.pattern.permute.xlu1 %v13061_v61 }
0x34ad   :  { %v7848_v57 = vpop.permute.xlu1 %7847 }
0x34ae   :  { %vm7849_vm9 = vcmp.eq.s32.totalorder %v13254_v17, %v7848_v57 }
0x34af   :  { %v10566_v13 = vsel %vm7849_vm9, 1.0, %v13052_v7 }
0x34b0   :  { %11913 = vmatmul.mubr.msk.f32.vlgmr.msra.gmra.mrb[84].mxu1 %vm96_vm1, %v10566_v13 }
0x34b1   :  { %12581 = vmatpush3.bf16.msra.mxu1 %v14628_v25  ;;  %11933 = vmatprep.mubr.msk.f32.mxu1 %vm13051_vm0, %v13052_v7 }
0x34b2   :  { %12594 = vmatprep.subr.bf16.mxu1 %v13050_v5 }
0x34b8   :  { %v8027_v47 = vpop.f32.mrb[86].mxu0 }
0x34b9   :  { %v11921_v49 = vpop.f32.mrb[87].mxu0 }
0x34bc   :  { %v8100_v0 = vpop.f32.mrb[88].mxu0 }
0x34bd   :  { %v8105_v35 = vrot.slane %v8100_v0, 7  ;;  %v11928_v44 = vpop.f32.mrb[89].mxu0 }
0x34bf   :  { %v8107_v11 = vsel %vm6179_vm3, %v8027_v47, %v8105_v35 }
0x34c0   :  { %11953 = vmatmul.mubr.msk.f32.vlgmr.msra.gmra.mrb[90].mxu0 %vm5856_vm7, %v8107_v11 }
0x34c1   :  { %12608 = vmatpush3.bf16.msra.mxu0 %v14589_v48  ;;  %11983 = vmatprep.mubr.msk.f32.mxu0 %vm13051_vm0, %v13052_v7 }
0x34c2   :  { %11981 = vmatprep.subr.mxu0 %v13052_v7 }
0x34c5   :  { %11982 = vmatpush3.msra.mxu0 %v14617_v23 }
0x34c6   :  { %12617 = vmatprep.subr.bf16.mxu0 %v13050_v5 }
0x3583   :  { %v7924_v31 = vpop.f32.mrb[84].mxu1 }
0x3584   :  { %v11914_v8 = vpop.f32.mrb[85].mxu1  ;;  %11934 = vmatmul.mubr.msk.f32.vlgmr.msra.gmra.mrb[86].mxu1 %vm250_vm4, %v7924_v31 }
0x3585   :  { %12596 = vmatpush3.bf16.msra.mxu1 %v14651_v28  ;;  %11963 = vmatprep.mubr.msk.f32.mxu1 %vm13051_vm0, %v13052_v7 }
0x3586   :  { %12597 = vmatprep.subr.bf16.mxu1 %v13050_v5 }
0x3589   :  { %12599 = vmatpush3.bf16.msra.mxu1 %v14661_v34 }
0x358a   :  { %12600 = vmatprep.subr.bf16.mxu1 %v13050_v5 }
0x358c   :  { %11964 = vmatmul.mubr.msk.f32.vlgmr.msra.gmra.mrb[88].mxu1 %vm176_vm6, %v14563_v22 }
0x358d   :  { %12602 = vmatpush3.bf16.msra.mxu1 %v14379_v51  ;;  %11974 = vmatprep.mubr.msk.f32.mxu1 %vm13051_vm0, %v13052_v7 }
0x358e   :  { %12603 = vmatprep.subr.bf16.mxu1 %v13050_v5 }
0x3591   :  { %12605 = vmatpush3.bf16.msra.mxu1 %v14385_v19 }
0x3592   :  { %12609 = vmatprep.subr.bf16.mxu1 %v13050_v5 }
0x3593   :  { %v8260_v27 = vpop.f32.mrb[90].mxu0 }
0x3594   :  { %v11954_v41 = vpop.f32.mrb[91].mxu0 }
0x3657   :  { %v8187_v29 = vpop.f32.mrb[86].mxu1 }
0x3658   :  { %v8261_v33 = vadd.f32 %v8260_v27, %v8187_v29  ;;  %v11935_v53 = vpop.f32.mrb[87].mxu1 }
0x3659   :  { %v8749_v53 = vld [vmem:[%s15019_s18 + $0x8] sm:$0xff] }
0x365f   :  { %v8334_v37 = vpop.f32.mrb[88].mxu1 }
0x3660   :  { %v8338_v60 = vadd.f32 %v8334_v37, %v8261_v33  ;;  %v11965_v4 = vpop.f32.mrb[89].mxu1  ;;  %v8748_v33 = vld [vmem:[%s15019_s18] sm:$0xff] }
0x3661   :  { %v14724_v37 = vpack.c.bf16 %v8749_v53, %v8748_v33  ;;  %v8750_v4 = vld [vmem:[%s15019_s18 + $0x10] sm:$0xff] }
0x3662   :  { %v8346_v22 = vadd.f32 %v14357_v55, %v8338_v60 }
0x3664   :  { %12966 = vtanh.f32 %v8346_v22  ;;  %v10577_v54 = vmul.f32 -1.442695, %v8346_v22  ;;  %v8751_v22 = vld [vmem:[%s15019_s18 + $0x18] sm:$0xff] }
0x3666   :  { %12968 = vpow2.f32 %v10577_v54  ;;  %v8752_v54 = vld [vmem:[%s15019_s18 + $0x20] sm:$0xff] }
0x366e   :  { %v12967_v51 = vpop.eup %12966 }
0x366f   :  { %8356 = vrot.lane.b32.xlu0 %v12967_v51, %s13056_s0  ;;  %v14735_v51 = vpack.c.bf16 %v8751_v22, %v8750_v4  ;;  %v9012_v4 = vld [vmem:[%s15023_s22 + $0x8] sm:$0xff]  ;;  %v9013_v22 = vld [vmem:[%s15023_s22 + $0x10] sm:$0xff] }
0x3670   :  { %v12969_v56 = vpop.eup %12968 }
0x3671   :  { %v8350_v19 = vadd.f32 1.0, %v12969_v56  ;;  %v8753_v56 = vld [vmem:[%s15019_s18 + $0x28] sm:$0xff] }
0x3673   :  { %12970 = vrcp.f32 %v8350_v19  ;;  %v14748_v19 = vpack.c.bf16 %v8753_v56, %v8752_v54 }
0x367d   :  { %v12971_v40 = vpop.eup %12970 }
0x367e   :  { %v8354_v24 = vmul.f32 %v12971_v40, %v14556_v14 }
0x36e1   :  { %v8357_v10 = vpop.permute.xlu0 %8356 }
0x36e2   :  { %v8359_v32 = vmul.f32 %v12971_v40, %v8357_v10  ;;  %v8755_v10 = vld [vmem:[%s15019_s18 + $0x38] sm:$0xff] }
0x36e4   :  { %8361 = vrot.lane.b32.xlu1 %v8359_v32, %s13057_s4 }
0x3756   :  { %v8362_v43 = vpop.permute.xlu1 %8361 }
0x3757   :  { %v14680_v21 = vadd.f32 %v8362_v43, %v8354_v24  ;;  %v8483_v43 = vstv %s8482_s27 }
0x3758   :  { %vm8484_vm15 = vcmp.eq.s32.totalorder %v8483_v43, 1 }
0x3759   :  { %12972 = vtanh.f32 %v14680_v21 }
0x3763   :  { %v12973_v55 = vpop.eup %12972 }
0x3764   :  { %8367 = vrot.lane.b32.xlu1 %v12973_v55, %s13056_s0 }
0x3768   :  { %8574 = vrot.lane.b32.xlu1 %v14687_v9, %s13064_s30 }
0x37d6   :  { %v8368_v6 = vpop.permute.xlu1 %8367 }
0x37d7   :  { %v8370_v52 = vmul.f32 %v12971_v40, %v8368_v6  ;;  %v8754_v40 = vld [vmem:[%s15019_s18 + $0x30] sm:$0xff] }
0x37d8   :  { %v14758_v32 = vpack.c.bf16 %v8755_v10, %v8754_v40 }
0x37d9   :  { %8383 = vrot.lane.b32.xlu0 %v8370_v52, %s13057_s4 }
0x37da   :  { %v8575_v14 = vpop.permute.xlu1 %8574 }
0x37db   :  { %v8577_v46 = vmul.f32 %v8575_v14, %v8370_v52  ;;  %v8481_v14 = vld [vmem:[%s15055_s25] sm:$0x3] }
0x37dd   :  { %8579 = vrot.lane.b32.xlu0 %v8577_v46, %s13057_s4 }
0x384b   :  { %v14693_v12 = vpop.permute.xlu0 %8383 }
0x384c   :  { %11975 = vmatmul.mubr.msk.f32.vlgmr.msra.gmra.mrb[90].mxu1 %vm176_vm6, %v14693_v12 }
0x384d   :  { %12612 = vmatpush3.bf16.msk.msra.mxu1 %vm14192_vm10, %v14154_v42  ;;  %11990 = vmatprep.mubr.msk.f32.mxu1 %vm13051_vm0, %v13052_v7 }
0x384e   :  { %12613 = vmatprep.subr.bf16.mxu1 %v13050_v5 }
0x384f   :  { %v8580_v26 = vpop.permute.xlu0 %8579 }
0x3850   :  { %v8582_v30 = vsel %vm5977_vm11, %v8580_v26, 0.0 }
0x3851   :  { %8583 = vadd.xlane.f32.xlu0 %v8582_v30 }
0x38de   :  { %v8584_v3 = vpop.xlane.xlu0 %8583 }
0x38df   :  { %v8585_v62 = vadd.f32 %v8584_v3, %v14223_v16 }
0x38e1   :  { %v8586_v2 = vmax.f32 %v8585_v62, 0.0 }
0x38e3   :  { %v8587_v57 = vsel %vm6010_vm14, %v8586_v2, -inf }
0x391f   :  { %v8453_v59 = vpop.f32.mrb[90].mxu1 }
0x3920   :  { %v8454_v36 = vadd.f32 %v14411_v1, %v8453_v59  ;;  %v11976_v38 = vpop.f32.mrb[91].mxu1 }
0x3922   :  { %8458 = vst.msk [vmem:[#allocation6 + $0x8] sm:$0x3] %vm5884_vm5, %v8454_v36  ;;  %v8459_v20 = vsel %vm5884_vm5, %v8454_v36, -inf }
0x3923   :  { %8460 = vmax.xlane.f32.xlu1 %v8459_v20 }
0x3927   :  { %8588 = vmax.xlane.f32.xlu1 %v8587_v57 }
0x39b0   :  { %v8461_v13 = vpop.xlane.xlu1 %8460 }
0x39b1   :  { %vm8462_vm12 = vcmp.eq.f32.partialorder %v8454_v36, %v8461_v13 }
0x39b2   :  { %v8463_v47 = vsel %vm8462_vm12, %v13254_v17, 24 }
0x39b3   :  { %v8464_v49 = vsel %vm5884_vm5, %v8463_v47, 2147483647 }
0x39b4   :  { %v8466_v0 = vshra.s32 %v8464_v49, 16  ;;  %v8589_v35 = vpop.xlane.xlu1 %8588  ;;  %v8465_v45 = vand.u32 65535, %v8464_v49 }
0x39b5   :  { %v8590_v44 = vsub.f32 %v8586_v2, %v8589_v35 }
0x39b6   :  { %v8468_v1 = vcvt.s32.f32 %v8466_v0  ;;  %v8467_v31 = vcvt.s32.f32 %v8465_v45 }
0x39b7   :  { %v8591_v11 = vmul.f32 1.442695, %v8590_v44 }
0x39b8   :  { %8469 = vmin.xlane.f32.xlu0 %v8468_v1 }
0x39b9   :  { %12974 = vpow2.f32 %v8591_v11 }
0x39c3   :  { %v12975_v18 = vpop.eup %12974 }
0x39c4   :  { %v8593_v39 = vsel %vm6010_vm14, %v12975_v18, 0.0 }
0x39c5   :  { %8594 = vadd.xlane.f32.xlu1 %v8593_v39 }
0x3a45   :  { %v8470_v50 = vpop.xlane.xlu0 %8469 }
0x3a46   :  { %vm8471_vm13 = vcmp.eq.f32.partialorder %v8468_v1, %v8470_v50  ;;  %v8476_v24 = vcvt.f32.s32 %v8470_v50  ;;  %v14795_v1 = vld [vmem:[%s15022_s21] ss:$0 sm:$0xff] }
0x3a47   :  { %v8472_v8 = vsel %vm8471_vm13, %v8467_v31, inf }
0x3a48   :  { %8473 = vmin.xlane.f32.xlu0 %v8472_v8  ;;  %v8477_v6 = vshll.u32 %v8476_v24, 16 }
0x3a52   :  { %v8595_v27 = vpop.xlane.xlu1 %8594 }
0x3a53   :  { %12976 = vrcp.f32 %v8595_v27 }
0x3a5d   :  { %v12977_v41 = vpop.eup %12976 }
0x3a5e   :  { %v8597_v29 = vmul.f32 %v12977_v41, %v12975_v18 }
0x3a60   :  { %11991 = vmatmul.mubr.msk.f32.vlgmr.msra.gmra.mrb[92].mxu1 %vm6022_vm2, %v8597_v29  ;;  %v8671_v60 = vrot.slane %v8597_v29, 1 }
0x3a61   :  { %12616 = vmatpush3.bf16.msk.msra.mxu1 %vm14192_vm10, %v14272_v63  ;;  %11997 = vmatprep.mubr.msk.f32.mxu1 %vm13051_vm0, %v13052_v7 }
0x3a62   :  { %12620 = vmatprep.subr.bf16.mxu1 %v13050_v5 }
0x3a64   :  { %11998 = vmatmul.mubr.msk.f32.vlgmr.msra.gmra.mrb[94].mxu1 %vm6022_vm2, %v8671_v60  ;;  %v9011_v60 = vld [vmem:[%s15023_s22] sm:$0xff] }
0x3a65   :  { %12622 = vmatpush3.bf16.msra.mxu1 %v14724_v37  ;;  %12023 = vmatprep.mubr.msk.f32.mxu1 %vm13051_vm0, %v13052_v7  ;;  %v14813_v54 = vpack.c.bf16 %v9012_v4, %v9011_v60 }
0x3a66   :  { %12623 = vmatprep.subr.bf16.mxu1 %v13050_v5 }
0x3a69   :  { %12625 = vmatpush3.bf16.msra.mxu1 %v14735_v51 }
0x3a6a   :  { %12626 = vmatprep.subr.bf16.mxu1 %v13050_v5 }
0x3a6d   :  { %12628 = vmatpush3.bf16.msra.mxu1 %v14748_v19 }
0x3a6e   :  { %12629 = vmatprep.subr.bf16.mxu1 %v13050_v5 }
0x3a71   :  { %12631 = vmatpush3.bf16.msra.mxu1 %v14758_v32 }
0x3a72   :  { %12644 = vmatprep.subr.bf16.mxu1 %v13050_v5 }
0x3ad5   :  { %v8474_v55 = vpop.xlane.xlu0 %8473 }
0x3ad6   :  { %v8475_v52 = vcvt.f32.s32 %v8474_v55 }
0x3ad8   :  { %v8478_v46 = vadd.s32 %v8477_v6, %v8475_v52 }
0x3ada   :  { %v8485_v26 = vsel %vm8484_vm15, %v8481_v14, %v8478_v46  ;;  %v14843_v46 = vld [vmem:[%s15024_s23] ss:$0 sm:$0xff]  ;;  %s10595_s23 = sld [smem:[#allocation4 + $0x5]] }
0x3adb   :  { %8487 = vperm.xlu0 %12762, %v8485_v26  }
0x3adf   :  { %12763 = vset.pattern.permute.xlu0 %v13063_v15 }
0x3ae0   :  { %p9120_p9 = scmp.gt.s32.totalorder %s10595_s23, 0 }
0x3ae2   :  { %s9122_s12 = scalar_select %p9120_p9, 1, 0 }
0x3b33   :  { %v8667_v30 = vpop.f32.mrb[92].mxu1 }
0x3b34   :  { %v11992_v3 = vpop.f32.mrb[93].mxu1 }
0x3b37   :  { %v8740_v62 = vpop.f32.mrb[94].mxu1 }
0x3b38   :  { %v8745_v59 = vrot.slane %v8740_v62, 7  ;;  %v11999_v36 = vpop.f32.mrb[95].mxu1 }
0x3b3a   :  { %v8747_v38 = vsel %vm6179_vm3, %v8667_v30, %v8745_v59 }
0x3b3b   :  { %12024 = vmatmul.mubr.msk.f32.vlgmr.msra.gmra.mrb[96].mxu1 %vm5856_vm7, %v8747_v38 }
0x3b3c   :  { %12646 = vmatpush3.bf16.msra.mxu1 %v14589_v48  ;;  %12054 = vmatprep.mubr.msk.f32.mxu1 %vm13051_vm0, %v13052_v7 }
0x3b3d   :  { %12052 = vmatprep.subr.mxu1 %v13052_v7 }
0x3b40   :  { %12053 = vmatpush3.msra.mxu1 %v14617_v23 }
0x3b41   :  { %12655 = vmatprep.subr.bf16.mxu1 %v13050_v5 }
0x3b5a   :  { %v8488_v15 = vpop.permute.xlu0 %8487 }
0x3b5b   :  { %vm8489_vm8 = vcmp.eq.s32.totalorder %v13254_v17, %v8488_v15 }
0x3b5c   :  { %v10581_v2 = vsel %vm8489_vm8, 1.0, %v13052_v7 }
0x3b5d   :  { %11984 = vmatmul.mubr.msk.f32.vlgmr.msra.gmra.mrb[92].mxu0 %vm96_vm1, %v10581_v2 }
0x3b5e   :  { %12619 = vmatpush3.bf16.msra.mxu0 %v14628_v25  ;;  %12004 = vmatprep.mubr.msk.f32.mxu0 %vm13051_vm0, %v13052_v7 }
0x3b5f   :  { %12632 = vmatprep.subr.bf16.mxu0 %v13050_v5 }
0x3c0e   :  { %v8900_v20 = vpop.f32.mrb[96].mxu1 }
0x3c0f   :  { %v12025_v57 = vpop.f32.mrb[97].mxu1 }
0x3c30   :  { %v8564_v13 = vpop.f32.mrb[92].mxu0 }
0x3c31   :  { %v11985_v47 = vpop.f32.mrb[93].mxu0  ;;  %12005 = vmatmul.mubr.msk.f32.vlgmr.msra.gmra.mrb[94].mxu0 %vm250_vm4, %v8564_v13 }
0x3c32   :  { %12634 = vmatpush3.bf16.msra.mxu0 %v14651_v28  ;;  %12034 = vmatprep.mubr.msk.f32.mxu0 %vm13051_vm0, %v13052_v7 }
0x3c33   :  { %12635 = vmatprep.subr.bf16.mxu0 %v13050_v5 }
0x3c36   :  { %12637 = vmatpush3.bf16.msra.mxu0 %v14661_v34 }
0x3c37   :  { %12638 = vmatprep.subr.bf16.mxu0 %v13050_v5 }
0x3c39   :  { %12035 = vmatmul.mubr.msk.f32.vlgmr.msra.gmra.mrb[96].mxu0 %vm176_vm6, %v14693_v12 }
0x3c3a   :  { %12045 = vmatprep.mubr.msk.f32.mxu0 %vm13051_vm0, %v13052_v7  ;;  %12640 = vmatpush3.bf16.msra.mxu0 %v14813_v54 }
0x3c3b   :  { %12641 = vmatprep.subr.bf16.mxu0 %v13050_v5 }
0x3d04   :  { %v8827_v49 = vpop.f32.mrb[94].mxu0 }
0x3d05   :  { %v8901_v0 = vadd.f32 %v8900_v20, %v8827_v49  ;;  %v12006_v35 = vpop.f32.mrb[95].mxu0 }
0x3d0c   :  { %v8974_v44 = vpop.f32.mrb[96].mxu0 }
0x3d0d   :  { %v8978_v11 = vadd.f32 %v8974_v44, %v8901_v0  ;;  %v12036_v18 = vpop.f32.mrb[97].mxu0 }
0x3d0f   :  { %v8986_v39 = vadd.f32 %v14795_v1, %v8978_v11 }
0x3d11   :  { %12978 = vtanh.f32 %v8986_v39  ;;  %v10592_v12 = vmul.f32 -1.442695, %v8986_v39 }
0x3d13   :  { %12980 = vpow2.f32 %v10592_v12 }
0x3d1b   :  { %v12979_v45 = vpop.eup %12978 }
0x3d1c   :  { %8996 = vrot.lane.b32.xlu1 %v12979_v45, %s13056_s0 }
0x3d1d   :  { %v12981_v50 = vpop.eup %12980 }
0x3d1e   :  { %v8990_v31 = vadd.f32 1.0, %v12981_v50 }
0x3d20   :  { %12982 = vrcp.f32 %v8990_v31 }
0x3d2a   :  { %v12983_v8 = vpop.eup %12982 }
0x3d2b   :  { %v8994_v29 = vmul.f32 %v12983_v8, %v14680_v21  ;;  %v9014_v21 = vld [vmem:[%s15023_s22 + $0x18] sm:$0xff] }
0x3d2c   :  { %v14819_v56 = vpack.c.bf16 %v9014_v21, %v9013_v22  ;;  %v9121_v22 = vld [vmem:[%s15055_s25] sm:$0x3] }
0x3d2e   :  { %12643 = vmatpush3.bf16.msra.mxu0 %v14819_v56 }
0x3d2f   :  { %12647 = vmatprep.subr.bf16.mxu0 %v13050_v5 }
0x3d8e   :  { %v8997_v27 = vpop.permute.xlu1 %8996 }
0x3d8f   :  { %v8999_v41 = vmul.f32 %v12983_v8, %v8997_v27 }
0x3d91   :  { %9001 = vrot.lane.b32.xlu1 %v8999_v41, %s13057_s4 }
0x3e03   :  { %v9002_v33 = vpop.permute.xlu1 %9001 }
0x3e04   :  { %v14801_v53 = vadd.f32 %v9002_v33, %v8994_v29  ;;  %v9123_v29 = vstv %s9122_s12 }
0x3e05   :  { %vm9124_vm13 = vcmp.eq.s32.totalorder %v9123_v29, 1 }
0x3e06   :  { %12984 = vtanh.f32 %v14801_v53 }
0x3e10   :  { %v12985_v40 = vpop.eup %12984 }
0x3e11   :  { %9007 = vrot.lane.b32.xlu1 %v12985_v40, %s13056_s0 }
0x3e83   :  { %v9008_v10 = vpop.permute.xlu1 %9007 }
0x3e84   :  { %v9010_v24 = vmul.f32 %v12983_v8, %v9008_v10 }
0x3e86   :  { %9023 = vrot.lane.b32.xlu1 %v9010_v24, %s13057_s4 }
0x3e8a   :  { %9214 = vrot.lane.b32.xlu1 %v14687_v9, %s13064_s30 }
0x3ef8   :  { %v14828_v43 = vpop.permute.xlu1 %9023 }
0x3ef9   :  { %12046 = vmatmul.mubr.msk.f32.vlgmr.msra.gmra.mrb[98].mxu0 %vm176_vm6, %v14828_v43 }
0x3efa   :  { %12650 = vmatpush3.bf16.msk.msra.mxu0 %vm14192_vm10, %v14154_v42  ;;  %12061 = vmatprep.mubr.msk.f32.mxu0 %vm13051_vm0, %v13052_v7 }
0x3efb   :  { %12651 = vmatprep.subr.bf16.mxu0 %v13050_v5 }
0x3efc   :  { %v9215_v55 = vpop.permute.xlu1 %9214 }
0x3efd   :  { %v9217_v6 = vmul.f32 %v9215_v55, %v9010_v24 }
0x3eff   :  { %9219 = vrot.lane.b32.xlu1 %v9217_v6, %s13057_s4 }
0x3f71   :  { %v9220_v52 = vpop.permute.xlu1 %9219 }
0x3f72   :  { %v9222_v14 = vsel %vm5977_vm11, %v9220_v52, 0.0 }
0x3f73   :  { %9223 = vadd.xlane.f32.xlu0 %v9222_v14 }
0x3fcc   :  { %v9093_v26 = vpop.f32.mrb[98].mxu0 }
0x3fcd   :  { %v9094_v30 = vadd.f32 %v14843_v46, %v9093_v26  ;;  %v12047_v3 = vpop.f32.mrb[99].mxu0 }
0x3fcf   :  { %9098 = vst.msk [vmem:[#allocation6 + $0xa] sm:$0x3] %vm5884_vm5, %v9094_v30  ;;  %v9099_v62 = vsel %vm5884_vm5, %v9094_v30, -inf }
0x3fd0   :  { %9100 = vmax.xlane.f32.xlu1 %v9099_v62 }
0x4000   :  { %v9224_v59 = vpop.xlane.xlu0 %9223 }
0x4001   :  { %v9225_v36 = vadd.f32 %v9224_v59, %v14223_v16 }
0x4003   :  { %v9226_v38 = vmax.f32 %v9225_v36, 0.0 }
0x4005   :  { %v9227_v15 = vsel %vm6010_vm14, %v9226_v38, -inf }
0x4006   :  { %9228 = vmax.xlane.f32.xlu1 %v9227_v15 }
0x405d   :  { %v9101_v2 = vpop.xlane.xlu1 %9100 }
0x405e   :  { %vm9102_vm9 = vcmp.eq.f32.partialorder %v9094_v30, %v9101_v2 }
0x405f   :  { %v9103_v20 = vsel %vm9102_vm9, %v13254_v17, 24 }
0x4060   :  { %v9104_v57 = vsel %vm5884_vm5, %v9103_v20, 2147483647 }
0x4061   :  { %v9106_v13 = vshra.s32 %v9104_v57, 16  ;;  %v9105_v18 = vand.u32 65535, %v9104_v57 }
0x4063   :  { %v9108_v47 = vcvt.s32.f32 %v9106_v13  ;;  %v9107_v45 = vcvt.s32.f32 %v9105_v18 }
0x4065   :  { %9109 = vmin.xlane.f32.xlu0 %v9108_v47 }
0x4093   :  { %v9229_v49 = vpop.xlane.xlu1 %9228 }
0x4094   :  { %v9230_v0 = vsub.f32 %v9226_v38, %v9229_v49 }
0x4096   :  { %v9231_v35 = vmul.f32 1.442695, %v9230_v0 }
0x4098   :  { %12986 = vpow2.f32 %v9231_v35 }
0x40a2   :  { %v12987_v44 = vpop.eup %12986 }
0x40a3   :  { %v9233_v11 = vsel %vm6010_vm14, %v12987_v44, 0.0 }
0x40a4   :  { %9234 = vadd.xlane.f32.xlu1 %v9233_v11 }
0x40f2   :  { %v9110_v39 = vpop.xlane.xlu0 %9109 }
0x40f3   :  { %vm9111_vm12 = vcmp.eq.f32.partialorder %v9108_v47, %v9110_v39  ;;  %v9116_v41 = vcvt.f32.s32 %v9110_v39 }
0x40f4   :  { %v9112_v12 = vsel %vm9111_vm12, %v9107_v45, inf }
0x40f5   :  { %9113 = vmin.xlane.f32.xlu0 %v9112_v12  ;;  %v9117_v60 = vshll.u32 %v9116_v41, 16 }
0x4131   :  { %v9235_v50 = vpop.xlane.xlu1 %9234 }
0x4132   :  { %12988 = vrcp.f32 %v9235_v50 }
0x413c   :  { %v12989_v31 = vpop.eup %12988 }
0x413d   :  { %v9237_v8 = vmul.f32 %v12989_v31, %v12987_v44 }
0x413f   :  { %12062 = vmatmul.mubr.msk.f32.vlgmr.msra.gmra.mrb[100].mxu0 %vm6022_vm2, %v9237_v8  ;;  %v9311_v27 = vrot.slane %v9237_v8, 1 }
0x4140   :  { %12654 = vmatpush3.bf16.msk.msra.mxu0 %vm14192_vm10, %v14272_v63  ;;  %12068 = vmatprep.mubr.msk.f32.mxu0 %vm13051_vm0, %v13052_v7 }
0x4141   :  { %12658 = vmatprep.subr.bf16.mxu0 %v13050_v5 }
0x4143   :  { %12069 = vmatmul.mubr.msk.f32.vlgmr.msra.gmra.mrb[102].mxu0 %vm6022_vm2, %v9311_v27 }
0x4144   :  { %12660 = vmatpush3.bf16.msra.mxu0 %v14724_v37  ;;  %12094 = vmatprep.mubr.msk.f32.mxu0 %vm13051_vm0, %v13052_v7 }
0x4145   :  { %12661 = vmatprep.subr.bf16.mxu0 %v13050_v5 }
0x4148   :  { %12663 = vmatpush3.bf16.msra.mxu0 %v14735_v51 }
0x4149   :  { %12664 = vmatprep.subr.bf16.mxu0 %v13050_v5 }
0x414c   :  { %12666 = vmatpush3.bf16.msra.mxu0 %v14748_v19 }
0x414d   :  { %12667 = vmatprep.subr.bf16.mxu0 %v13050_v5 }
0x4150   :  { %12669 = vmatpush3.bf16.msra.mxu0 %v14758_v32 }
0x4151   :  { %12682 = vmatprep.subr.bf16.mxu0 %v13050_v5 }
0x4182   :  { %v9114_v33 = vpop.xlane.xlu0 %9113 }
0x4183   :  { %v9115_v4 = vcvt.f32.s32 %v9114_v33 }
0x4185   :  { %v9118_v21 = vadd.s32 %v9117_v60, %v9115_v4 }
0x4187   :  { %v9125_v40 = vsel %vm9124_vm13, %v9121_v22, %v9118_v21 }
0x4188   :  { %9127 = vperm.xlu0 %12763, %v9125_v40  }
0x418c   :  { %12765 = vset.pattern.permute.xlu0 %v13061_v61 }
0x4207   :  { %v9128_v10 = vpop.permute.xlu0 %9127 }
0x4208   :  { %vm9129_vm15 = vcmp.eq.s32.totalorder %v13254_v17, %v9128_v10 }
0x4209   :  { %v10596_v24 = vsel %vm9129_vm15, 1.0, %v13052_v7 }
0x420a   :  { %12055 = vmatmul.mubr.msk.f32.vlgmr.msra.gmra.mrb[98].mxu1 %vm96_vm1, %v10596_v24 }
0x420b   :  { %12657 = vmatpush3.bf16.msra.mxu1 %v14628_v25  ;;  %12075 = vmatprep.mubr.msk.f32.mxu1 %vm13051_vm0, %v13052_v7 }
0x420c   :  { %12670 = vmatprep.subr.bf16.mxu1 %v13050_v5 }
0x4212   :  { %v9307_v55 = vpop.f32.mrb[100].mxu0 }
0x4213   :  { %v12063_v6 = vpop.f32.mrb[101].mxu0 }
0x4216   :  { %v9380_v52 = vpop.f32.mrb[102].mxu0 }
0x4217   :  { %v9385_v14 = vrot.slane %v9380_v52, 7  ;;  %v12070_v26 = vpop.f32.mrb[103].mxu0 }
0x4219   :  { %v9387_v61 = vsel %vm6179_vm3, %v9307_v55, %v9385_v14 }
0x421a   :  { %12095 = vmatmul.mubr.msk.f32.vlgmr.msra.gmra.mrb[104].mxu0 %vm5856_vm7, %v9387_v61 }
0x421b   :  { %12684 = vmatpush3.bf16.msra.mxu0 %v14589_v48  ;;  %12125 = vmatprep.mubr.msk.f32.mxu0 %vm13051_vm0, %v13052_v7 }
0x421c   :  { %12123 = vmatprep.subr.mxu0 %v13052_v7 }
0x421f   :  { %12124 = vmatpush3.msra.mxu0 %v14617_v23 }
0x4220   :  { %12693 = vmatprep.subr.bf16.mxu0 %v13050_v5 }
0x42dd   :  { %v9204_v30 = vpop.f32.mrb[98].mxu1 }
0x42de   :  { %v12056_v3 = vpop.f32.mrb[99].mxu1  ;;  %12076 = vmatmul.mubr.msk.f32.vlgmr.msra.gmra.mrb[100].mxu1 %vm250_vm4, %v9204_v30 }
0x42df   :  { %12672 = vmatpush3.bf16.msra.mxu1 %v14651_v28  ;;  %12105 = vmatprep.mubr.msk.f32.mxu1 %vm13051_vm0, %v13052_v7 }
0x42e0   :  { %12673 = vmatprep.subr.bf16.mxu1 %v13050_v5 }
0x42e3   :  { %12675 = vmatpush3.bf16.msra.mxu1 %v14661_v34 }
0x42e4   :  { %12676 = vmatprep.subr.bf16.mxu1 %v13050_v5 }
0x42e6   :  { %12106 = vmatmul.mubr.msk.f32.vlgmr.msra.gmra.mrb[102].mxu1 %vm176_vm6, %v14828_v43 }
0x42e7   :  { %12678 = vmatpush3.bf16.msra.mxu1 %v14813_v54  ;;  %12116 = vmatprep.mubr.msk.f32.mxu1 %vm13051_vm0, %v13052_v7 }
0x42e8   :  { %12679 = vmatprep.subr.bf16.mxu1 %v13050_v5 }
0x42eb   :  { %12681 = vmatpush3.bf16.msra.mxu1 %v14819_v56 }
0x42ec   :  { %12685 = vmatprep.subr.bf16.mxu1 %v13050_v5 }
0x42ed   :  { %v9540_v48 = vpop.f32.mrb[104].mxu0 }
0x42ee   :  { %v12096_v23 = vpop.f32.mrb[105].mxu0 }
0x43b1   :  { %v9467_v62 = vpop.f32.mrb[100].mxu1 }
0x43b2   :  { %v9541_v59 = vadd.f32 %v9540_v48, %v9467_v62  ;;  %v12077_v36 = vpop.f32.mrb[101].mxu1 }
0x43b9   :  { %v9614_v38 = vpop.f32.mrb[102].mxu1 }
0x43ba   :  { %v9618_v15 = vadd.f32 %v9614_v38, %v9541_v59  ;;  %v12107_v2 = vpop.f32.mrb[103].mxu1 }
0x43bc   :  { %v9626_v43 = vadd.f32 %v14795_v1, %v9618_v15 }
0x43be   :  { %12990 = vtanh.f32 %v9626_v43  ;;  %v10607_v57 = vmul.f32 -1.442695, %v9626_v43 }
0x43c0   :  { %12992 = vpow2.f32 %v10607_v57 }
0x43c8   :  { %v12991_v20 = vpop.eup %12990 }
0x43c9   :  { %9636 = vrot.lane.b32.xlu1 %v12991_v20, %s13056_s0 }
0x43ca   :  { %v12993_v13 = vpop.eup %12992 }
0x43cb   :  { %v9630_v47 = vadd.f32 1.0, %v12993_v13 }
0x43cd   :  { %12994 = vrcp.f32 %v9630_v47 }
0x43d7   :  { %v12995_v49 = vpop.eup %12994 }
0x43d8   :  { %v9634_v44 = vmul.f32 %v12995_v49, %v14801_v53 }
0x443b   :  { %v9637_v0 = vpop.permute.xlu1 %9636 }
0x443c   :  { %v9639_v35 = vmul.f32 %v12995_v49, %v9637_v0 }
0x443e   :  { %9641 = vrot.lane.b32.xlu1 %v9639_v35, %s13057_s4 }
0x44b0   :  { %v9642_v11 = vpop.permute.xlu1 %9641 }
0x44b1   :  { %v14909_v18 = vadd.f32 %v9642_v11, %v9634_v44 }
0x44b3   :  { %12996 = vtanh.f32 %v14909_v18 }
0x44bd   :  { %v12997_v39 = vpop.eup %12996 }
0x44be   :  { %9647 = vrot.lane.b32.xlu1 %v12997_v39, %s13056_s0 }
0x4530   :  { %v9648_v45 = vpop.permute.xlu1 %9647 }
0x4531   :  { %v9650_v12 = vmul.f32 %v12995_v49, %v9648_v45 }
0x4533   :  { %9663 = vrot.lane.b32.xlu1 %v9650_v12, %s13057_s4 }
0x4537   :  { %9854 = vrot.lane.b32.xlu1 %v14687_v9, %s13064_s30  ;;  %s10610_s30 = sld [smem:[#allocation4 + $0x6]] }
0x453d   :  { %p9760_p10 = scmp.gt.s32.totalorder %s10610_s30, 0 }
0x453f   :  { %s9762_s1 = scalar_select %p9760_p10, 1, 0 }
0x45a5   :  { %v14916_v50 = vpop.permute.xlu1 %9663 }
0x45a6   :  { %12117 = vmatmul.mubr.msk.f32.vlgmr.msra.gmra.mrb[104].mxu1 %vm176_vm6, %v14916_v50 }
0x45a7   :  { %12688 = vmatpush3.bf16.msk.msra.mxu1 %vm14192_vm10, %v14154_v42  ;;  %12132 = vmatprep.mubr.msk.f32.mxu1 %vm13051_vm0, %v13052_v7 }
0x45a8   :  { %12689 = vmatprep.subr.bf16.mxu1 %v13050_v5 }
0x45a9   :  { %v9855_v53 = vpop.permute.xlu1 %9854 }
0x45aa   :  { %v9857_v31 = vmul.f32 %v9855_v53, %v9650_v12 }
0x45ac   :  { %9859 = vrot.lane.b32.xlu1 %v9857_v31, %s13057_s4 }
0x461e   :  { %v9860_v8 = vpop.permute.xlu1 %9859 }
0x461f   :  { %v9862_v9 = vsel %vm5977_vm11, %v9860_v8, 0.0 }
0x4620   :  { %9863 = vadd.xlane.f32.xlu0 %v9862_v9 }
0x4679   :  { %v9733_v27 = vpop.f32.mrb[104].mxu1 }
0x467a   :  { %v9734_v41 = vadd.f32 %v14843_v46, %v9733_v27  ;;  %v12118_v29 = vpop.f32.mrb[105].mxu1 }
0x467c   :  { %9738 = vst.msk [vmem:[#allocation6 + $0xc] sm:$0x3] %vm5884_vm5, %v9734_v41  ;;  %v9739_v42 = vsel %vm5884_vm5, %v9734_v41, -inf }
0x467d   :  { %9740 = vmax.xlane.f32.xlu1 %v9739_v42 }
0x46ad   :  { %v9864_v33 = vpop.xlane.xlu0 %9863 }
0x46ae   :  { %v9865_v60 = vadd.f32 %v9864_v33, %v14223_v16 }
0x46b0   :  { %v9866_v4 = vmax.f32 %v9865_v60, 0.0 }
0x46b2   :  { %v9867_v22 = vsel %vm6010_vm14, %v9866_v4, -inf }
0x46b3   :  { %9868 = vmax.xlane.f32.xlu0 %v9867_v22 }
0x470a   :  { %v9741_v21 = vpop.xlane.xlu1 %9740 }
0x470b   :  { %vm9742_vm8 = vcmp.eq.f32.partialorder %v9734_v41, %v9741_v21 }
0x470c   :  { %v9743_v40 = vsel %vm9742_vm8, %v13254_v17, 24 }
0x470d   :  { %v9744_v10 = vsel %vm5884_vm5, %v9743_v40, 2147483647 }
0x470e   :  { %v9746_v24 = vshra.s32 %v9744_v10, 16  ;;  %v9745_v61 = vand.u32 65535, %v9744_v10 }
0x4710   :  { %v9748_v55 = vcvt.s32.f32 %v9746_v24  ;;  %v9747_v3 = vcvt.s32.f32 %v9745_v61 }
0x4712   :  { %9749 = vmin.xlane.f32.xlu1 %v9748_v55 }
0x4740   :  { %v9869_v6 = vpop.xlane.xlu0 %9868 }
0x4741   :  { %v9870_v52 = vsub.f32 %v9866_v4, %v9869_v6 }
0x4743   :  { %v9871_v14 = vmul.f32 1.442695, %v9870_v52 }
0x4745   :  { %12998 = vpow2.f32 %v9871_v14 }
0x474f   :  { %v12999_v26 = vpop.eup %12998 }
0x4750   :  { %v9873_v16 = vsel %vm6010_vm14, %v12999_v26, 0.0 }
0x4751   :  { %9874 = vadd.xlane.f32.xlu0 %v9873_v16 }
0x479f   :  { %v9750_v30 = vpop.xlane.xlu1 %9749 }
0x47a0   :  { %vm9751_vm11 = vcmp.eq.f32.partialorder %v9748_v55, %v9750_v30  ;;  %v9756_v58 = vcvt.f32.s32 %v9750_v30 }
0x47a1   :  { %v9752_v48 = vsel %vm9751_vm11, %v9747_v3, inf }
0x47a2   :  { %9753 = vmin.xlane.f32.xlu1 %v9752_v48  ;;  %v9757_v38 = vshll.u32 %v9756_v58, 16 }
0x47de   :  { %v9875_v23 = vpop.xlane.xlu0 %9874 }
0x47df   :  { %13000 = vrcp.f32 %v9875_v23 }
0x47e9   :  { %v13001_v62 = vpop.eup %13000 }
0x47ea   :  { %v9877_v59 = vmul.f32 %v13001_v62, %v12999_v26 }
0x47ec   :  { %12133 = vmatmul.mubr.msk.f32.vlgmr.msra.gmra.mrb[106].mxu1 %vm6022_vm2, %v9877_v59  ;;  %v9951_v36 = vrot.slane %v9877_v59, 1 }
0x47ed   :  { %12692 = vmatpush3.bf16.msk.msra.mxu1 %vm14192_vm10, %v14272_v63  ;;  %12139 = vmatprep.mubr.msk.f32.mxu1 %vm13051_vm0, %v13052_v7  ;;  %v9763_v63 = vstv %s9762_s1 }
0x47ee   :  { %12696 = vmatprep.subr.bf16.mxu1 %v13050_v5  ;;  %vm9764_vm10 = vcmp.eq.s32.totalorder %v9763_v63, 1 }
0x47f0   :  { %12140 = vmatmul.mubr.msk.f32.vlgmr.msra.gmra.mrb[108].mxu1 %vm6022_vm2, %v9951_v36 }
0x47f1   :  { %12698 = vmatpush3.bf16.msra.mxu1 %v14724_v37  ;;  %12165 = vmatprep.mubr.msk.f32.mxu1 %vm13051_vm0, %v13052_v7 }
0x47f2   :  { %12699 = vmatprep.subr.bf16.mxu1 %v13050_v5 }
0x47f5   :  { %12701 = vmatpush3.bf16.msra.mxu1 %v14735_v51  ;;  %v9761_v51 = vld [vmem:[%s15055_s25] sm:$0x3]  ;;  %s13066_s25 = smov [#allocation6]  }
0x47f6   :  { %12702 = vmatprep.subr.bf16.mxu1 %v13050_v5  ;;  %s10384_s19 = sshll.u32 %s13066_s25, 4  ;;  %s10385_s19 = int_to_ptr.vmem [resolvable:$true] %s10384_s19 }
0x47f7   :  { %s13022_s5 = scalar_lea.vmem %s10385_s19, 256  ;;  %p13027_p12 = scmp.lt.s32.totalorder %s10385_s19, %s10385_s19 }
0x47f8   :  { %p13023_p11 = scmp.ne.s32.totalorder %s10385_s19, %s13022_s5  ;;  %p13028_p13 = scmp.lt.s32.totalorder %s13022_s5, %s13022_s5 }
0x47f9   :  { %12704 = vmatpush3.bf16.msra.mxu1 %v14748_v19 }
0x47fa   :  { %12705 = vmatprep.subr.bf16.mxu1 %v13050_v5  ;;  %p13029_p0 = por %p13028_p13, %p13027_p12 }
0x47fc   :  { %p13030_p1 = pnand %p13029_p0, %p13023_p11 }
0x47fd   :  { %12707 = vmatpush3.bf16.msra.mxu1 %v14758_v32 }
0x482f   :  { %v9754_v37 = vpop.xlane.xlu1 %9753 }
0x4830   :  { %v9755_v15 = vcvt.f32.s32 %v9754_v37 }
0x4832   :  { %v9758_v2 = vadd.s32 %v9757_v38, %v9755_v15 }
0x4834   :  { %v9765_v43 = vsel %vm9764_vm10, %v9761_v51, %v9758_v2 }
0x4835   :  { %9767 = vperm.xlu1 %12764, %v9765_v43  }
0x48b4   :  { %v9768_v19 = vpop.permute.xlu1 %9767 }
0x48b5   :  { %vm9769_vm14 = vcmp.eq.s32.totalorder %v13254_v17, %v9768_v19 }
0x48b6   :  { %v10611_v32 = vsel %vm9769_vm14, 1.0, %v13052_v7 }
0x48b7   :  { %12126 = vmatmul.mubr.msk.f32.vlgmr.msra.gmra.mrb[106].mxu0 %vm96_vm1, %v10611_v32 }
0x48b8   :  { %12695 = vmatpush3.bf16.msra.mxu0 %v14628_v25  ;;  %12146 = vmatprep.mubr.msk.f32.mxu0 %vm13051_vm0, %v13052_v7 }
0x48b9   :  { %12708 = vmatprep.subr.bf16.mxu0 %v13050_v5 }
0x48bf   :  { %v9947_v20 = vpop.f32.mrb[106].mxu1 }
0x48c0   :  { %v12134_v57 = vpop.f32.mrb[107].mxu1 }
0x48c3   :  { %v10020_v13 = vpop.f32.mrb[108].mxu1 }
0x48c4   :  { %v10025_v47 = vrot.slane %v10020_v13, 7  ;;  %v12141_v49 = vpop.f32.mrb[109].mxu1 }
0x48c6   :  { %v10027_v0 = vsel %vm6179_vm3, %v9947_v20, %v10025_v47 }
0x48c7   :  { %12166 = vmatmul.mubr.msk.f32.vlgmr.msra.gmra.mrb[110].mxu1 %vm5856_vm7, %v10027_v0 }
0x498a   :  { %v9844_v17 = vpop.f32.mrb[106].mxu0 }
0x498b   :  { %v12127_v35 = vpop.f32.mrb[107].mxu0  ;;  %12147 = vmatmul.mubr.msk.f32.vlgmr.msra.gmra.mrb[108].mxu0 %vm250_vm4, %v9844_v17 }
0x498c   :  { %12710 = vmatpush3.bf16.msra.mxu0 %v14651_v28  ;;  %12176 = vmatprep.mubr.msk.f32.mxu0 %vm13051_vm0, %v13052_v7 }
0x498d   :  { %12711 = vmatprep.subr.bf16.mxu0 %v13050_v5 }
0x4990   :  { %12713 = vmatpush3.bf16.msra.mxu0 %v14661_v34 }
0x4991   :  { %12714 = vmatprep.subr.bf16.mxu0 %v13050_v5 }
0x4993   :  { %12177 = vmatmul.mubr.msk.f32.vlgmr.msra.gmra.mrb[110].mxu0 %vm176_vm6, %v14916_v50 }
0x4994   :  { %12716 = vmatpush3.bf16.msra.mxu0 %v14813_v54  ;;  %12187 = vmatprep.mubr.msk.f32.mxu0 %vm13051_vm0, %v13052_v7 }
0x4995   :  { %12717 = vmatprep.subr.bf16.mxu0 %v13050_v5 }
0x4998   :  { %12719 = vmatpush3.bf16.msra.mxu0 %v14819_v56 }
0x499a   :  { %v10180_v25 = vpop.f32.mrb[110].mxu1 }
0x499b   :  { %v12167_v28 = vpop.f32.mrb[111].mxu1 }
0x4a5e   :  { %v10107_v44 = vpop.f32.mrb[108].mxu0 }
0x4a5f   :  { %v10181_v11 = vadd.f32 %v10180_v25, %v10107_v44  ;;  %v12148_v39 = vpop.f32.mrb[109].mxu0 }
0x4a66   :  { %v10254_v34 = vpop.f32.mrb[110].mxu0 }
0x4a67   :  { %v10258_v45 = vadd.f32 %v10254_v34, %v10181_v11  ;;  %v12178_v12 = vpop.f32.mrb[111].mxu0 }
0x4a69   :  { %v10266_v53 = vadd.f32 %v14795_v1, %v10258_v45 }
0x4a6b   :  { %13002 = vtanh.f32 %v10266_v53  ;;  %v10622_v54 = vmul.f32 -1.442695, %v10266_v53 }
0x4a6d   :  { %13004 = vpow2.f32 %v10622_v54 }
0x4a75   :  { %v13003_v50 = vpop.eup %13002 }
0x4a76   :  { %10276 = vrot.lane.b32.xlu0 %v13003_v50, %s13056_s0 }
0x4a77   :  { %v13005_v7 = vpop.eup %13004 }
0x4a78   :  { %v10270_v5 = vadd.f32 1.0, %v13005_v7 }
0x4a7a   :  { %13006 = vrcp.f32 %v10270_v5 }
0x4a84   :  { %v13007_v56 = vpop.eup %13006 }
0x4a85   :  { %v10274_v9 = vmul.f32 %v13007_v56, %v14909_v18 }
0x4ae8   :  { %v10277_v31 = vpop.permute.xlu0 %10276 }
0x4ae9   :  { %v10279_v8 = vmul.f32 %v13007_v56, %v10277_v31 }
0x4aeb   :  { %10281 = vrot.lane.b32.xlu1 %v10279_v8, %s13057_s4 }
0x4b5d   :  { %v10282_v27 = vpop.permute.xlu1 %10281 }
0x4b5e   :  { %v10284_v41 = vadd.f32 %v10282_v27, %v10274_v9 }
0x4b60   :  { %13008 = vtanh.f32 %v10284_v41 }
0x4b6a   :  { %v13009_v1 = vpop.eup %13008 }
0x4b6b   :  { %10287 = vrot.lane.b32.xlu1 %v13009_v1, %s13056_s0 }
0x4bdd   :  { %v10288_v29 = vpop.permute.xlu1 %10287 }
0x4bde   :  { %v10290_v42 = vmul.f32 %v13007_v56, %v10288_v29 }
0x4be0   :  { %10303 = vrot.lane.b32.xlu0 %v10290_v42, %s13057_s4 }
0x4c52   :  { %v10304_v33 = vpop.permute.xlu0 %10303 }
0x4c53   :  { %12188 = vmatmul.mubr.msk.f32.vlgmr.msra.gmra.mrb[112].mxu0 %vm176_vm6, %v10304_v33 }
0x4d26   :  { %v10373_v60 = vpop.f32.mrb[112].mxu0 }
0x4d27   :  { %v10374_v4 = vadd.f32 %v14843_v46, %v10373_v60  ;;  %v12189_v22 = vpop.f32.mrb[113].mxu0 }
0x4d29   :  { %10378 = vst.msk [vmem:[#allocation6 + $0xe] sm:$0x3] %vm5884_vm5, %v10374_v4 }
0x4d2a   :  { %13033 = shalt.err (!%p13030_p1)
}
0x4d2b   :  { %s13034_s29 = scalar_lea.hbm %s15025_s24, 256 }
0x4d2c   :  { %p13035_p2 = scmp.ne.s32.totalorder %s15025_s24, %s13034_s29  ;;  %p13038_p3 = scmp.lt.u32.totalorder %s13034_s29, %s15025_s24 }
0x4d2e   :  { %p13040_p4 = pnand %p13038_p3, %p13035_p2 }
0x4d30   :  { %13043 = shalt.err (!%p13040_p4)
}
0x4d31   :  { %s13067_s20 = smov 2  }
0x4d32   :  { %10390 = dma.vmem_to_hbm [thread:$0]  %s10385_s19, 256, %s15025_s24, [#allocation7], %s13057_s4, %s13057_s4, %s13067_s20  }
0x4d33   :  { %13046 = dma.done.wait [#allocation7], 256  }
0x4d34   :  { %13047 = vsyncadd [#allocation7], 4294967040 }
0x4d35   :  { %10394 = vsyncpa [#allocation7], 1 }

</bundles_post_ra>
